<compile_context>
chip_gen: v7x
topology: tpu7x:2x2x1
jax: 0.10.0
libtpu: 0.0.40
codegen_flags: <defaults>
</compile_context>

<pallas_src>
import functools

import jax
import jax.numpy as jnp
from jax.experimental import pallas as pl
from jax.experimental.pallas import tpu as pltpu


def _bottleneck_kernel(x_ref, w1_ref, w2_ref, w3_ref, b1_ref, b2_ref, b3_ref,
                       mask_ref, o_ref, pad_ref, *, W, PAD):
    """One grid step = one tile of B_t whole images flattened to (M, C) rows.

    x_ref:   (M, Cp)       bf16 input rows (channels-last, lane-padded)
    w1_ref:  (Cp, wp)      bf16 1x1 conv1 weight (BN1 scale folded in)
    w2_ref:  (9*wp, wp)    bf16 3x3 conv2 weight, rows ordered (tap, cin)
    w3_ref:  (wp, Cp)      bf16 1x1 conv3 weight (BN3 scale folded in)
    b*_ref:  (1, C)        f32 folded BatchNorm bias
    mask_ref:(M, 16)       bf16 0/1 validity mask per (row, tap), taps 0..8
    o_ref:   (M, Cp)       bf16 output rows (Cout == Cin, identity residual)
    pad_ref: VMEM (M+2*PAD, wp) bf16 row-padded staging for the 3x3 taps
    """
    M = x_ref.shape[0]
    wp = w1_ref.shape[1]

    # ---- conv1 (1x1) + bn1 + relu (scale folded into w1 columns) ----------
    h1 = jnp.dot(x_ref[...], w1_ref[...], preferred_element_type=jnp.float32)
    h1 = jnp.maximum(h1 + b1_ref[...], 0.0)

    # Stage the activation in the row-padded bf16 scratch.  Halo rows are
    # zeroed so the multiplicative tap mask can never touch non-finite VMEM
    # garbage (interior cross-image rows are finite activations, so *0 == 0).
    pad_ref[:PAD, :] = jnp.zeros((PAD, wp), jnp.bfloat16)
    pad_ref[PAD + M:M + 2 * PAD, :] = jnp.zeros((PAD, wp), jnp.bfloat16)
    pad_ref[PAD:PAD + M, :] = h1.astype(jnp.bfloat16)

    # ---- conv2 (3x3, pad=1, stride=1): per-tap masked matmul accumulation --
    # TODO(synk): pair taps (K = 2*wp) to fill the 256-deep MXU on v6e/v7x and
    #             derive the dx=+-1 taps via pltpu.roll to keep loads aligned.
    h2 = None
    for dy in range(3):
        for dx in range(3):
            t = dy * 3 + dx
            s = (dy - 1) * W + (dx - 1)
            patch = pad_ref[PAD + s:PAD + s + M, :]          # (M, wp) bf16
            patch = patch * mask_ref[:, t:t + 1]             # 0/1 lane broadcast
            part = jnp.dot(patch, w2_ref[t * wp:(t + 1) * wp, :],
                           preferred_element_type=jnp.float32)
            h2 = part if h2 is None else h2 + part
    h2 = jnp.maximum(h2 + b2_ref[...], 0.0)

    # ---- conv3 (1x1) + bn3 + residual add + relu ---------------------------
    # Re-read the resident x block for the residual instead of keeping a wide
    # copy live across all three matmuls (lower vreg/VMEM pressure).
    h3 = jnp.dot(h2.astype(jnp.bfloat16), w3_ref[...],
                 preferred_element_type=jnp.float32)
    y = jnp.maximum(h3 + b3_ref[...] + x_ref[...].astype(jnp.float32), 0.0)
    o_ref[...] = y.astype(jnp.bfloat16)


def _round_up(c, m=128):
    return max(m, ((c + m - 1) // m) * m)


def _vmem_limit_bytes():
    """~3/4 of physical VMEM, capped at 96 MiB (v5e/v6e: 96 MiB, v7x: 48 MiB)."""
    phys = 64 * 1024 * 1024            # conservative default (v7x)
    try:
        info = pltpu.get_tpu_info()
        phys = int(getattr(info, "vmem_capacity_bytes", phys))
    except Exception:
        pass
    return int(min(96 * 1024 * 1024, (phys // 4) * 3))


def _pick_batch_tile(n, hw, target_rows=1024):
    """Largest divisor of n with a sublane-aligned row tile <= target_rows.

    Prefers an even number of grid steps (load-balances v7x's 2 TensorCores).
    Falls back to a single full-array block if no aligned divisor exists
    (block == full dims is always legal).
    """
    aligned = [d for d in range(1, n + 1) if n % d == 0 and (d * hw) % 8 == 0]
    if not aligned:
        return n
    fit = [d for d in aligned if d * hw <= target_rows] or [min(aligned)]
    even = [d for d in fit if (n // d) % 2 == 0]
    return max(even) if even else max(fit)


def _tap_masks(m_tile, H, W):
    """(m_tile, 16) bf16 0/1 validity mask per (row, tap); taps row-major dy,dx."""
    hw = H * W
    r = jnp.arange(m_tile, dtype=jnp.int32)
    local = r % hw
    hh = local // W
    ww = local % W
    cols = []
    for dy in (-1, 0, 1):
        for dx in (-1, 0, 1):
            cols.append((hh + dy >= 0) & (hh + dy < H) &
                        (ww + dx >= 0) & (ww + dx < W))
    m = jnp.stack(cols, axis=1).astype(jnp.bfloat16)        # (m_tile, 9)
    return jnp.pad(m, ((0, 0), (0, 16 - 9)))                # (m_tile, 16)


def prepare_bottleneck_params(w1, w2, w3, s1, b1, s2, b2, s3, b3):
    """Fold BN into the conv weights, pad to lane-dense bf16 matmul operands.

    w1: (Cin, width); w2: (3, 3, width, width) as (ky, kx, cin, cout);
    w3: (width, Cout); s*/b*: folded BatchNorm scale/bias per channel.
    (From PyTorch (O, I, kh, kw) weights: 1x1 -> transpose to (I, O),
     3x3 -> transpose to (kh, kw, I, O).)
    """
    f32 = jnp.float32
    Cin, width = w1.shape
    Cout = w3.shape[1]
    assert Cin == Cout, "identity residual path requires Cin == Cout"
    Cp = _round_up(Cin)
    wp = _round_up(width)

    w1f = w1.astype(f32) * s1.reshape(1, -1)
    w2f = w2.astype(f32) * s2.reshape(1, 1, 1, -1)
    w3f = w3.astype(f32) * s3.reshape(1, -1)

    w1p = jnp.pad(w1f, ((0, Cp - Cin), (0, wp - width))).astype(jnp.bfloat16)
    w2p = jnp.pad(w2f, ((0, 0), (0, 0), (0, wp - width), (0, wp - width)))
    w2p = w2p.reshape(9 * wp, wp).astype(jnp.bfloat16)       # rows = (tap, cin)
    w3p = jnp.pad(w3f, ((0, wp - width), (0, Cp - Cout))).astype(jnp.bfloat16)

    b1p = jnp.pad(b1.reshape(1, -1).astype(f32), ((0, 0), (0, wp - width)))
    b2p = jnp.pad(b2.reshape(1, -1).astype(f32), ((0, 0), (0, wp - width)))
    b3p = jnp.pad(b3.reshape(1, -1).astype(f32), ((0, 0), (0, Cp - Cout)))

    return dict(w1p=w1p, w2p=w2p, w3p=w3p, b1p=b1p, b2p=b2p, b3p=b3p,
                Cin=Cin, Cout=Cout, width=width, Cp=Cp, wp=wp)


def bottleneck_rows_pallas(x_rows, params, *, N, H, W, target_rows=1024):
    """Bottleneck on lane-dense rows: (N*H*W, Cp) bf16 in -> (N*H*W, Cp) bf16 out.

    Chained bottleneck blocks should stay in this layout (no NCHW round trips).
    """
    Cp, wp, Cout = params["Cp"], params["wp"], params["Cout"]
    hw = H * W
    assert x_rows.shape == (N * hw, Cp) and x_rows.dtype == jnp.bfloat16

    bt = _pick_batch_tile(N, hw, target_rows)
    m_tile = bt * hw
    n_tiles = (N * hw) // m_tile
    pad_rows = ((W + 1 + 15) // 16) * 16          # halo >= W+1, bf16-pack aligned
    maskp = _tap_masks(m_tile, H, W)

    kernel = functools.partial(_bottleneck_kernel, W=W, PAD=pad_rows)
    w1p, w2p, w3p = params["w1p"], params["w2p"], params["w3p"]
    b1p, b2p, b3p = params["b1p"], params["b2p"], params["b3p"]

    def _call(single_buffer_consts):
        def const(a):
            idx = lambda i: (0,) * a.ndim
            if single_buffer_consts:
                # Constant index_map -> double buffering is pure VMEM waste.
                return pl.BlockSpec(a.shape, idx, pipeline_mode=pl.Buffered(1))
            return pl.BlockSpec(a.shape, idx)

        return pl.pallas_call(
            kernel,
            out_shape=jax.ShapeDtypeStruct((N * hw, Cp), jnp.bfloat16),
            grid_spec=pltpu.PrefetchScalarGridSpec(
                num_scalar_prefetch=0,
                grid=(n_tiles,),
                in_specs=[
                    pl.BlockSpec((m_tile, Cp), lambda i: (i, 0)),
                    const(w1p), const(w2p), const(w3p),
                    const(b1p), const(b2p), const(b3p), const(maskp),
                ],
                out_specs=pl.BlockSpec((m_tile, Cp), lambda i: (i, 0)),
                scratch_shapes=[
                    pltpu.VMEM((m_tile + 2 * pad_rows, wp), jnp.bfloat16),
                ],
            ),
            compiler_params=pltpu.CompilerParams(
                dimension_semantics=("parallel",),
                vmem_limit_bytes=_vmem_limit_bytes()),
        )(x_rows, w1p, w2p, w3p, b1p, b2p, b3p, maskp)

    # Kept eager (no jit) so a pipeline_mode/Buffered(1) mismatch on older jax
    # is caught here and falls back to default double-buffered constant blocks.
    try:
        return _call(True)
    except Exception:
        return _call(False)


def bottleneck_pallas(x_nchw, w1, w2, w3, s1, b1, s2, b2, s3, b3):
    """Inference Bottleneck forward.  x_nchw: (N, Cin, H, W) f32 -> NCHW f32."""
    N, Cin, H, W = x_nchw.shape
    params = prepare_bottleneck_params(w1, w2, w3, s1, b1, s2, b2, s3, b3)
    Cp, Cout = params["Cp"], params["Cout"]
    hw = H * W

    # NCHW -> lane-dense bf16 (N*H*W, Cp) rows.
    x2d = jnp.transpose(x_nchw, (0, 2, 3, 1)).reshape(N * hw, Cin)
    x2d = jnp.pad(x2d.astype(jnp.bfloat16), ((0, 0), (0, Cp - Cin)))

    out2d = bottleneck_rows_pallas(x2d, params, N=N, H=H, W=W)

    out = out2d[:, :Cout].astype(jnp.float32).reshape(N, H, W, Cout)
    return jnp.transpose(out, (0, 3, 1, 2))                  # back to NCHW


def bottleneck_reference(x_nchw, w1, w2, w3, s1, b1, s2, b2, s3, b3):
    """Pure-JAX reference with matching numerics (bf16 matmuls & residual input)."""
    x = jnp.transpose(x_nchw, (0, 2, 3, 1)).astype(jnp.float32)
    _, H, W, _ = x.shape
    xb = x.astype(jnp.bfloat16)
    w1f = (w1 * s1.reshape(1, -1)).astype(jnp.bfloat16)
    w2f = (w2 * s2.reshape(1, 1, 1, -1)).astype(jnp.bfloat16)
    w3f = (w3 * s3.reshape(1, -1)).astype(jnp.bfloat16)

    h = jnp.einsum('nhwc,cd->nhwd', xb, w1f, preferred_element_type=jnp.float32)
    h = jax.nn.relu(h + b1.reshape(1, 1, 1, -1))
    hp = jnp.pad(h.astype(jnp.bfloat16), ((0, 0), (1, 1), (1, 1), (0, 0)))
    acc = jnp.zeros(h.shape[:-1] + (w2.shape[-1],), jnp.float32)
    for dy in range(3):
        for dx in range(3):
            acc = acc + jnp.einsum('nhwc,cd->nhwd',
                                   hp[:, dy:dy + H, dx:dx + W, :], w2f[dy, dx],
                                   preferred_element_type=jnp.float32)
    h = jax.nn.relu(acc + b2.reshape(1, 1, 1, -1))
    h = jnp.einsum('nhwc,cd->nhwd', h.astype(jnp.bfloat16), w3f,
                   preferred_element_type=jnp.float32)
    y = jax.nn.relu(h + b3.reshape(1, 1, 1, -1) + xb.astype(jnp.float32))
    return jnp.transpose(y, (0, 3, 1, 2))


def _fold_bn(gamma, beta, mean, var, eps=1e-5):
    scale = gamma * jax.lax.rsqrt(var + eps)
    bias = beta - mean * scale
    return scale.reshape(1, -1), bias.reshape(1, -1)


if __name__ == "__main__":
    # Module config: Bottleneck(in_channel=256, out_channel=64) -> width=64,
    # Cout=256, stride=1, downsample=None (identity add legal: Cin == 4*64).
    # This is the canonical ResNet-50 layer1 block shape at a small 8x8 spatial.
    N, H, W = 4, 8, 8
    out_channel = 64
    expansion = 4
    width = out_channel                       # groups=1, width_per_group=64
    Cin = Cout = out_channel * expansion

    key = jax.random.PRNGKey(0)
    keys = jax.random.split(key, 8)

    x = jax.random.normal(keys[0], (N, Cin, H, W), jnp.float32)

    # Conv weights stored matmul-ready: 1x1 -> (I, O), 3x3 -> (kh, kw, I, O).
    w1 = jax.random.normal(keys[1], (Cin, width), jnp.float32) / jnp.sqrt(1.0 * Cin)
    w2 = jax.random.normal(keys[2], (3, 3, width, width), jnp.float32) / jnp.sqrt(9.0 * width)
    w3 = jax.random.normal(keys[3], (width, Cout), jnp.float32) / jnp.sqrt(1.0 * width)

    def bn_params(k, c):
        ks = jax.random.split(k, 4)
        gamma = 1.0 + 0.1 * jax.random.normal(ks[0], (c,), jnp.float32)
        beta = 0.1 * jax.random.normal(ks[1], (c,), jnp.float32)
        mean = 0.1 * jax.random.normal(ks[2], (c,), jnp.float32)
        var = 1.0 + 0.1 * jnp.abs(jax.random.normal(ks[3], (c,), jnp.float32))
        return _fold_bn(gamma, beta, mean, var)

    s1, b1 = bn_params(keys[4], width)
    s2, b2 = bn_params(keys[5], width)
    s3, b3 = bn_params(keys[6], Cout)

    y = bottleneck_pallas(x, w1, w2, w3, s1, b1, s2, b2, s3, b3)
    y = jax.block_until_ready(y)

    y_ref = bottleneck_reference(x, w1, w2, w3, s1, b1, s2, b2, s3, b3)
    assert y.shape == (N, Cout, H, W)
    max_diff = jnp.max(jnp.abs(y - y_ref))
    # Kernel output is bf16 (rel ~2^-9); compare against the f32 reference.
    assert jnp.allclose(y, y_ref, atol=2e-2, rtol=2e-2), (
        f"mismatch vs reference: max |diff| = {max_diff}")

    print("KERNEL_OK")
</pallas_src>

<mosaic_0001>
module attributes {stable_mosaic.version = 11 : i64} {
  func.func @_bottleneck_kernel(%arg0: i32, %arg1: memref<128x256xbf16, #tpu.memory_space<vmem>>, %arg2: memref<256x128xbf16, #tpu.memory_space<vmem>>, %arg3: memref<1152x128xbf16, #tpu.memory_space<vmem>>, %arg4: memref<128x256xbf16, #tpu.memory_space<vmem>>, %arg5: memref<1x128xf32, #tpu.memory_space<vmem>>, %arg6: memref<1x128xf32, #tpu.memory_space<vmem>>, %arg7: memref<1x256xf32, #tpu.memory_space<vmem>>, %arg8: memref<128x16xbf16, #tpu.memory_space<vmem>>, %arg9: memref<128x256xbf16, #tpu.memory_space<vmem>>, %arg10: memref<160x128xbf16, #tpu.memory_space<vmem>>) attributes {dimension_semantics = [#tpu.dimension_semantics<parallel>], iteration_bounds = array<i64: 2>, scalar_prefetch = 0 : i64, scratch_operands = 1 : i64, tpu.core_type = #tpu.core_type<tc>, window_params = [{transform_indices = @transform_0, window_bounds = array<i64: 128, 256>}, {pipeline_mode = #tpu.pipeline_mode<synchronous>, transform_indices = @transform_1, window_bounds = array<i64: 256, 128>}, {pipeline_mode = #tpu.pipeline_mode<synchronous>, transform_indices = @transform_2, window_bounds = array<i64: 1152, 128>}, {pipeline_mode = #tpu.pipeline_mode<synchronous>, transform_indices = @transform_3, window_bounds = array<i64: 128, 256>}, {pipeline_mode = #tpu.pipeline_mode<synchronous>, transform_indices = @transform_4, window_bounds = array<i64: 1, 128>}, {pipeline_mode = #tpu.pipeline_mode<synchronous>, transform_indices = @transform_5, window_bounds = array<i64: 1, 128>}, {pipeline_mode = #tpu.pipeline_mode<synchronous>, transform_indices = @transform_6, window_bounds = array<i64: 1, 256>}, {pipeline_mode = #tpu.pipeline_mode<synchronous>, transform_indices = @transform_7, window_bounds = array<i64: 128, 16>}, {transform_indices = @transform_8, window_bounds = array<i64: 128, 256>}]} {
    %c0 = arith.constant 0 : index
    %c0_0 = arith.constant 0 : index
    %0 = vector.load %arg1[%c0, %c0_0] : memref<128x256xbf16, #tpu.memory_space<vmem>>, vector<128x256xbf16>
    %c0_1 = arith.constant 0 : index
    %c0_2 = arith.constant 0 : index
    %1 = vector.load %arg2[%c0_1, %c0_2] : memref<256x128xbf16, #tpu.memory_space<vmem>>, vector<256x128xbf16>
    %cst = arith.constant dense<0.000000e+00> : vector<128x128xf32>
    %2 = tpu.matmul %0, %1, %cst {dimension_numbers = #tpu.dot_dimension_numbers<[1], [0], [0], [1], [0, 0, 1, 1], [], []>} : vector<128x256xbf16>, vector<256x128xbf16>, vector<128x128xf32> -> vector<128x128xf32>
    %c0_3 = arith.constant 0 : index
    %c0_4 = arith.constant 0 : index
    %3 = vector.load %arg5[%c0_3, %c0_4] : memref<1x128xf32, #tpu.memory_space<vmem>>, vector<1x128xf32>
    %4 = vector.broadcast %3 : vector<1x128xf32> to vector<128x128xf32>
    %5 = arith.addf %2, %4 : vector<128x128xf32>
    %cst_5 = arith.constant 0.000000e+00 : f32
    %6 = vector.broadcast %cst_5 : f32 to vector<128x128xf32>
    %7 = arith.maximumf %5, %6 : vector<128x128xf32>
    %cst_6 = arith.constant 0.000000e+00 : bf16
    %8 = vector.broadcast %cst_6 : bf16 to vector<16x128xbf16>
    %c0_7 = arith.constant 0 : index
    %c0_8 = arith.constant 0 : index
    %9 = vector.load %arg10[%c0_7, %c0_8] : memref<160x128xbf16, #tpu.memory_space<vmem>>, vector<16x128xbf16>
    tpu.vector_store %arg10[%c0_7, %c0_8], %8 {strides = array<i32>} : memref<160x128xbf16, #tpu.memory_space<vmem>>, vector<16x128xbf16>,
    %cst_9 = arith.constant 0.000000e+00 : bf16
    %10 = vector.broadcast %cst_9 : bf16 to vector<16x128xbf16>
    %c144 = arith.constant 144 : index
    %c0_10 = arith.constant 0 : index
    %11 = vector.load %arg10[%c144, %c0_10] : memref<160x128xbf16, #tpu.memory_space<vmem>>, vector<16x128xbf16>
    tpu.vector_store %arg10[%c144, %c0_10], %10 {strides = array<i32>} : memref<160x128xbf16, #tpu.memory_space<vmem>>, vector<16x128xbf16>,
    %12 = arith.truncf %7 : vector<128x128xf32> to vector<128x128xbf16>
    %c16 = arith.constant 16 : index
    %c0_11 = arith.constant 0 : index
    %13 = vector.load %arg10[%c16, %c0_11] : memref<160x128xbf16, #tpu.memory_space<vmem>>, vector<128x128xbf16>
    tpu.vector_store %arg10[%c16, %c0_11], %12 {strides = array<i32>} : memref<160x128xbf16, #tpu.memory_space<vmem>>, vector<128x128xbf16>,
    %c7 = arith.constant 7 : index
    %c0_12 = arith.constant 0 : index
    %14 = vector.load %arg10[%c7, %c0_12] : memref<160x128xbf16, #tpu.memory_space<vmem>>, vector<128x128xbf16>
    %c0_13 = arith.constant 0 : index
    %c0_14 = arith.constant 0 : index
    %15 = vector.load %arg8[%c0_13, %c0_14] : memref<128x16xbf16, #tpu.memory_space<vmem>>, vector<128x1xbf16>
    %16 = vector.broadcast %15 : vector<128x1xbf16> to vector<128x128xbf16>
    %17 = arith.mulf %14, %16 : vector<128x128xbf16>
    %c0_15 = arith.constant 0 : index
    %c0_16 = arith.constant 0 : index
    %18 = vector.load %arg3[%c0_15, %c0_16] : memref<1152x128xbf16, #tpu.memory_space<vmem>>, vector<128x128xbf16>
    %cst_17 = arith.constant dense<0.000000e+00> : vector<128x128xf32>
    %19 = tpu.matmul %17, %18, %cst_17 {dimension_numbers = #tpu.dot_dimension_numbers<[1], [0], [0], [1], [0, 0, 1, 1], [], []>} : vector<128x128xbf16>, vector<128x128xbf16>, vector<128x128xf32> -> vector<128x128xf32>
    %c8 = arith.constant 8 : index
    %c0_18 = arith.constant 0 : index
    %20 = vector.load %arg10[%c8, %c0_18] : memref<160x128xbf16, #tpu.memory_space<vmem>>, vector<128x128xbf16>
    %c0_19 = arith.constant 0 : index
    %c1 = arith.constant 1 : index
    %21 = vector.load %arg8[%c0_19, %c1] : memref<128x16xbf16, #tpu.memory_space<vmem>>, vector<128x1xbf16>
    %22 = vector.broadcast %21 : vector<128x1xbf16> to vector<128x128xbf16>
    %23 = arith.mulf %20, %22 : vector<128x128xbf16>
    %c128 = arith.constant 128 : index
    %c0_20 = arith.constant 0 : index
    %24 = vector.load %arg3[%c128, %c0_20] : memref<1152x128xbf16, #tpu.memory_space<vmem>>, vector<128x128xbf16>
    %cst_21 = arith.constant dense<0.000000e+00> : vector<128x128xf32>
    %25 = tpu.matmul %23, %24, %cst_21 {dimension_numbers = #tpu.dot_dimension_numbers<[1], [0], [0], [1], [0, 0, 1, 1], [], []>} : vector<128x128xbf16>, vector<128x128xbf16>, vector<128x128xf32> -> vector<128x128xf32>
    %26 = arith.addf %19, %25 : vector<128x128xf32>
    %c9 = arith.constant 9 : index
    %c0_22 = arith.constant 0 : index
    %27 = vector.load %arg10[%c9, %c0_22] : memref<160x128xbf16, #tpu.memory_space<vmem>>, vector<128x128xbf16>
    %c0_23 = arith.constant 0 : index
    %c2 = arith.constant 2 : index
    %28 = vector.load %arg8[%c0_23, %c2] : memref<128x16xbf16, #tpu.memory_space<vmem>>, vector<128x1xbf16>
    %29 = vector.broadcast %28 : vector<128x1xbf16> to vector<128x128xbf16>
    %30 = arith.mulf %27, %29 : vector<128x128xbf16>
    %c256 = arith.constant 256 : index
    %c0_24 = arith.constant 0 : index
    %31 = vector.load %arg3[%c256, %c0_24] : memref<1152x128xbf16, #tpu.memory_space<vmem>>, vector<128x128xbf16>
    %cst_25 = arith.constant dense<0.000000e+00> : vector<128x128xf32>
    %32 = tpu.matmul %30, %31, %cst_25 {dimension_numbers = #tpu.dot_dimension_numbers<[1], [0], [0], [1], [0, 0, 1, 1], [], []>} : vector<128x128xbf16>, vector<128x128xbf16>, vector<128x128xf32> -> vector<128x128xf32>
    %33 = arith.addf %26, %32 : vector<128x128xf32>
    %c15 = arith.constant 15 : index
    %c0_26 = arith.constant 0 : index
    %34 = vector.load %arg10[%c15, %c0_26] : memref<160x128xbf16, #tpu.memory_space<vmem>>, vector<128x128xbf16>
    %c0_27 = arith.constant 0 : index
    %c3 = arith.constant 3 : index
    %35 = vector.load %arg8[%c0_27, %c3] : memref<128x16xbf16, #tpu.memory_space<vmem>>, vector<128x1xbf16>
    %36 = vector.broadcast %35 : vector<128x1xbf16> to vector<128x128xbf16>
    %37 = arith.mulf %34, %36 : vector<128x128xbf16>
    %c384 = arith.constant 384 : index
    %c0_28 = arith.constant 0 : index
    %38 = vector.load %arg3[%c384, %c0_28] : memref<1152x128xbf16, #tpu.memory_space<vmem>>, vector<128x128xbf16>
    %cst_29 = arith.constant dense<0.000000e+00> : vector<128x128xf32>
    %39 = tpu.matmul %37, %38, %cst_29 {dimension_numbers = #tpu.dot_dimension_numbers<[1], [0], [0], [1], [0, 0, 1, 1], [], []>} : vector<128x128xbf16>, vector<128x128xbf16>, vector<128x128xf32> -> vector<128x128xf32>
    %40 = arith.addf %33, %39 : vector<128x128xf32>
    %c16_30 = arith.constant 16 : index
    %c0_31 = arith.constant 0 : index
    %41 = vector.load %arg10[%c16_30, %c0_31] : memref<160x128xbf16, #tpu.memory_space<vmem>>, vector<128x128xbf16>
    %c0_32 = arith.constant 0 : index
    %c4 = arith.constant 4 : index
    %42 = vector.load %arg8[%c0_32, %c4] : memref<128x16xbf16, #tpu.memory_space<vmem>>, vector<128x1xbf16>
    %43 = vector.broadcast %42 : vector<128x1xbf16> to vector<128x128xbf16>
    %44 = arith.mulf %41, %43 : vector<128x128xbf16>
    %c512 = arith.constant 512 : index
    %c0_33 = arith.constant 0 : index
    %45 = vector.load %arg3[%c512, %c0_33] : memref<1152x128xbf16, #tpu.memory_space<vmem>>, vector<128x128xbf16>
    %cst_34 = arith.constant dense<0.000000e+00> : vector<128x128xf32>
    %46 = tpu.matmul %44, %45, %cst_34 {dimension_numbers = #tpu.dot_dimension_numbers<[1], [0], [0], [1], [0, 0, 1, 1], [], []>} : vector<128x128xbf16>, vector<128x128xbf16>, vector<128x128xf32> -> vector<128x128xf32>
    %47 = arith.addf %40, %46 : vector<128x128xf32>
    %c17 = arith.constant 17 : index
    %c0_35 = arith.constant 0 : index
    %48 = vector.load %arg10[%c17, %c0_35] : memref<160x128xbf16, #tpu.memory_space<vmem>>, vector<128x128xbf16>
    %c0_36 = arith.constant 0 : index
    %c5 = arith.constant 5 : index
    %49 = vector.load %arg8[%c0_36, %c5] : memref<128x16xbf16, #tpu.memory_space<vmem>>, vector<128x1xbf16>
    %50 = vector.broadcast %49 : vector<128x1xbf16> to vector<128x128xbf16>
    %51 = arith.mulf %48, %50 : vector<128x128xbf16>
    %c640 = arith.constant 640 : index
    %c0_37 = arith.constant 0 : index
    %52 = vector.load %arg3[%c640, %c0_37] : memref<1152x128xbf16, #tpu.memory_space<vmem>>, vector<128x128xbf16>
    %cst_38 = arith.constant dense<0.000000e+00> : vector<128x128xf32>
    %53 = tpu.matmul %51, %52, %cst_38 {dimension_numbers = #tpu.dot_dimension_numbers<[1], [0], [0], [1], [0, 0, 1, 1], [], []>} : vector<128x128xbf16>, vector<128x128xbf16>, vector<128x128xf32> -> vector<128x128xf32>
    %54 = arith.addf %47, %53 : vector<128x128xf32>
    %c23 = arith.constant 23 : index
    %c0_39 = arith.constant 0 : index
    %55 = vector.load %arg10[%c23, %c0_39] : memref<160x128xbf16, #tpu.memory_space<vmem>>, vector<128x128xbf16>
    %c0_40 = arith.constant 0 : index
    %c6 = arith.constant 6 : index
    %56 = vector.load %arg8[%c0_40, %c6] : memref<128x16xbf16, #tpu.memory_space<vmem>>, vector<128x1xbf16>
    %57 = vector.broadcast %56 : vector<128x1xbf16> to vector<128x128xbf16>
    %58 = arith.mulf %55, %57 : vector<128x128xbf16>
    %c768 = arith.constant 768 : index
    %c0_41 = arith.constant 0 : index
    %59 = vector.load %arg3[%c768, %c0_41] : memref<1152x128xbf16, #tpu.memory_space<vmem>>, vector<128x128xbf16>
    %cst_42 = arith.constant dense<0.000000e+00> : vector<128x128xf32>
    %60 = tpu.matmul %58, %59, %cst_42 {dimension_numbers = #tpu.dot_dimension_numbers<[1], [0], [0], [1], [0, 0, 1, 1], [], []>} : vector<128x128xbf16>, vector<128x128xbf16>, vector<128x128xf32> -> vector<128x128xf32>
    %61 = arith.addf %54, %60 : vector<128x128xf32>
    %c24 = arith.constant 24 : index
    %c0_43 = arith.constant 0 : index
    %62 = vector.load %arg10[%c24, %c0_43] : memref<160x128xbf16, #tpu.memory_space<vmem>>, vector<128x128xbf16>
    %c0_44 = arith.constant 0 : index
    %c7_45 = arith.constant 7 : index
    %63 = vector.load %arg8[%c0_44, %c7_45] : memref<128x16xbf16, #tpu.memory_space<vmem>>, vector<128x1xbf16>
    %64 = vector.broadcast %63 : vector<128x1xbf16> to vector<128x128xbf16>
    %65 = arith.mulf %62, %64 : vector<128x128xbf16>
    %c896 = arith.constant 896 : index
    %c0_46 = arith.constant 0 : index
    %66 = vector.load %arg3[%c896, %c0_46] : memref<1152x128xbf16, #tpu.memory_space<vmem>>, vector<128x128xbf16>
    %cst_47 = arith.constant dense<0.000000e+00> : vector<128x128xf32>
    %67 = tpu.matmul %65, %66, %cst_47 {dimension_numbers = #tpu.dot_dimension_numbers<[1], [0], [0], [1], [0, 0, 1, 1], [], []>} : vector<128x128xbf16>, vector<128x128xbf16>, vector<128x128xf32> -> vector<128x128xf32>
    %68 = arith.addf %61, %67 : vector<128x128xf32>
    %c25 = arith.constant 25 : index
    %c0_48 = arith.constant 0 : index
    %69 = vector.load %arg10[%c25, %c0_48] : memref<160x128xbf16, #tpu.memory_space<vmem>>, vector<128x128xbf16>
    %c0_49 = arith.constant 0 : index
    %c8_50 = arith.constant 8 : index
    %70 = vector.load %arg8[%c0_49, %c8_50] : memref<128x16xbf16, #tpu.memory_space<vmem>>, vector<128x1xbf16>
    %71 = vector.broadcast %70 : vector<128x1xbf16> to vector<128x128xbf16>
    %72 = arith.mulf %69, %71 : vector<128x128xbf16>
    %c1024 = arith.constant 1024 : index
    %c0_51 = arith.constant 0 : index
    %73 = vector.load %arg3[%c1024, %c0_51] : memref<1152x128xbf16, #tpu.memory_space<vmem>>, vector<128x128xbf16>
    %cst_52 = arith.constant dense<0.000000e+00> : vector<128x128xf32>
    %74 = tpu.matmul %72, %73, %cst_52 {dimension_numbers = #tpu.dot_dimension_numbers<[1], [0], [0], [1], [0, 0, 1, 1], [], []>} : vector<128x128xbf16>, vector<128x128xbf16>, vector<128x128xf32> -> vector<128x128xf32>
    %75 = arith.addf %68, %74 : vector<128x128xf32>
    %c0_53 = arith.constant 0 : index
    %c0_54 = arith.constant 0 : index
    %76 = vector.load %arg6[%c0_53, %c0_54] : memref<1x128xf32, #tpu.memory_space<vmem>>, vector<1x128xf32>
    %77 = vector.broadcast %76 : vector<1x128xf32> to vector<128x128xf32>
    %78 = arith.addf %75, %77 : vector<128x128xf32>
    %cst_55 = arith.constant 0.000000e+00 : f32
    %79 = vector.broadcast %cst_55 : f32 to vector<128x128xf32>
    %80 = arith.maximumf %78, %79 : vector<128x128xf32>
    %81 = arith.truncf %80 : vector<128x128xf32> to vector<128x128xbf16>
    %c0_56 = arith.constant 0 : index
    %c0_57 = arith.constant 0 : index
    %82 = vector.load %arg4[%c0_56, %c0_57] : memref<128x256xbf16, #tpu.memory_space<vmem>>, vector<128x256xbf16>
    %cst_58 = arith.constant dense<0.000000e+00> : vector<128x256xf32>
    %83 = tpu.matmul %81, %82, %cst_58 {dimension_numbers = #tpu.dot_dimension_numbers<[1], [0], [0], [1], [0, 0, 1, 1], [], []>} : vector<128x128xbf16>, vector<128x256xbf16>, vector<128x256xf32> -> vector<128x256xf32>
    %c0_59 = arith.constant 0 : index
    %c0_60 = arith.constant 0 : index
    %84 = vector.load %arg7[%c0_59, %c0_60] : memref<1x256xf32, #tpu.memory_space<vmem>>, vector<1x256xf32>
    %85 = vector.broadcast %84 : vector<1x256xf32> to vector<128x256xf32>
    %86 = arith.addf %83, %85 : vector<128x256xf32>
    %c0_61 = arith.constant 0 : index
    %c0_62 = arith.constant 0 : index
    %87 = vector.load %arg1[%c0_61, %c0_62] : memref<128x256xbf16, #tpu.memory_space<vmem>>, vector<128x256xbf16>
    %88 = arith.extf %87 : vector<128x256xbf16> to vector<128x256xf32>
    %89 = arith.addf %86, %88 : vector<128x256xf32>
    %cst_63 = arith.constant 0.000000e+00 : f32
    %90 = vector.broadcast %cst_63 : f32 to vector<128x256xf32>
    %91 = arith.maximumf %89, %90 : vector<128x256xf32>
    %92 = arith.truncf %91 : vector<128x256xf32> to vector<128x256xbf16>
    %c0_64 = arith.constant 0 : index
    %c0_65 = arith.constant 0 : index
    %93 = vector.load %arg9[%c0_64, %c0_65] : memref<128x256xbf16, #tpu.memory_space<vmem>>, vector<128x256xbf16>
    tpu.vector_store %arg9[%c0_64, %c0_65], %92 {strides = array<i32>} : memref<128x256xbf16, #tpu.memory_space<vmem>>, vector<128x256xbf16>,
    return
  }
  func.func @transform_0(%arg0: i32) -> (i32, i32) {
    %c0_i32 = arith.constant 0 : i32
    %c0_i32_0 = arith.constant 0 : i32
    return %arg0, %c0_i32 : i32, i32
  }
  func.func @transform_1(%arg0: i32) -> (i32, i32) {
    %c0_i32 = arith.constant 0 : i32
    %c0_i32_0 = arith.constant 0 : i32
    %c0_i32_1 = arith.constant 0 : i32
    return %c0_i32, %c0_i32_0 : i32, i32
  }
  func.func @transform_2(%arg0: i32) -> (i32, i32) {
    %c0_i32 = arith.constant 0 : i32
    %c0_i32_0 = arith.constant 0 : i32
    %c0_i32_1 = arith.constant 0 : i32
    return %c0_i32, %c0_i32_0 : i32, i32
  }
  func.func @transform_3(%arg0: i32) -> (i32, i32) {
    %c0_i32 = arith.constant 0 : i32
    %c0_i32_0 = arith.constant 0 : i32
    %c0_i32_1 = arith.constant 0 : i32
    return %c0_i32, %c0_i32_0 : i32, i32
  }
  func.func @transform_4(%arg0: i32) -> (i32, i32) {
    %c0_i32 = arith.constant 0 : i32
    %c0_i32_0 = arith.constant 0 : i32
    %c0_i32_1 = arith.constant 0 : i32
    return %c0_i32, %c0_i32_0 : i32, i32
  }
  func.func @transform_5(%arg0: i32) -> (i32, i32) {
    %c0_i32 = arith.constant 0 : i32
    %c0_i32_0 = arith.constant 0 : i32
    %c0_i32_1 = arith.constant 0 : i32
    return %c0_i32, %c0_i32_0 : i32, i32
  }
  func.func @transform_6(%arg0: i32) -> (i32, i32) {
    %c0_i32 = arith.constant 0 : i32
    %c0_i32_0 = arith.constant 0 : i32
    %c0_i32_1 = arith.constant 0 : i32
    return %c0_i32, %c0_i32_0 : i32, i32
  }
  func.func @transform_7(%arg0: i32) -> (i32, i32) {
    %c0_i32 = arith.constant 0 : i32
    %c0_i32_0 = arith.constant 0 : i32
    %c0_i32_1 = arith.constant 0 : i32
    return %c0_i32, %c0_i32_0 : i32, i32
  }
  func.func @transform_8(%arg0: i32) -> (i32, i32) {
    %c0_i32 = arith.constant 0 : i32
    %c0_i32_0 = arith.constant 0 : i32
    return %arg0, %c0_i32 : i32, i32
  }
}

module attributes {stable_mosaic.version = 11 : i64} {
  func.func @_bottleneck_kernel(%arg0: i32, %arg1: memref<128x256xbf16, #tpu.memory_space<vmem>>, %arg2: memref<256x128xbf16, #tpu.memory_space<vmem>>, %arg3: memref<1152x128xbf16, #tpu.memory_space<vmem>>, %arg4: memref<128x256xbf16, #tpu.memory_space<vmem>>, %arg5: memref<1x128xf32, #tpu.memory_space<vmem>>, %arg6: memref<1x128xf32, #tpu.memory_space<vmem>>, %arg7: memref<1x256xf32, #tpu.memory_space<vmem>>, %arg8: memref<128x16xbf16, #tpu.memory_space<vmem>>, %arg9: memref<128x256xbf16, #tpu.memory_space<vmem>>, %arg10: memref<160x128xbf16, #tpu.memory_space<vmem>>) attributes {dimension_semantics = [#tpu.dimension_semantics<parallel>], iteration_bounds = array<i64: 2>, scalar_prefetch = 0 : i64, scratch_operands = 1 : i64, tpu.core_type = #tpu.core_type<tc>, window_params = [{transform_indices = @transform_0, window_bounds = array<i64: 128, 256>}, {pipeline_mode = #tpu.pipeline_mode<synchronous>, transform_indices = @transform_1, window_bounds = array<i64: 256, 128>}, {pipeline_mode = #tpu.pipeline_mode<synchronous>, transform_indices = @transform_2, window_bounds = array<i64: 1152, 128>}, {pipeline_mode = #tpu.pipeline_mode<synchronous>, transform_indices = @transform_3, window_bounds = array<i64: 128, 256>}, {pipeline_mode = #tpu.pipeline_mode<synchronous>, transform_indices = @transform_4, window_bounds = array<i64: 1, 128>}, {pipeline_mode = #tpu.pipeline_mode<synchronous>, transform_indices = @transform_5, window_bounds = array<i64: 1, 128>}, {pipeline_mode = #tpu.pipeline_mode<synchronous>, transform_indices = @transform_6, window_bounds = array<i64: 1, 256>}, {pipeline_mode = #tpu.pipeline_mode<synchronous>, transform_indices = @transform_7, window_bounds = array<i64: 128, 16>}, {transform_indices = @transform_8, window_bounds = array<i64: 128, 256>}]} {
    %c0 = arith.constant 0 : index
    %c0_0 = arith.constant 0 : index
    %0 = vector.load %arg1[%c0, %c0_0] : memref<128x256xbf16, #tpu.memory_space<vmem>>, vector<128x256xbf16>
    %c0_1 = arith.constant 0 : index
    %c0_2 = arith.constant 0 : index
    %1 = vector.load %arg2[%c0_1, %c0_2] : memref<256x128xbf16, #tpu.memory_space<vmem>>, vector<256x128xbf16>
    %cst = arith.constant dense<0.000000e+00> : vector<128x128xf32>
    %2 = tpu.matmul %0, %1, %cst {dimension_numbers = #tpu.dot_dimension_numbers<[1], [0], [0], [1], [0, 0, 1, 1], [], []>} : vector<128x256xbf16>, vector<256x128xbf16>, vector<128x128xf32> -> vector<128x128xf32>
    %c0_3 = arith.constant 0 : index
    %c0_4 = arith.constant 0 : index
    %3 = vector.load %arg5[%c0_3, %c0_4] : memref<1x128xf32, #tpu.memory_space<vmem>>, vector<1x128xf32>
    %4 = vector.broadcast %3 : vector<1x128xf32> to vector<128x128xf32>
    %5 = arith.addf %2, %4 : vector<128x128xf32>
    %cst_5 = arith.constant 0.000000e+00 : f32
    %6 = vector.broadcast %cst_5 : f32 to vector<128x128xf32>
    %7 = arith.maximumf %5, %6 : vector<128x128xf32>
    %cst_6 = arith.constant 0.000000e+00 : bf16
    %8 = vector.broadcast %cst_6 : bf16 to vector<16x128xbf16>
    %c0_7 = arith.constant 0 : index
    %c0_8 = arith.constant 0 : index
    %9 = vector.load %arg10[%c0_7, %c0_8] : memref<160x128xbf16, #tpu.memory_space<vmem>>, vector<16x128xbf16>
    tpu.vector_store %arg10[%c0_7, %c0_8], %8 {strides = array<i32>} : memref<160x128xbf16, #tpu.memory_space<vmem>>, vector<16x128xbf16>,
    %cst_9 = arith.constant 0.000000e+00 : bf16
    %10 = vector.broadcast %cst_9 : bf16 to vector<16x128xbf16>
    %c144 = arith.constant 144 : index
    %c0_10 = arith.constant 0 : index
    %11 = vector.load %arg10[%c144, %c0_10] : memref<160x128xbf16, #tpu.memory_space<vmem>>, vector<16x128xbf16>
    tpu.vector_store %arg10[%c144, %c0_10], %10 {strides = array<i32>} : memref<160x128xbf16, #tpu.memory_space<vmem>>, vector<16x128xbf16>,
    %12 = arith.truncf %7 : vector<128x128xf32> to vector<128x128xbf16>
    %c16 = arith.constant 16 : index
    %c0_11 = arith.constant 0 : index
    %13 = vector.load %arg10[%c16, %c0_11] : memref<160x128xbf16, #tpu.memory_space<vmem>>, vector<128x128xbf16>
    tpu.vector_store %arg10[%c16, %c0_11], %12 {strides = array<i32>} : memref<160x128xbf16, #tpu.memory_space<vmem>>, vector<128x128xbf16>,
    %c7 = arith.constant 7 : index
    %c0_12 = arith.constant 0 : index
    %14 = vector.load %arg10[%c7, %c0_12] : memref<160x128xbf16, #tpu.memory_space<vmem>>, vector<128x128xbf16>
    %c0_13 = arith.constant 0 : index
    %c0_14 = arith.constant 0 : index
    %15 = vector.load %arg8[%c0_13, %c0_14] : memref<128x16xbf16, #tpu.memory_space<vmem>>, vector<128x1xbf16>
    %16 = vector.broadcast %15 : vector<128x1xbf16> to vector<128x128xbf16>
    %17 = arith.mulf %14, %16 : vector<128x128xbf16>
    %c0_15 = arith.constant 0 : index
    %c0_16 = arith.constant 0 : index
    %18 = vector.load %arg3[%c0_15, %c0_16] : memref<1152x128xbf16, #tpu.memory_space<vmem>>, vector<128x128xbf16>
    %cst_17 = arith.constant dense<0.000000e+00> : vector<128x128xf32>
    %19 = tpu.matmul %17, %18, %cst_17 {dimension_numbers = #tpu.dot_dimension_numbers<[1], [0], [0], [1], [0, 0, 1, 1], [], []>} : vector<128x128xbf16>, vector<128x128xbf16>, vector<128x128xf32> -> vector<128x128xf32>
    %c8 = arith.constant 8 : index
    %c0_18 = arith.constant 0 : index
    %20 = vector.load %arg10[%c8, %c0_18] : memref<160x128xbf16, #tpu.memory_space<vmem>>, vector<128x128xbf16>
    %c0_19 = arith.constant 0 : index
    %c1 = arith.constant 1 : index
    %21 = vector.load %arg8[%c0_19, %c1] : memref<128x16xbf16, #tpu.memory_space<vmem>>, vector<128x1xbf16>
    %22 = vector.broadcast %21 : vector<128x1xbf16> to vector<128x128xbf16>
    %23 = arith.mulf %20, %22 : vector<128x128xbf16>
    %c128 = arith.constant 128 : index
    %c0_20 = arith.constant 0 : index
    %24 = vector.load %arg3[%c128, %c0_20] : memref<1152x128xbf16, #tpu.memory_space<vmem>>, vector<128x128xbf16>
    %cst_21 = arith.constant dense<0.000000e+00> : vector<128x128xf32>
    %25 = tpu.matmul %23, %24, %cst_21 {dimension_numbers = #tpu.dot_dimension_numbers<[1], [0], [0], [1], [0, 0, 1, 1], [], []>} : vector<128x128xbf16>, vector<128x128xbf16>, vector<128x128xf32> -> vector<128x128xf32>
    %26 = arith.addf %19, %25 : vector<128x128xf32>
    %c9 = arith.constant 9 : index
    %c0_22 = arith.constant 0 : index
    %27 = vector.load %arg10[%c9, %c0_22] : memref<160x128xbf16, #tpu.memory_space<vmem>>, vector<128x128xbf16>
    %c0_23 = arith.constant 0 : index
    %c2 = arith.constant 2 : index
    %28 = vector.load %arg8[%c0_23, %c2] : memref<128x16xbf16, #tpu.memory_space<vmem>>, vector<128x1xbf16>
    %29 = vector.broadcast %28 : vector<128x1xbf16> to vector<128x128xbf16>
    %30 = arith.mulf %27, %29 : vector<128x128xbf16>
    %c256 = arith.constant 256 : index
    %c0_24 = arith.constant 0 : index
    %31 = vector.load %arg3[%c256, %c0_24] : memref<1152x128xbf16, #tpu.memory_space<vmem>>, vector<128x128xbf16>
    %cst_25 = arith.constant dense<0.000000e+00> : vector<128x128xf32>
    %32 = tpu.matmul %30, %31, %cst_25 {dimension_numbers = #tpu.dot_dimension_numbers<[1], [0], [0], [1], [0, 0, 1, 1], [], []>} : vector<128x128xbf16>, vector<128x128xbf16>, vector<128x128xf32> -> vector<128x128xf32>
    %33 = arith.addf %26, %32 : vector<128x128xf32>
    %c15 = arith.constant 15 : index
    %c0_26 = arith.constant 0 : index
    %34 = vector.load %arg10[%c15, %c0_26] : memref<160x128xbf16, #tpu.memory_space<vmem>>, vector<128x128xbf16>
    %c0_27 = arith.constant 0 : index
    %c3 = arith.constant 3 : index
    %35 = vector.load %arg8[%c0_27, %c3] : memref<128x16xbf16, #tpu.memory_space<vmem>>, vector<128x1xbf16>
    %36 = vector.broadcast %35 : vector<128x1xbf16> to vector<128x128xbf16>
    %37 = arith.mulf %34, %36 : vector<128x128xbf16>
    %c384 = arith.constant 384 : index
    %c0_28 = arith.constant 0 : index
    %38 = vector.load %arg3[%c384, %c0_28] : memref<1152x128xbf16, #tpu.memory_space<vmem>>, vector<128x128xbf16>
    %cst_29 = arith.constant dense<0.000000e+00> : vector<128x128xf32>
    %39 = tpu.matmul %37, %38, %cst_29 {dimension_numbers = #tpu.dot_dimension_numbers<[1], [0], [0], [1], [0, 0, 1, 1], [], []>} : vector<128x128xbf16>, vector<128x128xbf16>, vector<128x128xf32> -> vector<128x128xf32>
    %40 = arith.addf %33, %39 : vector<128x128xf32>
    %c16_30 = arith.constant 16 : index
    %c0_31 = arith.constant 0 : index
    %41 = vector.load %arg10[%c16_30, %c0_31] : memref<160x128xbf16, #tpu.memory_space<vmem>>, vector<128x128xbf16>
    %c0_32 = arith.constant 0 : index
    %c4 = arith.constant 4 : index
    %42 = vector.load %arg8[%c0_32, %c4] : memref<128x16xbf16, #tpu.memory_space<vmem>>, vector<128x1xbf16>
    %43 = vector.broadcast %42 : vector<128x1xbf16> to vector<128x128xbf16>
    %44 = arith.mulf %41, %43 : vector<128x128xbf16>
    %c512 = arith.constant 512 : index
    %c0_33 = arith.constant 0 : index
    %45 = vector.load %arg3[%c512, %c0_33] : memref<1152x128xbf16, #tpu.memory_space<vmem>>, vector<128x128xbf16>
    %cst_34 = arith.constant dense<0.000000e+00> : vector<128x128xf32>
    %46 = tpu.matmul %44, %45, %cst_34 {dimension_numbers = #tpu.dot_dimension_numbers<[1], [0], [0], [1], [0, 0, 1, 1], [], []>} : vector<128x128xbf16>, vector<128x128xbf16>, vector<128x128xf32> -> vector<128x128xf32>
    %47 = arith.addf %40, %46 : vector<128x128xf32>
    %c17 = arith.constant 17 : index
    %c0_35 = arith.constant 0 : index
    %48 = vector.load %arg10[%c17, %c0_35] : memref<160x128xbf16, #tpu.memory_space<vmem>>, vector<128x128xbf16>
    %c0_36 = arith.constant 0 : index
    %c5 = arith.constant 5 : index
    %49 = vector.load %arg8[%c0_36, %c5] : memref<128x16xbf16, #tpu.memory_space<vmem>>, vector<128x1xbf16>
    %50 = vector.broadcast %49 : vector<128x1xbf16> to vector<128x128xbf16>
    %51 = arith.mulf %48, %50 : vector<128x128xbf16>
    %c640 = arith.constant 640 : index
    %c0_37 = arith.constant 0 : index
    %52 = vector.load %arg3[%c640, %c0_37] : memref<1152x128xbf16, #tpu.memory_space<vmem>>, vector<128x128xbf16>
    %cst_38 = arith.constant dense<0.000000e+00> : vector<128x128xf32>
    %53 = tpu.matmul %51, %52, %cst_38 {dimension_numbers = #tpu.dot_dimension_numbers<[1], [0], [0], [1], [0, 0, 1, 1], [], []>} : vector<128x128xbf16>, vector<128x128xbf16>, vector<128x128xf32> -> vector<128x128xf32>
    %54 = arith.addf %47, %53 : vector<128x128xf32>
    %c23 = arith.constant 23 : index
    %c0_39 = arith.constant 0 : index
    %55 = vector.load %arg10[%c23, %c0_39] : memref<160x128xbf16, #tpu.memory_space<vmem>>, vector<128x128xbf16>
    %c0_40 = arith.constant 0 : index
    %c6 = arith.constant 6 : index
    %56 = vector.load %arg8[%c0_40, %c6] : memref<128x16xbf16, #tpu.memory_space<vmem>>, vector<128x1xbf16>
    %57 = vector.broadcast %56 : vector<128x1xbf16> to vector<128x128xbf16>
    %58 = arith.mulf %55, %57 : vector<128x128xbf16>
    %c768 = arith.constant 768 : index
    %c0_41 = arith.constant 0 : index
    %59 = vector.load %arg3[%c768, %c0_41] : memref<1152x128xbf16, #tpu.memory_space<vmem>>, vector<128x128xbf16>
    %cst_42 = arith.constant dense<0.000000e+00> : vector<128x128xf32>
    %60 = tpu.matmul %58, %59, %cst_42 {dimension_numbers = #tpu.dot_dimension_numbers<[1], [0], [0], [1], [0, 0, 1, 1], [], []>} : vector<128x128xbf16>, vector<128x128xbf16>, vector<128x128xf32> -> vector<128x128xf32>
    %61 = arith.addf %54, %60 : vector<128x128xf32>
    %c24 = arith.constant 24 : index
    %c0_43 = arith.constant 0 : index
    %62 = vector.load %arg10[%c24, %c0_43] : memref<160x128xbf16, #tpu.memory_space<vmem>>, vector<128x128xbf16>
    %c0_44 = arith.constant 0 : index
    %c7_45 = arith.constant 7 : index
    %63 = vector.load %arg8[%c0_44, %c7_45] : memref<128x16xbf16, #tpu.memory_space<vmem>>, vector<128x1xbf16>
    %64 = vector.broadcast %63 : vector<128x1xbf16> to vector<128x128xbf16>
    %65 = arith.mulf %62, %64 : vector<128x128xbf16>
    %c896 = arith.constant 896 : index
    %c0_46 = arith.constant 0 : index
    %66 = vector.load %arg3[%c896, %c0_46] : memref<1152x128xbf16, #tpu.memory_space<vmem>>, vector<128x128xbf16>
    %cst_47 = arith.constant dense<0.000000e+00> : vector<128x128xf32>
    %67 = tpu.matmul %65, %66, %cst_47 {dimension_numbers = #tpu.dot_dimension_numbers<[1], [0], [0], [1], [0, 0, 1, 1], [], []>} : vector<128x128xbf16>, vector<128x128xbf16>, vector<128x128xf32> -> vector<128x128xf32>
    %68 = arith.addf %61, %67 : vector<128x128xf32>
    %c25 = arith.constant 25 : index
    %c0_48 = arith.constant 0 : index
    %69 = vector.load %arg10[%c25, %c0_48] : memref<160x128xbf16, #tpu.memory_space<vmem>>, vector<128x128xbf16>
    %c0_49 = arith.constant 0 : index
    %c8_50 = arith.constant 8 : index
    %70 = vector.load %arg8[%c0_49, %c8_50] : memref<128x16xbf16, #tpu.memory_space<vmem>>, vector<128x1xbf16>
    %71 = vector.broadcast %70 : vector<128x1xbf16> to vector<128x128xbf16>
    %72 = arith.mulf %69, %71 : vector<128x128xbf16>
    %c1024 = arith.constant 1024 : index
    %c0_51 = arith.constant 0 : index
    %73 = vector.load %arg3[%c1024, %c0_51] : memref<1152x128xbf16, #tpu.memory_space<vmem>>, vector<128x128xbf16>
    %cst_52 = arith.constant dense<0.000000e+00> : vector<128x128xf32>
    %74 = tpu.matmul %72, %73, %cst_52 {dimension_numbers = #tpu.dot_dimension_numbers<[1], [0], [0], [1], [0, 0, 1, 1], [], []>} : vector<128x128xbf16>, vector<128x128xbf16>, vector<128x128xf32> -> vector<128x128xf32>
    %75 = arith.addf %68, %74 : vector<128x128xf32>
    %c0_53 = arith.constant 0 : index
    %c0_54 = arith.constant 0 : index
    %76 = vector.load %arg6[%c0_53, %c0_54] : memref<1x128xf32, #tpu.memory_space<vmem>>, vector<1x128xf32>
    %77 = vector.broadcast %76 : vector<1x128xf32> to vector<128x128xf32>
    %78 = arith.addf %75, %77 : vector<128x128xf32>
    %cst_55 = arith.constant 0.000000e+00 : f32
    %79 = vector.broadcast %cst_55 : f32 to vector<128x128xf32>
    %80 = arith.maximumf %78, %79 : vector<128x128xf32>
    %81 = arith.truncf %80 : vector<128x128xf32> to vector<128x128xbf16>
    %c0_56 = arith.constant 0 : index
    %c0_57 = arith.constant 0 : index
    %82 = vector.load %arg4[%c0_56, %c0_57] : memref<128x256xbf16, #tpu.memory_space<vmem>>, vector<128x256xbf16>
    %cst_58 = arith.constant dense<0.000000e+00> : vector<128x256xf32>
    %83 = tpu.matmul %81, %82, %cst_58 {dimension_numbers = #tpu.dot_dimension_numbers<[1], [0], [0], [1], [0, 0, 1, 1], [], []>} : vector<128x128xbf16>, vector<128x256xbf16>, vector<128x256xf32> -> vector<128x256xf32>
    %c0_59 = arith.constant 0 : index
    %c0_60 = arith.constant 0 : index
    %84 = vector.load %arg7[%c0_59, %c0_60] : memref<1x256xf32, #tpu.memory_space<vmem>>, vector<1x256xf32>
    %85 = vector.broadcast %84 : vector<1x256xf32> to vector<128x256xf32>
    %86 = arith.addf %83, %85 : vector<128x256xf32>
    %c0_61 = arith.constant 0 : index
    %c0_62 = arith.constant 0 : index
    %87 = vector.load %arg1[%c0_61, %c0_62] : memref<128x256xbf16, #tpu.memory_space<vmem>>, vector<128x256xbf16>
    %88 = arith.extf %87 : vector<128x256xbf16> to vector<128x256xf32>
    %89 = arith.addf %86, %88 : vector<128x256xf32>
    %cst_63 = arith.constant 0.000000e+00 : f32
    %90 = vector.broadcast %cst_63 : f32 to vector<128x256xf32>
    %91 = arith.maximumf %89, %90 : vector<128x256xf32>
    %92 = arith.truncf %91 : vector<128x256xf32> to vector<128x256xbf16>
    %c0_64 = arith.constant 0 : index
    %c0_65 = arith.constant 0 : index
    %93 = vector.load %arg9[%c0_64, %c0_65] : memref<128x256xbf16, #tpu.memory_space<vmem>>, vector<128x256xbf16>
    tpu.vector_store %arg9[%c0_64, %c0_65], %92 {strides = array<i32>} : memref<128x256xbf16, #tpu.memory_space<vmem>>, vector<128x256xbf16>,
    return
  }
  func.func @transform_0(%arg0: i32) -> (i32, i32) {
    %c0_i32 = arith.constant 0 : i32
    %c0_i32_0 = arith.constant 0 : i32
    return %arg0, %c0_i32 : i32, i32
  }
  func.func @transform_1(%arg0: i32) -> (i32, i32) {
    %c0_i32 = arith.constant 0 : i32
    %c0_i32_0 = arith.constant 0 : i32
    %c0_i32_1 = arith.constant 0 : i32
    return %c0_i32, %c0_i32_0 : i32, i32
  }
  func.func @transform_2(%arg0: i32) -> (i32, i32) {
    %c0_i32 = arith.constant 0 : i32
    %c0_i32_0 = arith.constant 0 : i32
    %c0_i32_1 = arith.constant 0 : i32
    return %c0_i32, %c0_i32_0 : i32, i32
  }
  func.func @transform_3(%arg0: i32) -> (i32, i32) {
    %c0_i32 = arith.constant 0 : i32
    %c0_i32_0 = arith.constant 0 : i32
    %c0_i32_1 = arith.constant 0 : i32
    return %c0_i32, %c0_i32_0 : i32, i32
  }
  func.func @transform_4(%arg0: i32) -> (i32, i32) {
    %c0_i32 = arith.constant 0 : i32
    %c0_i32_0 = arith.constant 0 : i32
    %c0_i32_1 = arith.constant 0 : i32
    return %c0_i32, %c0_i32_0 : i32, i32
  }
  func.func @transform_5(%arg0: i32) -> (i32, i32) {
    %c0_i32 = arith.constant 0 : i32
    %c0_i32_0 = arith.constant 0 : i32
    %c0_i32_1 = arith.constant 0 : i32
    return %c0_i32, %c0_i32_0 : i32, i32
  }
  func.func @transform_6(%arg0: i32) -> (i32, i32) {
    %c0_i32 = arith.constant 0 : i32
    %c0_i32_0 = arith.constant 0 : i32
    %c0_i32_1 = arith.constant 0 : i32
    return %c0_i32, %c0_i32_0 : i32, i32
  }
  func.func @transform_7(%arg0: i32) -> (i32, i32) {
    %c0_i32 = arith.constant 0 : i32
    %c0_i32_0 = arith.constant 0 : i32
    %c0_i32_1 = arith.constant 0 : i32
    return %c0_i32, %c0_i32_0 : i32, i32
  }
  func.func @transform_8(%arg0: i32) -> (i32, i32) {
    %c0_i32 = arith.constant 0 : i32
    %c0_i32_0 = arith.constant 0 : i32
    return %arg0, %c0_i32 : i32, i32
  }
}

</mosaic_0001>

<bundles_post_ra>
// kernel: tpu_custom_call.1
= control target key start
LH: loop header
LB: loop body
LE: loop exit
PB: predicated region body
PF: predicated region fallthrough
CT: control target
= control target key end

     0   :  { %13 = vsyncpa [#allocation4], 0  ;;  %s9295_s0 = inlined_call_operand.hbm [shape: bf16[256,256], index: 0, kind: input, shape index: {}]   ;;  %s9296_s1 = inlined_call_operand.hbm [shape: bf16[256,128], index: 1, kind: input, shape index: {}]   ;;  %s9297_s2 = inlined_call_operand.hbm [shape: bf16[1152,128], index: 2, kind: input, shape index: {}]   ;;  %s9298_s3 = inlined_call_operand.hbm [shape: bf16[128,256], index: 3, kind: input, shape index: {}]   ;;  %s9299_s4 = inlined_call_operand.vmem [shape: f32[1,128], index: 4, kind: input, shape index: {}]   ;;  %s9300_s5 = inlined_call_operand.vmem [shape: f32[1,128], index: 5, kind: input, shape index: {}]   ;;  %s9301_s6 = inlined_call_operand.vmem [shape: f32[1,256], index: 6, kind: input, shape index: {}]   ;;  %s9302_s7 = inlined_call_operand.vmem [shape: bf16[128,16], index: 7, kind: input, shape index: {}]   ;;  %s9303_s8 = inlined_call_operand.hbm [shape: bf16[256,256], index: 8, kind: output, shape index: {}]  }
   0x1   :  { %15 = vsyncpa [#allocation4 + $0x1], 0 }
   0x2   :  { %16 = vsyncpa [#allocation7], 0 }
   0x3   :  { %17 = vsyncpa [#allocation10], 0 }
   0x4   :  { %18 = vsyncpa [#allocation5], 0 }
   0x5   :  { %20 = vsyncpa [#allocation5 + $0x1], 0  ;;  %s7501_s27 = smov 0   ;;  %s7503_s28 = smov 0  }
   0x6   :  { %s7505_s29 = smov 0   ;;  %s7507_s30 = smov 0  }
   0x7 LB: > { %9328 = sst [smem:[#allocation16_spill]] %s7421_s27  ;;  %s7522_s9 = sadd.s32 4294967295, %s7433_s30   ;;  %s7433_s30 = sphi %s7507_s30, %s9436_s30   ;;  %s7429_s29 = sphi %s7505_s29, %s9435_s29   ;;  %s7425_s28 = sphi %s7503_s28, %s9434_s28   ;;  %s7421_s27 = sphi %s7501_s27, %s9433_s27  }
   0x8   : > { %s6055_s10 = sadd.s32 4294967294, %s7433_s30   ;;  %p46_p0 = scmp.ne.s32.totalorder %s7425_s28, %s7421_s27 }
   0x9   : > { %p9304_p1 = scmp.eq.s32.totalorder %s7522_s9, 0  ;;  %p223_p3 = scmp.eq.s32.totalorder %s6055_s10, 1 }
   0xa   : > { %p6056_p5 = scmp.ge.s32.totalorder %s7433_s30, 1  ;;  %p230_p7 = scmp.lt.s32.totalorder %s7433_s30, 3 }
   0xb   : > { %p7531_p4 = por %p9304_p1, %p46_p0  ;;  %p7536_p6 = por %p223_p3, %p46_p0 }
   0xc   : > { %p7541_p8 = pnand %p6056_p5, %p230_p7  ;;  %s7435_s14 = smov [#allocation6]  }
   0xd   : > { %s9329_s11 = scalar_select %p7531_p4, 1, 0 }
   0xe   : > { %s9330_s12 = scalar_select %p7536_p6, 1, 0 }
   0xf   : > { %s9332_s13 = scalar_select %p7541_p8, 1, 0 }
  0x10   : > { %9331 = sst [smem:[#allocation17_spill]] %s9330_s12  ;;  %s242_s15 = sshll.u32 %s7435_s14, 4  ;;  %s7545_s15 = int_to_ptr.vmem [resolvable:$true] %s242_s15 }
  0x11   : > { %p6949_p9 = pneg %p7541_p8  ;;  %s7436_s17 = smov [#allocation8]  }
  0x12   : > { %s255_s18 = sshll.u32 %s7436_s17, 4  ;;  %s7437_s19 = smov [#allocation9]   ;;  %s7556_s18 = int_to_ptr.vmem [resolvable:$true] %s255_s18 }
  0x13   : > { %p7552_p11 = pnand %p6949_p9, %p9304_p1  ;;  %s7558_s20 = sshll.u32 %s7437_s19, 4  ;;  %s269_s20 = int_to_ptr.vmem [resolvable:$true] %s7558_s20 }
  0x14   : > { %s7245_s23 = scalar_lea.hbm %s9296_s1, 2048 }
  0x15   : > { %p7246_p12 = scmp.ne.s32.totalorder %s9296_s1, %s7245_s23  ;;  %p7568_p13 = pneg %p7552_p11 }
  0x16   : > { %p7252_p5 = scmp.lt.u32.totalorder %s7245_s23, %s9296_s1 }
  0x17   : > { %p7248_p0 = pnand %p7568_p13, %p7246_p12 }
  0x19   : > { %p7249_p3 = pneg %p7248_p0 }
  0x1b   : > { %p7254_p7 = pnand %p7252_p5, %p7249_p3 }
  0x1d   : > { %7257 = shalt.err (!%p7254_p7)
}
  0x1e   : > { %s7258_s17 = scalar_lea.vmem %s7545_s15, 2048  ;;  %p7266_p2 = scmp.lt.s32.totalorder %s7545_s15, %s7545_s15 }
  0x1f   : > { %p7259_p9 = scmp.ne.s32.totalorder %s7545_s15, %s7258_s17  ;;  %p7267_p6 = scmp.lt.s32.totalorder %s7258_s17, %s7258_s17 }
  0x21   : > { %p7261_p10 = pnand %p7259_p9, %p7568_p13  ;;  %p7268_p12 = por %p7267_p6, %p7266_p2 }
  0x23   : > { %p7262_p1 = pneg %p7261_p10 }
  0x25   : > { %p7269_p0 = pnand %p7268_p12, %p7262_p1 }
  0x27   : > { %7272 = shalt.err (!%p7269_p0)
}
  0x28   : > { %s7438_s19 = smov 64   ;;  %s7439_s21 = smov 4  }
  0x29   : > { %6952 = dma.hbm_to_vmem [thread:$0]  (!%p7552_p11), %s9296_s1, 2048, %s7545_s15, [#allocation7], %s7438_s19, %s7438_s19, %s7439_s21  }
  0x2a   : > { %s7273_s10 = scalar_lea.hbm %s9297_s2, 9216 }
  0x2b   : > { %p7274_p2 = scmp.ne.s32.totalorder %s9297_s2, %s7273_s10  ;;  %p7280_p10 = scmp.lt.u32.totalorder %s7273_s10, %s9297_s2 }
  0x2d   : > { %p7276_p1 = pnand %p7274_p2, %p7568_p13 }
  0x2f   : > { %p7277_p6 = pneg %p7276_p1 }
  0x31   : > { %p7282_p3 = pnand %p7280_p10, %p7277_p6 }
  0x33   : > { %7285 = shalt.err (!%p7282_p3)
}
  0x34   : > { %s7286_s15 = scalar_lea.vmem %s7556_s18, 9216  ;;  %p7294_p12 = scmp.lt.s32.totalorder %s7556_s18, %s7556_s18 }
  0x35   : > { %p7287_p5 = scmp.ne.s32.totalorder %s7556_s18, %s7286_s15  ;;  %p7295_p0 = scmp.lt.s32.totalorder %s7286_s15, %s7286_s15 }
  0x37   : > { %p7289_p7 = pnand %p7287_p5, %p7568_p13  ;;  %p7296_p2 = por %p7295_p0, %p7294_p12 }
  0x39   : > { %p7290_p9 = pneg %p7289_p7 }
  0x3b   : > { %p7297_p1 = pnand %p7296_p2, %p7290_p9 }
  0x3d   : > { %7300 = shalt.err (!%p7297_p1)
}
  0x3e   : > { %6955 = dma.hbm_to_vmem [thread:$0]  (!%p7552_p11), %s9297_s2, 9216, %s7556_s18, [#allocation7], %s7438_s19, %s7438_s19, %s7439_s21  }
  0x3f   : > { %s7301_s24 = scalar_lea.hbm %s9298_s3, 2048 }
  0x40   : > { %p7302_p6 = scmp.ne.s32.totalorder %s9298_s3, %s7301_s24  ;;  %p7308_p5 = scmp.lt.u32.totalorder %s7301_s24, %s9298_s3 }
  0x42   : > { %p7304_p10 = pnand %p7302_p6, %p7568_p13 }
  0x44   : > { %p7305_p3 = pneg %p7304_p10 }
  0x46   : > { %p7310_p7 = pnand %p7308_p5, %p7305_p3 }
  0x48   : > { %7313 = shalt.err (!%p7310_p7)
}
  0x49   : > { %s7314_s15 = scalar_lea.vmem %s269_s20, 2048  ;;  %p7322_p2 = scmp.lt.s32.totalorder %s269_s20, %s269_s20 }
  0x4a   : > { %p7315_p9 = scmp.ne.s32.totalorder %s269_s20, %s7314_s15  ;;  %p7323_p1 = scmp.lt.s32.totalorder %s7314_s15, %s7314_s15 }
  0x4c   : > { %p7317_p12 = pnand %p7315_p9, %p7568_p13  ;;  %p7324_p4 = por %p7323_p1, %p7322_p2 }
  0x4e   : > { %p7318_p0 = pneg %p7317_p12 }
  0x50   : > { %p7325_p8 = pnand %p7324_p4, %p7318_p0 }
  0x52   : > { %7328 = shalt.err (!%p7325_p8)
}
  0x53   : > { %s7440_s18 = smov 128   ;;  %s7441_s26 = smov 8  }
  0x54   : > { %6958 = dma.hbm_to_vmem [thread:$0]  (!%p7552_p11), %s9298_s3, 2048, %s269_s20, [#allocation10], %s7440_s18, %s7440_s18, %s7441_s26  }
  0x55   : > { %s7635_s27 = sadd.s32 1, %s7433_s30   ;;  %s33_s22 = sadd.s32 1, %s7429_s29 }
  0x56   : > { %s30_s12 = ssub.s32 %s7433_s30, %s7635_s27  ;;  %p40_p8 = scmp.ne.s32.totalorder %s7429_s29, %s7425_s28 }
  0x57   : > { %p31_p4 = scmp.eq.s32.totalorder %s30_s12, 0  ;;  %p41_p13 = scmp.eq.s32.totalorder %s7433_s30, 0 }
  0x58   : > { %p6970_p6 = scmp.lt.s32.totalorder %s7433_s30, 2  ;;  %p9335_p3 = scmp.eq.s32.totalorder %s7522_s9, 1 }
  0x59   : > { %s7645_s23 = scalar_select %p31_p4, %s7429_s29, %s33_s22  }
  0x5a   : > { %p42_p10 = por %p41_p13, %p40_p8  ;;  %p7649_p5 = por %p9335_p3, %p40_p8 }
  0x5b   : > { %s294_s24 = sand.u32 1, %s7429_s29   ;;  %s6290_s25 = sshll.u32 %s7433_s30, 11 }
  0x5c   : > { %s6061_s20 = sshll.u32 %s294_s24, 7  ;;  %s7658_s17 = scalar_lea.hbm %s9295_s0, %s6290_s25 }
  0x5d   : > { %s298_s15 = scalar_lea.vmem [#allocation3], %s6061_s20  ;;  %p7660_p11 = pnand %p6970_p6, %p42_p10 }
  0x5e   : > { %s306_s19 = sshll.u32 %s298_s15, 4  ;;  %s7666_s12 = scalar_lea.sflag [#allocation4], %s294_s24  ;;  %s7664_s19 = int_to_ptr.vmem [resolvable:$true] %s306_s19 }
  0x5f   : > { %s7329_s22 = scalar_lea.hbm %s7658_s17, 2048  ;;  %p7331_p9 = pneg %p7660_p11 }
  0x60   : > { %p7330_p7 = scmp.ne.s32.totalorder %s7658_s17, %s7329_s22  ;;  %s7334_s10 = scalar_lea.hbm %s9295_s0, 4096 }
  0x61   : > { %p7335_p2 = scmp.lt.u32.totalorder %s7658_s17, %s9295_s0  ;;  %p7336_p1 = scmp.lt.u32.totalorder %s7334_s10, %s7329_s22 }
  0x62   : > { %p7332_p12 = pnand %p7331_p9, %p7330_p7  ;;  %p7338_p8 = scmp.lt.u32.totalorder %s7329_s22, %s7658_s17 }
  0x63   : > { %p7337_p4 = por %p7336_p1, %p7335_p2 }
  0x64   : > { %p7333_p0 = pneg %p7332_p12 }
  0x65   : > { %p7339_p13 = por %p7338_p8, %p7337_p4 }
  0x67   : > { %p7340_p6 = pnand %p7339_p13, %p7333_p0 }
  0x69   : > { %7343 = shalt.err (!%p7340_p6)
}
  0x6a   : > { %s7344_s24 = scalar_lea.vmem %s7664_s19, 2048  ;;  %s7442_s25 = smov [#allocation3]  }
  0x6b   : > { %p7345_p10 = scmp.ne.s32.totalorder %s7664_s19, %s7344_s24  ;;  %s7349_s20 = sshll.u32 %s7442_s25, 4  ;;  %s7350_s20 = int_to_ptr.vmem [resolvable:$false] %s7349_s20 }
  0x6c   : > { %s7351_s14 = scalar_lea.vmem %s7350_s20, 4096  ;;  %p7352_p12 = scmp.lt.s32.totalorder %s7664_s19, %s7350_s20 }
  0x6d   : > { %p7347_p3 = pnand %p7345_p10, %p7331_p9  ;;  %p7353_p2 = scmp.lt.s32.totalorder %s7351_s14, %s7344_s24 }
  0x6f   : > { %p7348_p7 = pneg %p7347_p3  ;;  %p7354_p1 = por %p7353_p2, %p7352_p12 }
  0x71   : > { %p7355_p4 = pnand %p7354_p1, %p7348_p7 }
  0x73   : > { %7358 = shalt.err (!%p7355_p4)
}
  0x74   : > { %6962 = dma.hbm_to_vmem [thread:$0]  (!%p7660_p11), %s7658_s17, 2048, %s7664_s19, %s7666_s12, %s7440_s18, %s7440_s18, %s7441_s26  }
  0x75   : > { %p9338_p9 = scmp.ne.s32.totalorder %s9332_s13, 0 }
  0x77   : > { %318 = sbr.rel (%p9338_p9) target bundleno = 1157 (0x485), region = 52 }
  0x7e   : > { %s7700_s22 = sand.u32 1, %s7425_s28   ;;  %p9339_p0 = scmp.ne.s32.totalorder %s9329_s11, 0 }
  0x7f   : > { %s6066_s10 = sshll.u32 %s7700_s22, 7  ;;  %s321_s15 = scalar_lea.sflag [#allocation4], %s7700_s22 }
  0x80   : > { %s7706_s21 = scalar_lea.vmem [#allocation3], %s6066_s10 }
  0x81   : > { %7404 = dma.done.wait (%p9339_p0), %s321_s15, 2048  }
  0x82   : > { %7406 = vsyncadd (%p9339_p0), %s321_s15, 4294965248  ;;  %p9340_p11 = scmp.eq.s32.totalorder %s7522_s9, 0 }
  0x84   : > { %7408 = dma.done.wait (%p9340_p11), [#allocation7], 11264   ;;  %p9341_p8 = pmov %p9340_p11 }
  0x86   : > { %7410 = vsyncadd (%p9341_p8), [#allocation7], 4294956032  ;;  %p9342_p13 = pmov %p9341_p8 }
  0x87   : > { %p9343_p6 = pmov %p9341_p8 }
  0x88   : > { %7412 = dma.done.wait (%p9342_p13), [#allocation10], 2048  }
  0x89   : > { %7414 = vsyncadd (%p9343_p6), [#allocation10], 4294965248  ;;  %v7443_v0 = vmov 2   ;;  %v7723_v1 = vld [vmem:[%s9302_s7 + $0x8] sm:$0xf]  ;;  %v7075_v3 = vld [vmem:[#allocation6 + $0x40] sm:$0xff]  }
  0x8a   : > { %7027 = vset.pattern.permute.xlu1 %v7443_v0  ;;  %7026 = vset.pattern.permute.xlu0 %v7443_v0  ;;  %v7728_v2 = vld [vmem:[%s9302_s7] sm:$0xf]  ;;  %v7076_v4 = vld [vmem:[#allocation6] sm:$0xff]   ;;  %v7735_v5 = vld [vmem:[%s9302_s7 + $0xc] sm:$0xf]  ;;  %v7444_v36 = vmov 3  }
  0x8b   : > { %1787 = vperm.xlu1 %7027, %v7723_v1   ;;  %1765 = vperm.xlu0 %7026, %v7728_v2   ;;  %v7740_v6 = vld [vmem:[%s9302_s7 + $0x4] sm:$0xf]  ;;  %v7077_v7 = vld [vmem:[#allocation6 + $0x48] sm:$0xff]   ;;  %v7747_v9 = vld [vmem:[%s9302_s7 + $0x14] sm:$0xf]  ;;  %v7445_v39 = vmov 0  }
  0x8c   : > { %6309 = vmatprep.subr.bf16.mxu0 %v7075_v3  ;;  %v7078_v8 = vld [vmem:[#allocation6 + $0x8] sm:$0xff]   ;;  %v7752_v10 = vld [vmem:[%s9302_s7 + $0x10] sm:$0xf]  ;;  %v7079_v11 = vld [vmem:[#allocation6 + $0x50] sm:$0xff]   ;;  %716 = vst [vmem:[#allocation2] sm:$0xff] %v7445_v39  ;;  %v7446_v46 = vmov 4  }
  0x8d   : > { %6310 = vmatpush3.bf16.msra.mxu0 %v7076_v4  ;;  %v7080_v12 = vld [vmem:[#allocation6 + $0x10] sm:$0xff]   ;;  %v7759_v13 = vld [vmem:[%s9302_s7 + $0x1c] sm:$0xf]  ;;  %v7764_v14 = vld [vmem:[%s9302_s7 + $0x18] sm:$0xf]  ;;  %717 = vst [vmem:[#allocation2 + $0x48] sm:$0xff] %v7445_v39 }
  0x8e   : > { %6311 = vmatprep.subr.bf16.mxu0 %v7077_v7  ;;  %v7081_v15 = vld [vmem:[#allocation6 + $0x58] sm:$0xff]   ;;  %v7771_v17 = vld [vmem:[%s9302_s7 + $0x24] sm:$0xf]  ;;  %v7776_v18 = vld [vmem:[%s9302_s7 + $0x20] sm:$0xf]  ;;  %v7447_v52 = vmov 5  }
  0x8f   : > { %1798 = vperm.xlu1 %7027, %v7735_v5   ;;  %1776 = vperm.xlu0 %7026, %v7740_v6   ;;  %v7082_v16 = vld [vmem:[#allocation6 + $0x18] sm:$0xff]   ;;  %v7083_v19 = vld [vmem:[#allocation6 + $0x60] sm:$0xff]   ;;  %v7085_v23 = vld [vmem:[#allocation6 + $0x68] sm:$0xff]   ;;  %v7448_v56 = vmov 6   ;;  %vm2552_vm0 = vsmask.f32 7424 }
  0x90   : > { %v7084_v20 = vld [vmem:[#allocation6 + $0x20] sm:$0xff]   ;;  %v7783_v21 = vld [vmem:[%s9302_s7 + $0x2c] sm:$0xf]  ;;  %v7788_v22 = vld [vmem:[%s9302_s7 + $0x28] sm:$0xf]  ;;  %vm1358_vm4 = vcmask 1043456  }
  0x91   : > { %6312 = vmatpush3.bf16.msra.mxu0 %v7078_v8  ;;  %v7086_v24 = vld [vmem:[#allocation6 + $0x28] sm:$0xff]   ;;  %v7793_v25 = vld [vmem:[%s9302_s7 + $0x34] sm:$0xf]  ;;  %v7800_v26 = vld [vmem:[%s9302_s7 + $0x30] sm:$0xf]  ;;  %s9187_s14 = scalar_lea.vmem [#allocation11], %s6066_s10 }
  0x92   : > { %6313 = vmatprep.subr.bf16.mxu0 %v7079_v11  ;;  %v7087_v27 = vld [vmem:[#allocation6 + $0x70] sm:$0xff]   ;;  %v7093_v28 = vld [vmem:[%s7706_s21 + $0x4] ss:$8 sps:$4 sm:$0xff]   ;;  %v7813_v31 = vld [vmem:[%s9302_s7 + $0x38] sm:$0xf]  ;;  %s6308_s10 = sshll.u32 %s7522_s9, 11 }
  0x93   : > { %1820 = vperm.xlu1 %7027, %v7747_v9   ;;  %1809 = vperm.xlu0 %7026, %v7752_v10   ;;  %v7088_v29 = vld [vmem:[#allocation6 + $0x30] sm:$0xff]   ;;  %v7808_v30 = vld [vmem:[%s9302_s7 + $0x3c] sm:$0xf]  ;;  %v7089_v32 = vld [vmem:[#allocation6 + $0x78] sm:$0xff]   ;;  %vm2650_vm1 = vsmask.f32 256  ;;  %s9247_s18 = scalar_lea.hbm %s9303_s8, %s6308_s10 }
  0x94   : > { %635 = vmatprep.mubr.bf16.mxu0 %v7093_v28  ;;  %v7090_v33 = vld [vmem:[#allocation6 + $0x38] sm:$0xff]   ;;  %v7091_v34 = vld [vmem:[%s7706_s21] ss:$8 sps:$4 sm:$0xff]   ;;  %v7097_v38 = vld [vmem:[%s7706_s21 + $0x24] ss:$8 sps:$4 sm:$0xff]   ;;  %s5939_s11 = scalar_lea.sflag [#allocation5], %s7700_s22 }
  0x95   : > { %6314 = vmatpush3.bf16.msra.mxu0 %v7080_v12  ;;  %v7094_v35 = vld [vmem:[%s7706_s21 + $0x14] ss:$8 sps:$4 sm:$0xff]   ;;  %v7096_v37 = vld [vmem:[%s7706_s21 + $0x10] ss:$8 sps:$4 sm:$0xff]   ;;  %v7099_v40 = vld [vmem:[%s7706_s21 + $0x20] ss:$8 sps:$4 sm:$0xff]  }
  0x96   : > { %6315 = vmatprep.subr.bf16.mxu0 %v7081_v15  ;;  %v7100_v41 = vld [vmem:[%s7706_s21 + $0x34] ss:$8 sps:$4 sm:$0xff]   ;;  %v7102_v42 = vld [vmem:[%s7706_s21 + $0x30] ss:$8 sps:$4 sm:$0xff]   ;;  %v7103_v43 = vld [vmem:[%s7706_s21 + $0x44] ss:$8 sps:$4 sm:$0xff]  }
  0x97   : > { %1842 = vperm.xlu1 %7027, %v7759_v13   ;;  %1831 = vperm.xlu0 %7026, %v7764_v14   ;;  %v7105_v44 = vld [vmem:[%s7706_s21 + $0x40] ss:$8 sps:$4 sm:$0xff]   ;;  %v7106_v45 = vld [vmem:[%s7706_s21 + $0x54] ss:$8 sps:$4 sm:$0xff]   ;;  %v7108_v47 = vld [vmem:[%s7706_s21 + $0x50] ss:$8 sps:$4 sm:$0xff]  }
  0x98   : > { %v7109_v48 = vld [vmem:[%s7706_s21 + $0x64] ss:$8 sps:$4 sm:$0xff]   ;;  %v7111_v49 = vld [vmem:[%s7706_s21 + $0x60] ss:$8 sps:$4 sm:$0xff]   ;;  %v7112_v50 = vld [vmem:[%s7706_s21 + $0x74] ss:$8 sps:$4 sm:$0xff]  }
  0x99   : > { %6316 = vmatpush3.bf16.msra.mxu0 %v7082_v16  ;;  %v7114_v51 = vld [vmem:[%s7706_s21 + $0x70] ss:$8 sps:$4 sm:$0xff]   ;;  %v7115_v53 = vld [vmem:[#allocation8 + $0x80] sm:$0xff]   ;;  %v7116_v54 = vld [vmem:[#allocation8 + $0x88] sm:$0xff]   ;;  %vm1529_vm2 = vsmask.f32 4352 }
  0x9a   : > { %6317 = vmatprep.subr.bf16.mxu0 %v7083_v19  ;;  %6581 = vmatprep.subr.bf16.mxu1 %v7115_v53  ;;  %v7117_v55 = vld [vmem:[#allocation8 + $0x90] sm:$0xff]   ;;  %v7118_v57 = vld [vmem:[#allocation8 + $0x98] sm:$0xff]   ;;  %v7119_v60 = vld [vmem:[#allocation8 + $0xa0] sm:$0xff]   ;;  %vm991_vm3 = vsmask.f32 3328  ;;  %s7453_s9 = smov [#allocation11]  }
  0x9b   : > { %1864 = vperm.xlu1 %7027, %v7771_v17   ;;  %1853 = vperm.xlu0 %7026, %v7776_v18   ;;  %v7120_v63 = vld [vmem:[#allocation8 + $0xa8] sm:$0xff]   ;;  %v7121_v4 = vld [vmem:[#allocation8 + $0xb0] sm:$0xff]   ;;  %s7363_s17 = sshll.u32 %s7453_s9, 4  ;;  %s7364_s17 = int_to_ptr.vmem [resolvable:$false] %s7363_s17 }
  0x9c   : > { %6582 = vmatpush3.bf16.msra.mxu1 %v7115_v53  ;;  %s7365_s19 = scalar_lea.vmem %s7364_s17, 4096 }
  0x9d   : > { %6318 = vmatpush3.bf16.msra.mxu0 %v7084_v20  ;;  %6583 = vmatprep.subr.bf16.mxu1 %v7116_v54 }
  0x9e   : > { %6319 = vmatprep.subr.bf16.mxu0 %v7085_v23 }
  0x9f   : > { %1886 = vperm.xlu1 %7027, %v7783_v21   ;;  %1875 = vperm.xlu0 %7026, %v7788_v22  }
  0xa0   : > { %6584 = vmatpush3.bf16.msra.mxu1 %v7116_v54 }
  0xa1   : > { %6320 = vmatpush3.bf16.msra.mxu0 %v7086_v24  ;;  %6585 = vmatprep.subr.bf16.mxu1 %v7117_v55 }
  0xa2   : > { %6321 = vmatprep.subr.bf16.mxu0 %v7087_v27 }
  0xa3   : > { %1908 = vperm.xlu1 %7027, %v7793_v25   ;;  %1897 = vperm.xlu0 %7026, %v7800_v26  }
  0xa4   : > { %6586 = vmatpush3.bf16.msra.mxu1 %v7117_v55  ;;  %v7965_v55 = vld [vmem:[#allocation8 + $0xc0] sm:$0xff]  }
  0xa5   : > { %6322 = vmatpush3.bf16.msra.mxu0 %v7088_v29  ;;  %6587 = vmatprep.subr.bf16.mxu1 %v7118_v57  ;;  %v7450_v29 = vmov 839922192  }
  0xa6   : > { %6323 = vmatprep.subr.bf16.mxu0 %v7089_v32  ;;  %v767_v32 = vlaneseq }
  0xa7   : > { %1930 = vperm.xlu1 %7027, %v7808_v30   ;;  %1919 = vperm.xlu0 %7026, %v7813_v31  }
  0xa8   : > { %6588 = vmatpush3.bf16.msra.mxu1 %v7118_v57 }
  0xa9   : > { %6324 = vmatpush3.bf16.msra.mxu0 %v7090_v33  ;;  %6589 = vmatprep.subr.bf16.mxu1 %v7119_v60 }
  0xab   : > { %7029 = vset.pattern.permute.xlu1 %v7444_v36  ;;  %7028 = vset.pattern.permute.xlu0 %v7444_v36 }
  0xac   : > { %2348 = vperm.xlu1 %7029, %v7740_v6   ;;  %2337 = vperm.xlu0 %7028, %v7728_v2  }
  0xad   : > { %636 = vmatmul.mubr.bf16.vlgmr.msra.gmra.mrb[0].mxu0 %v7091_v34  ;;  %6590 = vmatpush3.bf16.msra.mxu1 %v7119_v60  ;;  %v7125_v60 = vld [vmem:[#allocation8 + $0x48] sm:$0xff]  }
  0xae   : > { %643 = vmatprep.mubr.bf16.mxu0 %v7094_v35  ;;  %6591 = vmatprep.subr.bf16.mxu1 %v7120_v63  ;;  %v7941_v35 = vshrl.u32 %v767_v32, 7 }
  0xb0   : > { %2359 = vperm.xlu1 %7029, %v7723_v1   ;;  %2370 = vperm.xlu0 %7028, %v7735_v5   ;;  %9344 = vst [vmem:[#allocation18_spill] sm:$0xff] %v7941_v35 }
  0xb1   : > { %6592 = vmatpush3.bf16.msra.mxu1 %v7120_v63 }
  0xb2   : > { %6593 = vmatprep.subr.bf16.mxu1 %v7121_v4 }
  0xb4   : > { %2381 = vperm.xlu1 %7029, %v7752_v10   ;;  %2392 = vperm.xlu0 %7028, %v7747_v9  }
  0xb5   : > { %644 = vmatmul.mubr.bf16.gmra.mrb[4].mxu0 %v7096_v37  ;;  %6594 = vmatpush3.bf16.msra.mxu1 %v7121_v4 }
  0xb6   : > { %651 = vmatprep.mubr.bf16.mxu0 %v7097_v38 }
  0xb8   : > { %2403 = vperm.xlu1 %7029, %v7764_v14   ;;  %2414 = vperm.xlu0 %7028, %v7759_v13  }
  0xbc   : > { %2425 = vperm.xlu1 %7029, %v7776_v18   ;;  %2436 = vperm.xlu0 %7028, %v7771_v17  }
  0xbd   : > { %652 = vmatmul.mubr.bf16.gmra.mrb[8].mxu0 %v7099_v40 }
  0xbe   : > { %659 = vmatprep.mubr.bf16.mxu0 %v7100_v41 }
  0xc0   : > { %2447 = vperm.xlu1 %7029, %v7788_v22   ;;  %2458 = vperm.xlu0 %7028, %v7783_v21  }
  0xc4   : > { %2469 = vperm.xlu1 %7029, %v7800_v26   ;;  %2480 = vperm.xlu0 %7028, %v7793_v25  }
  0xc5   : > { %660 = vmatmul.mubr.bf16.gmra.mrb[12].mxu0 %v7102_v42 }
  0xc6   : > { %667 = vmatprep.mubr.bf16.mxu0 %v7103_v43 }
  0xc8   : > { %2491 = vperm.xlu1 %7029, %v7813_v31   ;;  %2502 = vperm.xlu0 %7028, %v7808_v30  }
  0xcc   : > { %7030 = vset.pattern.permute.xlu1 %v7446_v46  ;;  %7031 = vset.pattern.permute.xlu0 %v7446_v46 }
  0xcd   : > { %2889 = vperm.xlu1 %7030, %v7728_v2   ;;  %2900 = vperm.xlu0 %7031, %v7740_v6  }
  0xce   : > { %668 = vmatmul.mubr.bf16.gmra.mrb[16].mxu0 %v7105_v44 }
  0xcf   : > { %675 = vmatprep.mubr.bf16.mxu0 %v7106_v45 }
  0xd1   : > { %2911 = vperm.xlu1 %7030, %v7723_v1   ;;  %2933 = vperm.xlu0 %7031, %v7752_v10  }
  0xd5   : > { %2922 = vperm.xlu1 %7030, %v7735_v5   ;;  %2955 = vperm.xlu0 %7031, %v7764_v14  }
  0xd6   : > { %676 = vmatmul.mubr.bf16.gmra.mrb[20].mxu0 %v7108_v47 }
  0xd7   : > { %683 = vmatprep.mubr.bf16.mxu0 %v7109_v48 }
  0xd9   : > { %2944 = vperm.xlu1 %7030, %v7747_v9   ;;  %2977 = vperm.xlu0 %7031, %v7776_v18  }
  0xdd   : > { %2966 = vperm.xlu1 %7030, %v7759_v13   ;;  %2999 = vperm.xlu0 %7031, %v7788_v22  }
  0xde   : > { %684 = vmatmul.mubr.bf16.gmra.mrb[24].mxu0 %v7111_v49  ;;  %v7123_v49 = vld [vmem:[#allocation8 + $0x40] sm:$0xff]  }
  0xdf   : > { %691 = vmatprep.mubr.bf16.mxu0 %v7112_v50  ;;  %v9313_v50 = vmov 7   ;;  %6517 = vmatprep.subr.bf16.mxu0 %v7123_v49 }
  0xe0   : > { %6518 = vmatpush3.bf16.msra.mxu0 %v7123_v49 }
  0xe1   : > { %2988 = vperm.xlu1 %7030, %v7771_v17   ;;  %3032 = vperm.xlu0 %7031, %v7793_v25  }
  0xe2   : > { %6519 = vmatprep.subr.bf16.mxu0 %v7125_v60 }
  0xe4   : > { %6520 = vmatpush3.bf16.msra.mxu0 %v7125_v60 }
  0xe5   : > { %3010 = vperm.xlu1 %7030, %v7783_v21   ;;  %7034 = vset.pattern.permute.xlu0 %v7447_v52 }
  0xe6   : > { %692 = vmatmul.mubr.bf16.gmra.mrb[28].mxu0 %v7114_v51  ;;  %3307 = vperm.xlu0 %7034, %v7728_v2  }
  0xe9   : > { %7032 = vset.pattern.permute.xlu1 %v7447_v52 }
  0xea   : > { %3318 = vperm.xlu1 %7032, %v7740_v6   ;;  %3340 = vperm.xlu0 %7034, %v7735_v5  }
  0xee   : > { %3329 = vperm.xlu1 %7032, %v7723_v1   ;;  %3362 = vperm.xlu0 %7034, %v7747_v9  }
  0xf2   : > { %3351 = vperm.xlu1 %7032, %v7752_v10   ;;  %3373 = vperm.xlu0 %7034, %v7764_v14  }
  0xf6   : > { %7033 = vset.pattern.permute.xlu1 %v7446_v46  ;;  %3406 = vperm.xlu0 %7034, %v7771_v17  }
  0xf7   : > { %3021 = vperm.xlu1 %7033, %v7800_v26  }
  0xfa   : > { %3428 = vperm.xlu0 %7034, %v7783_v21  }
  0xfb   : > { %3043 = vperm.xlu1 %7033, %v7813_v31  }
  0xfe   : > { %3450 = vperm.xlu0 %7034, %v7793_v25  }
  0xff   : > { %3054 = vperm.xlu1 %7033, %v7808_v30  }
 0x102   : > { %3472 = vperm.xlu0 %7034, %v7808_v30  }
 0x103   : > { %7035 = vset.pattern.permute.xlu1 %v7447_v52 }
 0x104   : > { %3384 = vperm.xlu1 %7035, %v7759_v13  }
 0x106   : > { %7037 = vset.pattern.permute.xlu0 %v7448_v56 }
 0x107   : > { %3870 = vperm.xlu0 %7037, %v7740_v6  }
 0x108   : > { %3395 = vperm.xlu1 %7035, %v7776_v18  }
 0x10a   : > { %v7880_v58 = vpop.permute.xlu1 %1787  ;;  %v7882_v59 = vpop.permute.xlu0 %1765 }
 0x10b   : > { %3903 = vperm.xlu0 %7037, %v7752_v10  }
 0x10c   : > { %3417 = vperm.xlu1 %7035, %v7788_v22  }
 0x10e   : > { %v7886_v61 = vpop.permute.xlu1 %1798  ;;  %v7888_v62 = vpop.permute.xlu0 %1776 }
 0x10f   : > { %3925 = vperm.xlu0 %7037, %v7764_v14   ;;  %v7122_v14 = vld [vmem:[#allocation8 + $0xb8] sm:$0xff]  }
 0x110   : > { %3439 = vperm.xlu1 %7035, %v7800_v26   ;;  %6595 = vmatprep.subr.bf16.mxu1 %v7122_v14 }
 0x111   : > { %6596 = vmatpush3.bf16.msra.mxu1 %v7122_v14 }
 0x112   : > { %v7892_v0 = vpop.permute.xlu1 %1820  ;;  %v7894_v3 = vpop.permute.xlu0 %1809  ;;  %6613 = vmatprep.subr.bf16.mxu1 %v7965_v55 }
 0x113   : > { %3947 = vperm.xlu0 %7037, %v7776_v18  }
 0x114   : > { %3461 = vperm.xlu1 %7035, %v7813_v31  }
 0x116   : > { %v7898_v7 = vpop.permute.xlu1 %1842  ;;  %v7900_v8 = vpop.permute.xlu0 %1831 }
 0x117   : > { %3969 = vperm.xlu0 %7037, %v7788_v22   ;;  %v9311_v22 = vmov 1  }
 0x118   : > { %7036 = vset.pattern.permute.xlu1 %v7448_v56 }
 0x119   : > { %3859 = vperm.xlu1 %7036, %v7728_v2  }
 0x11a   : > { %v7904_v11 = vpop.permute.xlu1 %1864  ;;  %v7906_v12 = vpop.permute.xlu0 %1853 }
 0x11b   : > { %3991 = vperm.xlu0 %7037, %v7800_v26  }
 0x11d   : > { %3881 = vperm.xlu1 %7036, %v7723_v1  }
 0x11e   : > { %v7910_v15 = vpop.permute.xlu1 %1886  ;;  %v7912_v16 = vpop.permute.xlu0 %1875 }
 0x11f   : > { %4013 = vperm.xlu0 %7037, %v7813_v31   ;;  %v765_v31 = vunpack.c.l.s4 %v7450_v29 }
 0x121   : > { %3892 = vperm.xlu1 %7036, %v7735_v5  }
 0x122   : > { %v7916_v19 = vpop.permute.xlu1 %1908  ;;  %v7918_v20 = vpop.permute.xlu0 %1897 }
 0x123   : > { %7038 = vset.pattern.permute.xlu0 %v9311_v22 }
 0x124   : > { %1099 = vperm.xlu0 %7038, %v7728_v2  }
 0x125   : > { %3914 = vperm.xlu1 %7036, %v7747_v9  }
 0x126   : > { %v7923_v23 = vpop.permute.xlu1 %1930  ;;  %v7925_v24 = vpop.permute.xlu0 %1919 }
 0x128   : > { %1132 = vperm.xlu0 %7038, %v7735_v5   ;;  %v766_v5 = vunpack.c.0.s8 %v765_v31 }
 0x129   : > { %3936 = vperm.xlu1 %7036, %v7759_v13  }
 0x12b   : > { %v7929_v27 = vpop.permute.xlu1 %2348  ;;  %v7931_v28 = vpop.permute.xlu0 %2337 }
 0x12c   : > { %1176 = vperm.xlu0 %7038, %v7759_v13   ;;  %v7951_v13 = vsub.s32 %v766_v5, %v7941_v35 }
 0x12d   : > { %3958 = vperm.xlu1 %7036, %v7771_v17  }
 0x12f   : > { %v7935_v33 = vpop.permute.xlu1 %2359  ;;  %v7937_v34 = vpop.permute.xlu0 %2370 }
 0x130   : > { %1220 = vperm.xlu0 %7038, %v7783_v21  }
 0x131   : > { %3980 = vperm.xlu1 %7036, %v7783_v21  }
 0x133   : > { %v7943_v36 = vpop.permute.xlu1 %2381  ;;  %v7945_v37 = vpop.permute.xlu0 %2392 }
 0x134   : > { %7052 = vset.pattern.permute.xlu0 %v7445_v39 }
 0x135   : > { %4002 = vperm.xlu1 %7036, %v7793_v25   ;;  %785 = vperm.xlu0 %7052, %v7723_v1  }
 0x137   : > { %v2404_v38 = vpop.permute.xlu1 %2403  ;;  %v2415_v40 = vpop.permute.xlu0 %2414 }
 0x138   : > { %v2412_v21 = vrot.slane %v2404_v38, %v7951_v13  ;;  %v2423_v41 = vrot.slane %v2415_v40, %v7951_v13 }
 0x139   : > { %4024 = vperm.xlu1 %7036, %v7808_v30   ;;  %809 = vperm.xlu0 %7052, %v7752_v10  }
 0x13a   : > { %v6156_v42 = vcombine.low %v2412_v21, %v2423_v41  ;;  %v7127_v21 = vld [vmem:[#allocation8 + $0x50] sm:$0xff]  }
 0x13b   : > { %v2426_v43 = vpop.permute.xlu1 %2425  ;;  %v2437_v44 = vpop.permute.xlu0 %2436  ;;  %6521 = vmatprep.subr.bf16.mxu0 %v7127_v21 }
 0x13c   : > { %v2577_v45 = vshll.u32 %v6156_v42, 16  ;;  %v2581_v46 = vshrl.u32 %v6156_v42, 16  ;;  %v2434_v47 = vrot.slane %v2426_v43, %v7951_v13  ;;  %v2445_v48 = vrot.slane %v2437_v44, %v7951_v13  ;;  %6522 = vmatpush3.bf16.msra.mxu0 %v7127_v21 }
 0x13d   : > { %7039 = vset.pattern.permute.xlu1 %v9311_v22  ;;  %7054 = vset.pattern.permute.xlu0 %v9313_v50 }
 0x13e   : > { %v7961_v51 = vrot.slane %v2577_v45, 1  ;;  %v6157_v52 = vcombine.low %v2434_v47, %v2445_v48  ;;  %1110 = vperm.xlu1 %7039, %v7740_v6   ;;  %4430 = vperm.xlu0 %7054, %v7728_v2  }
 0x13f   : > { %v2448_v53 = vpop.permute.xlu1 %2447  ;;  %v2459_v54 = vpop.permute.xlu0 %2458 }
 0x140   : > { %v2583_v56 = vor.u32 %v2581_v46, %v7961_v51  ;;  %v2585_v57 = vshll.u32 %v6157_v52, 16  ;;  %v2589_v63 = vshrl.u32 %v6157_v52, 16  ;;  %v2456_v4 = vrot.slane %v2448_v53, %v7951_v13  ;;  %v7129_v53 = vld [vmem:[#allocation8 + $0x58] sm:$0xff]  }
 0x141   : > { %v2467_v14 = vrot.slane %v2459_v54, %v7951_v13  ;;  %6523 = vmatprep.subr.bf16.mxu0 %v7129_v53 }
 0x142   : > { %v2587_v29 = vrot.slane %v2585_v57, 1  ;;  %1121 = vperm.xlu1 %7039, %v7723_v1   ;;  %4474 = vperm.xlu0 %7054, %v7752_v10   ;;  %v7131_v57 = vld [vmem:[#allocation8 + $0x60] sm:$0xff]  }
 0x143   : > { %v6158_v2 = vcombine.low %v2456_v4, %v2467_v14  ;;  %v2470_v31 = vpop.permute.xlu1 %2469  ;;  %v2481_v32 = vpop.permute.xlu0 %2480  ;;  %6524 = vmatpush3.bf16.msra.mxu0 %v7129_v53 }
 0x144   : > { %v7974_v5 = vsel %vm2552_vm0, %v2583_v56, %v2587_v29  ;;  %v2478_v38 = vrot.slane %v2470_v31, %v7951_v13  ;;  %v2489_v40 = vrot.slane %v2481_v32, %v7951_v13  ;;  %v2591_v41 = vor.u32 %v2589_v63, %v2587_v29  ;;  %6525 = vmatprep.subr.bf16.mxu0 %v7131_v57 }
 0x145   : > { %9345 = vst [vmem:[#allocation19_spill] sm:$0xff] %v7974_v5  ;;  %v2593_v42 = vshll.u32 %v6158_v2, 16  ;;  %v2597_v43 = vshrl.u32 %v6158_v2, 16 }
 0x146   : > { %v6159_v44 = vcombine.low %v2478_v38, %v2489_v40  ;;  %7040 = vset.pattern.permute.xlu1 %v9313_v50  ;;  %4485 = vperm.xlu0 %7054, %v7747_v9   ;;  %v7133_v40 = vld [vmem:[#allocation8 + $0x68] sm:$0xff]  }
 0x147   : > { %v2595_v1 = vrot.slane %v2593_v42, 1  ;;  %v2492_v45 = vpop.permute.xlu1 %2491  ;;  %4441 = vperm.xlu1 %7040, %v7740_v6   ;;  %v2503_v46 = vpop.permute.xlu0 %2502  ;;  %v7992_v6 = vld [vmem:[%s9302_s7 + $0x8] sm:$0xf]  ;;  %6526 = vmatpush3.bf16.msra.mxu0 %v7131_v57  ;;  %v1807_v57 = vrot.slane %v7886_v61, %v7951_v13 }
 0x148   : > { %v2601_v47 = vshll.u32 %v6159_v44, 16  ;;  %v2605_v48 = vshrl.u32 %v6159_v44, 16  ;;  %v2500_v49 = vrot.slane %v2492_v45, %v7951_v13  ;;  %v2511_v52 = vrot.slane %v2503_v46, %v7951_v13  ;;  %6527 = vmatprep.subr.bf16.mxu0 %v7133_v40  ;;  %v7137_v44 = vld [vmem:[#allocation8 + $0x78] sm:$0xff]   ;;  %v7214_v45 = vld [vmem:[%s9302_s7 + $0x18] sm:$0xf] }
 0x149   : > { %v7984_v54 = vsel %vm2552_vm0, %v2591_v41, %v2595_v1  ;;  %v2599_v56 = vor.u32 %v2597_v43, %v2595_v1  ;;  %v7135_v41 = vld [vmem:[#allocation8 + $0x70] sm:$0xff]   ;;  %v8037_v43 = vld [vmem:[%s9302_s7 + $0x14] sm:$0xf]  ;;  %v9309_v46 = vmov 8  }
 0x14a   : > { %9346 = vst [vmem:[#allocation20_spill] sm:$0xff] %v7984_v54  ;;  %v2603_v9 = vrot.slane %v2601_v47, 1  ;;  %v7986_v60 = vcombine.low %v2500_v49, %v2511_v52  ;;  %4518 = vperm.xlu0 %7054, %v7776_v18   ;;  %v1774_v47 = vrot.slane %v7882_v59, %v7951_v13 }
 0x14b   : > { %4452 = vperm.xlu1 %7040, %v7992_v6   ;;  %6528 = vmatpush3.bf16.msra.mxu0 %v7133_v40  ;;  %v1818_v40 = vrot.slane %v7894_v3, %v7951_v13  ;;  %v1851_v3 = vrot.slane %v7898_v7, %v7951_v13  ;;  %v8094_v7 = vld [vmem:[#allocation2] sm:$0xf0] }
 0x14c   : > { %v7996_v63 = vsel %vm2552_vm0, %v2599_v56, %v2603_v9  ;;  %v2607_v4 = vor.u32 %v2605_v48, %v2603_v9  ;;  %v2609_v14 = vshll.u32 %v7986_v60, 16  ;;  %v7999_v29 = vpop.permute.xlu1 %2889  ;;  %v8001_v2 = vpop.permute.xlu0 %2900  ;;  %6529 = vmatprep.subr.bf16.mxu0 %v7135_v41  ;;  %v8056_v48 = vld [vmem:[%s9302_s7 + $0x4] sm:$0xf]  ;;  %v1796_v56 = vrot.slane %v7880_v58, %v7951_v13  ;;  %9356 = vst [vmem:[#allocation30_spill] sm:$0xff] %v8094_v7 }
 0x14d   : > { %9347 = vst [vmem:[#allocation21_spill] sm:$0xff] %v7996_v63 }
 0x14e   : > { %v8003_v18 = vrot.slane %v2609_v14, 1  ;;  %4529 = vperm.xlu0 %7054, %v7771_v17   ;;  %v1829_v14 = vrot.slane %v7892_v0, %v7951_v13 }
 0x14f   : > { %7041 = vset.pattern.permute.xlu1 %v9311_v22  ;;  %6530 = vmatpush3.bf16.msra.mxu0 %v7135_v41  ;;  %v7216_v41 = vld [vmem:[%s9302_s7 + $0x20] sm:$0xf] }
 0x150   : > { %v8009_v31 = vsel %vm2552_vm0, %v2607_v4, %v8003_v18  ;;  %1143 = vperm.xlu1 %7041, %v7752_v10   ;;  %v8012_v32 = vpop.permute.xlu1 %2911  ;;  %v8014_v38 = vpop.permute.xlu0 %2933  ;;  %v8025_v10 = vld [vmem:[%s9302_s7 + $0xc] sm:$0xf]  ;;  %6531 = vmatprep.subr.bf16.mxu0 %v7137_v44 }
 0x151   : > { %9348 = vst [vmem:[#allocation22_spill] sm:$0xff] %v8009_v31 }
 0x152   : > { %4562 = vperm.xlu0 %7054, %v7800_v26  }
 0x153   : > { %6532 = vmatpush3.bf16.msra.mxu0 %v7137_v44 }
 0x154   : > { %7042 = vset.pattern.permute.xlu1 %v9313_v50  ;;  %v8018_v17 = vpop.permute.xlu1 %2922  ;;  %v8020_v21 = vpop.permute.xlu0 %2955 }
 0x155   : > { %9349 = vst [vmem:[#allocation23_spill] sm:$0xff] %v8020_v21  ;;  %4463 = vperm.xlu1 %7042, %v8025_v10  }
 0x156   : > { %4573 = vperm.xlu0 %7054, %v7793_v25  }
 0x158   : > { %v8029_v42 = vpop.permute.xlu1 %2944  ;;  %v8031_v26 = vpop.permute.xlu0 %2977 }
 0x159   : > { %9350 = vst [vmem:[#allocation24_spill] sm:$0xff] %v8031_v26  ;;  %7043 = vset.pattern.permute.xlu1 %v9311_v22 }
 0x15a   : > { %1154 = vperm.xlu1 %7043, %v8037_v43   ;;  %4595 = vperm.xlu0 %7054, %v7808_v30   ;;  %v1785_v30 = vrot.slane %v7888_v62, %v7951_v13 }
 0x15c   : > { %v8041_v25 = vpop.permute.xlu1 %2966  ;;  %v8043_v1 = vpop.permute.xlu0 %2999  ;;  %v6137_v53 = vcombine.low %v1774_v47, %v1785_v30  ;;  %v6138_v47 = vcombine.low %v1796_v56, %v1807_v57 }
 0x15d   : > { %9351 = vst [vmem:[#allocation25_spill] sm:$0xff] %v8041_v25  ;;  %9352 = vst [vmem:[#allocation26_spill] sm:$0xff] %v8043_v1  ;;  %v8116_v1 = vld [vmem:[%s9302_s7 + $0x2c] sm:$0xf] }
 0x15e   : > { %1165 = vperm.xlu1 %7043, %v7214_v45   ;;  %7060 = vset.pattern.permute.xlu0 %v9309_v46  ;;  %v1981_v9 = vshrl.u32 %v6137_v53, 16  ;;  %v1984_v4 = vshll.u32 %v6137_v53, 16  ;;  %v6139_v53 = vcombine.low %v1818_v40, %v1829_v14  ;;  %v1840_v46 = vrot.slane %v7900_v8, %v7951_v13 }
 0x15f   : > { %4888 = vperm.xlu0 %7060, %v8056_v48   ;;  %v1992_v8 = vshll.u32 %v6138_v47, 16 }
 0x160   : > { %v8059_v49 = vpop.permute.xlu1 %2988  ;;  %v8061_v52 = vpop.permute.xlu0 %3032  ;;  %v1983_v30 = vrot.slane %v1981_v9, 3  ;;  %v1986_v0 = vrot.slane %v1984_v4, 4  ;;  %v1989_v4 = vshrl.u32 %v6138_v47, 16  ;;  %v1998_v40 = vshrl.u32 %v6139_v53, 16 }
 0x161   : > { %9353 = vst [vmem:[#allocation27_spill] sm:$0xff] %v8059_v49  ;;  %9354 = vst [vmem:[#allocation28_spill] sm:$0xff] %v8061_v52 }
 0x162   : > { %7044 = vset.pattern.permute.xlu1 %v9313_v50  ;;  %v8096_v14 = vor.u32 %v1986_v0, %v1983_v30  ;;  %v1994_v0 = vrot.slane %v1992_v8, 4 }
 0x163   : > { %4496 = vperm.xlu1 %7044, %v7214_v45   ;;  %4932 = vperm.xlu0 %7060, %v8037_v43  }
 0x164   : > { %v8065_v59 = vpop.permute.xlu1 %3010  ;;  %v2060_v47 = vmul.bf16 %v8096_v14, %v8094_v7 }
 0x165   : > { %9355 = vst [vmem:[#allocation29_spill] sm:$0xff] %v8065_v59  ;;  %v3308_v62 = vpop.permute.xlu0 %3307 }
 0x166   : > { %v3316_v61 = vrot.slane %v3308_v62, %v7951_v13  ;;  %v7217_v62 = vld [vmem:[%s9302_s7 + $0x1c] sm:$0xf] }
 0x167   : > { %7045 = vset.pattern.permute.xlu1 %v9311_v22  ;;  %4965 = vperm.xlu0 %7060, %v7216_v41  }
 0x168   : > { %1187 = vperm.xlu1 %7045, %v7216_v41  }
 0x169   : > { %v3319_v58 = vpop.permute.xlu1 %3318  ;;  %v3341_v44 = vpop.permute.xlu0 %3340 }
 0x16a   : > { %v3327_v45 = vrot.slane %v3319_v58, %v7951_v13  ;;  %v3349_v22 = vrot.slane %v3341_v44, %v7951_v13  ;;  %v2001_v58 = vshll.u32 %v6139_v53, 16  ;;  %v6140_v44 = vcombine.low %v1840_v46, %v1851_v3 }
 0x16b   : > { %7064 = vset.pattern.permute.xlu0 %v7445_v39  ;;  %v2000_v53 = vrot.slane %v1998_v40, 3 }
 0x16c   : > { %7046 = vset.pattern.permute.xlu1 %v9313_v50  ;;  %845 = vperm.xlu0 %7064, %v7217_v62   ;;  %v8091_v9 = vcombine.low %v3316_v61, %v3327_v45  ;;  %v1862_v61 = vrot.slane %v7906_v12, %v7951_v13  ;;  %v9357_v45 = vmov 1   ;;  %v1991_v12 = vrot.slane %v1989_v4, 3 }
 0x16d   : > { %4507 = vperm.xlu1 %7046, %v7217_v62   ;;  %v3330_v56 = vpop.permute.xlu1 %3329  ;;  %v3363_v57 = vpop.permute.xlu0 %3362  ;;  %v1873_v62 = vrot.slane %v7904_v11, %v7951_v13  ;;  %v2003_v3 = vrot.slane %v2001_v58, 4  ;;  %v2089_v4 = vshll.u32 %v2060_v47, 16 }
 0x16e   : > { %v3338_v39 = vrot.slane %v3330_v56, %v7951_v13  ;;  %v3371_v35 = vrot.slane %v3363_v57, %v7951_v13  ;;  %v3523_v46 = vshrl.u32 %v8091_v9, 16  ;;  %v2007_v57 = vshrl.u32 %v6140_v44, 16 }
 0x16f   : > { %v6141_v49 = vcombine.low %v1862_v61, %v1873_v62  ;;  %v1884_v62 = vrot.slane %v7912_v16, %v7951_v13  ;;  %v1917_v61 = vrot.slane %v7916_v19, %v7951_v13  ;;  %v1995_v19 = vor.u32 %v1994_v0, %v1991_v12 }
 0x170   : > { %v6186_v50 = vcombine.low %v3338_v39, %v3349_v22  ;;  %857 = vperm.xlu0 %7064, %v7216_v41   ;;  %v7218_v41 = vld [vmem:[%s9302_s7 + $0x24] sm:$0xf]  ;;  %v8121_v8 = vrot.slane %v3523_v46, 7  ;;  %v1928_v46 = vrot.slane %v7925_v24, %v7951_v13  ;;  %v2357_v12 = vrot.slane %v7929_v27, %v7951_v13 }
 0x171   : > { %7047 = vset.pattern.permute.xlu1 %v9357_v45  ;;  %v3352_v56 = vpop.permute.xlu1 %3351  ;;  %v8104_v52 = vpop.permute.xlu0 %3373  ;;  %v2016_v25 = vshrl.u32 %v6141_v49, 16  ;;  %v2019_v63 = vshll.u32 %v6141_v49, 16  ;;  %v2346_v0 = vrot.slane %v7931_v28, %v7951_v13  ;;  %v2368_v49 = vrot.slane %v7935_v33, %v7951_v13 }
 0x172   : > { %v3530_v22 = vshrl.u32 %v6186_v50, 16  ;;  %v3533_v30 = vshll.u32 %v6186_v50, 16  ;;  %1198 = vperm.xlu1 %7047, %v7218_v41   ;;  %v3360_v11 = vrot.slane %v3352_v56, %v7951_v13  ;;  %v2010_v50 = vshll.u32 %v6140_v44, 16 }
 0x173   : > { %v2086_v56 = vshrl.u32 %v2060_v47, 16  ;;  %v1895_v44 = vrot.slane %v7910_v15, %v7951_v13  ;;  %v1906_v47 = vrot.slane %v7918_v20, %v7951_v13  ;;  %v7221_v15 = vld [vmem:[%s9302_s7 + $0x30] sm:$0xf]  ;;  %v2009_v20 = vrot.slane %v2007_v57, 3 }
 0x174   : > { %v3532_v39 = vrot.slane %v3530_v22, 7  ;;  %v6187_v59 = vcombine.low %v3360_v11, %v3371_v35  ;;  %893 = vperm.xlu0 %7064, %v8116_v1   ;;  %v7220_v35 = vld [vmem:[%s9302_s7 + $0x28] sm:$0xf]  ;;  %v2004_v11 = vor.u32 %v2003_v3, %v2000_v53  ;;  %v2390_v27 = vrot.slane %v7943_v36, %v7951_v13 }
 0x175   : > { %v8119_v41 = vpop.permute.xlu0 %3406  ;;  %v8155_v31 = vrot.slane %v2086_v56, 4  ;;  %v6142_v54 = vcombine.low %v1884_v62, %v1895_v44  ;;  %v6143_v53 = vcombine.low %v1906_v47, %v1917_v61  ;;  %v2379_v56 = vrot.slane %v7937_v34, %v7951_v13 }
 0x176   : > { %v3535_v40 = vor.u32 %v3533_v30, %v3532_v39  ;;  %v3538_v58 = vshrl.u32 %v6187_v59, 16  ;;  %v3541_v26 = vshll.u32 %v6187_v59, 16  ;;  %1209 = vperm.xlu1 %7047, %v7220_v35   ;;  %v8126_v22 = vpop.permute.xlu1 %3021  ;;  %v1939_v59 = vrot.slane %v7923_v23, %v7951_v13 }
 0x177   : > { %9358 = vst [vmem:[#allocation31_spill] sm:$0xff] %v8126_v22  ;;  %v2012_v23 = vrot.slane %v2010_v50, 4  ;;  %v9363_v50 = vmov 8   ;;  %v2401_v28 = vrot.slane %v7945_v37, %v7951_v13  ;;  %v2021_v44 = vrot.slane %v2019_v63, 4 }
 0x178   : > { %v8140_v30 = vrot.slane %v3538_v58, 7  ;;  %905 = vperm.xlu0 %7064, %v7221_v15   ;;  %v8147_v16 = vsel %vm2650_vm1, %v8121_v8, %v3535_v40  ;;  %v9360_v58 = vmov 7   ;;  %v6144_v3 = vcombine.low %v1928_v46, %v1939_v59 }
 0x179   : > { %9359 = vst [vmem:[#allocation32_spill] sm:$0xff] %v8147_v16  ;;  %v8149_v22 = vpop.permute.xlu0 %3428  ;;  %v2025_v62 = vshrl.u32 %v6142_v54, 16  ;;  %v2028_v33 = vshll.u32 %v6142_v54, 16  ;;  %v8181_v61 = vcombine.low %v2346_v0, %v2357_v12  ;;  %v2034_v34 = vshrl.u32 %v6143_v53, 16 }
 0x17a   : > { %v3543_v24 = vor.u32 %v3541_v26, %v8140_v30  ;;  %7048 = vset.pattern.permute.xlu1 %v9360_v58  ;;  %v8153_v21 = vpop.permute.xlu1 %3043  ;;  %v8164_v26 = vrot.slane %v2089_v4, 5  ;;  %v2018_v4 = vrot.slane %v2016_v25, 3  ;;  %v8186_v37 = vsel %vm1529_vm2, %v8096_v14, %v1995_v19 }
 0x17b   : > { %9361 = vst [vmem:[#allocation33_spill] sm:$0xff] %v8153_v21  ;;  %4540 = vperm.xlu1 %7048, %v7220_v35   ;;  %v8191_v25 = vsel %vm1529_vm2, %v1995_v19, %v2004_v11  ;;  %v2037_v63 = vshll.u32 %v6143_v53, 16  ;;  %v2043_v59 = vshrl.u32 %v6144_v3, 16  ;;  %v8193_v54 = vcombine.low %v2368_v49, %v2379_v56  ;;  %v8216_v49 = vld [vmem:[%s9302_s7 + $0x3c] sm:$0xf] }
 0x17c   : > { %v8162_v57 = vsel %vm2650_vm1, %v3532_v39, %v3543_v24  ;;  %7069 = vset.pattern.permute.xlu0 %v9363_v50  ;;  %v8177_v39 = vor.u32 %v2012_v23, %v2009_v20  ;;  %v8195_v46 = vcombine.low %v2390_v27, %v2401_v28  ;;  %v8204_v23 = vld [vmem:[#allocation2] sm:$0xff]  ;;  %v2046_v19 = vshll.u32 %v6144_v3, 16  ;;  %9365 = vst [vmem:[#allocation36_spill] sm:$0xff] %v8216_v49 }
 0x17d   : > { %9362 = vst [vmem:[#allocation34_spill] sm:$0xff] %v8162_v57  ;;  %v8175_v40 = vpop.permute.xlu0 %3450  ;;  %5009 = vperm.xlu0 %7069, %v7221_v15   ;;  %v3382_v24 = vrot.slane %v8104_v52, %v7951_v13  ;;  %v8219_v56 = vor.u32 %v2021_v44, %v2018_v4  ;;  %v2027_v27 = vrot.slane %v2025_v62, 3  ;;  %v2030_v3 = vrot.slane %v2028_v33, 4 }
 0x17e   : > { %v8179_v35 = vpop.permute.xlu1 %3054  ;;  %v8211_v53 = vsel %vm1529_vm2, %v2004_v11, %v8177_v39  ;;  %v2554_v28 = vshll.u32 %v8181_v61, 16  ;;  %v2039_v21 = vrot.slane %v2037_v63, 4  ;;  %v2045_v16 = vrot.slane %v2043_v59, 3 }
 0x17f   : > { %9364 = vst [vmem:[#allocation35_spill] sm:$0xff] %v8179_v35  ;;  %7049 = vset.pattern.permute.xlu1 %v9357_v45  ;;  %v2561_v57 = vshll.u32 %v8193_v54, 16  ;;  %v2569_v4 = vshll.u32 %v8195_v46, 16  ;;  %v2048_v44 = vrot.slane %v2046_v19, 4  ;;  %v3415_v62 = vrot.slane %v8119_v41, %v7951_v13 }
 0x180   : > { %1231 = vperm.xlu1 %7049, %v7221_v15   ;;  %v6325_v36 = vpop.f32.mrb[0].mxu0  ;;  %v8200_v15 = vld [vmem:[%s9299_s4] ss:$0 sm:$0xff]  ;;  %v2556_v63 = vrot.slane %v2554_v28, 1  ;;  %v2557_v59 = vshrl.u32 %v8181_v61, 16 }
 0x181   : > { %v6326_v20 = vpop.f32.mrb[1].mxu0  ;;  %v8202_v14 = vpop.permute.xlu0 %3472  ;;  %7072 = vset.pattern.permute.xlu0 %v8204_v23 }
 0x182   : > { %v6327_v12 = vadd.f32 %v6326_v20, %v6325_v36  ;;  %v6328_v0 = vpop.f32.mrb[2].mxu0  ;;  %941 = vperm.xlu0 %7072, %v8216_v49   ;;  %v2036_v20 = vrot.slane %v2034_v34, 3 }
 0x183   : > { %v6329_v52 = vpop.f32.mrb[3].mxu0  ;;  %v3385_v36 = vpop.permute.xlu1 %3384 }
 0x184   : > { %v638_v47 = vadd.f32 %v6327_v12, %v8200_v15  ;;  %v6330_v11 = vadd.f32 %v6329_v52, %v6328_v0  ;;  %7050 = vset.pattern.permute.xlu1 %v9360_v58  ;;  %v3393_v35 = vrot.slane %v3385_v36, %v7951_v13  ;;  %v2334_v0 = vld [vmem:[#allocation2] sm:$0x80]  ;;  %v2565_v52 = vshrl.u32 %v8193_v54, 16 }
 0x185   : > { %4551 = vperm.xlu1 %7050, %v8116_v1   ;;  %v2625_v28 = vmul.bf16 %v2556_v63, %v2334_v0 }
 0x186   : > { %v641_v33 = vadd.f32 %v6330_v11, %v8200_v15  ;;  %v6188_v34 = vcombine.low %v3382_v24, %v3393_v35  ;;  %v8231_v12 = vpop.permute.xlu0 %3870  ;;  %7074 = vset.pattern.permute.xlu0 %v9363_v50  ;;  %v700_v36 = vmax.f32 %v638_v47, 0.0  ;;  %v2563_v11 = vrot.slane %v2561_v57, 1 }
 0x187   : > { %v3396_v5 = vpop.permute.xlu1 %3395  ;;  %v2571_v35 = vrot.slane %v2569_v4, 1  ;;  %v2573_v24 = vshrl.u32 %v8195_v46, 16  ;;  %v2031_v46 = vor.u32 %v2030_v3, %v2027_v27  ;;  %v2040_v4 = vor.u32 %v2039_v21, %v2036_v20 }
 0x188   : > { %v701_v1 = vmax.f32 %v641_v33, 0.0  ;;  %v3546_v19 = vshrl.u32 %v6188_v34, 16  ;;  %v3549_v7 = vshll.u32 %v6188_v34, 16  ;;  %v3404_v41 = vrot.slane %v3396_v5, %v7951_v13  ;;  %v6331_v49 = vpop.f32.mrb[4].mxu0  ;;  %v8244_v33 = vld [vmem:[%s9302_s7] sm:$0xf] }
 0x189   : > { %7051 = vset.pattern.permute.xlu1 %v8204_v23  ;;  %v6332_v58 = vpop.f32.mrb[5].mxu0  ;;  %v8249_v34 = vor.u32 %v2048_v44, %v2045_v16  ;;  %v8262_v3 = vshrl.u32 %v2625_v28, 16  ;;  %v2567_v20 = vor.u32 %v2565_v52, %v2563_v11  ;;  %v2575_v44 = vor.u32 %v2573_v24, %v2571_v35 }
 0x18a   : > { %v8239_v45 = vpack.c.bf16 %v701_v1, %v700_v36  ;;  %v3548_v61 = vrot.slane %v3546_v19, 7  ;;  %v6189_v54 = vcombine.low %v3404_v41, %v3415_v62  ;;  %v6333_v47 = vadd.f32 %v6332_v58, %v6331_v49  ;;  %761 = vperm.xlu1 %7051, %v8244_v33   ;;  %v6334_v5 = vpop.f32.mrb[6].mxu0  ;;  %v8247_v57 = vpop.permute.xlu0 %3903 }
 0x18b   : > { %v6335_v0 = vpop.f32.mrb[7].mxu0  ;;  %v8251_v36 = vpop.permute.xlu1 %3417  ;;  %v8256_v58 = vsel %vm1529_vm2, %v8177_v39, %v8219_v56  ;;  %v2559_v49 = vor.u32 %v2557_v59, %v2556_v63  ;;  %v8281_v52 = vsel %vm1529_vm2, %v2031_v46, %v2040_v4 }
 0x18c   : > { %9366 = vst [vmem:[#allocation37_spill] sm:$0xff] %v8239_v45  ;;  %726 = vst [vmem:[#allocation2 + $0x8] sm:$0xff] %v8239_v45  ;;  %v3551_v62 = vor.u32 %v3549_v7, %v3548_v61  ;;  %v3554_v1 = vshrl.u32 %v6189_v54, 16  ;;  %v3557_v19 = vshll.u32 %v6189_v54, 16  ;;  %v646_v27 = vadd.f32 %v6333_v47, %v8200_v15 }
 0x18d   : > { %v6336_v21 = vadd.f32 %v6335_v0, %v6334_v5  ;;  %v2061_v16 = vmul.bf16 %v8186_v37, %v8239_v45  ;;  %v8278_v37 = vsel %vm1529_vm2, %v8219_v56, %v2031_v46 }
 0x18e   : > { %v8264_v41 = vrot.slane %v3554_v1, 7  ;;  %773 = vperm.xlu1 %7051, %v8056_v48   ;;  %v8267_v39 = vpop.permute.xlu0 %3925  ;;  %v8271_v7 = vsel %vm2650_vm1, %v8140_v30, %v3551_v62  ;;  %v2564_v48 = vsel %vm2552_vm0, %v2559_v49, %v2563_v11  ;;  %v8287_v30 = vsel %vm1529_vm2, %v2040_v4, %v8249_v34 }
 0x18f   : > { %v649_v63 = vadd.f32 %v6336_v21, %v8200_v15  ;;  %v8274_v59 = vpop.permute.xlu1 %3439  ;;  %v2094_v54 = vshrl.u32 %v2061_v16, 16  ;;  %v2097_v47 = vshll.u32 %v2061_v16, 16  ;;  %v702_v5 = vmax.f32 %v646_v27, 0.0 }
 0x190   : > { %v3559_v24 = vor.u32 %v3557_v19, %v8264_v41  ;;  %v6337_v28 = vpop.f32.mrb[8].mxu0  ;;  %v8291_v21 = vsel %vm2552_vm0, %v2567_v20, %v2571_v35  ;;  %v8295_v11 = vsel %vm2552_vm0, %v2575_v44, %v7961_v51  ;;  %v2613_v27 = vshrl.u32 %v7986_v60, 16 }
 0x191   : > { %v703_v0 = vmax.f32 %v649_v63, 0.0  ;;  %v6338_v62 = vpop.f32.mrb[9].mxu0  ;;  %v2096_v1 = vrot.slane %v2094_v54, 4  ;;  %v2099_v4 = vrot.slane %v2097_v47, 5  ;;  %v2898_v16 = vrot.slane %v7999_v29, %v7951_v13 }
 0x192   : > { %v6339_v46 = vadd.f32 %v6338_v62, %v6337_v28  ;;  %797 = vperm.xlu1 %7051, %v8025_v10   ;;  %v6340_v49 = vpop.f32.mrb[10].mxu0  ;;  %v8298_v19 = vpop.permute.xlu0 %3947  ;;  %v8308_v51 = vsel %vm2650_vm1, %v3548_v61, %v3559_v24  ;;  %v2909_v44 = vrot.slane %v8001_v2, %v7951_v13  ;;  %v2920_v54 = vrot.slane %v8012_v32, %v7951_v13 }
 0x193   : > { %v8303_v63 = vpack.c.bf16 %v703_v0, %v702_v5  ;;  %v6341_v35 = vpop.f32.mrb[11].mxu0  ;;  %v8305_v20 = vpop.permute.xlu1 %3461  ;;  %v2942_v29 = vrot.slane %v8014_v38, %v7951_v13  ;;  %v2931_v47 = vrot.slane %v8018_v17, %v7951_v13  ;;  %v2100_v5 = vor.u32 %v2099_v4, %v2096_v1 }
 0x194   : > { %v654_v28 = vadd.f32 %v6339_v46, %v8200_v15  ;;  %v6342_v60 = vadd.f32 %v6341_v35, %v6340_v49  ;;  %v2953_v2 = vrot.slane %v8029_v42, %v7951_v13  ;;  %v3526_v32 = vshll.u32 %v8091_v9, 16 }
 0x195   : > { %727 = vst [vmem:[#allocation2 + $0x10] sm:$0xff] %v8303_v63  ;;  %v2062_v61 = vmul.bf16 %v8191_v25, %v8303_v63  ;;  %v3437_v24 = vrot.slane %v8149_v22, %v7951_v13  ;;  %v3879_v17 = vrot.slane %v8231_v12, %v7951_v13  ;;  %v3426_v25 = vrot.slane %v8251_v36, %v7951_v13 }
 0x196   : > { %v657_v0 = vadd.f32 %v6342_v60, %v8200_v15  ;;  %7053 = vset.pattern.permute.xlu1 %v9363_v50  ;;  %v8329_v38 = vpop.permute.xlu0 %3969  ;;  %v9367_v42 = vor.u32 %v8164_v26, %v8155_v31  ;;  %v8340_v62 = vcombine.low %v2898_v16, %v2909_v44  ;;  %v704_v1 = vmax.f32 %v654_v28, 0.0 }
 0x197   : > { %4877 = vperm.xlu1 %7053, %v8244_v33   ;;  %v2103_v22 = vshrl.u32 %v2062_v61, 16  ;;  %v2106_v35 = vshll.u32 %v2062_v61, 16  ;;  %v8343_v12 = vor.u32 %v2613_v27, %v8003_v18  ;;  %v8345_v36 = vcombine.low %v2920_v54, %v2931_v47 }
 0x198   : > { %v2101_v9 = vsel %vm991_vm3, %v9367_v42, %v2100_v5  ;;  %9368 = vst [vmem:[#allocation38_spill] sm:$0xff] %v8340_v62  ;;  %v705_v46 = vmax.f32 %v657_v0, 0.0  ;;  %v3860_v49 = vpop.permute.xlu1 %3859  ;;  %v6343_v4 = vpop.f32.mrb[12].mxu0  ;;  %v8351_v28 = vmul.bf16 %v2564_v48, %v8239_v45  ;;  %v8353_v0 = vcombine.low %v2942_v29, %v2953_v2 }
 0x199   : > { %6597 = vmatprep.mubr.bf16.mxu1 %v2101_v9  ;;  %9369 = vst [vmem:[#allocation39_spill] sm:$0xff] %v8345_v36  ;;  %v3868_v33 = vrot.slane %v3860_v49, %v7951_v13  ;;  %v6344_v60 = vpop.f32.mrb[13].mxu0  ;;  %v2105_v31 = vrot.slane %v2103_v22, 4  ;;  %v2108_v44 = vrot.slane %v2106_v35, 5  ;;  %v8356_v61 = vor.u32 %v3526_v32, %v8121_v8 }
 0x19a   : > { %v8348_v26 = vpack.c.bf16 %v705_v46, %v704_v1  ;;  %v6345_v42 = vadd.f32 %v6344_v60, %v6343_v4  ;;  %v6346_v16 = vpop.f32.mrb[14].mxu0  ;;  %9370 = vst [vmem:[#allocation40_spill] sm:$0xff] %v8353_v0  ;;  %v8358_v18 = vcombine.low %v3426_v25, %v3437_v24  ;;  %v8361_v47 = vpop.permute.xlu0 %3991  ;;  %v3459_v8 = vrot.slane %v8175_v40, %v7951_v13  ;;  %v7126_v24 = vld [vmem:[#allocation8 + $0xc8] sm:$0xff]  }
 0x19b   : > { %v6201_v27 = vcombine.low %v3868_v33, %v3879_v17  ;;  %4899 = vperm.xlu1 %7053, %v7992_v6   ;;  %v6347_v54 = vpop.f32.mrb[15].mxu0  ;;  %v2109_v1 = vor.u32 %v2108_v44, %v2105_v31  ;;  %v3912_v6 = vrot.slane %v8247_v57, %v7951_v13  ;;  %v3448_v32 = vrot.slane %v8274_v59, %v7951_v13 }
 0x19c   : > { %728 = vst [vmem:[#allocation2 + $0x18] sm:$0xff] %v8348_v26  ;;  %v662_v9 = vadd.f32 %v6345_v42, %v8200_v15  ;;  %v6348_v22 = vadd.f32 %v6347_v54, %v6346_v16  ;;  %v3882_v48 = vpop.permute.xlu1 %3881  ;;  %v2063_v29 = vmul.bf16 %v8211_v53, %v8348_v26  ;;  %v2656_v53 = vshrl.u32 %v8351_v28, 16 }
 0x19d   : > { %v2110_v25 = vsel %vm991_vm3, %v2100_v5, %v2109_v1  ;;  %v3562_v49 = vshrl.u32 %v8358_v18, 16  ;;  %v4075_v40 = vshrl.u32 %v6201_v27, 16  ;;  %v3890_v4 = vrot.slane %v3882_v48, %v7951_v13 }
 0x19e   : > { %v665_v17 = vadd.f32 %v6348_v22, %v8200_v15  ;;  %v2112_v46 = vshrl.u32 %v2063_v29, 16  ;;  %6598 = vmatmul.mubr.bf16.vlgmr.msra.gmra.mrb[0].mxu1 %v2110_v25  ;;  %v2115_v35 = vshll.u32 %v2063_v29, 16  ;;  %v4078_v33 = vshll.u32 %v6201_v27, 16  ;;  %v8385_v54 = vpop.permute.xlu0 %4013 }
 0x19f   : > { %4910 = vperm.xlu1 %7053, %v8025_v10   ;;  %v706_v60 = vmax.f32 %v662_v9, 0.0  ;;  %6614 = vmatpush3.bf16.msra.mxu1 %v7965_v55  ;;  %v3934_v5 = vrot.slane %v8267_v39, %v7951_v13  ;;  %v7128_v10 = vld [vmem:[#allocation8 + $0xd0] sm:$0xff]   ;;  %v8390_v48 = vcombine.low %v3448_v32, %v3459_v8  ;;  %v8396_v25 = vrot.slane %v3562_v49, 7 }
 0x1a0   : > { %v707_v59 = vmax.f32 %v665_v17, 0.0  ;;  %v3893_v31 = vpop.permute.xlu1 %3892  ;;  %v2114_v42 = vrot.slane %v2112_v46, 4  ;;  %v2117_v22 = vrot.slane %v2115_v35, 5  ;;  %6615 = vmatprep.subr.bf16.mxu1 %v7126_v24  ;;  %v8394_v17 = vrot.slane %v2656_v53, 7 }
 0x1a1   : > { %v3901_v16 = vrot.slane %v3893_v31, %v7951_v13  ;;  %v6349_v44 = vpop.f32.mrb[16].mxu0  ;;  %v3956_v27 = vrot.slane %v8298_v19, %v7951_v13  ;;  %v4077_v2 = vrot.slane %v4075_v40, 4  ;;  %v4080_v8 = vrot.slane %v4078_v33, 5 }
 0x1a2   : > { %v8392_v29 = vpack.c.bf16 %v707_v59, %v706_v60  ;;  %v6350_v55 = vpop.f32.mrb[17].mxu0  ;;  %v8399_v35 = vor.u32 %v2117_v22, %v2114_v42  ;;  %v3978_v57 = vrot.slane %v8329_v38, %v7951_v13 }
 0x1a3   : > { %v6202_v46 = vcombine.low %v3890_v4, %v3901_v16  ;;  %v6351_v31 = vadd.f32 %v6350_v55, %v6349_v44  ;;  %v6352_v56 = vpop.f32.mrb[18].mxu0  ;;  %7055 = vset.pattern.permute.xlu1 %v8204_v23  ;;  %6616 = vmatpush3.bf16.msra.mxu1 %v7126_v24  ;;  %v7130_v16 = vld [vmem:[#allocation8 + $0xd8] sm:$0xff]  }
 0x1a4   : > { %729 = vst [vmem:[#allocation2 + $0x20] sm:$0xff] %v8392_v29  ;;  %v6353_v32 = vpop.f32.mrb[19].mxu0  ;;  %821 = vperm.xlu1 %7055, %v8037_v43   ;;  %v3915_v53 = vpop.permute.xlu1 %3914  ;;  %v2064_v49 = vmul.bf16 %v8256_v58, %v8392_v29  ;;  %6617 = vmatprep.subr.bf16.mxu1 %v7128_v10  ;;  %v2119_v44 = vsel %vm991_vm3, %v2109_v1, %v8399_v35 }
 0x1a5   : > { %v4083_v4 = vshrl.u32 %v6202_v46, 16  ;;  %v4086_v60 = vshll.u32 %v6202_v46, 16  ;;  %v670_v59 = vadd.f32 %v6351_v31, %v8200_v15  ;;  %v6354_v42 = vadd.f32 %v6353_v32, %v6352_v56  ;;  %v8414_v46 = vpop.permute.xlu0 %1099  ;;  %6601 = vmatprep.mubr.bf16.mxu1 %v2119_v44  ;;  %v7225_v44 = vld [vmem:[%s9302_s7 + $0x10] sm:$0xf] }
 0x1a6   : > { %v3923_v33 = vrot.slane %v3915_v53, %v7951_v13  ;;  %v2121_v43 = vshrl.u32 %v2064_v49, 16  ;;  %v8418_v31 = vor.u32 %v4080_v8, %v4077_v2  ;;  %v2124_v2 = vshll.u32 %v2064_v49, 16  ;;  %v7132_v8 = vld [vmem:[#allocation8 + $0xe0] sm:$0xff]  }
 0x1a7   : > { %v4085_v55 = vrot.slane %v4083_v4, 4  ;;  %v4088_v58 = vrot.slane %v4086_v60, 5  ;;  %v673_v24 = vadd.f32 %v6354_v42, %v8200_v15  ;;  %v708_v32 = vmax.f32 %v670_v59, 0.0  ;;  %6618 = vmatpush3.bf16.msra.mxu1 %v7128_v10 }
 0x1a8   : > { %v6203_v1 = vcombine.low %v3912_v6, %v3923_v33  ;;  %7056 = vset.pattern.permute.xlu1 %v9363_v50  ;;  %v3937_v53 = vpop.permute.xlu1 %3936  ;;  %6619 = vmatprep.subr.bf16.mxu1 %v7130_v16  ;;  %v2123_v10 = vrot.slane %v2121_v43, 4  ;;  %v2126_v43 = vrot.slane %v2124_v2, 5 }
 0x1a9   : > { %v4089_v4 = vor.u32 %v4088_v58, %v4085_v55  ;;  %v709_v60 = vmax.f32 %v673_v24, 0.0  ;;  %v3945_v42 = vrot.slane %v3937_v53, %v7951_v13  ;;  %v6355_v22 = vpop.f32.mrb[20].mxu0  ;;  %4921 = vperm.xlu1 %7056, %v7225_v44  }
 0x1aa   : > { %v4092_v6 = vshrl.u32 %v6203_v1, 16  ;;  %v4095_v59 = vshll.u32 %v6203_v1, 16  ;;  %v6356_v33 = vpop.f32.mrb[21].mxu0  ;;  %v8453_v2 = vor.u32 %v2126_v43, %v2123_v10 }
 0x1ab   : > { %v8432_v55 = vsel %vm991_vm3, %v8418_v31, %v4089_v4  ;;  %v8434_v58 = vpack.c.bf16 %v709_v60, %v708_v32  ;;  %v6204_v24 = vcombine.low %v3934_v5, %v3945_v42  ;;  %v6357_v49 = vadd.f32 %v6356_v33, %v6355_v22  ;;  %v6358_v53 = vpop.f32.mrb[22].mxu0  ;;  %6620 = vmatpush3.bf16.msra.mxu1 %v7130_v16  ;;  %v8442_v60 = vpop.permute.xlu0 %1132  ;;  %v7134_v42 = vld [vmem:[#allocation8 + $0xe8] sm:$0xff]   ;;  %v8450_v16 = vld [vmem:[%s9302_s7 + $0x34] sm:$0xf] }
 0x1ac   : > { %9371 = vst [vmem:[#allocation41_spill] sm:$0xff] %v8432_v55  ;;  %v4094_v38 = vrot.slane %v4092_v6, 4  ;;  %v4097_v56 = vrot.slane %v4095_v59, 5  ;;  %v6359_v1 = vpop.f32.mrb[23].mxu0  ;;  %v3959_v40 = vpop.permute.xlu1 %3958  ;;  %v9372_v22 = vmov 1   ;;  %6621 = vmatprep.subr.bf16.mxu1 %v7132_v8  ;;  %9373 = vst [vmem:[#allocation42_spill] sm:$0xff] %v8450_v16 }
 0x1ad   : > { %730 = vst [vmem:[#allocation2 + $0x28] sm:$0xff] %v8434_v58  ;;  %v4101_v9 = vshrl.u32 %v6204_v24, 16  ;;  %v4104_v32 = vshll.u32 %v6204_v24, 16  ;;  %v678_v39 = vadd.f32 %v6357_v49, %v8200_v15  ;;  %v6360_v5 = vadd.f32 %v6359_v1, %v6358_v53  ;;  %7057 = vset.pattern.permute.xlu1 %v9372_v22 }
 0x1ae   : > { %v4098_v33 = vor.u32 %v4097_v56, %v4094_v38  ;;  %v3967_v6 = vrot.slane %v3959_v40, %v7951_v13  ;;  %1242 = vperm.xlu1 %7057, %v8450_v16   ;;  %v2065_v59 = vmul.bf16 %v8278_v37, %v8434_v58  ;;  %v8460_v56 = vmul.bf16 %v8291_v21, %v8303_v63 }
 0x1af   : > { %v4103_v24 = vrot.slane %v4101_v9, 4  ;;  %v4106_v49 = vrot.slane %v4104_v32, 5  ;;  %v681_v53 = vadd.f32 %v6360_v5, %v8200_v15  ;;  %v710_v38 = vmax.f32 %v678_v39, 0.0  ;;  %6622 = vmatpush3.bf16.msra.mxu1 %v7132_v8 }
 0x1b0   : > { %v8463_v40 = vsel %vm991_vm3, %v4089_v4, %v4098_v33  ;;  %v6205_v10 = vcombine.low %v3956_v27, %v3967_v6  ;;  %v3981_v1 = vpop.permute.xlu1 %3980  ;;  %v2128_v37 = vsel %vm991_vm3, %v8399_v35, %v8453_v2  ;;  %v2130_v5 = vshrl.u32 %v2065_v59, 16  ;;  %6623 = vmatprep.subr.bf16.mxu1 %v7134_v42  ;;  %v7136_v4 = vld [vmem:[#allocation8 + $0xf0] sm:$0xff]   ;;  %v8477_v35 = vld [vmem:[%s9302_s7 + $0x38] sm:$0xf] }
 0x1b1   : > { %v4107_v9 = vor.u32 %v4106_v49, %v4103_v24  ;;  %v711_v43 = vmax.f32 %v681_v53, 0.0  ;;  %v3989_v32 = vrot.slane %v3981_v1, %v7951_v13  ;;  %v6361_v21 = vpop.f32.mrb[24].mxu0  ;;  %6602 = vmatmul.mubr.bf16.gmra.mrb[4].mxu1 %v2128_v37  ;;  %v4022_v39 = vrot.slane %v8385_v54, %v7951_v13  ;;  %9374 = vst [vmem:[#allocation43_spill] sm:$0xff] %v8477_v35  ;;  %v8485_v53 = vpop.permute.xlu0 %1176 }
 0x1b2   : > { %v4110_v19 = vshrl.u32 %v6205_v10, 16  ;;  %v4113_v27 = vshll.u32 %v6205_v10, 16  ;;  %v6362_v6 = vpop.f32.mrb[25].mxu0  ;;  %1253 = vperm.xlu1 %7057, %v8477_v35   ;;  %v2133_v8 = vshll.u32 %v2065_v59, 16  ;;  %v2132_v62 = vrot.slane %v2130_v5, 4 }
 0x1b3   : > { %v8481_v24 = vsel %vm991_vm3, %v4098_v33, %v4107_v9  ;;  %v8483_v49 = vpack.c.bf16 %v711_v43, %v710_v38  ;;  %v6206_v1 = vcombine.low %v3978_v57, %v3989_v32  ;;  %v6363_v54 = vadd.f32 %v6362_v6, %v6361_v21  ;;  %v6364_v37 = vpop.f32.mrb[26].mxu0  ;;  %6624 = vmatpush3.bf16.msra.mxu1 %v7134_v42  ;;  %v7138_v43 = vld [vmem:[#allocation8 + $0xf8] sm:$0xff]  }
 0x1b4   : > { %9375 = vst [vmem:[#allocation44_spill] sm:$0xff] %v8481_v24  ;;  %v4112_v10 = vrot.slane %v4110_v19, 4  ;;  %v4115_v44 = vrot.slane %v4113_v27, 5  ;;  %v6365_v0 = vpop.f32.mrb[27].mxu0  ;;  %v4003_v36 = vpop.permute.xlu1 %4002  ;;  %v2135_v16 = vrot.slane %v2133_v8, 5  ;;  %6625 = vmatprep.subr.bf16.mxu1 %v7136_v4  ;;  %v8489_v24 = vld [vmem:[#allocation8] sm:$0xff]   ;;  %v1108_v57 = vrot.slane %v8414_v46, %v7951_v13 }
 0x1b5   : > { %731 = vst [vmem:[#allocation2 + $0x30] sm:$0xff] %v8483_v49  ;;  %v4119_v59 = vshrl.u32 %v6206_v1, 16  ;;  %v4122_v55 = vshll.u32 %v6206_v1, 16  ;;  %v686_v33 = vadd.f32 %v6363_v54, %v8200_v15  ;;  %v6366_v38 = vadd.f32 %v6365_v0, %v6364_v37  ;;  %6549 = vmatprep.subr.bf16.mxu0 %v8489_v24  ;;  %v8515_v8 = vpop.permute.xlu0 %1220 }
 0x1b6   : > { %v4116_v32 = vor.u32 %v4115_v44, %v4112_v10  ;;  %v4011_v21 = vrot.slane %v4003_v36, %v7951_v13  ;;  %v9376_v5 = vmov 7   ;;  %v8495_v42 = vor.u32 %v2135_v16, %v2132_v62  ;;  %9378 = vst [vmem:[#allocation45_spill] sm:$0xff] %v8515_v8 }
 0x1b7   : > { %7058 = vset.pattern.permute.xlu1 %v9376_v5  ;;  %v4121_v19 = vrot.slane %v4119_v59, 4  ;;  %v4124_v27 = vrot.slane %v4122_v55, 5  ;;  %v689_v6 = vadd.f32 %v6366_v38, %v8200_v15  ;;  %v8501_v0 = vmul.bf16 %v8295_v11, %v8348_v26  ;;  %6626 = vmatpush3.bf16.msra.mxu1 %v7136_v4 }
 0x1b8   : > { %4584 = vperm.xlu1 %7058, %v8477_v35   ;;  %v8505_v46 = vsel %vm991_vm3, %v4107_v9, %v4116_v32  ;;  %v9377_v36 = vrot.slane %v8361_v47, %v7951_v13  ;;  %v4025_v44 = vpop.permute.xlu1 %4024  ;;  %v2137_v55 = vsel %vm991_vm3, %v8453_v2, %v8495_v42  ;;  %v2066_v16 = vmul.bf16 %v8281_v52, %v8483_v49  ;;  %v8518_v47 = vld [vmem:[#allocation8 + $0x100] sm:$0xff]  }
 0x1b9   : > { %v4125_v11 = vor.u32 %v4124_v27, %v4121_v19  ;;  %v712_v1 = vmax.f32 %v686_v33, 0.0  ;;  %v713_v54 = vmax.f32 %v689_v6, 0.0  ;;  %v4033_v9 = vrot.slane %v4025_v44, %v7951_v13  ;;  %v6367_v37 = vpop.f32.mrb[28].mxu0  ;;  %6605 = vmatprep.mubr.bf16.mxu1 %v2137_v55  ;;  %6627 = vmatprep.subr.bf16.mxu1 %v7138_v43  ;;  %v9380_v44 = vld [vmem:[#allocation36_spill] sm:$0xff] }
 0x1ba   : > { %v6207_v62 = vcombine.low %v9377_v36, %v4011_v21  ;;  %v6112_v10 = vcombine.low %v1108_v57, %v1108_v57  ;;  %v6368_v2 = vpop.f32.mrb[29].mxu0  ;;  %v2139_v21 = vshrl.u32 %v2066_v16, 16 }
 0x1bb   : > { %v8521_v52 = vsel %vm991_vm3, %v4116_v32, %v4125_v11  ;;  %v8523_v4 = vpack.c.bf16 %v713_v54, %v712_v1  ;;  %v8525_v5 = vcombine.low %v4022_v39, %v4033_v9  ;;  %v6369_v33 = vadd.f32 %v6368_v2, %v6367_v37  ;;  %v6370_v19 = vpop.f32.mrb[30].mxu0  ;;  %6628 = vmatpush3.bf16.msra.mxu1 %v7138_v43  ;;  %v9385_v2 = vld [vmem:[#allocation30_spill] sm:$0xff] }
 0x1bc   : > { %v4128_v59 = vshrl.u32 %v6207_v62, 16  ;;  %v4131_v38 = vshll.u32 %v6207_v62, 16  ;;  %9379 = vst [vmem:[#allocation46_spill] sm:$0xff] %v8521_v52  ;;  %7059 = vset.pattern.permute.xlu1 %v9372_v22  ;;  %v6371_v36 = vpop.f32.mrb[31].mxu0  ;;  %v2141_v57 = vrot.slane %v2139_v21, 4  ;;  %v2142_v62 = vshll.u32 %v2066_v16, 16  ;;  %6645 = vmatprep.subr.bf16.mxu1 %v8518_v47 }
 0x1bd   : > { %1264 = vperm.xlu1 %7059, %v9380_v44   ;;  %v9381_v32 = vshll.u32 %v8358_v18, 16  ;;  %v9382_v39 = vshrl.u32 %v8390_v48, 16  ;;  %732 = vst [vmem:[#allocation2 + $0x38] sm:$0xff] %v8523_v4  ;;  %v694_v22 = vadd.f32 %v6369_v33, %v8200_v15  ;;  %v6372_v54 = vadd.f32 %v6371_v36, %v6370_v19  ;;  %v1111_v9 = vpop.permute.xlu1 %1110  ;;  %v8553_v33 = vpop.permute.xlu0 %785 }
 0x1be   : > { %v4130_v27 = vrot.slane %v4128_v59, 4  ;;  %v4133_v6 = vrot.slane %v4131_v38, 5  ;;  %v9383_v43 = vrot.slane %v8202_v14, %v7951_v13  ;;  %v9384_v18 = vrot.slane %v8305_v20, %v7951_v13  ;;  %9386 = vst [vmem:[#allocation36_spill] sm:$0xff] %v8553_v33 }
 0x1bf   : > { %v8532_v55 = vor.u32 %v9381_v32, %v8396_v25  ;;  %v8536_v1 = vrot.slane %v9382_v39, 7  ;;  %v2144_v59 = vrot.slane %v2142_v62, 5  ;;  %v2659_v38 = vshll.u32 %v8351_v28, 16  ;;  %v9388_v32 = vld [vmem:[#allocation19_spill] sm:$0xff]  ;;  %v9389_v39 = vld [vmem:[#allocation20_spill] sm:$0xff] }
 0x1c0   : > { %v8547_v16 = vcombine.low %v9384_v18, %v9383_v43  ;;  %v8549_v37 = vor.u32 %v4133_v6, %v4130_v27  ;;  %v1324_v21 = vmul.bf16 %v6112_v10, %v9385_v2  ;;  %v697_v19 = vadd.f32 %v6372_v54, %v8200_v15  ;;  %v7228_v15 = vld [vmem:[%s9302_s7 + $0x18] sm:$0xf] }
 0x1c1   : > { %v2664_v36 = vshrl.u32 %v8460_v56, 16  ;;  %v2672_v14 = vshrl.u32 %v8501_v0, 16  ;;  %v1119_v27 = vrot.slane %v1111_v9, %v7951_v13  ;;  %7061 = vset.pattern.permute.xlu1 %v8204_v23  ;;  %v2145_v28 = vor.u32 %v2144_v59, %v2141_v57  ;;  %v1122_v62 = vpop.permute.xlu1 %1121  ;;  %v8585_v8 = vpop.permute.xlu0 %809 }
 0x1c2   : > { %v8560_v20 = vsel %vm991_vm3, %v4125_v11, %v8549_v37  ;;  %v2067_v10 = vmul.bf16 %v8287_v30, %v8523_v4  ;;  %v714_v6 = vmax.f32 %v694_v22, 0.0  ;;  %v715_v44 = vmax.f32 %v697_v19, 0.0  ;;  %833 = vperm.xlu1 %7061, %v7228_v15   ;;  %9391 = vst [vmem:[#allocation20_spill] sm:$0xff] %v8585_v8 }
 0x1c3   : > { %9387 = vst [vmem:[#allocation30_spill] sm:$0xff] %v8560_v20  ;;  %v2629_v11 = vmul.bf16 %v9388_v32, %v8392_v29  ;;  %v2630_v54 = vmul.bf16 %v9389_v39, %v8434_v58  ;;  %v1130_v9 = vrot.slane %v1122_v62, %v7951_v13  ;;  %v2146_v57 = vsel %vm991_vm3, %v8495_v42, %v2145_v28 }
 0x1c4   : > { %v2148_v30 = vshrl.u32 %v2067_v10, 16  ;;  %v8577_v22 = vor.u32 %v2659_v38, %v8394_v17  ;;  %v8581_v59 = vpack.c.bf16 %v715_v44, %v714_v6  ;;  %6606 = vmatmul.mubr.bf16.gmra.mrb[8].mxu1 %v2146_v57  ;;  %v2151_v2 = vshll.u32 %v2067_v10, 16 }
 0x1c5   : > { %v6113_v19 = vcombine.low %v1119_v27, %v1130_v9  ;;  %v8583_v39 = vrot.slane %v2664_v36, 7  ;;  %v2680_v62 = vshrl.u32 %v2629_v11, 16  ;;  %v1359_v33 = vrot.slane %v1324_v21, 4 }
 0x1c6   : > { %9390 = vst [vmem:[#allocation19_spill] sm:$0xff] %v8581_v59  ;;  %v2150_v32 = vrot.slane %v2148_v30, 4  ;;  %733 = vst [vmem:[#allocation2 + $0x40] sm:$0xff] %v8581_v59  ;;  %7062 = vset.pattern.permute.xlu1 %v9363_v50  ;;  %v2153_v42 = vrot.slane %v2151_v2, 5  ;;  %v8589_v38 = vrot.slane %v2672_v14, 7  ;;  %v2688_v18 = vshrl.u32 %v2630_v54, 16  ;;  %v4442_v27 = vpop.permute.xlu1 %4441 }
 0x1c7   : > { %v4137_v6 = vshrl.u32 %v8525_v5, 16  ;;  %v1325_v10 = vmul.bf16 %v6113_v19, %v8239_v45  ;;  %4943 = vperm.xlu1 %7062, %v7228_v15   ;;  %v2682_v36 = vrot.slane %v2680_v62, 7  ;;  %v2683_v44 = vshll.u32 %v2629_v11, 16  ;;  %v9392_v30 = vld [vmem:[#allocation21_spill] sm:$0xff]  ;;  %v9393_v2 = vld [vmem:[#allocation22_spill] sm:$0xff] }
 0x1c8   : > { %v8593_v9 = vor.u32 %v2153_v42, %v2150_v32  ;;  %v2690_v21 = vrot.slane %v2688_v18, 7  ;;  %v2691_v57 = vshll.u32 %v2630_v54, 16  ;;  %v2631_v43 = vmul.bf16 %v9392_v30, %v8483_v49  ;;  %v7229_v62 = vld [vmem:[%s9302_s7 + $0x1c] sm:$0xf] }
 0x1c9   : > { %v8597_v8 = vrot.slane %v1325_v10, 4  ;;  %v2685_v14 = vor.u32 %v2683_v44, %v2682_v36  ;;  %v2632_v20 = vmul.bf16 %v9393_v2, %v8523_v4  ;;  %v2633_v19 = vmul.bf16 %v8343_v12, %v8581_v59 }
 0x1ca   : > { %v4450_v15 = vrot.slane %v4442_v27, %v7951_v13  ;;  %v2155_v11 = vsel %vm991_vm3, %v2145_v28, %v8593_v9  ;;  %v2693_v32 = vor.u32 %v2691_v57, %v2690_v21  ;;  %v2696_v18 = vshrl.u32 %v2631_v43, 16  ;;  %v4453_v42 = vpop.permute.xlu1 %4452  ;;  %v8616_v28 = vpop.permute.xlu0 %4430 }
 0x1cb   : > { %v4140_v54 = vshll.u32 %v8525_v5, 16  ;;  %4954 = vperm.xlu1 %7062, %v7229_v62   ;;  %v1361_v10 = vsel %vm1358_vm4, %v1359_v33, %v8597_v8  ;;  %6609 = vmatprep.mubr.bf16.mxu1 %v2155_v11  ;;  %v8614_v12 = vsel %vm2650_vm1, %v8589_v38, %v2685_v14  ;;  %v2704_v27 = vshrl.u32 %v2632_v20, 16  ;;  %9394 = vst [vmem:[#allocation21_spill] sm:$0xff] %v8616_v28 }
 0x1cc   : > { %v4461_v44 = vrot.slane %v4453_v42, %v7951_v13  ;;  %6533 = vmatprep.mubr.bf16.mxu0 %v1361_v10  ;;  %v8620_v5 = vsel %vm2650_vm1, %v2682_v36, %v2693_v32  ;;  %v2698_v57 = vrot.slane %v2696_v18, 7  ;;  %v2699_v30 = vshll.u32 %v2631_v43, 16 }
 0x1cd   : > { %v1141_v2 = vrot.slane %v8442_v60, %v7951_v13  ;;  %v1763_v33 = vld [vmem:[#allocation2 + $0x40] sm:$0x1f]  ;;  %v2706_v11 = vrot.slane %v2704_v27, 7  ;;  %v2707_v62 = vshll.u32 %v2632_v20, 16  ;;  %v2712_v59 = vshrl.u32 %v2633_v19, 16 }
 0x1ce   : > { %v4139_v14 = vrot.slane %v4137_v6, 4  ;;  %v8624_v45 = vcombine.low %v4450_v15, %v4461_v44  ;;  %v2068_v28 = vmul.bf16 %v8249_v34, %v1763_v33  ;;  %v2701_v52 = vor.u32 %v2699_v30, %v2698_v57  ;;  %v7230_v60 = vld [vmem:[%s9302_s7 + $0x24] sm:$0xf]  ;;  %v8631_v20 = vpop.permute.xlu0 %4474  ;;  %v3297_v30 = vld [vmem:[#allocation2 + $0x8] sm:$0xff] }
 0x1cf   : > { %v4142_v42 = vrot.slane %v4140_v54, 5  ;;  %7063 = vset.pattern.permute.xlu1 %v8204_v23  ;;  %v2709_v36 = vor.u32 %v2707_v62, %v2706_v11  ;;  %v2714_v32 = vrot.slane %v2712_v59, 7  ;;  %v2715_v18 = vshll.u32 %v2633_v19, 16  ;;  %v1144_v43 = vpop.permute.xlu1 %1143  ;;  %v9395_v59 = vld [vmem:[#allocation34_spill] sm:$0xff] }
 0x1d0   : > { %869 = vperm.xlu1 %7063, %v7230_v60   ;;  %v2157_v6 = vshrl.u32 %v2068_v28, 16  ;;  %v2160_v15 = vshll.u32 %v2068_v28, 16  ;;  %v2667_v10 = vshll.u32 %v8460_v56, 16  ;;  %v8635_v34 = vsel %vm2650_vm1, %v2690_v21, %v2701_v52 }
 0x1d1   : > { %v1152_v54 = vrot.slane %v1144_v43, %v7951_v13  ;;  %v8640_v19 = vmul.bf16 %v9395_v59, %v8348_v26  ;;  %v8643_v27 = vsel %vm2650_vm1, %v2698_v57, %v2709_v36  ;;  %v2717_v44 = vor.u32 %v2715_v18, %v2714_v32 }
 0x1d2   : > { %v9396_v33 = vshrl.u32 %v8547_v16, 16  ;;  %v2159_v28 = vrot.slane %v2157_v6, 4  ;;  %v2162_v56 = vrot.slane %v2160_v15, 5  ;;  %v2669_v52 = vor.u32 %v2667_v10, %v8583_v39  ;;  %v8660_v18 = vpop.permute.xlu0 %4485 }
 0x1d3   : > { %v6114_v21 = vcombine.low %v1141_v2, %v1152_v54  ;;  %v2675_v43 = vshll.u32 %v8501_v0, 16  ;;  %v8652_v35 = vsel %vm2650_vm1, %v2706_v11, %v2717_v44  ;;  %v4143_v59 = vor.u32 %v4142_v42, %v4139_v14  ;;  %v9398_v2 = vld [vmem:[#allocation32_spill] sm:$0xff]  ;;  %v3856_v54 = vld [vmem:[#allocation2 + $0x8] sm:$0xf8] }
 0x1d4   : > { %v8647_v62 = vrot.slane %v9396_v33, 7  ;;  %v9397_v57 = vshll.u32 %v8390_v48, 16  ;;  %7065 = vset.pattern.permute.xlu1 %v9363_v50  ;;  %v2163_v32 = vor.u32 %v2162_v56, %v2159_v28  ;;  %v3594_v6 = vmul.bf16 %v8356_v61, %v3297_v30  ;;  %v8666_v11 = vpop.permute.xlu1 %4463 }
 0x1d5   : > { %v3595_v15 = vmul.bf16 %v9398_v2, %v8303_v63  ;;  %v1326_v0 = vmul.bf16 %v6114_v21, %v8303_v63  ;;  %4976 = vperm.xlu1 %7065, %v7230_v60   ;;  %v2677_v14 = vor.u32 %v2675_v43, %v8589_v38  ;;  %v8671_v48 = vsel %vm991_vm3, %v8549_v37, %v4143_v59  ;;  %v7162_v21 = vld [vmem:[#allocation8 + $0x8] sm:$0xff]  }
 0x1d6   : > { %v8657_v36 = vor.u32 %v9397_v57, %v8536_v1  ;;  %v3635_v42 = vshll.u32 %v8640_v19, 16  ;;  %v9399_v10 = vshll.u32 %v8547_v16, 16  ;;  %v2164_v44 = vsel %vm991_vm3, %v8593_v9, %v2163_v32  ;;  %v7231_v32 = vld [vmem:[%s9302_s7 + $0x28] sm:$0xf] }
 0x1d7   : > { %v9400_v60 = vrot.slane %v8262_v3, 7  ;;  %v3622_v30 = vshll.u32 %v3594_v6, 16  ;;  %v8686_v37 = vmul.bf16 %v8418_v31, %v3856_v54  ;;  %v1185_v33 = vrot.slane %v8485_v53, %v7951_v13  ;;  %6610 = vmatmul.mubr.bf16.gmra.mrb[12].mxu1 %v2164_v44  ;;  %v8698_v3 = vpop.permute.xlu0 %4518 }
 0x1d8   : > { %v8677_v61 = vor.u32 %v9399_v10, %v8647_v62  ;;  %v8690_v28 = vrot.slane %v1326_v0, 4  ;;  %v2670_v16 = vsel %vm2650_vm1, %v8394_v17, %v2669_v52  ;;  %v8696_v9 = vmul.bf16 %v8463_v40, %v8348_v26  ;;  %v3857_v52 = vld [vmem:[#allocation2 + $0x48] sm:$0xf] }
 0x1d9   : > { %v2662_v38 = vsel %vm2650_vm1, %v9400_v60, %v8577_v22  ;;  %v3620_v22 = vshrl.u32 %v3594_v6, 16  ;;  %v3624_v56 = vrot.slane %v3622_v30, 1  ;;  %v3627_v31 = vshll.u32 %v3595_v15, 16  ;;  %7066 = vset.pattern.permute.xlu1 %v8204_v23  ;;  %v1155_v6 = vpop.permute.xlu1 %1154 }
 0x1da   : > { %6629 = vmatprep.mubr.bf16.mxu1 %v2662_v38  ;;  %v4483_v43 = vrot.slane %v8631_v20, %v7951_v13  ;;  %v1363_v17 = vsel %vm1358_vm4, %v8597_v8, %v8690_v28  ;;  %v2678_v40 = vsel %vm2650_vm1, %v8583_v39, %v2677_v14  ;;  %v3637_v57 = vrot.slane %v3635_v42, 1  ;;  %881 = vperm.xlu1 %7066, %v7231_v32   ;;  %v7140_v38 = vld [vmem:[#allocation8 + $0x108] sm:$0xff]  }
 0x1db   : > { %6534 = vmatmul.mubr.bf16.vlgmr.msra.gmra.mrb[32].mxu0 %v1363_v17  ;;  %v3625_v2 = vor.u32 %v3624_v56, %v3620_v22  ;;  %v3629_v20 = vrot.slane %v3627_v31, 1  ;;  %v3631_v0 = vshrl.u32 %v3595_v15, 16  ;;  %v3597_v23 = vmul.bf16 %v8271_v7, %v8392_v29  ;;  %v7164_v31 = vld [vmem:[#allocation8 + $0x10] sm:$0xff]  }
 0x1dc   : > { %v4494_v8 = vrot.slane %v8660_v18, %v7951_v13  ;;  %v4527_v39 = vrot.slane %v8698_v3, %v7951_v13  ;;  %v3639_v14 = vshrl.u32 %v8640_v19, 16  ;;  %v3598_v42 = vmul.bf16 %v8308_v51, %v8434_v58  ;;  %6550 = vmatpush3.bf16.msra.mxu0 %v8489_v24 }
 0x1dd   : > { %v8721_v10 = vmul.bf16 %v4143_v59, %v3857_v52  ;;  %v8724_v15 = vsel %vm2552_vm0, %v3625_v2, %v3629_v20  ;;  %v3633_v54 = vor.u32 %v3631_v0, %v3629_v20  ;;  %v3643_v7 = vshll.u32 %v3597_v23, 16  ;;  %6551 = vmatprep.subr.bf16.mxu0 %v7162_v21  ;;  %v1166_v51 = vpop.permute.xlu1 %1165  ;;  %v8745_v20 = vld [vmem:[#allocation2 + $0x40] sm:$0xff] }
 0x1de   : > { %v4472_v44 = vrot.slane %v8666_v11, %v7951_v13  ;;  %v1163_v60 = vrot.slane %v1155_v6, %v7951_v13  ;;  %v3641_v19 = vor.u32 %v3639_v14, %v3637_v57  ;;  %v3651_v30 = vshll.u32 %v3598_v42, 16  ;;  %7067 = vset.pattern.permute.xlu1 %v9363_v50 }
 0x1df   : > { %v8731_v24 = vsel %vm2552_vm0, %v3633_v54, %v3637_v57  ;;  %v3645_v59 = vrot.slane %v3643_v7, 1  ;;  %v3647_v22 = vshrl.u32 %v3597_v23, 16  ;;  %v3568_v56 = vsel %vm2650_vm1, %v8264_v41, %v8532_v55  ;;  %6630 = vmatmul.mubr.bf16.vlgmr.msra.gmra.mrb[0].mxu1 %v2670_v16  ;;  %4987 = vperm.xlu1 %7067, %v7231_v32   ;;  %v7141_v16 = vld [vmem:[#allocation8 + $0x110] sm:$0xff]   ;;  %v7166_v7 = vld [vmem:[#allocation8 + $0x18] sm:$0xff]  }
 0x1e0   : > { %v4656_v11 = vmul.bf16 %v8624_v45, %v8303_v63  ;;  %v1174_v17 = vrot.slane %v1166_v51, %v7951_v13  ;;  %v3653_v52 = vrot.slane %v3651_v30, 1  ;;  %v3599_v6 = vmul.bf16 %v3568_v56, %v8483_v49  ;;  %6646 = vmatpush3.bf16.msra.mxu1 %v8518_v47  ;;  %6633 = vmatprep.mubr.bf16.mxu1 %v2678_v40  ;;  %v3305_v47 = vld [vmem:[#allocation2 + $0x48] sm:$0x1] }
 0x1e1   : > { %v4251_v57 = vshrl.u32 %v8721_v10, 16  ;;  %v8743_v2 = vsel %vm2552_vm0, %v3641_v19, %v3645_v59  ;;  %v3649_v41 = vor.u32 %v3647_v22, %v3645_v59  ;;  %v3655_v55 = vshrl.u32 %v3598_v42, 16  ;;  %6647 = vmatprep.subr.bf16.mxu1 %v7140_v38  ;;  %6552 = vmatpush3.bf16.msra.mxu0 %v7162_v21  ;;  %v7232_v21 = vld [vmem:[%s9302_s7 + $0x2c] sm:$0xf] }
 0x1e2   : > { %v8747_v0 = vcombine.low %v4472_v44, %v4483_v43  ;;  %v6115_v23 = vcombine.low %v1163_v60, %v1174_v17  ;;  %v4254_v32 = vshll.u32 %v8721_v10, 16  ;;  %v3659_v14 = vshll.u32 %v3599_v6, 16  ;;  %6553 = vmatprep.subr.bf16.mxu0 %v7164_v31  ;;  %v4497_v60 = vpop.permute.xlu1 %4496 }
 0x1e3   : > { %v8751_v40 = vsel %vm2552_vm0, %v3649_v41, %v3653_v52  ;;  %v3657_v54 = vor.u32 %v3655_v55, %v3653_v52  ;;  %v3576_v42 = vsel %vm2650_vm1, %v8396_v25, %v8657_v36  ;;  %v3584_v43 = vsel %vm2650_vm1, %v8536_v1, %v8677_v61  ;;  %4998 = vperm.xlu1 %7067, %v7232_v21   ;;  %v9401_v61 = vld [vmem:[#allocation41_spill] sm:$0xff] }
 0x1e4   : > { %v1327_v44 = vmul.bf16 %v6115_v23, %v8348_v26  ;;  %v3661_v19 = vrot.slane %v3659_v14, 1  ;;  %v3600_v30 = vmul.bf16 %v3576_v42, %v8523_v4  ;;  %v3601_v51 = vmul.bf16 %v3584_v43, %v8745_v20  ;;  %6648 = vmatpush3.bf16.msra.mxu1 %v7140_v38  ;;  %v8783_v23 = vld [vmem:[#allocation2] sm:$0xff] }
 0x1e5   : > { %v4505_v25 = vrot.slane %v4497_v60, %v7951_v13  ;;  %v3663_v36 = vshrl.u32 %v3599_v6, 16  ;;  %v3602_v1 = vmul.bf16 %v8647_v62, %v3305_v47  ;;  %v4155_v59 = vmul.bf16 %v9401_v61, %v8303_v63  ;;  %6649 = vmatprep.subr.bf16.mxu1 %v7141_v16  ;;  %6554 = vmatpush3.bf16.msra.mxu0 %v7164_v31  ;;  %v7142_v6 = vld [vmem:[#allocation8 + $0x118] sm:$0xff]   ;;  %v7168_v47 = vld [vmem:[#allocation8 + $0x20] sm:$0xff]  }
 0x1e6   : > { %v8769_v22 = vrot.slane %v1327_v44, 4  ;;  %v8772_v56 = vsel %vm2552_vm0, %v3657_v54, %v3661_v19  ;;  %v3667_v17 = vshll.u32 %v3600_v30, 16  ;;  %v4180_v52 = vshrl.u32 %v8686_v37, 16  ;;  %6555 = vmatprep.subr.bf16.mxu0 %v7166_v7  ;;  %v9402_v44 = vld [vmem:[#allocation42_spill] sm:$0xff] }
 0x1e7   : > { %v8778_v38 = vcombine.low %v4494_v8, %v4505_v25  ;;  %v8780_v62 = vrot.slane %v4251_v57, 3  ;;  %v3665_v41 = vor.u32 %v3663_v36, %v3661_v19  ;;  %v3675_v55 = vshll.u32 %v3601_v51, 16  ;;  %6634 = vmatmul.mubr.bf16.gmra.mrb[4].mxu1 %v8614_v12  ;;  %7068 = vset.pattern.permute.xlu1 %v8783_v23  ;;  %v1188_v57 = vpop.permute.xlu1 %1187  ;;  %v7143_v60 = vld [vmem:[#allocation8 + $0x120] sm:$0xff]  }
 0x1e8   : > { %v1365_v31 = vsel %vm1358_vm4, %v8690_v28, %v8769_v22  ;;  %v3669_v14 = vrot.slane %v3667_v17, 1  ;;  %v3671_v18 = vshrl.u32 %v3600_v30, 16  ;;  %v3683_v8 = vshll.u32 %v3602_v1, 16  ;;  %6650 = vmatpush3.bf16.msra.mxu1 %v7141_v16  ;;  %6637 = vmatprep.mubr.bf16.mxu1 %v8620_v5  ;;  %v7170_v17 = vld [vmem:[#allocation8 + $0x28] sm:$0xff]  }
 0x1e9   : > { %v3677_v54 = vrot.slane %v3675_v55, 1  ;;  %v3679_v42 = vshrl.u32 %v3601_v51, 16  ;;  %v4183_v12 = vshll.u32 %v8686_v37, 16  ;;  %v4188_v43 = vshrl.u32 %v4155_v59, 16  ;;  %917 = vperm.xlu1 %7068, %v9402_v44   ;;  %6537 = vmatprep.mubr.bf16.mxu0 %v1365_v31  ;;  %v9403_v31 = vld [vmem:[#allocation44_spill] sm:$0xff] }
 0x1ea   : > { %v1196_v21 = vrot.slane %v1188_v57, %v7951_v13  ;;  %v8794_v28 = vsel %vm2552_vm0, %v3665_v41, %v3669_v14  ;;  %v3673_v19 = vor.u32 %v3671_v18, %v3669_v14  ;;  %v4182_v30 = vrot.slane %v4180_v52, 3  ;;  %6651 = vmatprep.subr.bf16.mxu1 %v7142_v6  ;;  %6556 = vmatpush3.bf16.msra.mxu0 %v7166_v7 }
 0x1eb   : > { %v4657_v5 = vmul.bf16 %v8747_v0, %v8348_v26  ;;  %v3681_v16 = vor.u32 %v3679_v42, %v3677_v54  ;;  %v3685_v51 = vrot.slane %v3683_v8, 1  ;;  %v4185_v25 = vrot.slane %v4183_v12, 4  ;;  %6557 = vmatprep.subr.bf16.mxu0 %v7168_v47 }
 0x1ec   : > { %v6116_v37 = vcombine.low %v1185_v33, %v1196_v21  ;;  %v8802_v36 = vsel %vm2552_vm0, %v3673_v19, %v3677_v54  ;;  %v4190_v1 = vrot.slane %v4188_v43, 3  ;;  %v4191_v61 = vshll.u32 %v4155_v59, 16  ;;  %6652 = vmatpush3.bf16.msra.mxu1 %v7142_v6  ;;  %v4508_v33 = vpop.permute.xlu1 %4507  ;;  %v7144_v59 = vld [vmem:[#allocation8 + $0x128] sm:$0xff]  }
 0x1ed   : > { %v4658_v52 = vmul.bf16 %v8778_v38, %v8392_v29  ;;  %v8807_v26 = vsel %vm2552_vm0, %v3681_v16, %v3685_v51  ;;  %v4197_v0 = vshrl.u32 %v8696_v9, 16  ;;  %v4200_v7 = vshll.u32 %v8696_v9, 16  ;;  %7070 = vset.pattern.permute.xlu1 %v9363_v50  ;;  %6653 = vmatprep.subr.bf16.mxu1 %v7143_v60 }
 0x1ee   : > { %v1328_v53 = vmul.bf16 %v6116_v37, %v8392_v29  ;;  %v4186_v41 = vor.u32 %v4185_v25, %v4182_v30  ;;  %v4193_v55 = vrot.slane %v4191_v61, 4  ;;  %v4157_v38 = vmul.bf16 %v9403_v31, %v8392_v29  ;;  %5020 = vperm.xlu1 %7070, %v9402_v44   ;;  %6558 = vmatpush3.bf16.msra.mxu0 %v7168_v47  ;;  %v7172_v47 = vld [vmem:[#allocation8 + $0x30] sm:$0xff]   ;;  %v9404_v25 = vld [vmem:[#allocation43_spill] sm:$0xff]  ;;  %v4530_v31 = vpop.permute.xlu0 %4529 }
 0x1ef   : > { %v4516_v6 = vrot.slane %v4508_v33, %v7951_v13  ;;  %v4199_v14 = vrot.slane %v4197_v0, 3  ;;  %v4202_v18 = vrot.slane %v4200_v7, 4  ;;  %v4158_v9 = vmul.bf16 %v8505_v46, %v8434_v58  ;;  %6638 = vmatmul.mubr.bf16.gmra.mrb[8].mxu1 %v8635_v34  ;;  %6559 = vmatprep.subr.bf16.mxu0 %v7170_v17  ;;  %v7145_v34 = vld [vmem:[#allocation8 + $0x130] sm:$0xff]   ;;  %v7146_v33 = vld [vmem:[#allocation8 + $0x138] sm:$0xff]  }
 0x1f0   : > { %v8819_v8 = vrot.slane %v1328_v53, 4  ;;  %v4194_v57 = vor.u32 %v4193_v55, %v4190_v1  ;;  %v4206_v54 = vshrl.u32 %v4157_v38, 16  ;;  %v4209_v42 = vshll.u32 %v4157_v38, 16  ;;  %6654 = vmatpush3.bf16.msra.mxu1 %v7143_v60  ;;  %6641 = vmatprep.mubr.bf16.mxu1 %v8643_v27  ;;  %v9405_v1 = vld [vmem:[#allocation46_spill] sm:$0xff] }
 0x1f1   : > { %v6221_v29 = vcombine.low %v4516_v6, %v4527_v39  ;;  %v4203_v12 = vor.u32 %v4202_v18, %v4199_v14  ;;  %v4215_v43 = vshrl.u32 %v4158_v9, 16  ;;  %v4218_v44 = vshll.u32 %v4158_v9, 16  ;;  %6655 = vmatprep.subr.bf16.mxu1 %v7144_v59  ;;  %v1199_v27 = vpop.permute.xlu1 %1198  ;;  %v9406_v53 = vld [vmem:[#allocation30_spill] sm:$0xff] }
 0x1f2   : > { %v1367_v46 = vsel %vm1358_vm4, %v8769_v22, %v8819_v8  ;;  %v8830_v21 = vsel %vm1529_vm2, %v4186_v41, %v4194_v57  ;;  %v4208_v19 = vrot.slane %v4206_v54, 3  ;;  %v4211_v30 = vrot.slane %v4209_v42, 4  ;;  %7071 = vset.pattern.permute.xlu1 %v8783_v23  ;;  %6560 = vmatpush3.bf16.msra.mxu0 %v7170_v17 }
 0x1f3   : > { %v4659_v3 = vmul.bf16 %v6221_v29, %v8434_v58  ;;  %6538 = vmatmul.mubr.bf16.gmra.mrb[36].mxu0 %v1367_v46  ;;  %v8835_v39 = vsel %vm1529_vm2, %v4194_v57, %v4203_v12  ;;  %v4217_v60 = vrot.slane %v4215_v43, 3  ;;  %v4220_v16 = vrot.slane %v4218_v44, 4  ;;  %929 = vperm.xlu1 %7071, %v9404_v25   ;;  %v7174_v57 = vld [vmem:[#allocation8 + $0x38] sm:$0xff]   ;;  %v7147_v46 = vld [vmem:[#allocation8 + $0x140] sm:$0xff]  }
 0x1f4   : > { %v4692_v51 = vrot.slane %v4657_v5, 4  ;;  %v8840_v22 = vrot.slane %v4254_v32, 4  ;;  %v4212_v37 = vor.u32 %v4211_v30, %v4208_v19  ;;  %v4159_v61 = vmul.bf16 %v9405_v1, %v8483_v49  ;;  %6656 = vmatpush3.bf16.msra.mxu1 %v7144_v59  ;;  %6561 = vmatprep.subr.bf16.mxu0 %v7172_v47  ;;  %v9408_v43 = vld [vmem:[#allocation37_spill] sm:$0xff] }
 0x1f5   : > { %v4694_v23 = vrot.slane %v4658_v52, 4  ;;  %v1207_v0 = vrot.slane %v1199_v27, %v7951_v13  ;;  %v4221_v7 = vor.u32 %v4220_v16, %v4217_v60  ;;  %v4160_v5 = vmul.bf16 %v9406_v53, %v8523_v4  ;;  %6657 = vmatprep.subr.bf16.mxu1 %v7145_v34  ;;  %v1210_v52 = vpop.permute.xlu1 %1209  ;;  %v8898_v53 = vld [vmem:[#allocation2 + $0x18] sm:$0xff] }
 0x1f6   : > { %v8848_v10 = vsel %vm1529_vm2, %v4203_v12, %v4212_v37  ;;  %v4224_v32 = vshrl.u32 %v4159_v61, 16  ;;  %v4227_v41 = vshll.u32 %v4159_v61, 16  ;;  %v4161_v17 = vmul.bf16 %v8671_v48, %v8745_v20  ;;  %v9407_v12 = vld [vmem:[#allocation38_spill] sm:$0xff]  ;;  %6562 = vmatpush3.bf16.msra.mxu0 %v7172_v47 }
 0x1f7   : > { %v8852_v55 = vrot.slane %v4659_v3, 4  ;;  %v8855_v59 = vsel %vm1529_vm2, %v4212_v37, %v4221_v7  ;;  %v4233_v38 = vshrl.u32 %v4160_v5, 16  ;;  %v4236_v6 = vshll.u32 %v4160_v5, 16  ;;  %7073 = vset.pattern.permute.xlu1 %v9363_v50  ;;  %6642 = vmatmul.mubr.bf16.gmra.mrb[12].mxu1 %v8652_v35  ;;  %v9411_v5 = vld [vmem:[#allocation40_spill] sm:$0xff] }
 0x1f8   : > { %v1218_v14 = vrot.slane %v1210_v52, %v7951_v13  ;;  %v4226_v18 = vrot.slane %v4224_v32, 3  ;;  %v4229_v9 = vrot.slane %v4227_v41, 4  ;;  %v4242_v54 = vshrl.u32 %v4161_v17, 16  ;;  %6658 = vmatpush3.bf16.msra.mxu1 %v7145_v34  ;;  %5031 = vperm.xlu1 %7073, %v9404_v25  }
 0x1f9   : > { %v8863_v48 = vrot.slane %v4656_v11, 4  ;;  %v4235_v20 = vrot.slane %v4233_v38, 3  ;;  %v4238_v42 = vrot.slane %v4236_v6, 4  ;;  %v4245_v29 = vshll.u32 %v4161_v17, 16  ;;  %6659 = vmatprep.subr.bf16.mxu1 %v7146_v33  ;;  %6563 = vmatprep.subr.bf16.mxu0 %v7174_v57  ;;  %v9412_v17 = vld [vmem:[#allocation23_spill] sm:$0xff]  ;;  %v9414_v6 = vld [vmem:[#allocation45_spill] sm:$0xff] }
 0x1fa   : > { %v6117_v50 = vcombine.low %v1207_v0, %v1218_v14  ;;  %v9409_v44 = vmul.bf16 %v9407_v12, %v9408_v43  ;;  %v4538_v35 = vrot.slane %v4530_v31, %v7951_v13  ;;  %v4230_v19 = vor.u32 %v4229_v9, %v4226_v18  ;;  %v4541_v27 = vpop.permute.xlu1 %4540  ;;  %v8894_v0 = vld [vmem:[#allocation2 + $0x10] sm:$0xff]  ;;  %6564 = vmatpush3.bf16.msra.mxu0 %v7174_v57  ;;  %v9413_v31 = vld [vmem:[#allocation25_spill] sm:$0xff]  ;;  %v9415_v9 = vld [vmem:[#allocation24_spill] sm:$0xff]  ;;  %v4563_v12 = vpop.permute.xlu0 %4562 }
 0x1fb   : > { %v4244_v30 = vrot.slane %v4242_v54, 3  ;;  %v4239_v45 = vor.u32 %v4238_v42, %v4235_v20  ;;  %v4247_v63 = vrot.slane %v4245_v29, 4  ;;  %v8872_v11 = vsel %vm1358_vm4, %v8863_v48, %v4692_v51  ;;  %v9416_v54 = vld [vmem:[#allocation27_spill] sm:$0xff]  ;;  %v7149_v43 = vld [vmem:[#allocation8 + $0x150] sm:$0xff]  }
 0x1fc   : > { %6661 = vmatprep.mubr.bf16.mxu1 %v9409_v44  ;;  %v8875_v34 = vsel %vm1358_vm4, %v4692_v51, %v4694_v23  ;;  %v1329_v3 = vmul.bf16 %v6117_v50, %v8434_v58  ;;  %v8879_v60 = vsel %vm1529_vm2, %v4221_v7, %v4230_v19  ;;  %v4257_v16 = vor.u32 %v8840_v22, %v8780_v62  ;;  %v7234_v51 = vld [vmem:[%s9302_s7 + $0x3c] sm:$0xf] }
 0x1fd   : > { %v8885_v47 = vsel %vm1358_vm4, %v4694_v23, %v8852_v55  ;;  %6660 = vmatpush3.bf16.msra.mxu1 %v7146_v33  ;;  %5042 = vperm.xlu1 %7073, %v7234_v51   ;;  %v4549_v25 = vrot.slane %v4541_v27, %v7951_v13  ;;  %v8892_v37 = vsel %vm1529_vm2, %v4230_v19, %v4239_v45  ;;  %v9410_v62 = vld [vmem:[#allocation39_spill] sm:$0xff] }
 0x1fe   : > { %v4248_v1 = vor.u32 %v4247_v63, %v4244_v30  ;;  %v1368_v61 = vrot.slane %v1329_v3, 4  ;;  %6677 = vmatprep.subr.bf16.mxu1 %v7147_v46  ;;  %v3113_v22 = vmul.bf16 %v8894_v0, %v9410_v62  ;;  %v7148_v23 = vld [vmem:[#allocation8 + $0x148] sm:$0xff]   ;;  %v3114_v33 = vmul.bf16 %v8898_v53, %v9411_v5  ;;  %v8928_v3 = vld [vmem:[#allocation2 + $0x20] sm:$0xff] }
 0x1ff   : > { %v6222_v7 = vcombine.low %v4538_v35, %v4549_v25  ;;  %v2964_v52 = vrot.slane %v9412_v17, %v7951_v13  ;;  %v2975_v38 = vrot.slane %v9413_v31, %v7951_v13  ;;  %v1229_v14 = vrot.slane %v9414_v6, %v7951_v13  ;;  %v1232_v29 = vpop.permute.xlu1 %1231  ;;  %v9419_v5 = vld [vmem:[#allocation28_spill] sm:$0xff]  ;;  %v9420_v17 = vld [vmem:[#allocation31_spill] sm:$0xff] }
 0x200   : > { %v8903_v32 = vsel %vm1529_vm2, %v4239_v45, %v4248_v1  ;;  %v8906_v41 = vsel %vm1529_vm2, %v4248_v1, %v4257_v16  ;;  %6662 = vmatmul.mubr.bf16.vlgmr.msra.gmra.mrb[0].mxu1 %v3113_v22  ;;  %v1369_v18 = vsel %vm1358_vm4, %v8819_v8, %v1368_v61  ;;  %v2986_v57 = vrot.slane %v9415_v9, %v7951_v13  ;;  %v7150_v16 = vld [vmem:[#allocation8 + $0x158] sm:$0xff]   ;;  %v9417_v1 = vld [vmem:[#allocation26_spill] sm:$0xff] }
 0x201   : > { %v2997_v20 = vrot.slane %v9416_v54, %v7951_v13  ;;  %v4660_v42 = vmul.bf16 %v6222_v7, %v8483_v49  ;;  %6678 = vmatpush3.bf16.msra.mxu1 %v7147_v46  ;;  %6665 = vmatprep.mubr.bf16.mxu1 %v3114_v33  ;;  %v1240_v50 = vrot.slane %v1232_v29, %v7951_v13  ;;  %v9418_v22 = vld [vmem:[#allocation29_spill] sm:$0xff]  ;;  %v8939_v7 = vpop.permute.xlu0 %4573 }
 0x202   : > { %6541 = vmatprep.mubr.bf16.mxu0 %v1369_v18  ;;  %6679 = vmatprep.subr.bf16.mxu1 %v7148_v23  ;;  %v6172_v35 = vcombine.low %v2964_v52, %v2975_v38  ;;  %v4571_v30 = vrot.slane %v4563_v12, %v7951_v13  ;;  %v3008_v62 = vrot.slane %v9417_v1, %v7951_v13  ;;  %v7151_v38 = vld [vmem:[#allocation8 + $0x160] sm:$0xff]   ;;  %v9421_v12 = vld [vmem:[#allocation33_spill] sm:$0xff] }
 0x203   : > { %v4698_v44 = vrot.slane %v4660_v42, 4  ;;  %v6118_v8 = vcombine.low %v1229_v14, %v1240_v50  ;;  %v6173_v19 = vcombine.low %v2986_v57, %v2997_v20  ;;  %v3041_v33 = vrot.slane %v9419_v5, %v7951_v13  ;;  %v7152_v20 = vld [vmem:[#allocation8 + $0x168] sm:$0xff]  }
 0x204   : > { %v4552_v63 = vpop.permute.xlu1 %4551  ;;  %v3115_v27 = vmul.bf16 %v8928_v3, %v6172_v35  ;;  %v3030_v52 = vrot.slane %v9420_v17, %v7951_v13  ;;  %v9422_v35 = vld [vmem:[#allocation35_spill] sm:$0xff] }
 0x205   : > { %6680 = vmatpush3.bf16.msra.mxu1 %v7148_v23  ;;  %v8925_v45 = vsel %vm1358_vm4, %v8852_v55, %v4698_v44  ;;  %v1330_v46 = vmul.bf16 %v6118_v8, %v8483_v49  ;;  %v4560_v51 = vrot.slane %v4552_v63, %v7951_v13  ;;  %v3116_v25 = vmul.bf16 %v6173_v19, %v8434_v58  ;;  %v8951_v42 = vpop.permute.xlu0 %4595 }
 0x206   : > { %6681 = vmatprep.subr.bf16.mxu1 %v7149_v43  ;;  %v3019_v55 = vrot.slane %v9418_v22, %v7951_v13  ;;  %v6175_v9 = vcombine.low %v3030_v52, %v3041_v33  ;;  %v3063_v8 = vrot.slane %v9422_v35, %v7951_v13  ;;  %v7156_v33 = vld [vmem:[#allocation8 + $0x188] sm:$0xff]  }
 0x207   : > { %v8937_v23 = vrot.slane %v1330_v46, 4  ;;  %v6223_v31 = vcombine.low %v4560_v51, %v4571_v30 }
 0x208   : > { %6666 = vmatmul.mubr.bf16.gmra.mrb[4].mxu1 %v3115_v27  ;;  %v6174_v18 = vcombine.low %v3008_v62, %v3019_v55  ;;  %v3118_v50 = vmul.bf16 %v6175_v9, %v8523_v4 }
 0x209   : > { %6682 = vmatpush3.bf16.msra.mxu1 %v7149_v43  ;;  %6669 = vmatprep.mubr.bf16.mxu1 %v3116_v25  ;;  %v1371_v58 = vsel %vm1358_vm4, %v1368_v61, %v8937_v23  ;;  %v4661_v6 = vmul.bf16 %v6223_v31, %v8523_v4  ;;  %v762_v14 = vpop.permute.xlu1 %761  ;;  %v3052_v43 = vrot.slane %v9421_v12, %v7951_v13  ;;  %v4889_v46 = vpop.permute.xlu0 %4888  ;;  %v9423_v4 = vld [vmem:[#allocation19_spill] sm:$0xff]  ;;  %v7155_v25 = vld [vmem:[#allocation8 + $0x180] sm:$0xff]   ;;  %v8975_v12 = vld [vmem:[#allocation2 + $0x8] sm:$0xf0] }
 0x20a   : > { %6683 = vmatprep.subr.bf16.mxu1 %v7150_v16  ;;  %6542 = vmatmul.mubr.bf16.gmra.mrb[40].mxu0 %v1371_v58  ;;  %v3117_v54 = vmul.bf16 %v6174_v18, %v8483_v49  ;;  %v7153_v49 = vld [vmem:[#allocation8 + $0x170] sm:$0xff]   ;;  %v4897_v27 = vrot.slane %v4889_v46, %v7951_v13  ;;  %v770_v5 = vrot.slane %v762_v14, %v7951_v13 }
 0x20b   : > { %v8948_v57 = vrot.slane %v4661_v6, 4  ;;  %v6176_v30 = vcombine.low %v3052_v43, %v3063_v8 }
 0x20d   : > { %6684 = vmatpush3.bf16.msra.mxu1 %v7150_v16  ;;  %v774_v29 = vpop.permute.xlu1 %773  ;;  %v8956_v61 = vsel %vm1358_vm4, %v4698_v44, %v8948_v57  ;;  %v3119_v63 = vmul.bf16 %v6176_v30, %v9423_v4  ;;  %v7154_v44 = vld [vmem:[#allocation8 + $0x178] sm:$0xff]   ;;  %v4933_v30 = vpop.permute.xlu0 %4932 }
 0x20e   : > { %6685 = vmatprep.subr.bf16.mxu1 %v7151_v38  ;;  %v782_v17 = vrot.slane %v774_v29, %v7951_v13 }
 0x210   : > { %6670 = vmatmul.mubr.bf16.gmra.mrb[8].mxu1 %v3117_v54  ;;  %v7157_v54 = vld [vmem:[#allocation8 + $0x190] sm:$0xff]  }
 0x211   : > { %6686 = vmatpush3.bf16.msra.mxu1 %v7151_v38  ;;  %6673 = vmatprep.mubr.bf16.mxu1 %v3118_v50  ;;  %v798_v19 = vpop.permute.xlu1 %797  ;;  %v9424_v38 = vld [vmem:[#allocation36_spill] sm:$0xff] }
 0x212   : > { %6687 = vmatprep.subr.bf16.mxu1 %v7152_v20  ;;  %v806_v6 = vrot.slane %v798_v19, %v7951_v13 }
 0x215   : > { %6688 = vmatpush3.bf16.msra.mxu1 %v7152_v20  ;;  %v6104_v20 = vcombine.low %v770_v5, %v782_v17 }
 0x216   : > { %6689 = vmatprep.subr.bf16.mxu1 %v7153_v49  ;;  %v4878_v16 = vpop.permute.xlu1 %4877 }
 0x217   : > { %v4886_v51 = vrot.slane %v4878_v16, %v7951_v13  ;;  %v993_v46 = vshrl.u32 %v6104_v20, 16 }
 0x218   : > { %6674 = vmatmul.mubr.bf16.gmra.mrb[12].mxu1 %v3119_v63 }
 0x219   : > { %6690 = vmatpush3.bf16.msra.mxu1 %v7153_v49  ;;  %6693 = vmatprep.mubr.bf16.mxu1 %v8724_v15  ;;  %v6234_v1 = vcombine.low %v4886_v51, %v4897_v27  ;;  %v794_v15 = vrot.slane %v9424_v38, %v7951_v13  ;;  %v996_v27 = vshll.u32 %v6104_v20, 16 }
 0x21a   : > { %6691 = vmatprep.subr.bf16.mxu1 %v7154_v44  ;;  %v4900_v62 = vpop.permute.xlu1 %4899 }
 0x21b   : > { %v5093_v22 = vshrl.u32 %v6234_v1, 16  ;;  %v5096_v55 = vshll.u32 %v6234_v1, 16  ;;  %v4908_v58 = vrot.slane %v4900_v62, %v7951_v13  ;;  %v6105_v50 = vcombine.low %v794_v15, %v806_v6 }
 0x21c   : > { %v4941_v1 = vrot.slane %v4933_v30, %v7951_v13 }
 0x21d   : > { %6692 = vmatpush3.bf16.msra.mxu1 %v7154_v44  ;;  %v5095_v52 = vrot.slane %v5093_v22, 3  ;;  %v5098_v31 = vrot.slane %v5096_v55, 4  ;;  %v1001_v16 = vshrl.u32 %v6105_v50, 16  ;;  %v1004_v51 = vshll.u32 %v6105_v50, 16  ;;  %v7159_v22 = vld [vmem:[#allocation8 + $0x1a0] sm:$0xff]  }
 0x21e   : > { %6709 = vmatprep.subr.bf16.mxu1 %v7155_v25  ;;  %v4911_v18 = vpop.permute.xlu1 %4910 }
 0x21f   : > { %v4919_v9 = vrot.slane %v4911_v18, %v7951_v13  ;;  %v5099_v14 = vor.u32 %v5098_v31, %v5095_v52  ;;  %v1003_v38 = vrot.slane %v1001_v16, 4 }
 0x220   : > { %6694 = vmatmul.mubr.bf16.vlgmr.msra.gmra.mrb[0].mxu1 %v8731_v24  ;;  %v9425_v24 = vld [vmem:[#allocation20_spill] sm:$0xff] }
 0x221   : > { %6710 = vmatpush3.bf16.msra.mxu1 %v7155_v25  ;;  %6697 = vmatprep.mubr.bf16.mxu1 %v8743_v2  ;;  %v6235_v29 = vcombine.low %v4908_v58, %v4919_v9  ;;  %v818_v49 = vrot.slane %v9425_v24, %v7951_v13  ;;  %v5172_v19 = vmul.bf16 %v5099_v14, %v8975_v12  ;;  %v7158_v2 = vld [vmem:[#allocation8 + $0x198] sm:$0xff]   ;;  %v998_v58 = vrot.slane %v996_v27, 5  ;;  %v734_v27 = vld [vmem:[#allocation2] sm:$0xf8] }
 0x222   : > { %6711 = vmatprep.subr.bf16.mxu1 %v7156_v33 }
 0x223   : > { %v5101_v43 = vshrl.u32 %v6235_v29, 16  ;;  %v5104_v35 = vshll.u32 %v6235_v29, 16  ;;  %v822_v8 = vpop.permute.xlu1 %821  ;;  %v5198_v55 = vshrl.u32 %v5172_v19, 16  ;;  %v5201_v5 = vshll.u32 %v5172_v19, 16 }
 0x224   : > { %v830_v44 = vrot.slane %v822_v8, %v7951_v13 }
 0x225   : > { %6712 = vmatpush3.bf16.msra.mxu1 %v7156_v33  ;;  %v5103_v4 = vrot.slane %v5101_v43, 3  ;;  %v5106_v63 = vrot.slane %v5104_v35, 4  ;;  %v995_v33 = vrot.slane %v993_v46, 4  ;;  %v5200_v18 = vrot.slane %v5198_v55, 4 }
 0x226   : > { %6713 = vmatprep.subr.bf16.mxu1 %v7157_v54  ;;  %v6106_v52 = vcombine.low %v818_v49, %v830_v44  ;;  %v5203_v9 = vrot.slane %v5201_v5, 5 }
 0x227   : > { %v5107_v25 = vor.u32 %v5106_v63, %v5103_v4  ;;  %v999_v8 = vor.u32 %v998_v58, %v995_v33  ;;  %v7163_v4 = vld [vmem:[#allocation8 + $0x1b0] sm:$0xff]   ;;  %v7238_v58 = vld [vmem:[#allocation2 + $0x8] sm:$0xff] }
 0x228   : > { %6698 = vmatmul.mubr.bf16.gmra.mrb[4].mxu1 %v8751_v40  ;;  %v4922_v62 = vpop.permute.xlu1 %4921  ;;  %v1006_v40 = vrot.slane %v1004_v51, 5  ;;  %v1010_v29 = vshrl.u32 %v6106_v52, 16  ;;  %v1013_v50 = vshll.u32 %v6106_v52, 16  ;;  %v5204_v63 = vor.u32 %v5203_v9, %v5200_v18  ;;  %v7165_v52 = vld [vmem:[#allocation8 + $0x1b8] sm:$0xff]  }
 0x229   : > { %6714 = vmatpush3.bf16.msra.mxu1 %v7157_v54  ;;  %6701 = vmatprep.mubr.bf16.mxu1 %v8772_v56  ;;  %v5108_v17 = vsel %vm1529_vm2, %v5099_v14, %v5107_v25  ;;  %v4930_v31 = vrot.slane %v4922_v62, %v7951_v13  ;;  %v7161_v56 = vld [vmem:[#allocation8 + $0x1a8] sm:$0xff]   ;;  %v1072_v5 = vmul.bf16 %v999_v8, %v734_v27 }
 0x22a   : > { %6715 = vmatprep.subr.bf16.mxu1 %v7158_v2  ;;  %v5173_v15 = vmul.bf16 %v8894_v0, %v5108_v17  ;;  %v1007_v24 = vor.u32 %v1006_v40, %v1003_v38  ;;  %v1012_v16 = vrot.slane %v1010_v29, 4  ;;  %v1015_v51 = vrot.slane %v1013_v50, 5  ;;  %v9002_v40 = vld [vmem:[#allocation2 + $0x38] sm:$0xff] }
 0x22b   : > { %v6236_v6 = vcombine.low %v4930_v31, %v4941_v1 }
 0x22c   : > { %v5206_v54 = vshrl.u32 %v5173_v15, 16  ;;  %v5209_v20 = vshll.u32 %v5173_v15, 16  ;;  %v9000_v31 = vor.u32 %v1015_v51, %v1012_v16  ;;  %v9024_v51 = vld [vmem:[#allocation2 + $0x40] sm:$0xf] }
 0x22d   : > { %6716 = vmatpush3.bf16.msra.mxu1 %v7158_v2  ;;  %v5110_v43 = vshrl.u32 %v6236_v6, 16  ;;  %v5113_v14 = vshll.u32 %v6236_v6, 16  ;;  %v1243_v35 = vpop.permute.xlu1 %1242 }
 0x22e   : > { %6717 = vmatprep.subr.bf16.mxu1 %v7159_v22  ;;  %v5208_v49 = vrot.slane %v5206_v54, 4  ;;  %v5211_v19 = vrot.slane %v5209_v20, 5  ;;  %v1251_v2 = vrot.slane %v1243_v35, %v7951_v13  ;;  %v7167_v54 = vld [vmem:[#allocation8 + $0x1c0] sm:$0xff]   ;;  %v1531_v20 = vshrl.u32 %v1072_v5, 16 }
 0x22f   : > { %v5112_v30 = vrot.slane %v5110_v43, 3  ;;  %v5115_v46 = vrot.slane %v5113_v14, 4  ;;  %v1017_v43 = vsel %vm991_vm3, %v1007_v24, %v9000_v31  ;;  %v1534_v14 = vshll.u32 %v1072_v5, 16 }
 0x230   : > { %6702 = vmatmul.mubr.bf16.gmra.mrb[8].mxu1 %v8794_v28  ;;  %v5212_v44 = vor.u32 %v5211_v19, %v5208_v49  ;;  %v1008_v28 = vsel %vm991_vm3, %v999_v8, %v1007_v24 }
 0x231   : > { %6718 = vmatpush3.bf16.msra.mxu1 %v7159_v22  ;;  %6705 = vmatprep.mubr.bf16.mxu1 %v8802_v36  ;;  %v8990_v1 = vor.u32 %v5115_v46, %v5112_v30  ;;  %v1254_v62 = vpop.permute.xlu1 %1253  ;;  %v1073_v38 = vmul.bf16 %v7238_v58, %v1008_v28 }
 0x232   : > { %6719 = vmatprep.subr.bf16.mxu1 %v7161_v56  ;;  %v1262_v55 = vrot.slane %v1254_v62, %v7951_v13  ;;  %v8995_v22 = vsel %vm991_vm3, %v5204_v63, %v5212_v44  ;;  %v1536_v63 = vrot.slane %v1534_v14, 4 }
 0x233   : > { %v5117_v36 = vsel %vm1529_vm2, %v5107_v25, %v8990_v1  ;;  %v9008_v25 = vpop.permute.xlu0 %4965  ;;  %v1542_v35 = vshll.u32 %v1073_v38, 16 }
 0x234   : > { %v5174_v33 = vmul.bf16 %v8898_v53, %v5117_v36  ;;  %v6119_v17 = vcombine.low %v1251_v2, %v1262_v55  ;;  %v7169_v2 = vld [vmem:[#allocation8 + $0x1c8] sm:$0xff]  }
 0x235   : > { %6720 = vmatpush3.bf16.msra.mxu1 %v7161_v56 }
 0x236   : > { %6721 = vmatprep.subr.bf16.mxu1 %v7163_v4  ;;  %v1331_v15 = vmul.bf16 %v9002_v40, %v6119_v17  ;;  %v5215_v56 = vshrl.u32 %v5174_v33, 16  ;;  %v5218_v18 = vshll.u32 %v5174_v33, 16 }
 0x237   : > { %v9006_v6 = vpop.permute.xlu1 %4584  ;;  %v846_v46 = vpop.permute.xlu0 %845 }
 0x238   : > { %6706 = vmatmul.mubr.bf16.gmra.mrb[12].mxu1 %v8807_v26  ;;  %v1372_v9 = vrot.slane %v1331_v15, 4  ;;  %v5217_v29 = vrot.slane %v5215_v56, 4  ;;  %v5220_v50 = vrot.slane %v5218_v18, 5  ;;  %v1539_v26 = vshrl.u32 %v1073_v38, 16 }
 0x239   : > { %6722 = vmatpush3.bf16.msra.mxu1 %v7163_v4  ;;  %6725 = vmatprep.mubr.bf16.mxu1 %v8830_v21  ;;  %v1074_v21 = vmul.bf16 %v8894_v0, %v1017_v43  ;;  %v1533_v4 = vrot.slane %v1531_v20, 3  ;;  %v854_v0 = vrot.slane %v846_v46, %v7951_v13 }
 0x23a   : > { %6723 = vmatprep.subr.bf16.mxu1 %v7165_v52  ;;  %v1373_v8 = vsel %vm1358_vm4, %v8937_v23, %v1372_v9  ;;  %v9015_v49 = vor.u32 %v5220_v50, %v5217_v29  ;;  %v1541_v27 = vrot.slane %v1539_v26, 3  ;;  %v1544_v23 = vrot.slane %v1542_v35, 4  ;;  %v9426_v29 = vld [vmem:[#allocation21_spill] sm:$0xff]  ;;  %v7175_v26 = vld [vmem:[#allocation8 + $0x1e0] sm:$0xff]  }
 0x23b   : > { %6545 = vmatprep.mubr.bf16.mxu0 %v1373_v8  ;;  %v1548_v55 = vshrl.u32 %v1074_v21, 16  ;;  %v1551_v36 = vshll.u32 %v1074_v21, 16  ;;  %v1537_v33 = vor.u32 %v1536_v63, %v1533_v4  ;;  %v4439_v50 = vrot.slane %v9426_v29, %v7951_v13 }
 0x23c   : > { %v1265_v19 = vpop.permute.xlu1 %1264  ;;  %v9021_v24 = vsel %vm991_vm3, %v5212_v44, %v9015_v49  ;;  %v7171_v44 = vld [vmem:[#allocation8 + $0x1d0] sm:$0xff]   ;;  %v1545_v17 = vor.u32 %v1544_v23, %v1541_v27 }
 0x23d   : > { %6724 = vmatpush3.bf16.msra.mxu1 %v7165_v52  ;;  %v1273_v30 = vrot.slane %v1265_v19, %v7951_v13  ;;  %v1550_v38 = vrot.slane %v1548_v55, 3  ;;  %v1553_v15 = vrot.slane %v1551_v36, 4 }
 0x23e   : > { %6741 = vmatprep.subr.bf16.mxu1 %v7167_v54  ;;  %v1546_v20 = vsel %vm1529_vm2, %v1537_v33, %v1545_v17 }
 0x23f   : > { %v6120_v16 = vcombine.low %v1273_v30, %v1273_v30  ;;  %v1554_v35 = vor.u32 %v1553_v15, %v1550_v38  ;;  %v858_v30 = vpop.permute.xlu0 %857 }
 0x240   : > { %6726 = vmatmul.mubr.bf16.vlgmr.msra.gmra.mrb[0].mxu1 %v8835_v39  ;;  %v866_v27 = vrot.slane %v858_v30, %v7951_v13 }
 0x241   : > { %6742 = vmatpush3.bf16.msra.mxu1 %v7167_v54  ;;  %6729 = vmatprep.mubr.bf16.mxu1 %v8848_v10  ;;  %v1332_v62 = vmul.bf16 %v6120_v16, %v9024_v51  ;;  %v834_v28 = vpop.permute.xlu1 %833  ;;  %v7173_v10 = vld [vmem:[#allocation8 + $0x1d8] sm:$0xff]   ;;  %v1555_v4 = vsel %vm1529_vm2, %v1545_v17, %v1554_v35 }
 0x242   : > { %6743 = vmatprep.subr.bf16.mxu1 %v7169_v2  ;;  %v842_v5 = vrot.slane %v834_v28, %v7951_v13 }
 0x243   : > { %v1374_v52 = vrot.slane %v1332_v62, 4  ;;  %v894_v15 = vpop.permute.xlu0 %893 }
 0x244   : > { %v6107_v39 = vcombine.low %v842_v5, %v854_v0 }
 0x245   : > { %6744 = vmatpush3.bf16.msra.mxu1 %v7169_v2  ;;  %v1375_v58 = vsel %vm1358_vm4, %v1372_v9, %v1374_v52 }
 0x246   : > { %6745 = vmatprep.subr.bf16.mxu1 %v7171_v44  ;;  %v1019_v56 = vshrl.u32 %v6107_v39, 16  ;;  %v1022_v18 = vshll.u32 %v6107_v39, 16  ;;  %v4944_v54 = vpop.permute.xlu1 %4943  ;;  %6546 = vmatmul.mubr.bf16.gmra.mrb[44].mxu0 %v1375_v58 }
 0x247   : > { %6565 = vmatprep.mubr.bf16.mxu0 %v1546_v20  ;;  %v4952_v9 = vrot.slane %v4944_v54, %v7951_v13 }
 0x248   : > { %6730 = vmatmul.mubr.bf16.gmra.mrb[4].mxu1 %v8855_v59  ;;  %v1021_v43 = vrot.slane %v1019_v56, 4  ;;  %v1024_v14 = vrot.slane %v1022_v18, 5  ;;  %v6217_v59 = vcombine.low %v4439_v50, %v4439_v50  ;;  %v7178_v56 = vld [vmem:[#allocation8 + $0x1f8] sm:$0xff]  }
 0x249   : > { %6746 = vmatpush3.bf16.msra.mxu1 %v7171_v44  ;;  %6733 = vmatprep.mubr.bf16.mxu1 %v8879_v60  ;;  %v7176_v60 = vld [vmem:[#allocation8 + $0x1e8] sm:$0xff]  }
 0x24a   : > { %6747 = vmatprep.subr.bf16.mxu1 %v7173_v10  ;;  %v1025_v8 = vor.u32 %v1024_v14, %v1021_v43  ;;  %v4955_v19 = vpop.permute.xlu1 %4954 }
 0x24b   : > { %v4963_v21 = vrot.slane %v4955_v19, %v7951_v13  ;;  %v7179_v19 = vld [vmem:[#allocation8 + $0x200] sm:$0xff]  }
 0x24c   : > { %v1026_v46 = vsel %vm991_vm3, %v9000_v31, %v1025_v8  ;;  %v4655_v31 = vmul.bf16 %v6217_v59, %v8975_v12 }
 0x24d   : > { %6748 = vmatpush3.bf16.msra.mxu1 %v7173_v10  ;;  %v6237_v2 = vcombine.low %v4952_v9, %v4963_v21  ;;  %v1075_v63 = vmul.bf16 %v8898_v53, %v1026_v46  ;;  %v7177_v53 = vld [vmem:[#allocation8 + $0x1f0] sm:$0xff]   ;;  %v4974_v9 = vrot.slane %v9008_v25, %v7951_v13 }
 0x24e   : > { %6749 = vmatprep.subr.bf16.mxu1 %v7175_v26  ;;  %6566 = vmatmul.mubr.bf16.vlgmr.msra.gmra.mrb[32].mxu0 %v1555_v4  ;;  %v4689_v10 = vrot.slane %v4655_v31, 4  ;;  %v7180_v4 = vld [vmem:[#allocation8 + $0x208] sm:$0xff]  }
 0x24f   : > { %v5119_v23 = vshrl.u32 %v6237_v2, 16  ;;  %v5122_v16 = vshll.u32 %v6237_v2, 16  ;;  %v870_v0 = vpop.permute.xlu1 %869  ;;  %v1557_v62 = vshrl.u32 %v1075_v63, 16  ;;  %v1560_v28 = vshll.u32 %v1075_v63, 16 }
 0x250   : > { %6734 = vmatmul.mubr.bf16.gmra.mrb[8].mxu1 %v8892_v37  ;;  %v878_v44 = vrot.slane %v870_v0, %v7951_v13  ;;  %v4691_v29 = vsel %vm1358_vm4, %v4689_v10, %v8863_v48  ;;  %v4593_v0 = vrot.slane %v9006_v6, %v7951_v13  ;;  %v906_v6 = vpop.permute.xlu0 %905  ;;  %v7182_v10 = vld [vmem:[#allocation8 + $0x218] sm:$0xff]  }
 0x251   : > { %6750 = vmatpush3.bf16.msra.mxu1 %v7175_v26  ;;  %6737 = vmatprep.mubr.bf16.mxu1 %v8903_v32  ;;  %v5121_v55 = vrot.slane %v5119_v23, 3  ;;  %v5124_v36 = vrot.slane %v5122_v16, 4  ;;  %v1559_v5 = vrot.slane %v1557_v62, 3  ;;  %v1562_v33 = vrot.slane %v1560_v28, 4 }
 0x252   : > { %6751 = vmatprep.subr.bf16.mxu1 %v7176_v60  ;;  %v6108_v17 = vcombine.low %v866_v27, %v878_v44 }
 0x253   : > { %v9047_v52 = vor.u32 %v5124_v36, %v5121_v55  ;;  %v9049_v37 = vor.u32 %v1562_v33, %v1559_v5  ;;  %v7181_v36 = vld [vmem:[#allocation8 + $0x210] sm:$0xff]  }
 0x254   : > { %v1028_v39 = vshrl.u32 %v6108_v17, 16  ;;  %v1031_v58 = vshll.u32 %v6108_v17, 16  ;;  %v4977_v12 = vpop.permute.xlu1 %4976 }
 0x255   : > { %6752 = vmatpush3.bf16.msra.mxu1 %v7176_v60  ;;  %v5126_v32 = vsel %vm1529_vm2, %v8990_v1, %v9047_v52  ;;  %v1564_v38 = vsel %vm1529_vm2, %v1554_v35, %v9049_v37  ;;  %v902_v1 = vrot.slane %v894_v15, %v7951_v13  ;;  %v4985_v26 = vrot.slane %v4977_v12, %v7951_v13 }
 0x256   : > { %6753 = vmatprep.subr.bf16.mxu1 %v7177_v53  ;;  %v1030_v18 = vrot.slane %v1028_v39, 4  ;;  %v1033_v54 = vrot.slane %v1031_v58, 5  ;;  %6569 = vmatprep.mubr.bf16.mxu0 %v1564_v38  ;;  %v5175_v20 = vmul.bf16 %v8928_v3, %v5126_v32  ;;  %v4604_v58 = vrot.slane %v8951_v42, %v7951_v13  ;;  %v7240_v32 = vld [vmem:[#allocation2 + $0x28] sm:$0xff] }
 0x257   : > { %v6238_v63 = vcombine.low %v4974_v9, %v4985_v26  ;;  %v7183_v26 = vld [vmem:[#allocation8 + $0x220] sm:$0xff]  }
 0x258   : > { %6738 = vmatmul.mubr.bf16.gmra.mrb[12].mxu1 %v8906_v41  ;;  %v1034_v50 = vor.u32 %v1033_v54, %v1030_v18  ;;  %v5224_v43 = vshrl.u32 %v5175_v20, 16  ;;  %v5227_v14 = vshll.u32 %v5175_v20, 16  ;;  %v9090_v18 = vld [vmem:[#allocation2 + $0x40] sm:$0xff] }
 0x259   : > { %6754 = vmatpush3.bf16.msra.mxu1 %v7177_v53  ;;  %6757 = vmatprep.mubr.bf16.mxu1 %v4691_v29  ;;  %v882_v35 = vpop.permute.xlu1 %881  ;;  %v5128_v53 = vshrl.u32 %v6238_v63, 16  ;;  %v5131_v5 = vshll.u32 %v6238_v63, 16 }
 0x25a   : > { %6755 = vmatprep.subr.bf16.mxu1 %v7178_v56  ;;  %v1035_v41 = vsel %vm991_vm3, %v1025_v8, %v1034_v50  ;;  %v890_v21 = vrot.slane %v882_v35, %v7951_v13  ;;  %v5226_v48 = vrot.slane %v5224_v43, 4  ;;  %v5229_v30 = vrot.slane %v5227_v14, 5  ;;  %v5010_v43 = vpop.permute.xlu0 %5009 }
 0x25b   : > { %v1076_v59 = vmul.bf16 %v8928_v3, %v1035_v41  ;;  %v4582_v3 = vrot.slane %v8939_v7, %v7951_v13  ;;  %v5130_v15 = vrot.slane %v5128_v53, 3  ;;  %v6225_v14 = vcombine.low %v4604_v58, %v4604_v58  ;;  %v7243_v58 = vld [vmem:[#allocation2 + $0x30] sm:$0xff] }
 0x25c   : > { %v6109_v46 = vcombine.low %v890_v21, %v902_v1  ;;  %v9067_v2 = vor.u32 %v5229_v30, %v5226_v48 }
 0x25d   : > { %6756 = vmatpush3.bf16.msra.mxu1 %v7178_v56  ;;  %v1566_v25 = vshrl.u32 %v1076_v59, 16  ;;  %v1569_v60 = vshll.u32 %v1076_v59, 16  ;;  %v6224_v17 = vcombine.low %v4582_v3, %v4593_v0  ;;  %v5133_v56 = vrot.slane %v5131_v5, 4  ;;  %v7185_v5 = vld [vmem:[#allocation8 + $0x230] sm:$0xff]  }
 0x25e   : > { %6773 = vmatprep.subr.bf16.mxu1 %v7179_v19  ;;  %v1037_v27 = vshrl.u32 %v6109_v46, 16  ;;  %v1040_v23 = vshll.u32 %v6109_v46, 16  ;;  %v4988_v16 = vpop.permute.xlu1 %4987  ;;  %v9072_v8 = vsel %vm991_vm3, %v9015_v49, %v9067_v2  ;;  %v5018_v59 = vrot.slane %v5010_v43, %v7951_v13  ;;  %v942_v0 = vpop.permute.xlu0 %941 }
 0x25f   : > { %v1568_v62 = vrot.slane %v1566_v25, 3  ;;  %v1571_v28 = vrot.slane %v1569_v60, 4  ;;  %v4996_v55 = vrot.slane %v4988_v16, %v7951_v13  ;;  %v4662_v54 = vmul.bf16 %v9090_v18, %v6224_v17 }
 0x260   : > { %6758 = vmatmul.mubr.bf16.vlgmr.msra.gmra.mrb[0].mxu1 %v8872_v11  ;;  %v1039_v31 = vrot.slane %v1037_v27, 4  ;;  %v1042_v44 = vrot.slane %v1040_v23, 5  ;;  %v7184_v27 = vld [vmem:[#allocation8 + $0x228] sm:$0xff]   ;;  %v950_v53 = vrot.slane %v942_v0, %v7951_v13 }
 0x261   : > { %6774 = vmatpush3.bf16.msra.mxu1 %v7179_v19  ;;  %6761 = vmatprep.mubr.bf16.mxu1 %v8875_v34  ;;  %v1572_v49 = vor.u32 %v1571_v28, %v1568_v62  ;;  %v5134_v19 = vor.u32 %v5133_v56, %v5130_v15 }
 0x262   : > { %6775 = vmatprep.subr.bf16.mxu1 %v7180_v4  ;;  %v9081_v7 = vor.u32 %v1042_v44, %v1039_v31  ;;  %v4999_v33 = vpop.permute.xlu1 %4998 }
 0x263   : > { %v5007_v11 = vrot.slane %v4999_v33, %v7951_v13  ;;  %v1573_v39 = vsel %vm1529_vm2, %v9049_v37, %v1572_v49  ;;  %v914_v37 = vrot.slane %v906_v6, %v7951_v13  ;;  %v5135_v23 = vsel %vm1529_vm2, %v9047_v52, %v5134_v19 }
 0x264   : > { %v1044_v34 = vsel %vm991_vm3, %v1034_v50, %v9081_v7  ;;  %6570 = vmatmul.mubr.bf16.gmra.mrb[36].mxu0 %v1573_v39 }
 0x265   : > { %6776 = vmatpush3.bf16.msra.mxu1 %v7180_v4  ;;  %v6239_v12 = vcombine.low %v4996_v55, %v5007_v11  ;;  %v1077_v38 = vmul.bf16 %v7240_v32, %v1044_v34  ;;  %v7242_v4 = vld [vmem:[#allocation2 + $0x48] sm:$0xf] }
 0x266   : > { %6777 = vmatprep.subr.bf16.mxu1 %v7181_v36 }
 0x267   : > { %v1575_v20 = vshrl.u32 %v1077_v38, 16  ;;  %v1578_v29 = vshll.u32 %v1077_v38, 16  ;;  %v5137_v50 = vshrl.u32 %v6239_v12, 16  ;;  %v5140_v1 = vshll.u32 %v6239_v12, 16 }
 0x268   : > { %6762 = vmatmul.mubr.bf16.gmra.mrb[4].mxu1 %v8885_v47  ;;  %v918_v42 = vpop.permute.xlu1 %917  ;;  %v4702_v47 = vrot.slane %v4662_v54, 4 }
 0x269   : > { %6778 = vmatpush3.bf16.msra.mxu1 %v7181_v36  ;;  %6765 = vmatprep.mubr.bf16.mxu1 %v8925_v45  ;;  %v926_v9 = vrot.slane %v918_v42, %v7951_v13  ;;  %v1577_v35 = vrot.slane %v1575_v20, 3  ;;  %v1580_v41 = vrot.slane %v1578_v29, 4  ;;  %v5139_v48 = vrot.slane %v5137_v50, 3 }
 0x26a   : > { %6779 = vmatprep.subr.bf16.mxu1 %v7182_v10  ;;  %v5142_v30 = vrot.slane %v5140_v1, 4  ;;  %v4663_v45 = vmul.bf16 %v7242_v4, %v6225_v14  ;;  %v4703_v31 = vsel %vm1358_vm4, %v8948_v57, %v4702_v47 }
 0x26b   : > { %v6110_v21 = vcombine.low %v914_v37, %v926_v9  ;;  %v9098_v46 = vor.u32 %v1580_v41, %v1577_v35 }
 0x26c   : > { %v5143_v44 = vor.u32 %v5142_v30, %v5139_v48  ;;  %v4704_v36 = vrot.slane %v4663_v45, 4 }
 0x26d   : > { %6780 = vmatpush3.bf16.msra.mxu1 %v7182_v10  ;;  %v1046_v25 = vshrl.u32 %v6110_v21, 16  ;;  %v1049_v60 = vshll.u32 %v6110_v21, 16  ;;  %v5021_v63 = vpop.permute.xlu1 %5020  ;;  %v1582_v3 = vsel %vm1529_vm2, %v1572_v49, %v9098_v46  ;;  %v5176_v49 = vmul.bf16 %v7240_v32, %v5135_v23  ;;  %v7186_v32 = vld [vmem:[#allocation8 + $0x238] sm:$0xff]  }
 0x26e   : > { %6781 = vmatprep.subr.bf16.mxu1 %v7183_v26  ;;  %v5029_v16 = vrot.slane %v5021_v63, %v7951_v13  ;;  %6573 = vmatprep.mubr.bf16.mxu0 %v1582_v3  ;;  %v5144_v57 = vsel %vm1529_vm2, %v5134_v19, %v5143_v44  ;;  %v4705_v38 = vsel %vm1358_vm4, %v4702_v47, %v4704_v36 }
 0x26f   : > { %v1048_v62 = vrot.slane %v1046_v25, 4  ;;  %v1051_v28 = vrot.slane %v1049_v60, 5  ;;  %v5233_v15 = vshrl.u32 %v5176_v49, 16  ;;  %v5236_v20 = vshll.u32 %v5176_v49, 16  ;;  %v4875_v49 = vld [vmem:[#allocation2 + $0x48] sm:$0x1f] }
 0x270   : > { %6766 = vmatmul.mubr.bf16.gmra.mrb[8].mxu1 %v8956_v61  ;;  %v6240_v55 = vcombine.low %v5018_v59, %v5029_v16  ;;  %v5177_v1 = vmul.bf16 %v7243_v58, %v5144_v57 }
 0x271   : > { %6782 = vmatpush3.bf16.msra.mxu1 %v7183_v26  ;;  %6769 = vmatprep.mubr.bf16.mxu1 %v4703_v31  ;;  %v1052_v52 = vor.u32 %v1051_v28, %v1048_v62  ;;  %v5235_v26 = vrot.slane %v5233_v15, 4  ;;  %v5238_v47 = vrot.slane %v5236_v20, 5 }
 0x272   : > { %6783 = vmatprep.subr.bf16.mxu1 %v7184_v27  ;;  %v5146_v33 = vshrl.u32 %v6240_v55, 16  ;;  %v5149_v6 = vshll.u32 %v6240_v55, 16  ;;  %v930_v17 = vpop.permute.xlu1 %929  ;;  %v5242_v30 = vshrl.u32 %v5177_v1, 16  ;;  %v5245_v59 = vshll.u32 %v5177_v1, 16 }
 0x273   : > { %v1053_v61 = vsel %vm991_vm3, %v9081_v7, %v1052_v52  ;;  %v938_v11 = vrot.slane %v930_v17, %v7951_v13  ;;  %v5239_v23 = vor.u32 %v5238_v47, %v5235_v26  ;;  %v7192_v26 = vld [vmem:[#allocation9 + $0x14] ss:$8 sps:$4 sm:$0xff]  }
 0x274   : > { %v5148_v39 = vrot.slane %v5146_v33, 3  ;;  %v5151_v34 = vrot.slane %v5149_v6, 4  ;;  %v1078_v12 = vmul.bf16 %v7243_v58, %v1053_v61  ;;  %v5247_v0 = vrot.slane %v5245_v59, 5  ;;  %v7198_v47 = vld [vmem:[#allocation9 + $0x34] ss:$8 sps:$4 sm:$0xff]  }
 0x275   : > { %6784 = vmatpush3.bf16.msra.mxu1 %v7184_v27  ;;  %v6111_v10 = vcombine.low %v938_v11, %v950_v53  ;;  %v5240_v61 = vsel %vm991_vm3, %v9067_v2, %v5239_v23  ;;  %v9133_v2 = vld [vmem:[#allocation2] sm:$0xff] }
 0x276   : > { %6785 = vmatprep.subr.bf16.mxu1 %v7185_v5  ;;  %v5152_v56 = vor.u32 %v5151_v34, %v5148_v39  ;;  %v1584_v54 = vshrl.u32 %v1078_v12, 16  ;;  %v1587_v37 = vshll.u32 %v1078_v12, 16  ;;  %v7202_v59 = vld [vmem:[#allocation9 + $0x50] ss:$8 sps:$4 sm:$0xff]  }
 0x277   : > { %v1055_v7 = vshrl.u32 %v6111_v10, 16  ;;  %v1058_v29 = vshll.u32 %v6111_v10, 16  ;;  %v5032_v50 = vpop.permute.xlu1 %5031 }
 0x278   : > { %6770 = vmatmul.mubr.bf16.gmra.mrb[12].mxu1 %v4705_v38  ;;  %v1586_v42 = vrot.slane %v1584_v54, 3  ;;  %v1589_v43 = vrot.slane %v1587_v37, 4  ;;  %v5153_v35 = vsel %vm1529_vm2, %v5143_v44, %v5152_v56  ;;  %v5040_v19 = vrot.slane %v5032_v50, %v7951_v13 }
 0x279   : > { %6786 = vmatpush3.bf16.msra.mxu1 %v7185_v5  ;;  %6789 = vmatprep.mubr.bf16.mxu1 %v8995_v22  ;;  %v1057_v14 = vrot.slane %v1055_v7, 4  ;;  %v1060_v9 = vrot.slane %v1058_v29, 5  ;;  %v5178_v60 = vmul.bf16 %v9002_v40, %v5153_v35  ;;  %v7190_v35 = vld [vmem:[#allocation9 + $0x10] ss:$8 sps:$4 sm:$0xff]  }
 0x27a   : > { %6787 = vmatprep.subr.bf16.mxu1 %v7186_v32  ;;  %v1590_v41 = vor.u32 %v1589_v43, %v1586_v42 }
 0x27b   : > { %v1061_v21 = vor.u32 %v1060_v9, %v1057_v14  ;;  %v5251_v55 = vshrl.u32 %v5178_v60, 16  ;;  %v5254_v36 = vshll.u32 %v5178_v60, 16  ;;  %v7187_v14 = vld [vmem:[#allocation9] ss:$8 sps:$4 sm:$0xff]   ;;  %v7189_v9 = vld [vmem:[#allocation9 + $0x4] ss:$8 sps:$4 sm:$0xff]  }
 0x27c   : > { %v5043_v48 = vpop.permute.xlu1 %5042  ;;  %v1591_v22 = vsel %vm1529_vm2, %v9098_v46, %v1590_v41  ;;  %5601 = vmatprep.subr.bf16.mxu0 %v7189_v9  ;;  %v7208_v60 = vld [vmem:[#allocation9 + $0x70] ss:$8 sps:$4 sm:$0xff]  }
 0x27d   : > { %v5051_v4 = vrot.slane %v5043_v48, %v7951_v13  ;;  %6788 = vmatpush3.bf16.msra.mxu1 %v7186_v32  ;;  %v1062_v45 = vsel %vm991_vm3, %v1052_v52, %v1061_v21  ;;  %v1080_v25 = vmul.bf16 %v1061_v21, %v9024_v51  ;;  %6574 = vmatmul.mubr.bf16.gmra.mrb[40].mxu0 %v1591_v22  ;;  %v5244_v13 = vrot.slane %v5242_v30, 4  ;;  %v7196_v21 = vld [vmem:[#allocation9 + $0x30] ss:$8 sps:$4 sm:$0xff]   ;;  %v7201_v48 = vld [vmem:[#allocation9 + $0x44] ss:$8 sps:$4 sm:$0xff]  }
 0x27e   : > { %v1079_v27 = vmul.bf16 %v9002_v40, %v1062_v45  ;;  %v5253_v11 = vrot.slane %v5251_v55, 4  ;;  %5602 = vmatpush1.bf16.msra.mxu0 %v7187_v14  ;;  %v7199_v30 = vld [vmem:[#allocation9 + $0x40] ss:$8 sps:$4 sm:$0xff]   ;;  %v7207_v45 = vld [vmem:[#allocation9 + $0x64] ss:$8 sps:$4 sm:$0xff]  }
 0x27f   : > { %v6241_v63 = vcombine.low %v5040_v19, %v5051_v4  ;;  %v1602_v16 = vshrl.u32 %v1080_v25, 16  ;;  %v1605_v3 = vshll.u32 %v1080_v25, 16  ;;  %v5248_v33 = vor.u32 %v5247_v0, %v5244_v13  ;;  %5603 = vmatprep.subr.bf16.mxu0 %v7192_v26  ;;  %v7195_v19 = vld [vmem:[#allocation9 + $0x24] ss:$8 sps:$4 sm:$0xff]   ;;  %v7204_v4 = vld [vmem:[#allocation9 + $0x54] ss:$8 sps:$4 sm:$0xff]  }
 0x280   : > { %6790 = vmatmul.mubr.bf16.vlgmr.msra.gmra.mrb[0].mxu1 %v9021_v24  ;;  %v1593_v46 = vshrl.u32 %v1079_v27, 16  ;;  %v1596_v31 = vshll.u32 %v1079_v27, 16  ;;  %v7205_v22 = vld [vmem:[#allocation9 + $0x60] ss:$8 sps:$4 sm:$0xff]   ;;  %v7210_v25 = vld [vmem:[#allocation9 + $0x74] ss:$8 sps:$4 sm:$0xff]  }
 0x281   : > { %v5155_v62 = vshrl.u32 %v6241_v63, 16  ;;  %v5158_v28 = vshll.u32 %v6241_v63, 16  ;;  %6793 = vmatprep.mubr.bf16.mxu1 %v9072_v8  ;;  %v1604_v51 = vrot.slane %v1602_v16, 3  ;;  %v1607_v44 = vrot.slane %v1605_v3, 4 }
 0x282   : > { %v1595_v40 = vrot.slane %v1593_v46, 3  ;;  %v1598_v5 = vrot.slane %v1596_v31, 4  ;;  %v5256_v8 = vrot.slane %v5254_v36, 5  ;;  %v5249_v12 = vsel %vm991_vm3, %v5239_v23, %v5248_v33  ;;  %5604 = vmatpush1.bf16.msra.mxu0 %v7190_v35 }
 0x283   : > { %v5157_v52 = vrot.slane %v5155_v62, 3  ;;  %v5160_v53 = vrot.slane %v5158_v28, 4  ;;  %v1608_v24 = vor.u32 %v1607_v44, %v1604_v51  ;;  %5605 = vmatprep.subr.bf16.mxu0 %v7195_v19  ;;  %v9142_v44 = vld [vmem:[%s9300_s5] ss:$0 sm:$0xff] }
 0x284   : > { %v1599_v17 = vor.u32 %v1598_v5, %v1595_v40  ;;  %v5257_v15 = vor.u32 %v5256_v8, %v5253_v11 }
 0x285   : > { %v5161_v6 = vor.u32 %v5160_v53, %v5157_v52 }
 0x286   : > { %v1600_v34 = vsel %vm1529_vm2, %v1590_v41, %v1599_v17  ;;  %v1609_v58 = vsel %vm1529_vm2, %v1599_v17, %v1608_v24  ;;  %v5258_v29 = vsel %vm991_vm3, %v5248_v33, %v5257_v15  ;;  %v7193_v41 = vld [vmem:[#allocation9 + $0x20] ss:$8 sps:$4 sm:$0xff]  }
 0x287   : > { %v5162_v57 = vsel %vm1529_vm2, %v5152_v56, %v5161_v6  ;;  %v5180_v39 = vmul.bf16 %v5161_v6, %v4875_v49  ;;  %6577 = vmatprep.mubr.bf16.mxu0 %v1600_v34  ;;  %5606 = vmatpush1.bf16.msra.mxu0 %v7193_v41 }
 0x288   : > { %6794 = vmatmul.mubr.bf16.gmra.mrb[4].mxu1 %v5240_v61  ;;  %v5179_v10 = vmul.bf16 %v9090_v18, %v5162_v57  ;;  %6578 = vmatmul.mubr.bf16.gmra.mrb[44].mxu0 %v1609_v58 }
 0x289   : > { %6797 = vmatprep.mubr.bf16.mxu1 %v5249_v12  ;;  %5633 = vmatprep.mubr.bf16.mxu0 %v9133_v2  ;;  %v5269_v56 = vshrl.u32 %v5180_v39, 16  ;;  %v5272_v54 = vshll.u32 %v5180_v39, 16 }
 0x28a   : > { %v5260_v38 = vshrl.u32 %v5179_v10, 16  ;;  %v5263_v32 = vshll.u32 %v5179_v10, 16  ;;  %5607 = vmatprep.subr.bf16.mxu0 %v7198_v47 }
 0x28b   : > { %v5271_v50 = vrot.slane %v5269_v56, 4  ;;  %v5274_v1 = vrot.slane %v5272_v54, 5  ;;  %5608 = vmatpush1.bf16.msra.mxu0 %v7196_v21 }
 0x28c   : > { %v5262_v37 = vrot.slane %v5260_v38, 4  ;;  %v5265_v20 = vrot.slane %v5263_v32, 5  ;;  %5609 = vmatprep.subr.bf16.mxu0 %v7201_v48 }
 0x28d   : > { %v5275_v42 = vor.u32 %v5274_v1, %v5271_v50 }
 0x28e   : > { %v5266_v7 = vor.u32 %v5265_v20, %v5262_v37 }
 0x28f   : > { %5610 = vmatpush1.bf16.msra.mxu0 %v7199_v30 }
 0x290   : > { %6798 = vmatmul.mubr.bf16.gmra.mrb[8].mxu1 %v5258_v29  ;;  %v5267_v18 = vsel %vm991_vm3, %v5257_v15, %v5266_v7  ;;  %v5276_v43 = vsel %vm991_vm3, %v5266_v7, %v5275_v42  ;;  %5611 = vmatprep.subr.bf16.mxu0 %v7204_v4 }
 0x291   : > { %6801 = vmatprep.mubr.bf16.mxu1 %v5267_v18 }
 0x293   : > { %5612 = vmatpush1.bf16.msra.mxu0 %v7202_v59 }
 0x294   : > { %5613 = vmatprep.subr.bf16.mxu0 %v7207_v45 }
 0x297   : > { %5614 = vmatpush1.bf16.msra.mxu0 %v7205_v22 }
 0x298   : > { %6802 = vmatmul.mubr.bf16.gmra.mrb[12].mxu1 %v5276_v43  ;;  %5615 = vmatprep.subr.bf16.mxu0 %v7210_v25 }
 0x29b   : > { %5616 = vmatpush1.bf16.msra.mxu0 %v7208_v60 }
 0x321   : > { %v6567_v63 = vpop.f32.mrb[32].mxu0 }
 0x322   : > { %v1700_v27 = vpop.f32.mrb[33].mxu0 }
 0x323   : > { %v6568_v23 = vpop.f32.mrb[34].mxu0 }
 0x324   : > { %v1703_v16 = vpop.f32.mrb[35].mxu0 }
 0x337   : > { %v6571_v3 = vpop.f32.mrb[36].mxu0 }
 0x338   : > { %v1716_v13 = vpop.f32.mrb[37].mxu0 }
 0x339   : > { %v6572_v0 = vpop.f32.mrb[38].mxu0 }
 0x33a   : > { %v1719_v62 = vpop.f32.mrb[39].mxu0 }
 0x350   : > { %v6575_v28 = vpop.f32.mrb[40].mxu0 }
 0x351   : > { %v1732_v46 = vpop.f32.mrb[41].mxu0 }
 0x352   : > { %v6576_v31 = vpop.f32.mrb[42].mxu0 }
 0x353   : > { %v6791_v51 = vpop.f32.mrb[0].mxu1  ;;  %v1735_v36 = vpop.f32.mrb[43].mxu0 }
 0x354   : > { %v6805_v55 = vadd.f32 %v6791_v51, %v6567_v63  ;;  %v5367_v52 = vpop.f32.mrb[1].mxu1 }
 0x355   : > { %v6806_v53 = vadd.f32 %v5367_v52, %v1700_v27  ;;  %v6792_v40 = vpop.f32.mrb[2].mxu1 }
 0x356   : > { %v5455_v5 = vadd.f32 %v6805_v55, %v9142_v44  ;;  %v6807_v49 = vadd.f32 %v6792_v40, %v6568_v23  ;;  %v5370_v24 = vpop.f32.mrb[3].mxu1 }
 0x357   : > { %v5453_v33 = vadd.f32 %v6806_v53, %v9142_v44  ;;  %v6808_v6 = vadd.f32 %v5370_v24, %v1703_v16 }
 0x358   : > { %v5456_v17 = vadd.f32 %v6807_v49, %v9142_v44  ;;  %v5471_v11 = vmax.f32 %v5455_v5, 0.0 }
 0x359   : > { %v5454_v61 = vadd.f32 %v6808_v6, %v9142_v44  ;;  %v5469_v57 = vmax.f32 %v5453_v33, 0.0 }
 0x35a   : > { %v5472_v8 = vmax.f32 %v5456_v17, 0.0 }
 0x35b   : > { %v5470_v39 = vmax.f32 %v5454_v61, 0.0  ;;  %v6795_v34 = vpop.f32.mrb[4].mxu1  ;;  %v6579_v12 = vpop.f32.mrb[44].mxu0 }
 0x35c   : > { %v6809_v58 = vadd.f32 %v6795_v34, %v6571_v3  ;;  %v5383_v10 = vpop.f32.mrb[5].mxu1  ;;  %v5486_v38 = vpack.c.bf16 %v5472_v8, %v5471_v11  ;;  %v1748_v56 = vpop.f32.mrb[45].mxu0 }
 0x35d   : > { %v5485_v32 = vpack.c.bf16 %v5470_v39, %v5469_v57  ;;  %v6810_v15 = vadd.f32 %v5383_v10, %v1716_v13  ;;  %v6796_v54 = vpop.f32.mrb[6].mxu1  ;;  %v6580_v7 = vpop.f32.mrb[46].mxu0  ;;  %v5509_v39 = vld [vmem:[%s9301_s6] sm:$0x3] }
 0x35e   : > { %v5459_v37 = vadd.f32 %v6809_v58, %v9142_v44  ;;  %v6811_v20 = vadd.f32 %v6796_v54, %v6572_v0  ;;  %v5386_v29 = vpop.f32.mrb[7].mxu1  ;;  %v1751_v18 = vpop.f32.mrb[47].mxu0  ;;  %v5714_v58 = vld [vmem:[%s7706_s21] sm:$0xff] }
 0x35f   : > { %v5457_v50 = vadd.f32 %v6810_v15, %v9142_v44  ;;  %v6812_v1 = vadd.f32 %v5386_v29, %v1719_v62  ;;  %5634 = vmatmul.mubr.bf16.vlgmr.msra.gmra.mrb[48].mxu0 %v5485_v32  ;;  %v5730_v32 = vunpack.c.l.bf16 %v5714_v58 }
 0x360   : > { %v5460_v42 = vadd.f32 %v6811_v20, %v9142_v44  ;;  %5643 = vmatprep.mubr.bf16.mxu0 %v9133_v2  ;;  %v5475_v14 = vmax.f32 %v5459_v37, 0.0 }
 0x361   : > { %v5458_v43 = vadd.f32 %v6812_v1, %v9142_v44  ;;  %v5473_v26 = vmax.f32 %v5457_v50, 0.0 }
 0x362   : > { %v5476_v9 = vmax.f32 %v5460_v42, 0.0 }
 0x363   : > { %v5474_v35 = vmax.f32 %v5458_v43, 0.0  ;;  %v6799_v19 = vpop.f32.mrb[8].mxu1 }
 0x364   : > { %v6813_v41 = vadd.f32 %v6799_v19, %v6575_v28  ;;  %v5399_v47 = vpop.f32.mrb[9].mxu1  ;;  %v5488_v21 = vpack.c.bf16 %v5476_v9, %v5475_v14  ;;  %v5716_v14 = vld [vmem:[%s7706_s21 + $0x10] sm:$0xff] }
 0x365   : > { %v6814_v48 = vadd.f32 %v5399_v47, %v1732_v46  ;;  %v6800_v30 = vpop.f32.mrb[10].mxu1  ;;  %v5487_v59 = vpack.c.bf16 %v5474_v35, %v5473_v26 }
 0x366   : > { %v5463_v4 = vadd.f32 %v6813_v41, %v9142_v44  ;;  %v6815_v22 = vadd.f32 %v6800_v30, %v6576_v31  ;;  %v5402_v45 = vpop.f32.mrb[11].mxu1  ;;  %v5717_v41 = vld [vmem:[%s7706_s21 + $0x18] sm:$0xff] }
 0x367   : > { %v5461_v25 = vadd.f32 %v6814_v48, %v9142_v44  ;;  %v6816_v60 = vadd.f32 %v5402_v45, %v1735_v36  ;;  %5644 = vmatmul.mubr.bf16.gmra.mrb[52].mxu0 %v5486_v38  ;;  %v5715_v38 = vld [vmem:[%s7706_s21 + $0x8] sm:$0xff] }
 0x368   : > { %v5464_v63 = vadd.f32 %v6815_v22, %v9142_v44  ;;  %5653 = vmatprep.mubr.bf16.mxu0 %v9133_v2  ;;  %v5479_v23 = vmax.f32 %v5463_v4, 0.0  ;;  %v5732_v37 = vunpack.c.l.bf16 %v5715_v38  ;;  %v5733_v29 = vunpack.c.h.bf16 %v5715_v38 }
 0x369   : > { %v5462_v27 = vadd.f32 %v6816_v60, %v9142_v44  ;;  %v5477_v3 = vmax.f32 %v5461_v25, 0.0  ;;  %v5735_v4 = vunpack.c.h.bf16 %v5716_v14  ;;  %v5736_v25 = vunpack.c.l.bf16 %v5717_v41 }
 0x36a   : > { %v5480_v16 = vmax.f32 %v5464_v63, 0.0 }
 0x36b   : > { %v5478_v13 = vmax.f32 %v5462_v27, 0.0  ;;  %v6803_v0 = vpop.f32.mrb[12].mxu1 }
 0x36c   : > { %v6817_v62 = vadd.f32 %v6803_v0, %v6579_v12  ;;  %v5415_v28 = vpop.f32.mrb[13].mxu1  ;;  %v5490_v46 = vpack.c.bf16 %v5480_v16, %v5479_v23  ;;  %v5737_v23 = vunpack.c.h.bf16 %v5717_v41 }
 0x36d   : > { %v6818_v31 = vadd.f32 %v5415_v28, %v1748_v56  ;;  %v6804_v51 = vpop.f32.mrb[14].mxu1  ;;  %v5489_v55 = vpack.c.bf16 %v5478_v13, %v5477_v3  ;;  %v5731_v56 = vunpack.c.h.bf16 %v5714_v58  ;;  %v5718_v28 = vld [vmem:[%s7706_s21 + $0x20] sm:$0xff] }
 0x36e   : > { %v5467_v36 = vadd.f32 %v6817_v62, %v9142_v44  ;;  %v6819_v52 = vadd.f32 %v6804_v51, %v6580_v7  ;;  %v5418_v53 = vpop.f32.mrb[15].mxu1 }
 0x36f   : > { %v5465_v40 = vadd.f32 %v6818_v31, %v9142_v44  ;;  %v6820_v5 = vadd.f32 %v5418_v53, %v1751_v18  ;;  %5654 = vmatmul.mubr.bf16.gmra.mrb[56].mxu0 %v5487_v59  ;;  %v5738_v53 = vunpack.c.l.bf16 %v5718_v28 }
 0x370   : > { %v5468_v49 = vadd.f32 %v6819_v52, %v9142_v44  ;;  %5663 = vmatprep.mubr.bf16.mxu0 %v9133_v2  ;;  %v5483_v33 = vmax.f32 %v5467_v36, 0.0  ;;  %v5719_v36 = vld [vmem:[%s7706_s21 + $0x28] sm:$0xff] }
 0x371   : > { %v5466_v24 = vadd.f32 %v6820_v5, %v9142_v44  ;;  %v5481_v17 = vmax.f32 %v5465_v40, 0.0  ;;  %v9427_v44 = vld [vmem:[#allocation18_spill] sm:$0xff] }
 0x372   : > { %v5484_v6 = vmax.f32 %v5468_v49, 0.0  ;;  %v5513_v57 = vsub.s32 0, %v9427_v44  ;;  %v5517_v34 = vsub.s32 1, %v9427_v44  ;;  %v5741_v44 = vunpack.c.h.bf16 %v5719_v36 }
 0x373   : > { %v5482_v61 = vmax.f32 %v5466_v24, 0.0  ;;  %v5739_v24 = vunpack.c.h.bf16 %v5718_v28 }
 0x374   : > { %v5492_v11 = vpack.c.bf16 %v5484_v6, %v5483_v33  ;;  %v9173_v12 = vrot.slane %v5509_v39, %v5513_v57  ;;  %v9175_v10 = vrot.slane %v5509_v39, %v5517_v34 }
 0x375   : > { %v5491_v8 = vpack.c.bf16 %v5482_v61, %v5481_v17  ;;  %v5740_v17 = vunpack.c.l.bf16 %v5719_v36 }
 0x377   : > { %5664 = vmatmul.mubr.bf16.gmra.mrb[60].mxu0 %v5488_v21  ;;  %v5734_v21 = vunpack.c.l.bf16 %v5716_v14 }
 0x378   : > { %5673 = vmatprep.mubr.bf16.mxu0 %v9133_v2 }
 0x37f   : > { %5674 = vmatmul.mubr.bf16.gmra.mrb[64].mxu0 %v5489_v55 }
 0x380   : > { %5683 = vmatprep.mubr.bf16.mxu0 %v9133_v2 }
 0x387   : > { %5684 = vmatmul.mubr.bf16.gmra.mrb[68].mxu0 %v5490_v46 }
 0x388   : > { %5693 = vmatprep.mubr.bf16.mxu0 %v9133_v2 }
 0x38f   : > { %5694 = vmatmul.mubr.bf16.gmra.mrb[72].mxu0 %v5491_v8 }
 0x390   : > { %5703 = vmatprep.mubr.bf16.mxu0 %v9133_v2 }
 0x397   : > { %5704 = vmatmul.mubr.bf16.gmra.mrb[76].mxu0 %v5492_v11 }
 0x432   : > { %v5635_v15 = vpop.f32.mrb[48].mxu0 }
 0x433   : > { %v5636_v2 = vadd.f32 %v5635_v15, %v9173_v12  ;;  %v5637_v54 = vpop.f32.mrb[49].mxu0 }
 0x434   : > { %v5638_v20 = vadd.f32 %v5637_v54, %v9175_v10  ;;  %v5639_v7 = vpop.f32.mrb[50].mxu0 }
 0x435   : > { %v5762_v50 = vadd.f32 %v5730_v32, %v5636_v2  ;;  %v5640_v1 = vadd.f32 %v5639_v7, %v9173_v12  ;;  %v5641_v18 = vpop.f32.mrb[51].mxu0  ;;  %v5720_v32 = vld [vmem:[%s7706_s21 + $0x30] sm:$0xff] }
 0x436   : > { %v5763_v42 = vadd.f32 %v5731_v56, %v5638_v20  ;;  %v5642_v43 = vadd.f32 %v5641_v18, %v9175_v10  ;;  %v5742_v7 = vunpack.c.l.bf16 %v5720_v32  ;;  %v5743_v18 = vunpack.c.h.bf16 %v5720_v32 }
 0x437   : > { %v5794_v9 = vmax.f32 %v5762_v50, 0.0  ;;  %v5764_v26 = vadd.f32 %v5732_v37, %v5640_v1  ;;  %v5721_v37 = vld [vmem:[%s7706_s21 + $0x38] sm:$0xff] }
 0x438   : > { %v5795_v35 = vmax.f32 %v5763_v42, 0.0  ;;  %v5765_v19 = vadd.f32 %v5733_v29, %v5642_v43  ;;  %v5744_v14 = vunpack.c.l.bf16 %v5721_v37 }
 0x439   : > { %v5796_v47 = vmax.f32 %v5764_v26, 0.0 }
 0x43a   : > { %v6291_v48 = vpack.c.bf16 %v5795_v35, %v5794_v9  ;;  %v5797_v30 = vmax.f32 %v5765_v19, 0.0  ;;  %v5645_v59 = vpop.f32.mrb[52].mxu0  ;;  %v5745_v19 = vunpack.c.h.bf16 %v5721_v37 }
 0x43b   : > { %v5646_v22 = vadd.f32 %v5645_v59, %v9173_v12  ;;  %v5647_v45 = vpop.f32.mrb[53].mxu0  ;;  %v5722_v59 = vld [vmem:[%s7706_s21 + $0x40] sm:$0xff] }
 0x43c   : > { %5922 = vst [vmem:[%s9187_s14] sm:$0xff] %v6291_v48  ;;  %v6292_v60 = vpack.c.bf16 %v5797_v30, %v5796_v47  ;;  %v5648_v63 = vadd.f32 %v5647_v45, %v9175_v10  ;;  %v5649_v27 = vpop.f32.mrb[54].mxu0 }
 0x43d   : > { %v5766_v16 = vadd.f32 %v5734_v21, %v5646_v22  ;;  %v5650_v3 = vadd.f32 %v5649_v27, %v9173_v12  ;;  %v5651_v13 = vpop.f32.mrb[55].mxu0  ;;  %v5746_v27 = vunpack.c.l.bf16 %v5722_v59 }
 0x43e   : > { %5923 = vst [vmem:[%s9187_s14 + $0x8] sm:$0xff] %v6292_v60  ;;  %v5767_v0 = vadd.f32 %v5735_v4, %v5648_v63  ;;  %v5652_v62 = vadd.f32 %v5651_v13, %v9175_v10  ;;  %v5723_v60 = vld [vmem:[%s7706_s21 + $0x48] sm:$0xff]  ;;  %v5747_v13 = vunpack.c.h.bf16 %v5722_v59 }
 0x43f   : > { %v5798_v46 = vmax.f32 %v5766_v16, 0.0  ;;  %v5768_v31 = vadd.f32 %v5736_v25, %v5650_v3  ;;  %v5748_v28 = vunpack.c.l.bf16 %v5723_v60 }
 0x440   : > { %v5799_v51 = vmax.f32 %v5767_v0, 0.0  ;;  %v5769_v55 = vadd.f32 %v5737_v23, %v5652_v62 }
 0x441   : > { %v5800_v52 = vmax.f32 %v5768_v31, 0.0 }
 0x442   : > { %v6293_v40 = vpack.c.bf16 %v5799_v51, %v5798_v46  ;;  %v5801_v5 = vmax.f32 %v5769_v55, 0.0  ;;  %v5655_v49 = vpop.f32.mrb[56].mxu0  ;;  %v5749_v55 = vunpack.c.h.bf16 %v5723_v60 }
 0x443   : > { %v5656_v33 = vadd.f32 %v5655_v49, %v9173_v12  ;;  %v5657_v6 = vpop.f32.mrb[57].mxu0  ;;  %v5724_v49 = vld [vmem:[%s7706_s21 + $0x50] sm:$0xff] }
 0x444   : > { %5924 = vst [vmem:[%s9187_s14 + $0x10] sm:$0xff] %v6293_v40  ;;  %v6294_v61 = vpack.c.bf16 %v5801_v5, %v5800_v52  ;;  %v5658_v11 = vadd.f32 %v5657_v6, %v9175_v10  ;;  %v5659_v8 = vpop.f32.mrb[58].mxu0 }
 0x445   : > { %v5770_v57 = vadd.f32 %v5738_v53, %v5656_v33  ;;  %v5660_v39 = vadd.f32 %v5659_v8, %v9173_v12  ;;  %v5661_v34 = vpop.f32.mrb[59].mxu0  ;;  %v5750_v8 = vunpack.c.l.bf16 %v5724_v49 }
 0x446   : > { %5925 = vst [vmem:[%s9187_s14 + $0x18] sm:$0xff] %v6294_v61  ;;  %v5771_v58 = vadd.f32 %v5739_v24, %v5658_v11  ;;  %v5662_v38 = vadd.f32 %v5661_v34, %v9175_v10  ;;  %v5725_v61 = vld [vmem:[%s7706_s21 + $0x58] sm:$0xff]  ;;  %v5751_v34 = vunpack.c.h.bf16 %v5724_v49 }
 0x447   : > { %v5802_v15 = vmax.f32 %v5770_v57, 0.0  ;;  %v5772_v56 = vadd.f32 %v5740_v17, %v5660_v39  ;;  %v5752_v32 = vunpack.c.l.bf16 %v5725_v61 }
 0x448   : > { %v5803_v2 = vmax.f32 %v5771_v58, 0.0  ;;  %v5773_v54 = vadd.f32 %v5741_v44, %v5662_v38 }
 0x449   : > { %v5804_v20 = vmax.f32 %v5772_v56, 0.0 }
 0x44a   : > { %v6295_v29 = vpack.c.bf16 %v5803_v2, %v5802_v15  ;;  %v5805_v50 = vmax.f32 %v5773_v54, 0.0  ;;  %v5665_v1 = vpop.f32.mrb[60].mxu0  ;;  %v5753_v54 = vunpack.c.h.bf16 %v5725_v61 }
 0x44b   : > { %v5666_v42 = vadd.f32 %v5665_v1, %v9173_v12  ;;  %v5667_v43 = vpop.f32.mrb[61].mxu0  ;;  %v5726_v1 = vld [vmem:[%s7706_s21 + $0x60] sm:$0xff] }
 0x44c   : > { %5926 = vst [vmem:[%s9187_s14 + $0x20] sm:$0xff] %v6295_v29  ;;  %v6296_v9 = vpack.c.bf16 %v5805_v50, %v5804_v20  ;;  %v5668_v26 = vadd.f32 %v5667_v43, %v9175_v10  ;;  %v5669_v35 = vpop.f32.mrb[62].mxu0 }
 0x44d   : > { %v5774_v41 = vadd.f32 %v5742_v7, %v5666_v42  ;;  %v5670_v47 = vadd.f32 %v5669_v35, %v9173_v12  ;;  %v5671_v21 = vpop.f32.mrb[63].mxu0  ;;  %v5754_v35 = vunpack.c.l.bf16 %v5726_v1 }
 0x44e   : > { %5927 = vst [vmem:[%s9187_s14 + $0x28] sm:$0xff] %v6296_v9  ;;  %v5775_v48 = vadd.f32 %v5743_v18, %v5668_v26  ;;  %v5672_v30 = vadd.f32 %v5671_v21, %v9175_v10  ;;  %v5727_v9 = vld [vmem:[%s7706_s21 + $0x68] sm:$0xff]  ;;  %v5755_v21 = vunpack.c.h.bf16 %v5726_v1 }
 0x44f   : > { %v5806_v4 = vmax.f32 %v5774_v41, 0.0  ;;  %v5776_v22 = vadd.f32 %v5744_v14, %v5670_v47  ;;  %v5756_v59 = vunpack.c.l.bf16 %v5727_v9 }
 0x450   : > { %v5807_v45 = vmax.f32 %v5775_v48, 0.0  ;;  %v5777_v25 = vadd.f32 %v5745_v19, %v5672_v30 }
 0x451   : > { %v5808_v63 = vmax.f32 %v5776_v22, 0.0 }
 0x452   : > { %v6297_v23 = vpack.c.bf16 %v5807_v45, %v5806_v4  ;;  %v5809_v16 = vmax.f32 %v5777_v25, 0.0  ;;  %v5675_v3 = vpop.f32.mrb[64].mxu0  ;;  %v5757_v25 = vunpack.c.h.bf16 %v5727_v9 }
 0x453   : > { %v5676_v0 = vadd.f32 %v5675_v3, %v9173_v12  ;;  %v5677_v62 = vpop.f32.mrb[65].mxu0  ;;  %v5728_v3 = vld [vmem:[%s7706_s21 + $0x70] sm:$0xff] }
 0x454   : > { %5928 = vst [vmem:[%s9187_s14 + $0x30] sm:$0xff] %v6297_v23  ;;  %v6298_v46 = vpack.c.bf16 %v5809_v16, %v5808_v63  ;;  %v5678_v31 = vadd.f32 %v5677_v62, %v9175_v10  ;;  %v5679_v51 = vpop.f32.mrb[66].mxu0 }
 0x455   : > { %v5778_v36 = vadd.f32 %v5746_v27, %v5676_v0  ;;  %v5680_v52 = vadd.f32 %v5679_v51, %v9173_v12  ;;  %v5681_v53 = vpop.f32.mrb[67].mxu0  ;;  %v5758_v51 = vunpack.c.l.bf16 %v5728_v3 }
 0x456   : > { %5929 = vst [vmem:[%s9187_s14 + $0x38] sm:$0xff] %v6298_v46  ;;  %v5779_v40 = vadd.f32 %v5747_v13, %v5678_v31  ;;  %v5682_v5 = vadd.f32 %v5681_v53, %v9175_v10  ;;  %v5729_v46 = vld [vmem:[%s7706_s21 + $0x78] sm:$0xff]  ;;  %v5759_v53 = vunpack.c.h.bf16 %v5728_v3  ;;  %s5953_s21 = sshll.u32 %s9187_s14, 4  ;;  %s9249_s21 = int_to_ptr.vmem [resolvable:$true] %s5953_s21 }
 0x457   : > { %v5810_v24 = vmax.f32 %v5778_v36, 0.0  ;;  %v5780_v33 = vadd.f32 %v5748_v28, %v5680_v52  ;;  %v5760_v49 = vunpack.c.l.bf16 %v5729_v46  ;;  %s7359_s26 = scalar_lea.vmem %s9249_s21, 2048  ;;  %p7366_p12 = scmp.lt.s32.totalorder %s9249_s21, %s7364_s17 }
 0x458   : > { %v5811_v6 = vmax.f32 %v5779_v40, 0.0  ;;  %v5781_v17 = vadd.f32 %v5749_v55, %v5682_v5  ;;  %p7360_p10 = scmp.ne.s32.totalorder %s9249_s21, %s7359_s26  ;;  %p7367_p2 = scmp.lt.s32.totalorder %s7365_s19, %s7359_s26 }
 0x459   : > { %v5812_v11 = vmax.f32 %v5780_v33, 0.0 }
 0x45a   : > { %v6299_v44 = vpack.c.bf16 %v5811_v6, %v5810_v24  ;;  %v5813_v57 = vmax.f32 %v5781_v17, 0.0  ;;  %v5685_v39 = vpop.f32.mrb[68].mxu0  ;;  %v5761_v17 = vunpack.c.h.bf16 %v5729_v46  ;;  %p7361_p3 = pnand %p7360_p10, %p7649_p5  ;;  %p7368_p1 = por %p7367_p2, %p7366_p12 }
 0x45b   : > { %v5686_v58 = vadd.f32 %v5685_v39, %v9173_v12  ;;  %v5687_v38 = vpop.f32.mrb[69].mxu0 }
 0x45c   : > { %5930 = vst [vmem:[%s9187_s14 + $0x40] sm:$0xff] %v6299_v44  ;;  %v6300_v15 = vpack.c.bf16 %v5813_v57, %v5812_v11  ;;  %v5688_v56 = vadd.f32 %v5687_v38, %v9175_v10  ;;  %v5689_v2 = vpop.f32.mrb[70].mxu0  ;;  %p7362_p7 = pneg %p7361_p3 }
 0x45d   : > { %v5782_v37 = vadd.f32 %v5750_v8, %v5686_v58  ;;  %v5690_v20 = vadd.f32 %v5689_v2, %v9173_v12  ;;  %v5691_v7 = vpop.f32.mrb[71].mxu0 }
 0x45e   : > { %5931 = vst [vmem:[%s9187_s14 + $0x48] sm:$0xff] %v6300_v15  ;;  %v5783_v29 = vadd.f32 %v5751_v34, %v5688_v56  ;;  %v5692_v50 = vadd.f32 %v5691_v7, %v9175_v10  ;;  %p7369_p4 = pnand %p7368_p1, %p7362_p7 }
 0x45f   : > { %v5814_v18 = vmax.f32 %v5782_v37, 0.0  ;;  %v5784_v42 = vadd.f32 %v5752_v32, %v5690_v20 }
 0x460   : > { %v5815_v43 = vmax.f32 %v5783_v29, 0.0  ;;  %v5785_v14 = vadd.f32 %v5753_v54, %v5692_v50 }
 0x461   : > { %v5816_v26 = vmax.f32 %v5784_v42, 0.0 }
 0x462   : > { %v6301_v19 = vpack.c.bf16 %v5815_v43, %v5814_v18  ;;  %v5817_v41 = vmax.f32 %v5785_v14, 0.0  ;;  %v5695_v47 = vpop.f32.mrb[72].mxu0 }
 0x463   : > { %v5696_v48 = vadd.f32 %v5695_v47, %v9173_v12  ;;  %v5697_v30 = vpop.f32.mrb[73].mxu0 }
 0x464   : > { %5932 = vst [vmem:[%s9187_s14 + $0x50] sm:$0xff] %v6301_v19  ;;  %v6302_v4 = vpack.c.bf16 %v5817_v41, %v5816_v26  ;;  %v5698_v22 = vadd.f32 %v5697_v30, %v9175_v10  ;;  %v5699_v45 = vpop.f32.mrb[74].mxu0 }
 0x465   : > { %v5786_v60 = vadd.f32 %v5754_v35, %v5696_v48  ;;  %v5700_v63 = vadd.f32 %v5699_v45, %v9173_v12  ;;  %v5701_v27 = vpop.f32.mrb[75].mxu0 }
 0x466   : > { %5933 = vst [vmem:[%s9187_s14 + $0x58] sm:$0xff] %v6302_v4  ;;  %v5787_v23 = vadd.f32 %v5755_v21, %v5698_v22  ;;  %v5702_v16 = vadd.f32 %v5701_v27, %v9175_v10 }
 0x467   : > { %v5818_v13 = vmax.f32 %v5786_v60, 0.0  ;;  %v5788_v0 = vadd.f32 %v5756_v59, %v5700_v63 }
 0x468   : > { %v5819_v62 = vmax.f32 %v5787_v23, 0.0  ;;  %v5789_v28 = vadd.f32 %v5757_v25, %v5702_v16 }
 0x469   : > { %v5820_v31 = vmax.f32 %v5788_v0, 0.0 }
 0x46a   : > { %v6303_v55 = vpack.c.bf16 %v5819_v62, %v5818_v13  ;;  %v5821_v36 = vmax.f32 %v5789_v28, 0.0  ;;  %v5705_v52 = vpop.f32.mrb[76].mxu0 }
 0x46b   : > { %v5706_v40 = vadd.f32 %v5705_v52, %v9173_v12  ;;  %v5707_v5 = vpop.f32.mrb[77].mxu0 }
 0x46c   : > { %5934 = vst [vmem:[%s9187_s14 + $0x60] sm:$0xff] %v6303_v55  ;;  %v6304_v24 = vpack.c.bf16 %v5821_v36, %v5820_v31  ;;  %v5708_v33 = vadd.f32 %v5707_v5, %v9175_v10  ;;  %v5709_v6 = vpop.f32.mrb[78].mxu0 }
 0x46d   : > { %v5790_v61 = vadd.f32 %v5758_v51, %v5706_v40  ;;  %v5710_v11 = vadd.f32 %v5709_v6, %v9173_v12  ;;  %v5711_v8 = vpop.f32.mrb[79].mxu0 }
 0x46e   : > { %5935 = vst [vmem:[%s9187_s14 + $0x68] sm:$0xff] %v6304_v24  ;;  %v5791_v44 = vadd.f32 %v5759_v53, %v5708_v33  ;;  %v5712_v57 = vadd.f32 %v5711_v8, %v9175_v10 }
 0x46f   : > { %v5822_v39 = vmax.f32 %v5790_v61, 0.0  ;;  %v5792_v34 = vadd.f32 %v5760_v49, %v5710_v11 }
 0x470   : > { %v5823_v58 = vmax.f32 %v5791_v44, 0.0  ;;  %v5793_v38 = vadd.f32 %v5761_v17, %v5712_v57 }
 0x471   : > { %v5824_v32 = vmax.f32 %v5792_v34, 0.0 }
 0x472   : > { %v6305_v15 = vpack.c.bf16 %v5823_v58, %v5822_v39  ;;  %v5825_v56 = vmax.f32 %v5793_v38, 0.0 }
 0x474   : > { %5936 = vst [vmem:[%s9187_s14 + $0x70] sm:$0xff] %v6305_v15  ;;  %v6306_v12 = vpack.c.bf16 %v5825_v56, %v5824_v32 }
 0x476   : > { %5937 = vst [vmem:[%s9187_s14 + $0x78] sm:$0xff] %v6306_v12 }
 0x477   : > { %7372 = shalt.err (!%p7369_p4)
}
 0x478   : > { %s7373_s12 = scalar_lea.hbm %s9247_s18, 2048  ;;  %s7377_s20 = scalar_lea.hbm %s9303_s8, 4096 }
 0x479   : > { %p7374_p9 = scmp.ne.s32.totalorder %s9247_s18, %s7373_s12  ;;  %p7378_p8 = scmp.lt.u32.totalorder %s9247_s18, %s9303_s8 }
 0x47a   : > { %p7379_p13 = scmp.lt.u32.totalorder %s7377_s20, %s7373_s12  ;;  %p7381_p10 = scmp.lt.u32.totalorder %s7373_s12, %s9247_s18 }
 0x47b   : > { %p7375_p0 = pnand %p7374_p9, %p7649_p5 }
 0x47c   : > { %p7380_p6 = por %p7379_p13, %p7378_p8 }
 0x47d   : > { %p7376_p11 = pneg %p7375_p0 }
 0x47e   : > { %p7382_p3 = por %p7381_p10, %p7380_p6 }
 0x480   : > { %p7383_p7 = pnand %p7382_p3, %p7376_p11 }
 0x482   : > { %7386 = shalt.err (!%p7383_p7)
}
 0x483   : > { %s7454_s15 = smov 128   ;;  %s7455_s13 = smov 8  }
 0x484   : > { %6947 = dma.vmem_to_hbm [thread:$0]  (%p7649_p5), %s9249_s21, 2048, %s9247_s18, %s5939_s11, %s7454_s15, %s7454_s15, %s7455_s13  }
 0x485 PF: > { %s9428_s26 = sld [smem:[#allocation16_spill]]  ;;  %s9429_s9 = sld [smem:[#allocation17_spill]] }
 0x486   : > { %p9431_p2 = scmp.ge.s32.totalorder %s7433_s30, 2 }
 0x48b   : > { %s5968_s17 = sand.u32 1, %s9428_s26   ;;  %p9430_p12 = scmp.ne.s32.totalorder %s9429_s9, 0 }
 0x48c   : > { %s5969_s19 = scalar_lea.sflag [#allocation5], %s5968_s17 }
 0x48d   : > { %p6964_p1 = pnand %p9431_p2, %p9430_p12 }
 0x48f   : > { %7416 = dma.done.wait (!%p6964_p1), %s5969_s19, 2048  }
 0x490   : > { %7418 = vsyncadd (!%p6964_p1), %s5969_s19, 4294965248  ;;  %s9432_s12 = smov %s7635_s27  ;;  %p23_p4 = scmp.ge.s32.totalorder %s7635_s27, 4  }
 0x491   : > { %s9433_s27 = smov %s7425_s28  ;;  %s9434_s28 = smov %s7429_s29 }
 0x492   : > { %s9435_s29 = smov %s7645_s23  ;;  %s9436_s30 = smov %s9432_s12 }
 0x493   :  { %25 = sbr.rel (!%p23_p4) target bundleno = 7 (0x7), region = 109 }
 0x49a   :  { %5974 = vsyncpa [#allocation4], 1 }
 0x49b   :  { %5976 = vsyncpa [#allocation4 + $0x1], 1 }
 0x49c   :  { %5977 = vsyncpa [#allocation7], 1 }
 0x49d   :  { %5978 = vsyncpa [#allocation10], 1 }
 0x49e   :  { %5979 = vsyncpa [#allocation5], 1 }
 0x49f   :  { %5981 = vsyncpa [#allocation5 + $0x1], 1 }

// kernel: tpu_custom_call.1
= control target key start
LH: loop header
LB: loop body
LE: loop exit
PB: predicated region body
PF: predicated region fallthrough
CT: control target
= control target key end

     0   :  { %13 = vsyncpa [#allocation4], 0  ;;  %s9295_s0 = inlined_call_operand.hbm [shape: bf16[256,256], index: 0, kind: input, shape index: {}]   ;;  %s9296_s1 = inlined_call_operand.hbm [shape: bf16[256,128], index: 1, kind: input, shape index: {}]   ;;  %s9297_s2 = inlined_call_operand.hbm [shape: bf16[1152,128], index: 2, kind: input, shape index: {}]   ;;  %s9298_s3 = inlined_call_operand.hbm [shape: bf16[128,256], index: 3, kind: input, shape index: {}]   ;;  %s9299_s4 = inlined_call_operand.vmem [shape: f32[1,128], index: 4, kind: input, shape index: {}]   ;;  %s9300_s5 = inlined_call_operand.vmem [shape: f32[1,128], index: 5, kind: input, shape index: {}]   ;;  %s9301_s6 = inlined_call_operand.vmem [shape: f32[1,256], index: 6, kind: input, shape index: {}]   ;;  %s9302_s7 = inlined_call_operand.vmem [shape: bf16[128,16], index: 7, kind: input, shape index: {}]   ;;  %s9303_s8 = inlined_call_operand.hbm [shape: bf16[256,256], index: 8, kind: output, shape index: {}]  }
   0x1   :  { %15 = vsyncpa [#allocation4 + $0x1], 0 }
   0x2   :  { %16 = vsyncpa [#allocation7], 0 }
   0x3   :  { %17 = vsyncpa [#allocation10], 0 }
   0x4   :  { %18 = vsyncpa [#allocation5], 0 }
   0x5   :  { %20 = vsyncpa [#allocation5 + $0x1], 0  ;;  %s7501_s27 = smov 0   ;;  %s7503_s28 = smov 0  }
   0x6   :  { %s7505_s29 = smov 0   ;;  %s7507_s30 = smov 0  }
   0x7 LB: > { %9328 = sst [smem:[#allocation16_spill]] %s7421_s27  ;;  %s7522_s9 = sadd.s32 4294967295, %s7433_s30   ;;  %s7433_s30 = sphi %s7507_s30, %s9436_s30   ;;  %s7429_s29 = sphi %s7505_s29, %s9435_s29   ;;  %s7425_s28 = sphi %s7503_s28, %s9434_s28   ;;  %s7421_s27 = sphi %s7501_s27, %s9433_s27  }
   0x8   : > { %s6055_s10 = sadd.s32 4294967294, %s7433_s30   ;;  %p46_p0 = scmp.ne.s32.totalorder %s7425_s28, %s7421_s27 }
   0x9   : > { %p9304_p1 = scmp.eq.s32.totalorder %s7522_s9, 0  ;;  %p223_p3 = scmp.eq.s32.totalorder %s6055_s10, 1 }
   0xa   : > { %p6056_p5 = scmp.ge.s32.totalorder %s7433_s30, 1  ;;  %p230_p7 = scmp.lt.s32.totalorder %s7433_s30, 3 }
   0xb   : > { %p7531_p4 = por %p9304_p1, %p46_p0  ;;  %p7536_p6 = por %p223_p3, %p46_p0 }
   0xc   : > { %p7541_p8 = pnand %p6056_p5, %p230_p7  ;;  %s7435_s14 = smov [#allocation6]  }
   0xd   : > { %s9329_s11 = scalar_select %p7531_p4, 1, 0 }
   0xe   : > { %s9330_s12 = scalar_select %p7536_p6, 1, 0 }
   0xf   : > { %s9332_s13 = scalar_select %p7541_p8, 1, 0 }
  0x10   : > { %9331 = sst [smem:[#allocation17_spill]] %s9330_s12  ;;  %s242_s15 = sshll.u32 %s7435_s14, 4  ;;  %s7545_s15 = int_to_ptr.vmem [resolvable:$true] %s242_s15 }
  0x11   : > { %p6949_p9 = pneg %p7541_p8  ;;  %s7436_s17 = smov [#allocation8]  }
  0x12   : > { %s255_s18 = sshll.u32 %s7436_s17, 4  ;;  %s7437_s19 = smov [#allocation9]   ;;  %s7556_s18 = int_to_ptr.vmem [resolvable:$true] %s255_s18 }
  0x13   : > { %p7552_p11 = pnand %p6949_p9, %p9304_p1  ;;  %s7558_s20 = sshll.u32 %s7437_s19, 4  ;;  %s269_s20 = int_to_ptr.vmem [resolvable:$true] %s7558_s20 }
  0x14   : > { %s7245_s23 = scalar_lea.hbm %s9296_s1, 2048 }
  0x15   : > { %p7246_p12 = scmp.ne.s32.totalorder %s9296_s1, %s7245_s23  ;;  %p7568_p13 = pneg %p7552_p11 }
  0x16   : > { %p7252_p5 = scmp.lt.u32.totalorder %s7245_s23, %s9296_s1 }
  0x17   : > { %p7248_p0 = pnand %p7568_p13, %p7246_p12 }
  0x19   : > { %p7249_p3 = pneg %p7248_p0 }
  0x1b   : > { %p7254_p7 = pnand %p7252_p5, %p7249_p3 }
  0x1d   : > { %7257 = shalt.err (!%p7254_p7)
}
  0x1e   : > { %s7258_s17 = scalar_lea.vmem %s7545_s15, 2048  ;;  %p7266_p2 = scmp.lt.s32.totalorder %s7545_s15, %s7545_s15 }
  0x1f   : > { %p7259_p9 = scmp.ne.s32.totalorder %s7545_s15, %s7258_s17  ;;  %p7267_p6 = scmp.lt.s32.totalorder %s7258_s17, %s7258_s17 }
  0x21   : > { %p7261_p10 = pnand %p7259_p9, %p7568_p13  ;;  %p7268_p12 = por %p7267_p6, %p7266_p2 }
  0x23   : > { %p7262_p1 = pneg %p7261_p10 }
  0x25   : > { %p7269_p0 = pnand %p7268_p12, %p7262_p1 }
  0x27   : > { %7272 = shalt.err (!%p7269_p0)
}
  0x28   : > { %s7438_s19 = smov 64   ;;  %s7439_s21 = smov 4  }
  0x29   : > { %6952 = dma.hbm_to_vmem [thread:$0]  (!%p7552_p11), %s9296_s1, 2048, %s7545_s15, [#allocation7], %s7438_s19, %s7438_s19, %s7439_s21  }
  0x2a   : > { %s7273_s10 = scalar_lea.hbm %s9297_s2, 9216 }
  0x2b   : > { %p7274_p2 = scmp.ne.s32.totalorder %s9297_s2, %s7273_s10  ;;  %p7280_p10 = scmp.lt.u32.totalorder %s7273_s10, %s9297_s2 }
  0x2d   : > { %p7276_p1 = pnand %p7274_p2, %p7568_p13 }
  0x2f   : > { %p7277_p6 = pneg %p7276_p1 }
  0x31   : > { %p7282_p3 = pnand %p7280_p10, %p7277_p6 }
  0x33   : > { %7285 = shalt.err (!%p7282_p3)
}
  0x34   : > { %s7286_s15 = scalar_lea.vmem %s7556_s18, 9216  ;;  %p7294_p12 = scmp.lt.s32.totalorder %s7556_s18, %s7556_s18 }
  0x35   : > { %p7287_p5 = scmp.ne.s32.totalorder %s7556_s18, %s7286_s15  ;;  %p7295_p0 = scmp.lt.s32.totalorder %s7286_s15, %s7286_s15 }
  0x37   : > { %p7289_p7 = pnand %p7287_p5, %p7568_p13  ;;  %p7296_p2 = por %p7295_p0, %p7294_p12 }
  0x39   : > { %p7290_p9 = pneg %p7289_p7 }
  0x3b   : > { %p7297_p1 = pnand %p7296_p2, %p7290_p9 }
  0x3d   : > { %7300 = shalt.err (!%p7297_p1)
}
  0x3e   : > { %6955 = dma.hbm_to_vmem [thread:$0]  (!%p7552_p11), %s9297_s2, 9216, %s7556_s18, [#allocation7], %s7438_s19, %s7438_s19, %s7439_s21  }
  0x3f   : > { %s7301_s24 = scalar_lea.hbm %s9298_s3, 2048 }
  0x40   : > { %p7302_p6 = scmp.ne.s32.totalorder %s9298_s3, %s7301_s24  ;;  %p7308_p5 = scmp.lt.u32.totalorder %s7301_s24, %s9298_s3 }
  0x42   : > { %p7304_p10 = pnand %p7302_p6, %p7568_p13 }
  0x44   : > { %p7305_p3 = pneg %p7304_p10 }
  0x46   : > { %p7310_p7 = pnand %p7308_p5, %p7305_p3 }
  0x48   : > { %7313 = shalt.err (!%p7310_p7)
}
  0x49   : > { %s7314_s15 = scalar_lea.vmem %s269_s20, 2048  ;;  %p7322_p2 = scmp.lt.s32.totalorder %s269_s20, %s269_s20 }
  0x4a   : > { %p7315_p9 = scmp.ne.s32.totalorder %s269_s20, %s7314_s15  ;;  %p7323_p1 = scmp.lt.s32.totalorder %s7314_s15, %s7314_s15 }
  0x4c   : > { %p7317_p12 = pnand %p7315_p9, %p7568_p13  ;;  %p7324_p4 = por %p7323_p1, %p7322_p2 }
  0x4e   : > { %p7318_p0 = pneg %p7317_p12 }
  0x50   : > { %p7325_p8 = pnand %p7324_p4, %p7318_p0 }
  0x52   : > { %7328 = shalt.err (!%p7325_p8)
}
  0x53   : > { %s7440_s18 = smov 128   ;;  %s7441_s26 = smov 8  }
  0x54   : > { %6958 = dma.hbm_to_vmem [thread:$0]  (!%p7552_p11), %s9298_s3, 2048, %s269_s20, [#allocation10], %s7440_s18, %s7440_s18, %s7441_s26  }
  0x55   : > { %s7635_s27 = sadd.s32 1, %s7433_s30   ;;  %s33_s22 = sadd.s32 1, %s7429_s29 }
  0x56   : > { %s30_s12 = ssub.s32 %s7433_s30, %s7635_s27  ;;  %p40_p8 = scmp.ne.s32.totalorder %s7429_s29, %s7425_s28 }
  0x57   : > { %p31_p4 = scmp.eq.s32.totalorder %s30_s12, 0  ;;  %p41_p13 = scmp.eq.s32.totalorder %s7433_s30, 0 }
  0x58   : > { %p6970_p6 = scmp.lt.s32.totalorder %s7433_s30, 2  ;;  %p9335_p3 = scmp.eq.s32.totalorder %s7522_s9, 1 }
  0x59   : > { %s7645_s23 = scalar_select %p31_p4, %s7429_s29, %s33_s22  }
  0x5a   : > { %p42_p10 = por %p41_p13, %p40_p8  ;;  %p7649_p5 = por %p9335_p3, %p40_p8 }
  0x5b   : > { %s294_s24 = sand.u32 1, %s7429_s29   ;;  %s6290_s25 = sshll.u32 %s7433_s30, 11 }
  0x5c   : > { %s6061_s20 = sshll.u32 %s294_s24, 7  ;;  %s7658_s17 = scalar_lea.hbm %s9295_s0, %s6290_s25 }
  0x5d   : > { %s298_s15 = scalar_lea.vmem [#allocation3], %s6061_s20  ;;  %p7660_p11 = pnand %p6970_p6, %p42_p10 }
  0x5e   : > { %s306_s19 = sshll.u32 %s298_s15, 4  ;;  %s7666_s12 = scalar_lea.sflag [#allocation4], %s294_s24  ;;  %s7664_s19 = int_to_ptr.vmem [resolvable:$true] %s306_s19 }
  0x5f   : > { %s7329_s22 = scalar_lea.hbm %s7658_s17, 2048  ;;  %p7331_p9 = pneg %p7660_p11 }
  0x60   : > { %p7330_p7 = scmp.ne.s32.totalorder %s7658_s17, %s7329_s22  ;;  %s7334_s10 = scalar_lea.hbm %s9295_s0, 4096 }
  0x61   : > { %p7335_p2 = scmp.lt.u32.totalorder %s7658_s17, %s9295_s0  ;;  %p7336_p1 = scmp.lt.u32.totalorder %s7334_s10, %s7329_s22 }
  0x62   : > { %p7332_p12 = pnand %p7331_p9, %p7330_p7  ;;  %p7338_p8 = scmp.lt.u32.totalorder %s7329_s22, %s7658_s17 }
  0x63   : > { %p7337_p4 = por %p7336_p1, %p7335_p2 }
  0x64   : > { %p7333_p0 = pneg %p7332_p12 }
  0x65   : > { %p7339_p13 = por %p7338_p8, %p7337_p4 }
  0x67   : > { %p7340_p6 = pnand %p7339_p13, %p7333_p0 }
  0x69   : > { %7343 = shalt.err (!%p7340_p6)
}
  0x6a   : > { %s7344_s24 = scalar_lea.vmem %s7664_s19, 2048  ;;  %s7442_s25 = smov [#allocation3]  }
  0x6b   : > { %p7345_p10 = scmp.ne.s32.totalorder %s7664_s19, %s7344_s24  ;;  %s7349_s20 = sshll.u32 %s7442_s25, 4  ;;  %s7350_s20 = int_to_ptr.vmem [resolvable:$false] %s7349_s20 }
  0x6c   : > { %s7351_s14 = scalar_lea.vmem %s7350_s20, 4096  ;;  %p7352_p12 = scmp.lt.s32.totalorder %s7664_s19, %s7350_s20 }
  0x6d   : > { %p7347_p3 = pnand %p7345_p10, %p7331_p9  ;;  %p7353_p2 = scmp.lt.s32.totalorder %s7351_s14, %s7344_s24 }
  0x6f   : > { %p7348_p7 = pneg %p7347_p3  ;;  %p7354_p1 = por %p7353_p2, %p7352_p12 }
  0x71   : > { %p7355_p4 = pnand %p7354_p1, %p7348_p7 }
  0x73   : > { %7358 = shalt.err (!%p7355_p4)
}
  0x74   : > { %6962 = dma.hbm_to_vmem [thread:$0]  (!%p7660_p11), %s7658_s17, 2048, %s7664_s19, %s7666_s12, %s7440_s18, %s7440_s18, %s7441_s26  }
  0x75   : > { %p9338_p9 = scmp.ne.s32.totalorder %s9332_s13, 0 }
  0x77   : > { %318 = sbr.rel (%p9338_p9) target bundleno = 1157 (0x485), region = 52 }
  0x7e   : > { %s7700_s22 = sand.u32 1, %s7425_s28   ;;  %p9339_p0 = scmp.ne.s32.totalorder %s9329_s11, 0 }
  0x7f   : > { %s6066_s10 = sshll.u32 %s7700_s22, 7  ;;  %s321_s15 = scalar_lea.sflag [#allocation4], %s7700_s22 }
  0x80   : > { %s7706_s21 = scalar_lea.vmem [#allocation3], %s6066_s10 }
  0x81   : > { %7404 = dma.done.wait (%p9339_p0), %s321_s15, 2048  }
  0x82   : > { %7406 = vsyncadd (%p9339_p0), %s321_s15, 4294965248  ;;  %p9340_p11 = scmp.eq.s32.totalorder %s7522_s9, 0 }
  0x84   : > { %7408 = dma.done.wait (%p9340_p11), [#allocation7], 11264   ;;  %p9341_p8 = pmov %p9340_p11 }
  0x86   : > { %7410 = vsyncadd (%p9341_p8), [#allocation7], 4294956032  ;;  %p9342_p13 = pmov %p9341_p8 }
  0x87   : > { %p9343_p6 = pmov %p9341_p8 }
  0x88   : > { %7412 = dma.done.wait (%p9342_p13), [#allocation10], 2048  }
  0x89   : > { %7414 = vsyncadd (%p9343_p6), [#allocation10], 4294965248  ;;  %v7443_v0 = vmov 2   ;;  %v7723_v1 = vld [vmem:[%s9302_s7 + $0x8] sm:$0xf]  ;;  %v7075_v3 = vld [vmem:[#allocation6 + $0x40] sm:$0xff]  }
  0x8a   : > { %7027 = vset.pattern.permute.xlu1 %v7443_v0  ;;  %7026 = vset.pattern.permute.xlu0 %v7443_v0  ;;  %v7728_v2 = vld [vmem:[%s9302_s7] sm:$0xf]  ;;  %v7076_v4 = vld [vmem:[#allocation6] sm:$0xff]   ;;  %v7735_v5 = vld [vmem:[%s9302_s7 + $0xc] sm:$0xf]  ;;  %v7444_v36 = vmov 3  }
  0x8b   : > { %1787 = vperm.xlu1 %7027, %v7723_v1   ;;  %1765 = vperm.xlu0 %7026, %v7728_v2   ;;  %v7740_v6 = vld [vmem:[%s9302_s7 + $0x4] sm:$0xf]  ;;  %v7077_v7 = vld [vmem:[#allocation6 + $0x48] sm:$0xff]   ;;  %v7747_v9 = vld [vmem:[%s9302_s7 + $0x14] sm:$0xf]  ;;  %v7445_v39 = vmov 0  }
  0x8c   : > { %6309 = vmatprep.subr.bf16.mxu0 %v7075_v3  ;;  %v7078_v8 = vld [vmem:[#allocation6 + $0x8] sm:$0xff]   ;;  %v7752_v10 = vld [vmem:[%s9302_s7 + $0x10] sm:$0xf]  ;;  %v7079_v11 = vld [vmem:[#allocation6 + $0x50] sm:$0xff]   ;;  %716 = vst [vmem:[#allocation2] sm:$0xff] %v7445_v39  ;;  %v7446_v46 = vmov 4  }
  0x8d   : > { %6310 = vmatpush3.bf16.msra.mxu0 %v7076_v4  ;;  %v7080_v12 = vld [vmem:[#allocation6 + $0x10] sm:$0xff]   ;;  %v7759_v13 = vld [vmem:[%s9302_s7 + $0x1c] sm:$0xf]  ;;  %v7764_v14 = vld [vmem:[%s9302_s7 + $0x18] sm:$0xf]  ;;  %717 = vst [vmem:[#allocation2 + $0x48] sm:$0xff] %v7445_v39 }
  0x8e   : > { %6311 = vmatprep.subr.bf16.mxu0 %v7077_v7  ;;  %v7081_v15 = vld [vmem:[#allocation6 + $0x58] sm:$0xff]   ;;  %v7771_v17 = vld [vmem:[%s9302_s7 + $0x24] sm:$0xf]  ;;  %v7776_v18 = vld [vmem:[%s9302_s7 + $0x20] sm:$0xf]  ;;  %v7447_v52 = vmov 5  }
  0x8f   : > { %1798 = vperm.xlu1 %7027, %v7735_v5   ;;  %1776 = vperm.xlu0 %7026, %v7740_v6   ;;  %v7082_v16 = vld [vmem:[#allocation6 + $0x18] sm:$0xff]   ;;  %v7083_v19 = vld [vmem:[#allocation6 + $0x60] sm:$0xff]   ;;  %v7085_v23 = vld [vmem:[#allocation6 + $0x68] sm:$0xff]   ;;  %v7448_v56 = vmov 6   ;;  %vm2552_vm0 = vsmask.f32 7424 }
  0x90   : > { %v7084_v20 = vld [vmem:[#allocation6 + $0x20] sm:$0xff]   ;;  %v7783_v21 = vld [vmem:[%s9302_s7 + $0x2c] sm:$0xf]  ;;  %v7788_v22 = vld [vmem:[%s9302_s7 + $0x28] sm:$0xf]  ;;  %vm1358_vm4 = vcmask 1043456  }
  0x91   : > { %6312 = vmatpush3.bf16.msra.mxu0 %v7078_v8  ;;  %v7086_v24 = vld [vmem:[#allocation6 + $0x28] sm:$0xff]   ;;  %v7793_v25 = vld [vmem:[%s9302_s7 + $0x34] sm:$0xf]  ;;  %v7800_v26 = vld [vmem:[%s9302_s7 + $0x30] sm:$0xf]  ;;  %s9187_s14 = scalar_lea.vmem [#allocation11], %s6066_s10 }
  0x92   : > { %6313 = vmatprep.subr.bf16.mxu0 %v7079_v11  ;;  %v7087_v27 = vld [vmem:[#allocation6 + $0x70] sm:$0xff]   ;;  %v7093_v28 = vld [vmem:[%s7706_s21 + $0x4] ss:$8 sps:$4 sm:$0xff]   ;;  %v7813_v31 = vld [vmem:[%s9302_s7 + $0x38] sm:$0xf]  ;;  %s6308_s10 = sshll.u32 %s7522_s9, 11 }
  0x93   : > { %1820 = vperm.xlu1 %7027, %v7747_v9   ;;  %1809 = vperm.xlu0 %7026, %v7752_v10   ;;  %v7088_v29 = vld [vmem:[#allocation6 + $0x30] sm:$0xff]   ;;  %v7808_v30 = vld [vmem:[%s9302_s7 + $0x3c] sm:$0xf]  ;;  %v7089_v32 = vld [vmem:[#allocation6 + $0x78] sm:$0xff]   ;;  %vm2650_vm1 = vsmask.f32 256  ;;  %s9247_s18 = scalar_lea.hbm %s9303_s8, %s6308_s10 }
  0x94   : > { %635 = vmatprep.mubr.bf16.mxu0 %v7093_v28  ;;  %v7090_v33 = vld [vmem:[#allocation6 + $0x38] sm:$0xff]   ;;  %v7091_v34 = vld [vmem:[%s7706_s21] ss:$8 sps:$4 sm:$0xff]   ;;  %v7097_v38 = vld [vmem:[%s7706_s21 + $0x24] ss:$8 sps:$4 sm:$0xff]   ;;  %s5939_s11 = scalar_lea.sflag [#allocation5], %s7700_s22 }
  0x95   : > { %6314 = vmatpush3.bf16.msra.mxu0 %v7080_v12  ;;  %v7094_v35 = vld [vmem:[%s7706_s21 + $0x14] ss:$8 sps:$4 sm:$0xff]   ;;  %v7096_v37 = vld [vmem:[%s7706_s21 + $0x10] ss:$8 sps:$4 sm:$0xff]   ;;  %v7099_v40 = vld [vmem:[%s7706_s21 + $0x20] ss:$8 sps:$4 sm:$0xff]  }
  0x96   : > { %6315 = vmatprep.subr.bf16.mxu0 %v7081_v15  ;;  %v7100_v41 = vld [vmem:[%s7706_s21 + $0x34] ss:$8 sps:$4 sm:$0xff]   ;;  %v7102_v42 = vld [vmem:[%s7706_s21 + $0x30] ss:$8 sps:$4 sm:$0xff]   ;;  %v7103_v43 = vld [vmem:[%s7706_s21 + $0x44] ss:$8 sps:$4 sm:$0xff]  }
  0x97   : > { %1842 = vperm.xlu1 %7027, %v7759_v13   ;;  %1831 = vperm.xlu0 %7026, %v7764_v14   ;;  %v7105_v44 = vld [vmem:[%s7706_s21 + $0x40] ss:$8 sps:$4 sm:$0xff]   ;;  %v7106_v45 = vld [vmem:[%s7706_s21 + $0x54] ss:$8 sps:$4 sm:$0xff]   ;;  %v7108_v47 = vld [vmem:[%s7706_s21 + $0x50] ss:$8 sps:$4 sm:$0xff]  }
  0x98   : > { %v7109_v48 = vld [vmem:[%s7706_s21 + $0x64] ss:$8 sps:$4 sm:$0xff]   ;;  %v7111_v49 = vld [vmem:[%s7706_s21 + $0x60] ss:$8 sps:$4 sm:$0xff]   ;;  %v7112_v50 = vld [vmem:[%s7706_s21 + $0x74] ss:$8 sps:$4 sm:$0xff]  }
  0x99   : > { %6316 = vmatpush3.bf16.msra.mxu0 %v7082_v16  ;;  %v7114_v51 = vld [vmem:[%s7706_s21 + $0x70] ss:$8 sps:$4 sm:$0xff]   ;;  %v7115_v53 = vld [vmem:[#allocation8 + $0x80] sm:$0xff]   ;;  %v7116_v54 = vld [vmem:[#allocation8 + $0x88] sm:$0xff]   ;;  %vm1529_vm2 = vsmask.f32 4352 }
  0x9a   : > { %6317 = vmatprep.subr.bf16.mxu0 %v7083_v19  ;;  %6581 = vmatprep.subr.bf16.mxu1 %v7115_v53  ;;  %v7117_v55 = vld [vmem:[#allocation8 + $0x90] sm:$0xff]   ;;  %v7118_v57 = vld [vmem:[#allocation8 + $0x98] sm:$0xff]   ;;  %v7119_v60 = vld [vmem:[#allocation8 + $0xa0] sm:$0xff]   ;;  %vm991_vm3 = vsmask.f32 3328  ;;  %s7453_s9 = smov [#allocation11]  }
  0x9b   : > { %1864 = vperm.xlu1 %7027, %v7771_v17   ;;  %1853 = vperm.xlu0 %7026, %v7776_v18   ;;  %v7120_v63 = vld [vmem:[#allocation8 + $0xa8] sm:$0xff]   ;;  %v7121_v4 = vld [vmem:[#allocation8 + $0xb0] sm:$0xff]   ;;  %s7363_s17 = sshll.u32 %s7453_s9, 4  ;;  %s7364_s17 = int_to_ptr.vmem [resolvable:$false] %s7363_s17 }
  0x9c   : > { %6582 = vmatpush3.bf16.msra.mxu1 %v7115_v53  ;;  %s7365_s19 = scalar_lea.vmem %s7364_s17, 4096 }
  0x9d   : > { %6318 = vmatpush3.bf16.msra.mxu0 %v7084_v20  ;;  %6583 = vmatprep.subr.bf16.mxu1 %v7116_v54 }
  0x9e   : > { %6319 = vmatprep.subr.bf16.mxu0 %v7085_v23 }
  0x9f   : > { %1886 = vperm.xlu1 %7027, %v7783_v21   ;;  %1875 = vperm.xlu0 %7026, %v7788_v22  }
  0xa0   : > { %6584 = vmatpush3.bf16.msra.mxu1 %v7116_v54 }
  0xa1   : > { %6320 = vmatpush3.bf16.msra.mxu0 %v7086_v24  ;;  %6585 = vmatprep.subr.bf16.mxu1 %v7117_v55 }
  0xa2   : > { %6321 = vmatprep.subr.bf16.mxu0 %v7087_v27 }
  0xa3   : > { %1908 = vperm.xlu1 %7027, %v7793_v25   ;;  %1897 = vperm.xlu0 %7026, %v7800_v26  }
  0xa4   : > { %6586 = vmatpush3.bf16.msra.mxu1 %v7117_v55  ;;  %v7965_v55 = vld [vmem:[#allocation8 + $0xc0] sm:$0xff]  }
  0xa5   : > { %6322 = vmatpush3.bf16.msra.mxu0 %v7088_v29  ;;  %6587 = vmatprep.subr.bf16.mxu1 %v7118_v57  ;;  %v7450_v29 = vmov 839922192  }
  0xa6   : > { %6323 = vmatprep.subr.bf16.mxu0 %v7089_v32  ;;  %v767_v32 = vlaneseq }
  0xa7   : > { %1930 = vperm.xlu1 %7027, %v7808_v30   ;;  %1919 = vperm.xlu0 %7026, %v7813_v31  }
  0xa8   : > { %6588 = vmatpush3.bf16.msra.mxu1 %v7118_v57 }
  0xa9   : > { %6324 = vmatpush3.bf16.msra.mxu0 %v7090_v33  ;;  %6589 = vmatprep.subr.bf16.mxu1 %v7119_v60 }
  0xab   : > { %7029 = vset.pattern.permute.xlu1 %v7444_v36  ;;  %7028 = vset.pattern.permute.xlu0 %v7444_v36 }
  0xac   : > { %2348 = vperm.xlu1 %7029, %v7740_v6   ;;  %2337 = vperm.xlu0 %7028, %v7728_v2  }
  0xad   : > { %636 = vmatmul.mubr.bf16.vlgmr.msra.gmra.mrb[0].mxu0 %v7091_v34  ;;  %6590 = vmatpush3.bf16.msra.mxu1 %v7119_v60  ;;  %v7125_v60 = vld [vmem:[#allocation8 + $0x48] sm:$0xff]  }
  0xae   : > { %643 = vmatprep.mubr.bf16.mxu0 %v7094_v35  ;;  %6591 = vmatprep.subr.bf16.mxu1 %v7120_v63  ;;  %v7941_v35 = vshrl.u32 %v767_v32, 7 }
  0xb0   : > { %2359 = vperm.xlu1 %7029, %v7723_v1   ;;  %2370 = vperm.xlu0 %7028, %v7735_v5   ;;  %9344 = vst [vmem:[#allocation18_spill] sm:$0xff] %v7941_v35 }
  0xb1   : > { %6592 = vmatpush3.bf16.msra.mxu1 %v7120_v63 }
  0xb2   : > { %6593 = vmatprep.subr.bf16.mxu1 %v7121_v4 }
  0xb4   : > { %2381 = vperm.xlu1 %7029, %v7752_v10   ;;  %2392 = vperm.xlu0 %7028, %v7747_v9  }
  0xb5   : > { %644 = vmatmul.mubr.bf16.gmra.mrb[4].mxu0 %v7096_v37  ;;  %6594 = vmatpush3.bf16.msra.mxu1 %v7121_v4 }
  0xb6   : > { %651 = vmatprep.mubr.bf16.mxu0 %v7097_v38 }
  0xb8   : > { %2403 = vperm.xlu1 %7029, %v7764_v14   ;;  %2414 = vperm.xlu0 %7028, %v7759_v13  }
  0xbc   : > { %2425 = vperm.xlu1 %7029, %v7776_v18   ;;  %2436 = vperm.xlu0 %7028, %v7771_v17  }
  0xbd   : > { %652 = vmatmul.mubr.bf16.gmra.mrb[8].mxu0 %v7099_v40 }
  0xbe   : > { %659 = vmatprep.mubr.bf16.mxu0 %v7100_v41 }
  0xc0   : > { %2447 = vperm.xlu1 %7029, %v7788_v22   ;;  %2458 = vperm.xlu0 %7028, %v7783_v21  }
  0xc4   : > { %2469 = vperm.xlu1 %7029, %v7800_v26   ;;  %2480 = vperm.xlu0 %7028, %v7793_v25  }
  0xc5   : > { %660 = vmatmul.mubr.bf16.gmra.mrb[12].mxu0 %v7102_v42 }
  0xc6   : > { %667 = vmatprep.mubr.bf16.mxu0 %v7103_v43 }
  0xc8   : > { %2491 = vperm.xlu1 %7029, %v7813_v31   ;;  %2502 = vperm.xlu0 %7028, %v7808_v30  }
  0xcc   : > { %7030 = vset.pattern.permute.xlu1 %v7446_v46  ;;  %7031 = vset.pattern.permute.xlu0 %v7446_v46 }
  0xcd   : > { %2889 = vperm.xlu1 %7030, %v7728_v2   ;;  %2900 = vperm.xlu0 %7031, %v7740_v6  }
  0xce   : > { %668 = vmatmul.mubr.bf16.gmra.mrb[16].mxu0 %v7105_v44 }
  0xcf   : > { %675 = vmatprep.mubr.bf16.mxu0 %v7106_v45 }
  0xd1   : > { %2911 = vperm.xlu1 %7030, %v7723_v1   ;;  %2933 = vperm.xlu0 %7031, %v7752_v10  }
  0xd5   : > { %2922 = vperm.xlu1 %7030, %v7735_v5   ;;  %2955 = vperm.xlu0 %7031, %v7764_v14  }
  0xd6   : > { %676 = vmatmul.mubr.bf16.gmra.mrb[20].mxu0 %v7108_v47 }
  0xd7   : > { %683 = vmatprep.mubr.bf16.mxu0 %v7109_v48 }
  0xd9   : > { %2944 = vperm.xlu1 %7030, %v7747_v9   ;;  %2977 = vperm.xlu0 %7031, %v7776_v18  }
  0xdd   : > { %2966 = vperm.xlu1 %7030, %v7759_v13   ;;  %2999 = vperm.xlu0 %7031, %v7788_v22  }
  0xde   : > { %684 = vmatmul.mubr.bf16.gmra.mrb[24].mxu0 %v7111_v49  ;;  %v7123_v49 = vld [vmem:[#allocation8 + $0x40] sm:$0xff]  }
  0xdf   : > { %691 = vmatprep.mubr.bf16.mxu0 %v7112_v50  ;;  %v9313_v50 = vmov 7   ;;  %6517 = vmatprep.subr.bf16.mxu0 %v7123_v49 }
  0xe0   : > { %6518 = vmatpush3.bf16.msra.mxu0 %v7123_v49 }
  0xe1   : > { %2988 = vperm.xlu1 %7030, %v7771_v17   ;;  %3032 = vperm.xlu0 %7031, %v7793_v25  }
  0xe2   : > { %6519 = vmatprep.subr.bf16.mxu0 %v7125_v60 }
  0xe4   : > { %6520 = vmatpush3.bf16.msra.mxu0 %v7125_v60 }
  0xe5   : > { %3010 = vperm.xlu1 %7030, %v7783_v21   ;;  %7034 = vset.pattern.permute.xlu0 %v7447_v52 }
  0xe6   : > { %692 = vmatmul.mubr.bf16.gmra.mrb[28].mxu0 %v7114_v51  ;;  %3307 = vperm.xlu0 %7034, %v7728_v2  }
  0xe9   : > { %7032 = vset.pattern.permute.xlu1 %v7447_v52 }
  0xea   : > { %3318 = vperm.xlu1 %7032, %v7740_v6   ;;  %3340 = vperm.xlu0 %7034, %v7735_v5  }
  0xee   : > { %3329 = vperm.xlu1 %7032, %v7723_v1   ;;  %3362 = vperm.xlu0 %7034, %v7747_v9  }
  0xf2   : > { %3351 = vperm.xlu1 %7032, %v7752_v10   ;;  %3373 = vperm.xlu0 %7034, %v7764_v14  }
  0xf6   : > { %7033 = vset.pattern.permute.xlu1 %v7446_v46  ;;  %3406 = vperm.xlu0 %7034, %v7771_v17  }
  0xf7   : > { %3021 = vperm.xlu1 %7033, %v7800_v26  }
  0xfa   : > { %3428 = vperm.xlu0 %7034, %v7783_v21  }
  0xfb   : > { %3043 = vperm.xlu1 %7033, %v7813_v31  }
  0xfe   : > { %3450 = vperm.xlu0 %7034, %v7793_v25  }
  0xff   : > { %3054 = vperm.xlu1 %7033, %v7808_v30  }
 0x102   : > { %3472 = vperm.xlu0 %7034, %v7808_v30  }
 0x103   : > { %7035 = vset.pattern.permute.xlu1 %v7447_v52 }
 0x104   : > { %3384 = vperm.xlu1 %7035, %v7759_v13  }
 0x106   : > { %7037 = vset.pattern.permute.xlu0 %v7448_v56 }
 0x107   : > { %3870 = vperm.xlu0 %7037, %v7740_v6  }
 0x108   : > { %3395 = vperm.xlu1 %7035, %v7776_v18  }
 0x10a   : > { %v7880_v58 = vpop.permute.xlu1 %1787  ;;  %v7882_v59 = vpop.permute.xlu0 %1765 }
 0x10b   : > { %3903 = vperm.xlu0 %7037, %v7752_v10  }
 0x10c   : > { %3417 = vperm.xlu1 %7035, %v7788_v22  }
 0x10e   : > { %v7886_v61 = vpop.permute.xlu1 %1798  ;;  %v7888_v62 = vpop.permute.xlu0 %1776 }
 0x10f   : > { %3925 = vperm.xlu0 %7037, %v7764_v14   ;;  %v7122_v14 = vld [vmem:[#allocation8 + $0xb8] sm:$0xff]  }
 0x110   : > { %3439 = vperm.xlu1 %7035, %v7800_v26   ;;  %6595 = vmatprep.subr.bf16.mxu1 %v7122_v14 }
 0x111   : > { %6596 = vmatpush3.bf16.msra.mxu1 %v7122_v14 }
 0x112   : > { %v7892_v0 = vpop.permute.xlu1 %1820  ;;  %v7894_v3 = vpop.permute.xlu0 %1809  ;;  %6613 = vmatprep.subr.bf16.mxu1 %v7965_v55 }
 0x113   : > { %3947 = vperm.xlu0 %7037, %v7776_v18  }
 0x114   : > { %3461 = vperm.xlu1 %7035, %v7813_v31  }
 0x116   : > { %v7898_v7 = vpop.permute.xlu1 %1842  ;;  %v7900_v8 = vpop.permute.xlu0 %1831 }
 0x117   : > { %3969 = vperm.xlu0 %7037, %v7788_v22   ;;  %v9311_v22 = vmov 1  }
 0x118   : > { %7036 = vset.pattern.permute.xlu1 %v7448_v56 }
 0x119   : > { %3859 = vperm.xlu1 %7036, %v7728_v2  }
 0x11a   : > { %v7904_v11 = vpop.permute.xlu1 %1864  ;;  %v7906_v12 = vpop.permute.xlu0 %1853 }
 0x11b   : > { %3991 = vperm.xlu0 %7037, %v7800_v26  }
 0x11d   : > { %3881 = vperm.xlu1 %7036, %v7723_v1  }
 0x11e   : > { %v7910_v15 = vpop.permute.xlu1 %1886  ;;  %v7912_v16 = vpop.permute.xlu0 %1875 }
 0x11f   : > { %4013 = vperm.xlu0 %7037, %v7813_v31   ;;  %v765_v31 = vunpack.c.l.s4 %v7450_v29 }
 0x121   : > { %3892 = vperm.xlu1 %7036, %v7735_v5  }
 0x122   : > { %v7916_v19 = vpop.permute.xlu1 %1908  ;;  %v7918_v20 = vpop.permute.xlu0 %1897 }
 0x123   : > { %7038 = vset.pattern.permute.xlu0 %v9311_v22 }
 0x124   : > { %1099 = vperm.xlu0 %7038, %v7728_v2  }
 0x125   : > { %3914 = vperm.xlu1 %7036, %v7747_v9  }
 0x126   : > { %v7923_v23 = vpop.permute.xlu1 %1930  ;;  %v7925_v24 = vpop.permute.xlu0 %1919 }
 0x128   : > { %1132 = vperm.xlu0 %7038, %v7735_v5   ;;  %v766_v5 = vunpack.c.0.s8 %v765_v31 }
 0x129   : > { %3936 = vperm.xlu1 %7036, %v7759_v13  }
 0x12b   : > { %v7929_v27 = vpop.permute.xlu1 %2348  ;;  %v7931_v28 = vpop.permute.xlu0 %2337 }
 0x12c   : > { %1176 = vperm.xlu0 %7038, %v7759_v13   ;;  %v7951_v13 = vsub.s32 %v766_v5, %v7941_v35 }
 0x12d   : > { %3958 = vperm.xlu1 %7036, %v7771_v17  }
 0x12f   : > { %v7935_v33 = vpop.permute.xlu1 %2359  ;;  %v7937_v34 = vpop.permute.xlu0 %2370 }
 0x130   : > { %1220 = vperm.xlu0 %7038, %v7783_v21  }
 0x131   : > { %3980 = vperm.xlu1 %7036, %v7783_v21  }
 0x133   : > { %v7943_v36 = vpop.permute.xlu1 %2381  ;;  %v7945_v37 = vpop.permute.xlu0 %2392 }
 0x134   : > { %7052 = vset.pattern.permute.xlu0 %v7445_v39 }
 0x135   : > { %4002 = vperm.xlu1 %7036, %v7793_v25   ;;  %785 = vperm.xlu0 %7052, %v7723_v1  }
 0x137   : > { %v2404_v38 = vpop.permute.xlu1 %2403  ;;  %v2415_v40 = vpop.permute.xlu0 %2414 }
 0x138   : > { %v2412_v21 = vrot.slane %v2404_v38, %v7951_v13  ;;  %v2423_v41 = vrot.slane %v2415_v40, %v7951_v13 }
 0x139   : > { %4024 = vperm.xlu1 %7036, %v7808_v30   ;;  %809 = vperm.xlu0 %7052, %v7752_v10  }
 0x13a   : > { %v6156_v42 = vcombine.low %v2412_v21, %v2423_v41  ;;  %v7127_v21 = vld [vmem:[#allocation8 + $0x50] sm:$0xff]  }
 0x13b   : > { %v2426_v43 = vpop.permute.xlu1 %2425  ;;  %v2437_v44 = vpop.permute.xlu0 %2436  ;;  %6521 = vmatprep.subr.bf16.mxu0 %v7127_v21 }
 0x13c   : > { %v2577_v45 = vshll.u32 %v6156_v42, 16  ;;  %v2581_v46 = vshrl.u32 %v6156_v42, 16  ;;  %v2434_v47 = vrot.slane %v2426_v43, %v7951_v13  ;;  %v2445_v48 = vrot.slane %v2437_v44, %v7951_v13  ;;  %6522 = vmatpush3.bf16.msra.mxu0 %v7127_v21 }
 0x13d   : > { %7039 = vset.pattern.permute.xlu1 %v9311_v22  ;;  %7054 = vset.pattern.permute.xlu0 %v9313_v50 }
 0x13e   : > { %v7961_v51 = vrot.slane %v2577_v45, 1  ;;  %v6157_v52 = vcombine.low %v2434_v47, %v2445_v48  ;;  %1110 = vperm.xlu1 %7039, %v7740_v6   ;;  %4430 = vperm.xlu0 %7054, %v7728_v2  }
 0x13f   : > { %v2448_v53 = vpop.permute.xlu1 %2447  ;;  %v2459_v54 = vpop.permute.xlu0 %2458 }
 0x140   : > { %v2583_v56 = vor.u32 %v2581_v46, %v7961_v51  ;;  %v2585_v57 = vshll.u32 %v6157_v52, 16  ;;  %v2589_v63 = vshrl.u32 %v6157_v52, 16  ;;  %v2456_v4 = vrot.slane %v2448_v53, %v7951_v13  ;;  %v7129_v53 = vld [vmem:[#allocation8 + $0x58] sm:$0xff]  }
 0x141   : > { %v2467_v14 = vrot.slane %v2459_v54, %v7951_v13  ;;  %6523 = vmatprep.subr.bf16.mxu0 %v7129_v53 }
 0x142   : > { %v2587_v29 = vrot.slane %v2585_v57, 1  ;;  %1121 = vperm.xlu1 %7039, %v7723_v1   ;;  %4474 = vperm.xlu0 %7054, %v7752_v10   ;;  %v7131_v57 = vld [vmem:[#allocation8 + $0x60] sm:$0xff]  }
 0x143   : > { %v6158_v2 = vcombine.low %v2456_v4, %v2467_v14  ;;  %v2470_v31 = vpop.permute.xlu1 %2469  ;;  %v2481_v32 = vpop.permute.xlu0 %2480  ;;  %6524 = vmatpush3.bf16.msra.mxu0 %v7129_v53 }
 0x144   : > { %v7974_v5 = vsel %vm2552_vm0, %v2583_v56, %v2587_v29  ;;  %v2478_v38 = vrot.slane %v2470_v31, %v7951_v13  ;;  %v2489_v40 = vrot.slane %v2481_v32, %v7951_v13  ;;  %v2591_v41 = vor.u32 %v2589_v63, %v2587_v29  ;;  %6525 = vmatprep.subr.bf16.mxu0 %v7131_v57 }
 0x145   : > { %9345 = vst [vmem:[#allocation19_spill] sm:$0xff] %v7974_v5  ;;  %v2593_v42 = vshll.u32 %v6158_v2, 16  ;;  %v2597_v43 = vshrl.u32 %v6158_v2, 16 }
 0x146   : > { %v6159_v44 = vcombine.low %v2478_v38, %v2489_v40  ;;  %7040 = vset.pattern.permute.xlu1 %v9313_v50  ;;  %4485 = vperm.xlu0 %7054, %v7747_v9   ;;  %v7133_v40 = vld [vmem:[#allocation8 + $0x68] sm:$0xff]  }
 0x147   : > { %v2595_v1 = vrot.slane %v2593_v42, 1  ;;  %v2492_v45 = vpop.permute.xlu1 %2491  ;;  %4441 = vperm.xlu1 %7040, %v7740_v6   ;;  %v2503_v46 = vpop.permute.xlu0 %2502  ;;  %v7992_v6 = vld [vmem:[%s9302_s7 + $0x8] sm:$0xf]  ;;  %6526 = vmatpush3.bf16.msra.mxu0 %v7131_v57  ;;  %v1807_v57 = vrot.slane %v7886_v61, %v7951_v13 }
 0x148   : > { %v2601_v47 = vshll.u32 %v6159_v44, 16  ;;  %v2605_v48 = vshrl.u32 %v6159_v44, 16  ;;  %v2500_v49 = vrot.slane %v2492_v45, %v7951_v13  ;;  %v2511_v52 = vrot.slane %v2503_v46, %v7951_v13  ;;  %6527 = vmatprep.subr.bf16.mxu0 %v7133_v40  ;;  %v7137_v44 = vld [vmem:[#allocation8 + $0x78] sm:$0xff]   ;;  %v7214_v45 = vld [vmem:[%s9302_s7 + $0x18] sm:$0xf] }
 0x149   : > { %v7984_v54 = vsel %vm2552_vm0, %v2591_v41, %v2595_v1  ;;  %v2599_v56 = vor.u32 %v2597_v43, %v2595_v1  ;;  %v7135_v41 = vld [vmem:[#allocation8 + $0x70] sm:$0xff]   ;;  %v8037_v43 = vld [vmem:[%s9302_s7 + $0x14] sm:$0xf]  ;;  %v9309_v46 = vmov 8  }
 0x14a   : > { %9346 = vst [vmem:[#allocation20_spill] sm:$0xff] %v7984_v54  ;;  %v2603_v9 = vrot.slane %v2601_v47, 1  ;;  %v7986_v60 = vcombine.low %v2500_v49, %v2511_v52  ;;  %4518 = vperm.xlu0 %7054, %v7776_v18   ;;  %v1774_v47 = vrot.slane %v7882_v59, %v7951_v13 }
 0x14b   : > { %4452 = vperm.xlu1 %7040, %v7992_v6   ;;  %6528 = vmatpush3.bf16.msra.mxu0 %v7133_v40  ;;  %v1818_v40 = vrot.slane %v7894_v3, %v7951_v13  ;;  %v1851_v3 = vrot.slane %v7898_v7, %v7951_v13  ;;  %v8094_v7 = vld [vmem:[#allocation2] sm:$0xf0] }
 0x14c   : > { %v7996_v63 = vsel %vm2552_vm0, %v2599_v56, %v2603_v9  ;;  %v2607_v4 = vor.u32 %v2605_v48, %v2603_v9  ;;  %v2609_v14 = vshll.u32 %v7986_v60, 16  ;;  %v7999_v29 = vpop.permute.xlu1 %2889  ;;  %v8001_v2 = vpop.permute.xlu0 %2900  ;;  %6529 = vmatprep.subr.bf16.mxu0 %v7135_v41  ;;  %v8056_v48 = vld [vmem:[%s9302_s7 + $0x4] sm:$0xf]  ;;  %v1796_v56 = vrot.slane %v7880_v58, %v7951_v13  ;;  %9356 = vst [vmem:[#allocation30_spill] sm:$0xff] %v8094_v7 }
 0x14d   : > { %9347 = vst [vmem:[#allocation21_spill] sm:$0xff] %v7996_v63 }
 0x14e   : > { %v8003_v18 = vrot.slane %v2609_v14, 1  ;;  %4529 = vperm.xlu0 %7054, %v7771_v17   ;;  %v1829_v14 = vrot.slane %v7892_v0, %v7951_v13 }
 0x14f   : > { %7041 = vset.pattern.permute.xlu1 %v9311_v22  ;;  %6530 = vmatpush3.bf16.msra.mxu0 %v7135_v41  ;;  %v7216_v41 = vld [vmem:[%s9302_s7 + $0x20] sm:$0xf] }
 0x150   : > { %v8009_v31 = vsel %vm2552_vm0, %v2607_v4, %v8003_v18  ;;  %1143 = vperm.xlu1 %7041, %v7752_v10   ;;  %v8012_v32 = vpop.permute.xlu1 %2911  ;;  %v8014_v38 = vpop.permute.xlu0 %2933  ;;  %v8025_v10 = vld [vmem:[%s9302_s7 + $0xc] sm:$0xf]  ;;  %6531 = vmatprep.subr.bf16.mxu0 %v7137_v44 }
 0x151   : > { %9348 = vst [vmem:[#allocation22_spill] sm:$0xff] %v8009_v31 }
 0x152   : > { %4562 = vperm.xlu0 %7054, %v7800_v26  }
 0x153   : > { %6532 = vmatpush3.bf16.msra.mxu0 %v7137_v44 }
 0x154   : > { %7042 = vset.pattern.permute.xlu1 %v9313_v50  ;;  %v8018_v17 = vpop.permute.xlu1 %2922  ;;  %v8020_v21 = vpop.permute.xlu0 %2955 }
 0x155   : > { %9349 = vst [vmem:[#allocation23_spill] sm:$0xff] %v8020_v21  ;;  %4463 = vperm.xlu1 %7042, %v8025_v10  }
 0x156   : > { %4573 = vperm.xlu0 %7054, %v7793_v25  }
 0x158   : > { %v8029_v42 = vpop.permute.xlu1 %2944  ;;  %v8031_v26 = vpop.permute.xlu0 %2977 }
 0x159   : > { %9350 = vst [vmem:[#allocation24_spill] sm:$0xff] %v8031_v26  ;;  %7043 = vset.pattern.permute.xlu1 %v9311_v22 }
 0x15a   : > { %1154 = vperm.xlu1 %7043, %v8037_v43   ;;  %4595 = vperm.xlu0 %7054, %v7808_v30   ;;  %v1785_v30 = vrot.slane %v7888_v62, %v7951_v13 }
 0x15c   : > { %v8041_v25 = vpop.permute.xlu1 %2966  ;;  %v8043_v1 = vpop.permute.xlu0 %2999  ;;  %v6137_v53 = vcombine.low %v1774_v47, %v1785_v30  ;;  %v6138_v47 = vcombine.low %v1796_v56, %v1807_v57 }
 0x15d   : > { %9351 = vst [vmem:[#allocation25_spill] sm:$0xff] %v8041_v25  ;;  %9352 = vst [vmem:[#allocation26_spill] sm:$0xff] %v8043_v1  ;;  %v8116_v1 = vld [vmem:[%s9302_s7 + $0x2c] sm:$0xf] }
 0x15e   : > { %1165 = vperm.xlu1 %7043, %v7214_v45   ;;  %7060 = vset.pattern.permute.xlu0 %v9309_v46  ;;  %v1981_v9 = vshrl.u32 %v6137_v53, 16  ;;  %v1984_v4 = vshll.u32 %v6137_v53, 16  ;;  %v6139_v53 = vcombine.low %v1818_v40, %v1829_v14  ;;  %v1840_v46 = vrot.slane %v7900_v8, %v7951_v13 }
 0x15f   : > { %4888 = vperm.xlu0 %7060, %v8056_v48   ;;  %v1992_v8 = vshll.u32 %v6138_v47, 16 }
 0x160   : > { %v8059_v49 = vpop.permute.xlu1 %2988  ;;  %v8061_v52 = vpop.permute.xlu0 %3032  ;;  %v1983_v30 = vrot.slane %v1981_v9, 3  ;;  %v1986_v0 = vrot.slane %v1984_v4, 4  ;;  %v1989_v4 = vshrl.u32 %v6138_v47, 16  ;;  %v1998_v40 = vshrl.u32 %v6139_v53, 16 }
 0x161   : > { %9353 = vst [vmem:[#allocation27_spill] sm:$0xff] %v8059_v49  ;;  %9354 = vst [vmem:[#allocation28_spill] sm:$0xff] %v8061_v52 }
 0x162   : > { %7044 = vset.pattern.permute.xlu1 %v9313_v50  ;;  %v8096_v14 = vor.u32 %v1986_v0, %v1983_v30  ;;  %v1994_v0 = vrot.slane %v1992_v8, 4 }
 0x163   : > { %4496 = vperm.xlu1 %7044, %v7214_v45   ;;  %4932 = vperm.xlu0 %7060, %v8037_v43  }
 0x164   : > { %v8065_v59 = vpop.permute.xlu1 %3010  ;;  %v2060_v47 = vmul.bf16 %v8096_v14, %v8094_v7 }
 0x165   : > { %9355 = vst [vmem:[#allocation29_spill] sm:$0xff] %v8065_v59  ;;  %v3308_v62 = vpop.permute.xlu0 %3307 }
 0x166   : > { %v3316_v61 = vrot.slane %v3308_v62, %v7951_v13  ;;  %v7217_v62 = vld [vmem:[%s9302_s7 + $0x1c] sm:$0xf] }
 0x167   : > { %7045 = vset.pattern.permute.xlu1 %v9311_v22  ;;  %4965 = vperm.xlu0 %7060, %v7216_v41  }
 0x168   : > { %1187 = vperm.xlu1 %7045, %v7216_v41  }
 0x169   : > { %v3319_v58 = vpop.permute.xlu1 %3318  ;;  %v3341_v44 = vpop.permute.xlu0 %3340 }
 0x16a   : > { %v3327_v45 = vrot.slane %v3319_v58, %v7951_v13  ;;  %v3349_v22 = vrot.slane %v3341_v44, %v7951_v13  ;;  %v2001_v58 = vshll.u32 %v6139_v53, 16  ;;  %v6140_v44 = vcombine.low %v1840_v46, %v1851_v3 }
 0x16b   : > { %7064 = vset.pattern.permute.xlu0 %v7445_v39  ;;  %v2000_v53 = vrot.slane %v1998_v40, 3 }
 0x16c   : > { %7046 = vset.pattern.permute.xlu1 %v9313_v50  ;;  %845 = vperm.xlu0 %7064, %v7217_v62   ;;  %v8091_v9 = vcombine.low %v3316_v61, %v3327_v45  ;;  %v1862_v61 = vrot.slane %v7906_v12, %v7951_v13  ;;  %v9357_v45 = vmov 1   ;;  %v1991_v12 = vrot.slane %v1989_v4, 3 }
 0x16d   : > { %4507 = vperm.xlu1 %7046, %v7217_v62   ;;  %v3330_v56 = vpop.permute.xlu1 %3329  ;;  %v3363_v57 = vpop.permute.xlu0 %3362  ;;  %v1873_v62 = vrot.slane %v7904_v11, %v7951_v13  ;;  %v2003_v3 = vrot.slane %v2001_v58, 4  ;;  %v2089_v4 = vshll.u32 %v2060_v47, 16 }
 0x16e   : > { %v3338_v39 = vrot.slane %v3330_v56, %v7951_v13  ;;  %v3371_v35 = vrot.slane %v3363_v57, %v7951_v13  ;;  %v3523_v46 = vshrl.u32 %v8091_v9, 16  ;;  %v2007_v57 = vshrl.u32 %v6140_v44, 16 }
 0x16f   : > { %v6141_v49 = vcombine.low %v1862_v61, %v1873_v62  ;;  %v1884_v62 = vrot.slane %v7912_v16, %v7951_v13  ;;  %v1917_v61 = vrot.slane %v7916_v19, %v7951_v13  ;;  %v1995_v19 = vor.u32 %v1994_v0, %v1991_v12 }
 0x170   : > { %v6186_v50 = vcombine.low %v3338_v39, %v3349_v22  ;;  %857 = vperm.xlu0 %7064, %v7216_v41   ;;  %v7218_v41 = vld [vmem:[%s9302_s7 + $0x24] sm:$0xf]  ;;  %v8121_v8 = vrot.slane %v3523_v46, 7  ;;  %v1928_v46 = vrot.slane %v7925_v24, %v7951_v13  ;;  %v2357_v12 = vrot.slane %v7929_v27, %v7951_v13 }
 0x171   : > { %7047 = vset.pattern.permute.xlu1 %v9357_v45  ;;  %v3352_v56 = vpop.permute.xlu1 %3351  ;;  %v8104_v52 = vpop.permute.xlu0 %3373  ;;  %v2016_v25 = vshrl.u32 %v6141_v49, 16  ;;  %v2019_v63 = vshll.u32 %v6141_v49, 16  ;;  %v2346_v0 = vrot.slane %v7931_v28, %v7951_v13  ;;  %v2368_v49 = vrot.slane %v7935_v33, %v7951_v13 }
 0x172   : > { %v3530_v22 = vshrl.u32 %v6186_v50, 16  ;;  %v3533_v30 = vshll.u32 %v6186_v50, 16  ;;  %1198 = vperm.xlu1 %7047, %v7218_v41   ;;  %v3360_v11 = vrot.slane %v3352_v56, %v7951_v13  ;;  %v2010_v50 = vshll.u32 %v6140_v44, 16 }
 0x173   : > { %v2086_v56 = vshrl.u32 %v2060_v47, 16  ;;  %v1895_v44 = vrot.slane %v7910_v15, %v7951_v13  ;;  %v1906_v47 = vrot.slane %v7918_v20, %v7951_v13  ;;  %v7221_v15 = vld [vmem:[%s9302_s7 + $0x30] sm:$0xf]  ;;  %v2009_v20 = vrot.slane %v2007_v57, 3 }
 0x174   : > { %v3532_v39 = vrot.slane %v3530_v22, 7  ;;  %v6187_v59 = vcombine.low %v3360_v11, %v3371_v35  ;;  %893 = vperm.xlu0 %7064, %v8116_v1   ;;  %v7220_v35 = vld [vmem:[%s9302_s7 + $0x28] sm:$0xf]  ;;  %v2004_v11 = vor.u32 %v2003_v3, %v2000_v53  ;;  %v2390_v27 = vrot.slane %v7943_v36, %v7951_v13 }
 0x175   : > { %v8119_v41 = vpop.permute.xlu0 %3406  ;;  %v8155_v31 = vrot.slane %v2086_v56, 4  ;;  %v6142_v54 = vcombine.low %v1884_v62, %v1895_v44  ;;  %v6143_v53 = vcombine.low %v1906_v47, %v1917_v61  ;;  %v2379_v56 = vrot.slane %v7937_v34, %v7951_v13 }
 0x176   : > { %v3535_v40 = vor.u32 %v3533_v30, %v3532_v39  ;;  %v3538_v58 = vshrl.u32 %v6187_v59, 16  ;;  %v3541_v26 = vshll.u32 %v6187_v59, 16  ;;  %1209 = vperm.xlu1 %7047, %v7220_v35   ;;  %v8126_v22 = vpop.permute.xlu1 %3021  ;;  %v1939_v59 = vrot.slane %v7923_v23, %v7951_v13 }
 0x177   : > { %9358 = vst [vmem:[#allocation31_spill] sm:$0xff] %v8126_v22  ;;  %v2012_v23 = vrot.slane %v2010_v50, 4  ;;  %v9363_v50 = vmov 8   ;;  %v2401_v28 = vrot.slane %v7945_v37, %v7951_v13  ;;  %v2021_v44 = vrot.slane %v2019_v63, 4 }
 0x178   : > { %v8140_v30 = vrot.slane %v3538_v58, 7  ;;  %905 = vperm.xlu0 %7064, %v7221_v15   ;;  %v8147_v16 = vsel %vm2650_vm1, %v8121_v8, %v3535_v40  ;;  %v9360_v58 = vmov 7   ;;  %v6144_v3 = vcombine.low %v1928_v46, %v1939_v59 }
 0x179   : > { %9359 = vst [vmem:[#allocation32_spill] sm:$0xff] %v8147_v16  ;;  %v8149_v22 = vpop.permute.xlu0 %3428  ;;  %v2025_v62 = vshrl.u32 %v6142_v54, 16  ;;  %v2028_v33 = vshll.u32 %v6142_v54, 16  ;;  %v8181_v61 = vcombine.low %v2346_v0, %v2357_v12  ;;  %v2034_v34 = vshrl.u32 %v6143_v53, 16 }
 0x17a   : > { %v3543_v24 = vor.u32 %v3541_v26, %v8140_v30  ;;  %7048 = vset.pattern.permute.xlu1 %v9360_v58  ;;  %v8153_v21 = vpop.permute.xlu1 %3043  ;;  %v8164_v26 = vrot.slane %v2089_v4, 5  ;;  %v2018_v4 = vrot.slane %v2016_v25, 3  ;;  %v8186_v37 = vsel %vm1529_vm2, %v8096_v14, %v1995_v19 }
 0x17b   : > { %9361 = vst [vmem:[#allocation33_spill] sm:$0xff] %v8153_v21  ;;  %4540 = vperm.xlu1 %7048, %v7220_v35   ;;  %v8191_v25 = vsel %vm1529_vm2, %v1995_v19, %v2004_v11  ;;  %v2037_v63 = vshll.u32 %v6143_v53, 16  ;;  %v2043_v59 = vshrl.u32 %v6144_v3, 16  ;;  %v8193_v54 = vcombine.low %v2368_v49, %v2379_v56  ;;  %v8216_v49 = vld [vmem:[%s9302_s7 + $0x3c] sm:$0xf] }
 0x17c   : > { %v8162_v57 = vsel %vm2650_vm1, %v3532_v39, %v3543_v24  ;;  %7069 = vset.pattern.permute.xlu0 %v9363_v50  ;;  %v8177_v39 = vor.u32 %v2012_v23, %v2009_v20  ;;  %v8195_v46 = vcombine.low %v2390_v27, %v2401_v28  ;;  %v8204_v23 = vld [vmem:[#allocation2] sm:$0xff]  ;;  %v2046_v19 = vshll.u32 %v6144_v3, 16  ;;  %9365 = vst [vmem:[#allocation36_spill] sm:$0xff] %v8216_v49 }
 0x17d   : > { %9362 = vst [vmem:[#allocation34_spill] sm:$0xff] %v8162_v57  ;;  %v8175_v40 = vpop.permute.xlu0 %3450  ;;  %5009 = vperm.xlu0 %7069, %v7221_v15   ;;  %v3382_v24 = vrot.slane %v8104_v52, %v7951_v13  ;;  %v8219_v56 = vor.u32 %v2021_v44, %v2018_v4  ;;  %v2027_v27 = vrot.slane %v2025_v62, 3  ;;  %v2030_v3 = vrot.slane %v2028_v33, 4 }
 0x17e   : > { %v8179_v35 = vpop.permute.xlu1 %3054  ;;  %v8211_v53 = vsel %vm1529_vm2, %v2004_v11, %v8177_v39  ;;  %v2554_v28 = vshll.u32 %v8181_v61, 16  ;;  %v2039_v21 = vrot.slane %v2037_v63, 4  ;;  %v2045_v16 = vrot.slane %v2043_v59, 3 }
 0x17f   : > { %9364 = vst [vmem:[#allocation35_spill] sm:$0xff] %v8179_v35  ;;  %7049 = vset.pattern.permute.xlu1 %v9357_v45  ;;  %v2561_v57 = vshll.u32 %v8193_v54, 16  ;;  %v2569_v4 = vshll.u32 %v8195_v46, 16  ;;  %v2048_v44 = vrot.slane %v2046_v19, 4  ;;  %v3415_v62 = vrot.slane %v8119_v41, %v7951_v13 }
 0x180   : > { %1231 = vperm.xlu1 %7049, %v7221_v15   ;;  %v6325_v36 = vpop.f32.mrb[0].mxu0  ;;  %v8200_v15 = vld [vmem:[%s9299_s4] ss:$0 sm:$0xff]  ;;  %v2556_v63 = vrot.slane %v2554_v28, 1  ;;  %v2557_v59 = vshrl.u32 %v8181_v61, 16 }
 0x181   : > { %v6326_v20 = vpop.f32.mrb[1].mxu0  ;;  %v8202_v14 = vpop.permute.xlu0 %3472  ;;  %7072 = vset.pattern.permute.xlu0 %v8204_v23 }
 0x182   : > { %v6327_v12 = vadd.f32 %v6326_v20, %v6325_v36  ;;  %v6328_v0 = vpop.f32.mrb[2].mxu0  ;;  %941 = vperm.xlu0 %7072, %v8216_v49   ;;  %v2036_v20 = vrot.slane %v2034_v34, 3 }
 0x183   : > { %v6329_v52 = vpop.f32.mrb[3].mxu0  ;;  %v3385_v36 = vpop.permute.xlu1 %3384 }
 0x184   : > { %v638_v47 = vadd.f32 %v6327_v12, %v8200_v15  ;;  %v6330_v11 = vadd.f32 %v6329_v52, %v6328_v0  ;;  %7050 = vset.pattern.permute.xlu1 %v9360_v58  ;;  %v3393_v35 = vrot.slane %v3385_v36, %v7951_v13  ;;  %v2334_v0 = vld [vmem:[#allocation2] sm:$0x80]  ;;  %v2565_v52 = vshrl.u32 %v8193_v54, 16 }
 0x185   : > { %4551 = vperm.xlu1 %7050, %v8116_v1   ;;  %v2625_v28 = vmul.bf16 %v2556_v63, %v2334_v0 }
 0x186   : > { %v641_v33 = vadd.f32 %v6330_v11, %v8200_v15  ;;  %v6188_v34 = vcombine.low %v3382_v24, %v3393_v35  ;;  %v8231_v12 = vpop.permute.xlu0 %3870  ;;  %7074 = vset.pattern.permute.xlu0 %v9363_v50  ;;  %v700_v36 = vmax.f32 %v638_v47, 0.0  ;;  %v2563_v11 = vrot.slane %v2561_v57, 1 }
 0x187   : > { %v3396_v5 = vpop.permute.xlu1 %3395  ;;  %v2571_v35 = vrot.slane %v2569_v4, 1  ;;  %v2573_v24 = vshrl.u32 %v8195_v46, 16  ;;  %v2031_v46 = vor.u32 %v2030_v3, %v2027_v27  ;;  %v2040_v4 = vor.u32 %v2039_v21, %v2036_v20 }
 0x188   : > { %v701_v1 = vmax.f32 %v641_v33, 0.0  ;;  %v3546_v19 = vshrl.u32 %v6188_v34, 16  ;;  %v3549_v7 = vshll.u32 %v6188_v34, 16  ;;  %v3404_v41 = vrot.slane %v3396_v5, %v7951_v13  ;;  %v6331_v49 = vpop.f32.mrb[4].mxu0  ;;  %v8244_v33 = vld [vmem:[%s9302_s7] sm:$0xf] }
 0x189   : > { %7051 = vset.pattern.permute.xlu1 %v8204_v23  ;;  %v6332_v58 = vpop.f32.mrb[5].mxu0  ;;  %v8249_v34 = vor.u32 %v2048_v44, %v2045_v16  ;;  %v8262_v3 = vshrl.u32 %v2625_v28, 16  ;;  %v2567_v20 = vor.u32 %v2565_v52, %v2563_v11  ;;  %v2575_v44 = vor.u32 %v2573_v24, %v2571_v35 }
 0x18a   : > { %v8239_v45 = vpack.c.bf16 %v701_v1, %v700_v36  ;;  %v3548_v61 = vrot.slane %v3546_v19, 7  ;;  %v6189_v54 = vcombine.low %v3404_v41, %v3415_v62  ;;  %v6333_v47 = vadd.f32 %v6332_v58, %v6331_v49  ;;  %761 = vperm.xlu1 %7051, %v8244_v33   ;;  %v6334_v5 = vpop.f32.mrb[6].mxu0  ;;  %v8247_v57 = vpop.permute.xlu0 %3903 }
 0x18b   : > { %v6335_v0 = vpop.f32.mrb[7].mxu0  ;;  %v8251_v36 = vpop.permute.xlu1 %3417  ;;  %v8256_v58 = vsel %vm1529_vm2, %v8177_v39, %v8219_v56  ;;  %v2559_v49 = vor.u32 %v2557_v59, %v2556_v63  ;;  %v8281_v52 = vsel %vm1529_vm2, %v2031_v46, %v2040_v4 }
 0x18c   : > { %9366 = vst [vmem:[#allocation37_spill] sm:$0xff] %v8239_v45  ;;  %726 = vst [vmem:[#allocation2 + $0x8] sm:$0xff] %v8239_v45  ;;  %v3551_v62 = vor.u32 %v3549_v7, %v3548_v61  ;;  %v3554_v1 = vshrl.u32 %v6189_v54, 16  ;;  %v3557_v19 = vshll.u32 %v6189_v54, 16  ;;  %v646_v27 = vadd.f32 %v6333_v47, %v8200_v15 }
 0x18d   : > { %v6336_v21 = vadd.f32 %v6335_v0, %v6334_v5  ;;  %v2061_v16 = vmul.bf16 %v8186_v37, %v8239_v45  ;;  %v8278_v37 = vsel %vm1529_vm2, %v8219_v56, %v2031_v46 }
 0x18e   : > { %v8264_v41 = vrot.slane %v3554_v1, 7  ;;  %773 = vperm.xlu1 %7051, %v8056_v48   ;;  %v8267_v39 = vpop.permute.xlu0 %3925  ;;  %v8271_v7 = vsel %vm2650_vm1, %v8140_v30, %v3551_v62  ;;  %v2564_v48 = vsel %vm2552_vm0, %v2559_v49, %v2563_v11  ;;  %v8287_v30 = vsel %vm1529_vm2, %v2040_v4, %v8249_v34 }
 0x18f   : > { %v649_v63 = vadd.f32 %v6336_v21, %v8200_v15  ;;  %v8274_v59 = vpop.permute.xlu1 %3439  ;;  %v2094_v54 = vshrl.u32 %v2061_v16, 16  ;;  %v2097_v47 = vshll.u32 %v2061_v16, 16  ;;  %v702_v5 = vmax.f32 %v646_v27, 0.0 }
 0x190   : > { %v3559_v24 = vor.u32 %v3557_v19, %v8264_v41  ;;  %v6337_v28 = vpop.f32.mrb[8].mxu0  ;;  %v8291_v21 = vsel %vm2552_vm0, %v2567_v20, %v2571_v35  ;;  %v8295_v11 = vsel %vm2552_vm0, %v2575_v44, %v7961_v51  ;;  %v2613_v27 = vshrl.u32 %v7986_v60, 16 }
 0x191   : > { %v703_v0 = vmax.f32 %v649_v63, 0.0  ;;  %v6338_v62 = vpop.f32.mrb[9].mxu0  ;;  %v2096_v1 = vrot.slane %v2094_v54, 4  ;;  %v2099_v4 = vrot.slane %v2097_v47, 5  ;;  %v2898_v16 = vrot.slane %v7999_v29, %v7951_v13 }
 0x192   : > { %v6339_v46 = vadd.f32 %v6338_v62, %v6337_v28  ;;  %797 = vperm.xlu1 %7051, %v8025_v10   ;;  %v6340_v49 = vpop.f32.mrb[10].mxu0  ;;  %v8298_v19 = vpop.permute.xlu0 %3947  ;;  %v8308_v51 = vsel %vm2650_vm1, %v3548_v61, %v3559_v24  ;;  %v2909_v44 = vrot.slane %v8001_v2, %v7951_v13  ;;  %v2920_v54 = vrot.slane %v8012_v32, %v7951_v13 }
 0x193   : > { %v8303_v63 = vpack.c.bf16 %v703_v0, %v702_v5  ;;  %v6341_v35 = vpop.f32.mrb[11].mxu0  ;;  %v8305_v20 = vpop.permute.xlu1 %3461  ;;  %v2942_v29 = vrot.slane %v8014_v38, %v7951_v13  ;;  %v2931_v47 = vrot.slane %v8018_v17, %v7951_v13  ;;  %v2100_v5 = vor.u32 %v2099_v4, %v2096_v1 }
 0x194   : > { %v654_v28 = vadd.f32 %v6339_v46, %v8200_v15  ;;  %v6342_v60 = vadd.f32 %v6341_v35, %v6340_v49  ;;  %v2953_v2 = vrot.slane %v8029_v42, %v7951_v13  ;;  %v3526_v32 = vshll.u32 %v8091_v9, 16 }
 0x195   : > { %727 = vst [vmem:[#allocation2 + $0x10] sm:$0xff] %v8303_v63  ;;  %v2062_v61 = vmul.bf16 %v8191_v25, %v8303_v63  ;;  %v3437_v24 = vrot.slane %v8149_v22, %v7951_v13  ;;  %v3879_v17 = vrot.slane %v8231_v12, %v7951_v13  ;;  %v3426_v25 = vrot.slane %v8251_v36, %v7951_v13 }
 0x196   : > { %v657_v0 = vadd.f32 %v6342_v60, %v8200_v15  ;;  %7053 = vset.pattern.permute.xlu1 %v9363_v50  ;;  %v8329_v38 = vpop.permute.xlu0 %3969  ;;  %v9367_v42 = vor.u32 %v8164_v26, %v8155_v31  ;;  %v8340_v62 = vcombine.low %v2898_v16, %v2909_v44  ;;  %v704_v1 = vmax.f32 %v654_v28, 0.0 }
 0x197   : > { %4877 = vperm.xlu1 %7053, %v8244_v33   ;;  %v2103_v22 = vshrl.u32 %v2062_v61, 16  ;;  %v2106_v35 = vshll.u32 %v2062_v61, 16  ;;  %v8343_v12 = vor.u32 %v2613_v27, %v8003_v18  ;;  %v8345_v36 = vcombine.low %v2920_v54, %v2931_v47 }
 0x198   : > { %v2101_v9 = vsel %vm991_vm3, %v9367_v42, %v2100_v5  ;;  %9368 = vst [vmem:[#allocation38_spill] sm:$0xff] %v8340_v62  ;;  %v705_v46 = vmax.f32 %v657_v0, 0.0  ;;  %v3860_v49 = vpop.permute.xlu1 %3859  ;;  %v6343_v4 = vpop.f32.mrb[12].mxu0  ;;  %v8351_v28 = vmul.bf16 %v2564_v48, %v8239_v45  ;;  %v8353_v0 = vcombine.low %v2942_v29, %v2953_v2 }
 0x199   : > { %6597 = vmatprep.mubr.bf16.mxu1 %v2101_v9  ;;  %9369 = vst [vmem:[#allocation39_spill] sm:$0xff] %v8345_v36  ;;  %v3868_v33 = vrot.slane %v3860_v49, %v7951_v13  ;;  %v6344_v60 = vpop.f32.mrb[13].mxu0  ;;  %v2105_v31 = vrot.slane %v2103_v22, 4  ;;  %v2108_v44 = vrot.slane %v2106_v35, 5  ;;  %v8356_v61 = vor.u32 %v3526_v32, %v8121_v8 }
 0x19a   : > { %v8348_v26 = vpack.c.bf16 %v705_v46, %v704_v1  ;;  %v6345_v42 = vadd.f32 %v6344_v60, %v6343_v4  ;;  %v6346_v16 = vpop.f32.mrb[14].mxu0  ;;  %9370 = vst [vmem:[#allocation40_spill] sm:$0xff] %v8353_v0  ;;  %v8358_v18 = vcombine.low %v3426_v25, %v3437_v24  ;;  %v8361_v47 = vpop.permute.xlu0 %3991  ;;  %v3459_v8 = vrot.slane %v8175_v40, %v7951_v13  ;;  %v7126_v24 = vld [vmem:[#allocation8 + $0xc8] sm:$0xff]  }
 0x19b   : > { %v6201_v27 = vcombine.low %v3868_v33, %v3879_v17  ;;  %4899 = vperm.xlu1 %7053, %v7992_v6   ;;  %v6347_v54 = vpop.f32.mrb[15].mxu0  ;;  %v2109_v1 = vor.u32 %v2108_v44, %v2105_v31  ;;  %v3912_v6 = vrot.slane %v8247_v57, %v7951_v13  ;;  %v3448_v32 = vrot.slane %v8274_v59, %v7951_v13 }
 0x19c   : > { %728 = vst [vmem:[#allocation2 + $0x18] sm:$0xff] %v8348_v26  ;;  %v662_v9 = vadd.f32 %v6345_v42, %v8200_v15  ;;  %v6348_v22 = vadd.f32 %v6347_v54, %v6346_v16  ;;  %v3882_v48 = vpop.permute.xlu1 %3881  ;;  %v2063_v29 = vmul.bf16 %v8211_v53, %v8348_v26  ;;  %v2656_v53 = vshrl.u32 %v8351_v28, 16 }
 0x19d   : > { %v2110_v25 = vsel %vm991_vm3, %v2100_v5, %v2109_v1  ;;  %v3562_v49 = vshrl.u32 %v8358_v18, 16  ;;  %v4075_v40 = vshrl.u32 %v6201_v27, 16  ;;  %v3890_v4 = vrot.slane %v3882_v48, %v7951_v13 }
 0x19e   : > { %v665_v17 = vadd.f32 %v6348_v22, %v8200_v15  ;;  %v2112_v46 = vshrl.u32 %v2063_v29, 16  ;;  %6598 = vmatmul.mubr.bf16.vlgmr.msra.gmra.mrb[0].mxu1 %v2110_v25  ;;  %v2115_v35 = vshll.u32 %v2063_v29, 16  ;;  %v4078_v33 = vshll.u32 %v6201_v27, 16  ;;  %v8385_v54 = vpop.permute.xlu0 %4013 }
 0x19f   : > { %4910 = vperm.xlu1 %7053, %v8025_v10   ;;  %v706_v60 = vmax.f32 %v662_v9, 0.0  ;;  %6614 = vmatpush3.bf16.msra.mxu1 %v7965_v55  ;;  %v3934_v5 = vrot.slane %v8267_v39, %v7951_v13  ;;  %v7128_v10 = vld [vmem:[#allocation8 + $0xd0] sm:$0xff]   ;;  %v8390_v48 = vcombine.low %v3448_v32, %v3459_v8  ;;  %v8396_v25 = vrot.slane %v3562_v49, 7 }
 0x1a0   : > { %v707_v59 = vmax.f32 %v665_v17, 0.0  ;;  %v3893_v31 = vpop.permute.xlu1 %3892  ;;  %v2114_v42 = vrot.slane %v2112_v46, 4  ;;  %v2117_v22 = vrot.slane %v2115_v35, 5  ;;  %6615 = vmatprep.subr.bf16.mxu1 %v7126_v24  ;;  %v8394_v17 = vrot.slane %v2656_v53, 7 }
 0x1a1   : > { %v3901_v16 = vrot.slane %v3893_v31, %v7951_v13  ;;  %v6349_v44 = vpop.f32.mrb[16].mxu0  ;;  %v3956_v27 = vrot.slane %v8298_v19, %v7951_v13  ;;  %v4077_v2 = vrot.slane %v4075_v40, 4  ;;  %v4080_v8 = vrot.slane %v4078_v33, 5 }
 0x1a2   : > { %v8392_v29 = vpack.c.bf16 %v707_v59, %v706_v60  ;;  %v6350_v55 = vpop.f32.mrb[17].mxu0  ;;  %v8399_v35 = vor.u32 %v2117_v22, %v2114_v42  ;;  %v3978_v57 = vrot.slane %v8329_v38, %v7951_v13 }
 0x1a3   : > { %v6202_v46 = vcombine.low %v3890_v4, %v3901_v16  ;;  %v6351_v31 = vadd.f32 %v6350_v55, %v6349_v44  ;;  %v6352_v56 = vpop.f32.mrb[18].mxu0  ;;  %7055 = vset.pattern.permute.xlu1 %v8204_v23  ;;  %6616 = vmatpush3.bf16.msra.mxu1 %v7126_v24  ;;  %v7130_v16 = vld [vmem:[#allocation8 + $0xd8] sm:$0xff]  }
 0x1a4   : > { %729 = vst [vmem:[#allocation2 + $0x20] sm:$0xff] %v8392_v29  ;;  %v6353_v32 = vpop.f32.mrb[19].mxu0  ;;  %821 = vperm.xlu1 %7055, %v8037_v43   ;;  %v3915_v53 = vpop.permute.xlu1 %3914  ;;  %v2064_v49 = vmul.bf16 %v8256_v58, %v8392_v29  ;;  %6617 = vmatprep.subr.bf16.mxu1 %v7128_v10  ;;  %v2119_v44 = vsel %vm991_vm3, %v2109_v1, %v8399_v35 }
 0x1a5   : > { %v4083_v4 = vshrl.u32 %v6202_v46, 16  ;;  %v4086_v60 = vshll.u32 %v6202_v46, 16  ;;  %v670_v59 = vadd.f32 %v6351_v31, %v8200_v15  ;;  %v6354_v42 = vadd.f32 %v6353_v32, %v6352_v56  ;;  %v8414_v46 = vpop.permute.xlu0 %1099  ;;  %6601 = vmatprep.mubr.bf16.mxu1 %v2119_v44  ;;  %v7225_v44 = vld [vmem:[%s9302_s7 + $0x10] sm:$0xf] }
 0x1a6   : > { %v3923_v33 = vrot.slane %v3915_v53, %v7951_v13  ;;  %v2121_v43 = vshrl.u32 %v2064_v49, 16  ;;  %v8418_v31 = vor.u32 %v4080_v8, %v4077_v2  ;;  %v2124_v2 = vshll.u32 %v2064_v49, 16  ;;  %v7132_v8 = vld [vmem:[#allocation8 + $0xe0] sm:$0xff]  }
 0x1a7   : > { %v4085_v55 = vrot.slane %v4083_v4, 4  ;;  %v4088_v58 = vrot.slane %v4086_v60, 5  ;;  %v673_v24 = vadd.f32 %v6354_v42, %v8200_v15  ;;  %v708_v32 = vmax.f32 %v670_v59, 0.0  ;;  %6618 = vmatpush3.bf16.msra.mxu1 %v7128_v10 }
 0x1a8   : > { %v6203_v1 = vcombine.low %v3912_v6, %v3923_v33  ;;  %7056 = vset.pattern.permute.xlu1 %v9363_v50  ;;  %v3937_v53 = vpop.permute.xlu1 %3936  ;;  %6619 = vmatprep.subr.bf16.mxu1 %v7130_v16  ;;  %v2123_v10 = vrot.slane %v2121_v43, 4  ;;  %v2126_v43 = vrot.slane %v2124_v2, 5 }
 0x1a9   : > { %v4089_v4 = vor.u32 %v4088_v58, %v4085_v55  ;;  %v709_v60 = vmax.f32 %v673_v24, 0.0  ;;  %v3945_v42 = vrot.slane %v3937_v53, %v7951_v13  ;;  %v6355_v22 = vpop.f32.mrb[20].mxu0  ;;  %4921 = vperm.xlu1 %7056, %v7225_v44  }
 0x1aa   : > { %v4092_v6 = vshrl.u32 %v6203_v1, 16  ;;  %v4095_v59 = vshll.u32 %v6203_v1, 16  ;;  %v6356_v33 = vpop.f32.mrb[21].mxu0  ;;  %v8453_v2 = vor.u32 %v2126_v43, %v2123_v10 }
 0x1ab   : > { %v8432_v55 = vsel %vm991_vm3, %v8418_v31, %v4089_v4  ;;  %v8434_v58 = vpack.c.bf16 %v709_v60, %v708_v32  ;;  %v6204_v24 = vcombine.low %v3934_v5, %v3945_v42  ;;  %v6357_v49 = vadd.f32 %v6356_v33, %v6355_v22  ;;  %v6358_v53 = vpop.f32.mrb[22].mxu0  ;;  %6620 = vmatpush3.bf16.msra.mxu1 %v7130_v16  ;;  %v8442_v60 = vpop.permute.xlu0 %1132  ;;  %v7134_v42 = vld [vmem:[#allocation8 + $0xe8] sm:$0xff]   ;;  %v8450_v16 = vld [vmem:[%s9302_s7 + $0x34] sm:$0xf] }
 0x1ac   : > { %9371 = vst [vmem:[#allocation41_spill] sm:$0xff] %v8432_v55  ;;  %v4094_v38 = vrot.slane %v4092_v6, 4  ;;  %v4097_v56 = vrot.slane %v4095_v59, 5  ;;  %v6359_v1 = vpop.f32.mrb[23].mxu0  ;;  %v3959_v40 = vpop.permute.xlu1 %3958  ;;  %v9372_v22 = vmov 1   ;;  %6621 = vmatprep.subr.bf16.mxu1 %v7132_v8  ;;  %9373 = vst [vmem:[#allocation42_spill] sm:$0xff] %v8450_v16 }
 0x1ad   : > { %730 = vst [vmem:[#allocation2 + $0x28] sm:$0xff] %v8434_v58  ;;  %v4101_v9 = vshrl.u32 %v6204_v24, 16  ;;  %v4104_v32 = vshll.u32 %v6204_v24, 16  ;;  %v678_v39 = vadd.f32 %v6357_v49, %v8200_v15  ;;  %v6360_v5 = vadd.f32 %v6359_v1, %v6358_v53  ;;  %7057 = vset.pattern.permute.xlu1 %v9372_v22 }
 0x1ae   : > { %v4098_v33 = vor.u32 %v4097_v56, %v4094_v38  ;;  %v3967_v6 = vrot.slane %v3959_v40, %v7951_v13  ;;  %1242 = vperm.xlu1 %7057, %v8450_v16   ;;  %v2065_v59 = vmul.bf16 %v8278_v37, %v8434_v58  ;;  %v8460_v56 = vmul.bf16 %v8291_v21, %v8303_v63 }
 0x1af   : > { %v4103_v24 = vrot.slane %v4101_v9, 4  ;;  %v4106_v49 = vrot.slane %v4104_v32, 5  ;;  %v681_v53 = vadd.f32 %v6360_v5, %v8200_v15  ;;  %v710_v38 = vmax.f32 %v678_v39, 0.0  ;;  %6622 = vmatpush3.bf16.msra.mxu1 %v7132_v8 }
 0x1b0   : > { %v8463_v40 = vsel %vm991_vm3, %v4089_v4, %v4098_v33  ;;  %v6205_v10 = vcombine.low %v3956_v27, %v3967_v6  ;;  %v3981_v1 = vpop.permute.xlu1 %3980  ;;  %v2128_v37 = vsel %vm991_vm3, %v8399_v35, %v8453_v2  ;;  %v2130_v5 = vshrl.u32 %v2065_v59, 16  ;;  %6623 = vmatprep.subr.bf16.mxu1 %v7134_v42  ;;  %v7136_v4 = vld [vmem:[#allocation8 + $0xf0] sm:$0xff]   ;;  %v8477_v35 = vld [vmem:[%s9302_s7 + $0x38] sm:$0xf] }
 0x1b1   : > { %v4107_v9 = vor.u32 %v4106_v49, %v4103_v24  ;;  %v711_v43 = vmax.f32 %v681_v53, 0.0  ;;  %v3989_v32 = vrot.slane %v3981_v1, %v7951_v13  ;;  %v6361_v21 = vpop.f32.mrb[24].mxu0  ;;  %6602 = vmatmul.mubr.bf16.gmra.mrb[4].mxu1 %v2128_v37  ;;  %v4022_v39 = vrot.slane %v8385_v54, %v7951_v13  ;;  %9374 = vst [vmem:[#allocation43_spill] sm:$0xff] %v8477_v35  ;;  %v8485_v53 = vpop.permute.xlu0 %1176 }
 0x1b2   : > { %v4110_v19 = vshrl.u32 %v6205_v10, 16  ;;  %v4113_v27 = vshll.u32 %v6205_v10, 16  ;;  %v6362_v6 = vpop.f32.mrb[25].mxu0  ;;  %1253 = vperm.xlu1 %7057, %v8477_v35   ;;  %v2133_v8 = vshll.u32 %v2065_v59, 16  ;;  %v2132_v62 = vrot.slane %v2130_v5, 4 }
 0x1b3   : > { %v8481_v24 = vsel %vm991_vm3, %v4098_v33, %v4107_v9  ;;  %v8483_v49 = vpack.c.bf16 %v711_v43, %v710_v38  ;;  %v6206_v1 = vcombine.low %v3978_v57, %v3989_v32  ;;  %v6363_v54 = vadd.f32 %v6362_v6, %v6361_v21  ;;  %v6364_v37 = vpop.f32.mrb[26].mxu0  ;;  %6624 = vmatpush3.bf16.msra.mxu1 %v7134_v42  ;;  %v7138_v43 = vld [vmem:[#allocation8 + $0xf8] sm:$0xff]  }
 0x1b4   : > { %9375 = vst [vmem:[#allocation44_spill] sm:$0xff] %v8481_v24  ;;  %v4112_v10 = vrot.slane %v4110_v19, 4  ;;  %v4115_v44 = vrot.slane %v4113_v27, 5  ;;  %v6365_v0 = vpop.f32.mrb[27].mxu0  ;;  %v4003_v36 = vpop.permute.xlu1 %4002  ;;  %v2135_v16 = vrot.slane %v2133_v8, 5  ;;  %6625 = vmatprep.subr.bf16.mxu1 %v7136_v4  ;;  %v8489_v24 = vld [vmem:[#allocation8] sm:$0xff]   ;;  %v1108_v57 = vrot.slane %v8414_v46, %v7951_v13 }
 0x1b5   : > { %731 = vst [vmem:[#allocation2 + $0x30] sm:$0xff] %v8483_v49  ;;  %v4119_v59 = vshrl.u32 %v6206_v1, 16  ;;  %v4122_v55 = vshll.u32 %v6206_v1, 16  ;;  %v686_v33 = vadd.f32 %v6363_v54, %v8200_v15  ;;  %v6366_v38 = vadd.f32 %v6365_v0, %v6364_v37  ;;  %6549 = vmatprep.subr.bf16.mxu0 %v8489_v24  ;;  %v8515_v8 = vpop.permute.xlu0 %1220 }
 0x1b6   : > { %v4116_v32 = vor.u32 %v4115_v44, %v4112_v10  ;;  %v4011_v21 = vrot.slane %v4003_v36, %v7951_v13  ;;  %v9376_v5 = vmov 7   ;;  %v8495_v42 = vor.u32 %v2135_v16, %v2132_v62  ;;  %9378 = vst [vmem:[#allocation45_spill] sm:$0xff] %v8515_v8 }
 0x1b7   : > { %7058 = vset.pattern.permute.xlu1 %v9376_v5  ;;  %v4121_v19 = vrot.slane %v4119_v59, 4  ;;  %v4124_v27 = vrot.slane %v4122_v55, 5  ;;  %v689_v6 = vadd.f32 %v6366_v38, %v8200_v15  ;;  %v8501_v0 = vmul.bf16 %v8295_v11, %v8348_v26  ;;  %6626 = vmatpush3.bf16.msra.mxu1 %v7136_v4 }
 0x1b8   : > { %4584 = vperm.xlu1 %7058, %v8477_v35   ;;  %v8505_v46 = vsel %vm991_vm3, %v4107_v9, %v4116_v32  ;;  %v9377_v36 = vrot.slane %v8361_v47, %v7951_v13  ;;  %v4025_v44 = vpop.permute.xlu1 %4024  ;;  %v2137_v55 = vsel %vm991_vm3, %v8453_v2, %v8495_v42  ;;  %v2066_v16 = vmul.bf16 %v8281_v52, %v8483_v49  ;;  %v8518_v47 = vld [vmem:[#allocation8 + $0x100] sm:$0xff]  }
 0x1b9   : > { %v4125_v11 = vor.u32 %v4124_v27, %v4121_v19  ;;  %v712_v1 = vmax.f32 %v686_v33, 0.0  ;;  %v713_v54 = vmax.f32 %v689_v6, 0.0  ;;  %v4033_v9 = vrot.slane %v4025_v44, %v7951_v13  ;;  %v6367_v37 = vpop.f32.mrb[28].mxu0  ;;  %6605 = vmatprep.mubr.bf16.mxu1 %v2137_v55  ;;  %6627 = vmatprep.subr.bf16.mxu1 %v7138_v43  ;;  %v9380_v44 = vld [vmem:[#allocation36_spill] sm:$0xff] }
 0x1ba   : > { %v6207_v62 = vcombine.low %v9377_v36, %v4011_v21  ;;  %v6112_v10 = vcombine.low %v1108_v57, %v1108_v57  ;;  %v6368_v2 = vpop.f32.mrb[29].mxu0  ;;  %v2139_v21 = vshrl.u32 %v2066_v16, 16 }
 0x1bb   : > { %v8521_v52 = vsel %vm991_vm3, %v4116_v32, %v4125_v11  ;;  %v8523_v4 = vpack.c.bf16 %v713_v54, %v712_v1  ;;  %v8525_v5 = vcombine.low %v4022_v39, %v4033_v9  ;;  %v6369_v33 = vadd.f32 %v6368_v2, %v6367_v37  ;;  %v6370_v19 = vpop.f32.mrb[30].mxu0  ;;  %6628 = vmatpush3.bf16.msra.mxu1 %v7138_v43  ;;  %v9385_v2 = vld [vmem:[#allocation30_spill] sm:$0xff] }
 0x1bc   : > { %v4128_v59 = vshrl.u32 %v6207_v62, 16  ;;  %v4131_v38 = vshll.u32 %v6207_v62, 16  ;;  %9379 = vst [vmem:[#allocation46_spill] sm:$0xff] %v8521_v52  ;;  %7059 = vset.pattern.permute.xlu1 %v9372_v22  ;;  %v6371_v36 = vpop.f32.mrb[31].mxu0  ;;  %v2141_v57 = vrot.slane %v2139_v21, 4  ;;  %v2142_v62 = vshll.u32 %v2066_v16, 16  ;;  %6645 = vmatprep.subr.bf16.mxu1 %v8518_v47 }
 0x1bd   : > { %1264 = vperm.xlu1 %7059, %v9380_v44   ;;  %v9381_v32 = vshll.u32 %v8358_v18, 16  ;;  %v9382_v39 = vshrl.u32 %v8390_v48, 16  ;;  %732 = vst [vmem:[#allocation2 + $0x38] sm:$0xff] %v8523_v4  ;;  %v694_v22 = vadd.f32 %v6369_v33, %v8200_v15  ;;  %v6372_v54 = vadd.f32 %v6371_v36, %v6370_v19  ;;  %v1111_v9 = vpop.permute.xlu1 %1110  ;;  %v8553_v33 = vpop.permute.xlu0 %785 }
 0x1be   : > { %v4130_v27 = vrot.slane %v4128_v59, 4  ;;  %v4133_v6 = vrot.slane %v4131_v38, 5  ;;  %v9383_v43 = vrot.slane %v8202_v14, %v7951_v13  ;;  %v9384_v18 = vrot.slane %v8305_v20, %v7951_v13  ;;  %9386 = vst [vmem:[#allocation36_spill] sm:$0xff] %v8553_v33 }
 0x1bf   : > { %v8532_v55 = vor.u32 %v9381_v32, %v8396_v25  ;;  %v8536_v1 = vrot.slane %v9382_v39, 7  ;;  %v2144_v59 = vrot.slane %v2142_v62, 5  ;;  %v2659_v38 = vshll.u32 %v8351_v28, 16  ;;  %v9388_v32 = vld [vmem:[#allocation19_spill] sm:$0xff]  ;;  %v9389_v39 = vld [vmem:[#allocation20_spill] sm:$0xff] }
 0x1c0   : > { %v8547_v16 = vcombine.low %v9384_v18, %v9383_v43  ;;  %v8549_v37 = vor.u32 %v4133_v6, %v4130_v27  ;;  %v1324_v21 = vmul.bf16 %v6112_v10, %v9385_v2  ;;  %v697_v19 = vadd.f32 %v6372_v54, %v8200_v15  ;;  %v7228_v15 = vld [vmem:[%s9302_s7 + $0x18] sm:$0xf] }
 0x1c1   : > { %v2664_v36 = vshrl.u32 %v8460_v56, 16  ;;  %v2672_v14 = vshrl.u32 %v8501_v0, 16  ;;  %v1119_v27 = vrot.slane %v1111_v9, %v7951_v13  ;;  %7061 = vset.pattern.permute.xlu1 %v8204_v23  ;;  %v2145_v28 = vor.u32 %v2144_v59, %v2141_v57  ;;  %v1122_v62 = vpop.permute.xlu1 %1121  ;;  %v8585_v8 = vpop.permute.xlu0 %809 }
 0x1c2   : > { %v8560_v20 = vsel %vm991_vm3, %v4125_v11, %v8549_v37  ;;  %v2067_v10 = vmul.bf16 %v8287_v30, %v8523_v4  ;;  %v714_v6 = vmax.f32 %v694_v22, 0.0  ;;  %v715_v44 = vmax.f32 %v697_v19, 0.0  ;;  %833 = vperm.xlu1 %7061, %v7228_v15   ;;  %9391 = vst [vmem:[#allocation20_spill] sm:$0xff] %v8585_v8 }
 0x1c3   : > { %9387 = vst [vmem:[#allocation30_spill] sm:$0xff] %v8560_v20  ;;  %v2629_v11 = vmul.bf16 %v9388_v32, %v8392_v29  ;;  %v2630_v54 = vmul.bf16 %v9389_v39, %v8434_v58  ;;  %v1130_v9 = vrot.slane %v1122_v62, %v7951_v13  ;;  %v2146_v57 = vsel %vm991_vm3, %v8495_v42, %v2145_v28 }
 0x1c4   : > { %v2148_v30 = vshrl.u32 %v2067_v10, 16  ;;  %v8577_v22 = vor.u32 %v2659_v38, %v8394_v17  ;;  %v8581_v59 = vpack.c.bf16 %v715_v44, %v714_v6  ;;  %6606 = vmatmul.mubr.bf16.gmra.mrb[8].mxu1 %v2146_v57  ;;  %v2151_v2 = vshll.u32 %v2067_v10, 16 }
 0x1c5   : > { %v6113_v19 = vcombine.low %v1119_v27, %v1130_v9  ;;  %v8583_v39 = vrot.slane %v2664_v36, 7  ;;  %v2680_v62 = vshrl.u32 %v2629_v11, 16  ;;  %v1359_v33 = vrot.slane %v1324_v21, 4 }
 0x1c6   : > { %9390 = vst [vmem:[#allocation19_spill] sm:$0xff] %v8581_v59  ;;  %v2150_v32 = vrot.slane %v2148_v30, 4  ;;  %733 = vst [vmem:[#allocation2 + $0x40] sm:$0xff] %v8581_v59  ;;  %7062 = vset.pattern.permute.xlu1 %v9363_v50  ;;  %v2153_v42 = vrot.slane %v2151_v2, 5  ;;  %v8589_v38 = vrot.slane %v2672_v14, 7  ;;  %v2688_v18 = vshrl.u32 %v2630_v54, 16  ;;  %v4442_v27 = vpop.permute.xlu1 %4441 }
 0x1c7   : > { %v4137_v6 = vshrl.u32 %v8525_v5, 16  ;;  %v1325_v10 = vmul.bf16 %v6113_v19, %v8239_v45  ;;  %4943 = vperm.xlu1 %7062, %v7228_v15   ;;  %v2682_v36 = vrot.slane %v2680_v62, 7  ;;  %v2683_v44 = vshll.u32 %v2629_v11, 16  ;;  %v9392_v30 = vld [vmem:[#allocation21_spill] sm:$0xff]  ;;  %v9393_v2 = vld [vmem:[#allocation22_spill] sm:$0xff] }
 0x1c8   : > { %v8593_v9 = vor.u32 %v2153_v42, %v2150_v32  ;;  %v2690_v21 = vrot.slane %v2688_v18, 7  ;;  %v2691_v57 = vshll.u32 %v2630_v54, 16  ;;  %v2631_v43 = vmul.bf16 %v9392_v30, %v8483_v49  ;;  %v7229_v62 = vld [vmem:[%s9302_s7 + $0x1c] sm:$0xf] }
 0x1c9   : > { %v8597_v8 = vrot.slane %v1325_v10, 4  ;;  %v2685_v14 = vor.u32 %v2683_v44, %v2682_v36  ;;  %v2632_v20 = vmul.bf16 %v9393_v2, %v8523_v4  ;;  %v2633_v19 = vmul.bf16 %v8343_v12, %v8581_v59 }
 0x1ca   : > { %v4450_v15 = vrot.slane %v4442_v27, %v7951_v13  ;;  %v2155_v11 = vsel %vm991_vm3, %v2145_v28, %v8593_v9  ;;  %v2693_v32 = vor.u32 %v2691_v57, %v2690_v21  ;;  %v2696_v18 = vshrl.u32 %v2631_v43, 16  ;;  %v4453_v42 = vpop.permute.xlu1 %4452  ;;  %v8616_v28 = vpop.permute.xlu0 %4430 }
 0x1cb   : > { %v4140_v54 = vshll.u32 %v8525_v5, 16  ;;  %4954 = vperm.xlu1 %7062, %v7229_v62   ;;  %v1361_v10 = vsel %vm1358_vm4, %v1359_v33, %v8597_v8  ;;  %6609 = vmatprep.mubr.bf16.mxu1 %v2155_v11  ;;  %v8614_v12 = vsel %vm2650_vm1, %v8589_v38, %v2685_v14  ;;  %v2704_v27 = vshrl.u32 %v2632_v20, 16  ;;  %9394 = vst [vmem:[#allocation21_spill] sm:$0xff] %v8616_v28 }
 0x1cc   : > { %v4461_v44 = vrot.slane %v4453_v42, %v7951_v13  ;;  %6533 = vmatprep.mubr.bf16.mxu0 %v1361_v10  ;;  %v8620_v5 = vsel %vm2650_vm1, %v2682_v36, %v2693_v32  ;;  %v2698_v57 = vrot.slane %v2696_v18, 7  ;;  %v2699_v30 = vshll.u32 %v2631_v43, 16 }
 0x1cd   : > { %v1141_v2 = vrot.slane %v8442_v60, %v7951_v13  ;;  %v1763_v33 = vld [vmem:[#allocation2 + $0x40] sm:$0x1f]  ;;  %v2706_v11 = vrot.slane %v2704_v27, 7  ;;  %v2707_v62 = vshll.u32 %v2632_v20, 16  ;;  %v2712_v59 = vshrl.u32 %v2633_v19, 16 }
 0x1ce   : > { %v4139_v14 = vrot.slane %v4137_v6, 4  ;;  %v8624_v45 = vcombine.low %v4450_v15, %v4461_v44  ;;  %v2068_v28 = vmul.bf16 %v8249_v34, %v1763_v33  ;;  %v2701_v52 = vor.u32 %v2699_v30, %v2698_v57  ;;  %v7230_v60 = vld [vmem:[%s9302_s7 + $0x24] sm:$0xf]  ;;  %v8631_v20 = vpop.permute.xlu0 %4474  ;;  %v3297_v30 = vld [vmem:[#allocation2 + $0x8] sm:$0xff] }
 0x1cf   : > { %v4142_v42 = vrot.slane %v4140_v54, 5  ;;  %7063 = vset.pattern.permute.xlu1 %v8204_v23  ;;  %v2709_v36 = vor.u32 %v2707_v62, %v2706_v11  ;;  %v2714_v32 = vrot.slane %v2712_v59, 7  ;;  %v2715_v18 = vshll.u32 %v2633_v19, 16  ;;  %v1144_v43 = vpop.permute.xlu1 %1143  ;;  %v9395_v59 = vld [vmem:[#allocation34_spill] sm:$0xff] }
 0x1d0   : > { %869 = vperm.xlu1 %7063, %v7230_v60   ;;  %v2157_v6 = vshrl.u32 %v2068_v28, 16  ;;  %v2160_v15 = vshll.u32 %v2068_v28, 16  ;;  %v2667_v10 = vshll.u32 %v8460_v56, 16  ;;  %v8635_v34 = vsel %vm2650_vm1, %v2690_v21, %v2701_v52 }
 0x1d1   : > { %v1152_v54 = vrot.slane %v1144_v43, %v7951_v13  ;;  %v8640_v19 = vmul.bf16 %v9395_v59, %v8348_v26  ;;  %v8643_v27 = vsel %vm2650_vm1, %v2698_v57, %v2709_v36  ;;  %v2717_v44 = vor.u32 %v2715_v18, %v2714_v32 }
 0x1d2   : > { %v9396_v33 = vshrl.u32 %v8547_v16, 16  ;;  %v2159_v28 = vrot.slane %v2157_v6, 4  ;;  %v2162_v56 = vrot.slane %v2160_v15, 5  ;;  %v2669_v52 = vor.u32 %v2667_v10, %v8583_v39  ;;  %v8660_v18 = vpop.permute.xlu0 %4485 }
 0x1d3   : > { %v6114_v21 = vcombine.low %v1141_v2, %v1152_v54  ;;  %v2675_v43 = vshll.u32 %v8501_v0, 16  ;;  %v8652_v35 = vsel %vm2650_vm1, %v2706_v11, %v2717_v44  ;;  %v4143_v59 = vor.u32 %v4142_v42, %v4139_v14  ;;  %v9398_v2 = vld [vmem:[#allocation32_spill] sm:$0xff]  ;;  %v3856_v54 = vld [vmem:[#allocation2 + $0x8] sm:$0xf8] }
 0x1d4   : > { %v8647_v62 = vrot.slane %v9396_v33, 7  ;;  %v9397_v57 = vshll.u32 %v8390_v48, 16  ;;  %7065 = vset.pattern.permute.xlu1 %v9363_v50  ;;  %v2163_v32 = vor.u32 %v2162_v56, %v2159_v28  ;;  %v3594_v6 = vmul.bf16 %v8356_v61, %v3297_v30  ;;  %v8666_v11 = vpop.permute.xlu1 %4463 }
 0x1d5   : > { %v3595_v15 = vmul.bf16 %v9398_v2, %v8303_v63  ;;  %v1326_v0 = vmul.bf16 %v6114_v21, %v8303_v63  ;;  %4976 = vperm.xlu1 %7065, %v7230_v60   ;;  %v2677_v14 = vor.u32 %v2675_v43, %v8589_v38  ;;  %v8671_v48 = vsel %vm991_vm3, %v8549_v37, %v4143_v59  ;;  %v7162_v21 = vld [vmem:[#allocation8 + $0x8] sm:$0xff]  }
 0x1d6   : > { %v8657_v36 = vor.u32 %v9397_v57, %v8536_v1  ;;  %v3635_v42 = vshll.u32 %v8640_v19, 16  ;;  %v9399_v10 = vshll.u32 %v8547_v16, 16  ;;  %v2164_v44 = vsel %vm991_vm3, %v8593_v9, %v2163_v32  ;;  %v7231_v32 = vld [vmem:[%s9302_s7 + $0x28] sm:$0xf] }
 0x1d7   : > { %v9400_v60 = vrot.slane %v8262_v3, 7  ;;  %v3622_v30 = vshll.u32 %v3594_v6, 16  ;;  %v8686_v37 = vmul.bf16 %v8418_v31, %v3856_v54  ;;  %v1185_v33 = vrot.slane %v8485_v53, %v7951_v13  ;;  %6610 = vmatmul.mubr.bf16.gmra.mrb[12].mxu1 %v2164_v44  ;;  %v8698_v3 = vpop.permute.xlu0 %4518 }
 0x1d8   : > { %v8677_v61 = vor.u32 %v9399_v10, %v8647_v62  ;;  %v8690_v28 = vrot.slane %v1326_v0, 4  ;;  %v2670_v16 = vsel %vm2650_vm1, %v8394_v17, %v2669_v52  ;;  %v8696_v9 = vmul.bf16 %v8463_v40, %v8348_v26  ;;  %v3857_v52 = vld [vmem:[#allocation2 + $0x48] sm:$0xf] }
 0x1d9   : > { %v2662_v38 = vsel %vm2650_vm1, %v9400_v60, %v8577_v22  ;;  %v3620_v22 = vshrl.u32 %v3594_v6, 16  ;;  %v3624_v56 = vrot.slane %v3622_v30, 1  ;;  %v3627_v31 = vshll.u32 %v3595_v15, 16  ;;  %7066 = vset.pattern.permute.xlu1 %v8204_v23  ;;  %v1155_v6 = vpop.permute.xlu1 %1154 }
 0x1da   : > { %6629 = vmatprep.mubr.bf16.mxu1 %v2662_v38  ;;  %v4483_v43 = vrot.slane %v8631_v20, %v7951_v13  ;;  %v1363_v17 = vsel %vm1358_vm4, %v8597_v8, %v8690_v28  ;;  %v2678_v40 = vsel %vm2650_vm1, %v8583_v39, %v2677_v14  ;;  %v3637_v57 = vrot.slane %v3635_v42, 1  ;;  %881 = vperm.xlu1 %7066, %v7231_v32   ;;  %v7140_v38 = vld [vmem:[#allocation8 + $0x108] sm:$0xff]  }
 0x1db   : > { %6534 = vmatmul.mubr.bf16.vlgmr.msra.gmra.mrb[32].mxu0 %v1363_v17  ;;  %v3625_v2 = vor.u32 %v3624_v56, %v3620_v22  ;;  %v3629_v20 = vrot.slane %v3627_v31, 1  ;;  %v3631_v0 = vshrl.u32 %v3595_v15, 16  ;;  %v3597_v23 = vmul.bf16 %v8271_v7, %v8392_v29  ;;  %v7164_v31 = vld [vmem:[#allocation8 + $0x10] sm:$0xff]  }
 0x1dc   : > { %v4494_v8 = vrot.slane %v8660_v18, %v7951_v13  ;;  %v4527_v39 = vrot.slane %v8698_v3, %v7951_v13  ;;  %v3639_v14 = vshrl.u32 %v8640_v19, 16  ;;  %v3598_v42 = vmul.bf16 %v8308_v51, %v8434_v58  ;;  %6550 = vmatpush3.bf16.msra.mxu0 %v8489_v24 }
 0x1dd   : > { %v8721_v10 = vmul.bf16 %v4143_v59, %v3857_v52  ;;  %v8724_v15 = vsel %vm2552_vm0, %v3625_v2, %v3629_v20  ;;  %v3633_v54 = vor.u32 %v3631_v0, %v3629_v20  ;;  %v3643_v7 = vshll.u32 %v3597_v23, 16  ;;  %6551 = vmatprep.subr.bf16.mxu0 %v7162_v21  ;;  %v1166_v51 = vpop.permute.xlu1 %1165  ;;  %v8745_v20 = vld [vmem:[#allocation2 + $0x40] sm:$0xff] }
 0x1de   : > { %v4472_v44 = vrot.slane %v8666_v11, %v7951_v13  ;;  %v1163_v60 = vrot.slane %v1155_v6, %v7951_v13  ;;  %v3641_v19 = vor.u32 %v3639_v14, %v3637_v57  ;;  %v3651_v30 = vshll.u32 %v3598_v42, 16  ;;  %7067 = vset.pattern.permute.xlu1 %v9363_v50 }
 0x1df   : > { %v8731_v24 = vsel %vm2552_vm0, %v3633_v54, %v3637_v57  ;;  %v3645_v59 = vrot.slane %v3643_v7, 1  ;;  %v3647_v22 = vshrl.u32 %v3597_v23, 16  ;;  %v3568_v56 = vsel %vm2650_vm1, %v8264_v41, %v8532_v55  ;;  %6630 = vmatmul.mubr.bf16.vlgmr.msra.gmra.mrb[0].mxu1 %v2670_v16  ;;  %4987 = vperm.xlu1 %7067, %v7231_v32   ;;  %v7141_v16 = vld [vmem:[#allocation8 + $0x110] sm:$0xff]   ;;  %v7166_v7 = vld [vmem:[#allocation8 + $0x18] sm:$0xff]  }
 0x1e0   : > { %v4656_v11 = vmul.bf16 %v8624_v45, %v8303_v63  ;;  %v1174_v17 = vrot.slane %v1166_v51, %v7951_v13  ;;  %v3653_v52 = vrot.slane %v3651_v30, 1  ;;  %v3599_v6 = vmul.bf16 %v3568_v56, %v8483_v49  ;;  %6646 = vmatpush3.bf16.msra.mxu1 %v8518_v47  ;;  %6633 = vmatprep.mubr.bf16.mxu1 %v2678_v40  ;;  %v3305_v47 = vld [vmem:[#allocation2 + $0x48] sm:$0x1] }
 0x1e1   : > { %v4251_v57 = vshrl.u32 %v8721_v10, 16  ;;  %v8743_v2 = vsel %vm2552_vm0, %v3641_v19, %v3645_v59  ;;  %v3649_v41 = vor.u32 %v3647_v22, %v3645_v59  ;;  %v3655_v55 = vshrl.u32 %v3598_v42, 16  ;;  %6647 = vmatprep.subr.bf16.mxu1 %v7140_v38  ;;  %6552 = vmatpush3.bf16.msra.mxu0 %v7162_v21  ;;  %v7232_v21 = vld [vmem:[%s9302_s7 + $0x2c] sm:$0xf] }
 0x1e2   : > { %v8747_v0 = vcombine.low %v4472_v44, %v4483_v43  ;;  %v6115_v23 = vcombine.low %v1163_v60, %v1174_v17  ;;  %v4254_v32 = vshll.u32 %v8721_v10, 16  ;;  %v3659_v14 = vshll.u32 %v3599_v6, 16  ;;  %6553 = vmatprep.subr.bf16.mxu0 %v7164_v31  ;;  %v4497_v60 = vpop.permute.xlu1 %4496 }
 0x1e3   : > { %v8751_v40 = vsel %vm2552_vm0, %v3649_v41, %v3653_v52  ;;  %v3657_v54 = vor.u32 %v3655_v55, %v3653_v52  ;;  %v3576_v42 = vsel %vm2650_vm1, %v8396_v25, %v8657_v36  ;;  %v3584_v43 = vsel %vm2650_vm1, %v8536_v1, %v8677_v61  ;;  %4998 = vperm.xlu1 %7067, %v7232_v21   ;;  %v9401_v61 = vld [vmem:[#allocation41_spill] sm:$0xff] }
 0x1e4   : > { %v1327_v44 = vmul.bf16 %v6115_v23, %v8348_v26  ;;  %v3661_v19 = vrot.slane %v3659_v14, 1  ;;  %v3600_v30 = vmul.bf16 %v3576_v42, %v8523_v4  ;;  %v3601_v51 = vmul.bf16 %v3584_v43, %v8745_v20  ;;  %6648 = vmatpush3.bf16.msra.mxu1 %v7140_v38  ;;  %v8783_v23 = vld [vmem:[#allocation2] sm:$0xff] }
 0x1e5   : > { %v4505_v25 = vrot.slane %v4497_v60, %v7951_v13  ;;  %v3663_v36 = vshrl.u32 %v3599_v6, 16  ;;  %v3602_v1 = vmul.bf16 %v8647_v62, %v3305_v47  ;;  %v4155_v59 = vmul.bf16 %v9401_v61, %v8303_v63  ;;  %6649 = vmatprep.subr.bf16.mxu1 %v7141_v16  ;;  %6554 = vmatpush3.bf16.msra.mxu0 %v7164_v31  ;;  %v7142_v6 = vld [vmem:[#allocation8 + $0x118] sm:$0xff]   ;;  %v7168_v47 = vld [vmem:[#allocation8 + $0x20] sm:$0xff]  }
 0x1e6   : > { %v8769_v22 = vrot.slane %v1327_v44, 4  ;;  %v8772_v56 = vsel %vm2552_vm0, %v3657_v54, %v3661_v19  ;;  %v3667_v17 = vshll.u32 %v3600_v30, 16  ;;  %v4180_v52 = vshrl.u32 %v8686_v37, 16  ;;  %6555 = vmatprep.subr.bf16.mxu0 %v7166_v7  ;;  %v9402_v44 = vld [vmem:[#allocation42_spill] sm:$0xff] }
 0x1e7   : > { %v8778_v38 = vcombine.low %v4494_v8, %v4505_v25  ;;  %v8780_v62 = vrot.slane %v4251_v57, 3  ;;  %v3665_v41 = vor.u32 %v3663_v36, %v3661_v19  ;;  %v3675_v55 = vshll.u32 %v3601_v51, 16  ;;  %6634 = vmatmul.mubr.bf16.gmra.mrb[4].mxu1 %v8614_v12  ;;  %7068 = vset.pattern.permute.xlu1 %v8783_v23  ;;  %v1188_v57 = vpop.permute.xlu1 %1187  ;;  %v7143_v60 = vld [vmem:[#allocation8 + $0x120] sm:$0xff]  }
 0x1e8   : > { %v1365_v31 = vsel %vm1358_vm4, %v8690_v28, %v8769_v22  ;;  %v3669_v14 = vrot.slane %v3667_v17, 1  ;;  %v3671_v18 = vshrl.u32 %v3600_v30, 16  ;;  %v3683_v8 = vshll.u32 %v3602_v1, 16  ;;  %6650 = vmatpush3.bf16.msra.mxu1 %v7141_v16  ;;  %6637 = vmatprep.mubr.bf16.mxu1 %v8620_v5  ;;  %v7170_v17 = vld [vmem:[#allocation8 + $0x28] sm:$0xff]  }
 0x1e9   : > { %v3677_v54 = vrot.slane %v3675_v55, 1  ;;  %v3679_v42 = vshrl.u32 %v3601_v51, 16  ;;  %v4183_v12 = vshll.u32 %v8686_v37, 16  ;;  %v4188_v43 = vshrl.u32 %v4155_v59, 16  ;;  %917 = vperm.xlu1 %7068, %v9402_v44   ;;  %6537 = vmatprep.mubr.bf16.mxu0 %v1365_v31  ;;  %v9403_v31 = vld [vmem:[#allocation44_spill] sm:$0xff] }
 0x1ea   : > { %v1196_v21 = vrot.slane %v1188_v57, %v7951_v13  ;;  %v8794_v28 = vsel %vm2552_vm0, %v3665_v41, %v3669_v14  ;;  %v3673_v19 = vor.u32 %v3671_v18, %v3669_v14  ;;  %v4182_v30 = vrot.slane %v4180_v52, 3  ;;  %6651 = vmatprep.subr.bf16.mxu1 %v7142_v6  ;;  %6556 = vmatpush3.bf16.msra.mxu0 %v7166_v7 }
 0x1eb   : > { %v4657_v5 = vmul.bf16 %v8747_v0, %v8348_v26  ;;  %v3681_v16 = vor.u32 %v3679_v42, %v3677_v54  ;;  %v3685_v51 = vrot.slane %v3683_v8, 1  ;;  %v4185_v25 = vrot.slane %v4183_v12, 4  ;;  %6557 = vmatprep.subr.bf16.mxu0 %v7168_v47 }
 0x1ec   : > { %v6116_v37 = vcombine.low %v1185_v33, %v1196_v21  ;;  %v8802_v36 = vsel %vm2552_vm0, %v3673_v19, %v3677_v54  ;;  %v4190_v1 = vrot.slane %v4188_v43, 3  ;;  %v4191_v61 = vshll.u32 %v4155_v59, 16  ;;  %6652 = vmatpush3.bf16.msra.mxu1 %v7142_v6  ;;  %v4508_v33 = vpop.permute.xlu1 %4507  ;;  %v7144_v59 = vld [vmem:[#allocation8 + $0x128] sm:$0xff]  }
 0x1ed   : > { %v4658_v52 = vmul.bf16 %v8778_v38, %v8392_v29  ;;  %v8807_v26 = vsel %vm2552_vm0, %v3681_v16, %v3685_v51  ;;  %v4197_v0 = vshrl.u32 %v8696_v9, 16  ;;  %v4200_v7 = vshll.u32 %v8696_v9, 16  ;;  %7070 = vset.pattern.permute.xlu1 %v9363_v50  ;;  %6653 = vmatprep.subr.bf16.mxu1 %v7143_v60 }
 0x1ee   : > { %v1328_v53 = vmul.bf16 %v6116_v37, %v8392_v29  ;;  %v4186_v41 = vor.u32 %v4185_v25, %v4182_v30  ;;  %v4193_v55 = vrot.slane %v4191_v61, 4  ;;  %v4157_v38 = vmul.bf16 %v9403_v31, %v8392_v29  ;;  %5020 = vperm.xlu1 %7070, %v9402_v44   ;;  %6558 = vmatpush3.bf16.msra.mxu0 %v7168_v47  ;;  %v7172_v47 = vld [vmem:[#allocation8 + $0x30] sm:$0xff]   ;;  %v9404_v25 = vld [vmem:[#allocation43_spill] sm:$0xff]  ;;  %v4530_v31 = vpop.permute.xlu0 %4529 }
 0x1ef   : > { %v4516_v6 = vrot.slane %v4508_v33, %v7951_v13  ;;  %v4199_v14 = vrot.slane %v4197_v0, 3  ;;  %v4202_v18 = vrot.slane %v4200_v7, 4  ;;  %v4158_v9 = vmul.bf16 %v8505_v46, %v8434_v58  ;;  %6638 = vmatmul.mubr.bf16.gmra.mrb[8].mxu1 %v8635_v34  ;;  %6559 = vmatprep.subr.bf16.mxu0 %v7170_v17  ;;  %v7145_v34 = vld [vmem:[#allocation8 + $0x130] sm:$0xff]   ;;  %v7146_v33 = vld [vmem:[#allocation8 + $0x138] sm:$0xff]  }
 0x1f0   : > { %v8819_v8 = vrot.slane %v1328_v53, 4  ;;  %v4194_v57 = vor.u32 %v4193_v55, %v4190_v1  ;;  %v4206_v54 = vshrl.u32 %v4157_v38, 16  ;;  %v4209_v42 = vshll.u32 %v4157_v38, 16  ;;  %6654 = vmatpush3.bf16.msra.mxu1 %v7143_v60  ;;  %6641 = vmatprep.mubr.bf16.mxu1 %v8643_v27  ;;  %v9405_v1 = vld [vmem:[#allocation46_spill] sm:$0xff] }
 0x1f1   : > { %v6221_v29 = vcombine.low %v4516_v6, %v4527_v39  ;;  %v4203_v12 = vor.u32 %v4202_v18, %v4199_v14  ;;  %v4215_v43 = vshrl.u32 %v4158_v9, 16  ;;  %v4218_v44 = vshll.u32 %v4158_v9, 16  ;;  %6655 = vmatprep.subr.bf16.mxu1 %v7144_v59  ;;  %v1199_v27 = vpop.permute.xlu1 %1198  ;;  %v9406_v53 = vld [vmem:[#allocation30_spill] sm:$0xff] }
 0x1f2   : > { %v1367_v46 = vsel %vm1358_vm4, %v8769_v22, %v8819_v8  ;;  %v8830_v21 = vsel %vm1529_vm2, %v4186_v41, %v4194_v57  ;;  %v4208_v19 = vrot.slane %v4206_v54, 3  ;;  %v4211_v30 = vrot.slane %v4209_v42, 4  ;;  %7071 = vset.pattern.permute.xlu1 %v8783_v23  ;;  %6560 = vmatpush3.bf16.msra.mxu0 %v7170_v17 }
 0x1f3   : > { %v4659_v3 = vmul.bf16 %v6221_v29, %v8434_v58  ;;  %6538 = vmatmul.mubr.bf16.gmra.mrb[36].mxu0 %v1367_v46  ;;  %v8835_v39 = vsel %vm1529_vm2, %v4194_v57, %v4203_v12  ;;  %v4217_v60 = vrot.slane %v4215_v43, 3  ;;  %v4220_v16 = vrot.slane %v4218_v44, 4  ;;  %929 = vperm.xlu1 %7071, %v9404_v25   ;;  %v7174_v57 = vld [vmem:[#allocation8 + $0x38] sm:$0xff]   ;;  %v7147_v46 = vld [vmem:[#allocation8 + $0x140] sm:$0xff]  }
 0x1f4   : > { %v4692_v51 = vrot.slane %v4657_v5, 4  ;;  %v8840_v22 = vrot.slane %v4254_v32, 4  ;;  %v4212_v37 = vor.u32 %v4211_v30, %v4208_v19  ;;  %v4159_v61 = vmul.bf16 %v9405_v1, %v8483_v49  ;;  %6656 = vmatpush3.bf16.msra.mxu1 %v7144_v59  ;;  %6561 = vmatprep.subr.bf16.mxu0 %v7172_v47  ;;  %v9408_v43 = vld [vmem:[#allocation37_spill] sm:$0xff] }
 0x1f5   : > { %v4694_v23 = vrot.slane %v4658_v52, 4  ;;  %v1207_v0 = vrot.slane %v1199_v27, %v7951_v13  ;;  %v4221_v7 = vor.u32 %v4220_v16, %v4217_v60  ;;  %v4160_v5 = vmul.bf16 %v9406_v53, %v8523_v4  ;;  %6657 = vmatprep.subr.bf16.mxu1 %v7145_v34  ;;  %v1210_v52 = vpop.permute.xlu1 %1209  ;;  %v8898_v53 = vld [vmem:[#allocation2 + $0x18] sm:$0xff] }
 0x1f6   : > { %v8848_v10 = vsel %vm1529_vm2, %v4203_v12, %v4212_v37  ;;  %v4224_v32 = vshrl.u32 %v4159_v61, 16  ;;  %v4227_v41 = vshll.u32 %v4159_v61, 16  ;;  %v4161_v17 = vmul.bf16 %v8671_v48, %v8745_v20  ;;  %v9407_v12 = vld [vmem:[#allocation38_spill] sm:$0xff]  ;;  %6562 = vmatpush3.bf16.msra.mxu0 %v7172_v47 }
 0x1f7   : > { %v8852_v55 = vrot.slane %v4659_v3, 4  ;;  %v8855_v59 = vsel %vm1529_vm2, %v4212_v37, %v4221_v7  ;;  %v4233_v38 = vshrl.u32 %v4160_v5, 16  ;;  %v4236_v6 = vshll.u32 %v4160_v5, 16  ;;  %7073 = vset.pattern.permute.xlu1 %v9363_v50  ;;  %6642 = vmatmul.mubr.bf16.gmra.mrb[12].mxu1 %v8652_v35  ;;  %v9411_v5 = vld [vmem:[#allocation40_spill] sm:$0xff] }
 0x1f8   : > { %v1218_v14 = vrot.slane %v1210_v52, %v7951_v13  ;;  %v4226_v18 = vrot.slane %v4224_v32, 3  ;;  %v4229_v9 = vrot.slane %v4227_v41, 4  ;;  %v4242_v54 = vshrl.u32 %v4161_v17, 16  ;;  %6658 = vmatpush3.bf16.msra.mxu1 %v7145_v34  ;;  %5031 = vperm.xlu1 %7073, %v9404_v25  }
 0x1f9   : > { %v8863_v48 = vrot.slane %v4656_v11, 4  ;;  %v4235_v20 = vrot.slane %v4233_v38, 3  ;;  %v4238_v42 = vrot.slane %v4236_v6, 4  ;;  %v4245_v29 = vshll.u32 %v4161_v17, 16  ;;  %6659 = vmatprep.subr.bf16.mxu1 %v7146_v33  ;;  %6563 = vmatprep.subr.bf16.mxu0 %v7174_v57  ;;  %v9412_v17 = vld [vmem:[#allocation23_spill] sm:$0xff]  ;;  %v9414_v6 = vld [vmem:[#allocation45_spill] sm:$0xff] }
 0x1fa   : > { %v6117_v50 = vcombine.low %v1207_v0, %v1218_v14  ;;  %v9409_v44 = vmul.bf16 %v9407_v12, %v9408_v43  ;;  %v4538_v35 = vrot.slane %v4530_v31, %v7951_v13  ;;  %v4230_v19 = vor.u32 %v4229_v9, %v4226_v18  ;;  %v4541_v27 = vpop.permute.xlu1 %4540  ;;  %v8894_v0 = vld [vmem:[#allocation2 + $0x10] sm:$0xff]  ;;  %6564 = vmatpush3.bf16.msra.mxu0 %v7174_v57  ;;  %v9413_v31 = vld [vmem:[#allocation25_spill] sm:$0xff]  ;;  %v9415_v9 = vld [vmem:[#allocation24_spill] sm:$0xff]  ;;  %v4563_v12 = vpop.permute.xlu0 %4562 }
 0x1fb   : > { %v4244_v30 = vrot.slane %v4242_v54, 3  ;;  %v4239_v45 = vor.u32 %v4238_v42, %v4235_v20  ;;  %v4247_v63 = vrot.slane %v4245_v29, 4  ;;  %v8872_v11 = vsel %vm1358_vm4, %v8863_v48, %v4692_v51  ;;  %v9416_v54 = vld [vmem:[#allocation27_spill] sm:$0xff]  ;;  %v7149_v43 = vld [vmem:[#allocation8 + $0x150] sm:$0xff]  }
 0x1fc   : > { %6661 = vmatprep.mubr.bf16.mxu1 %v9409_v44  ;;  %v8875_v34 = vsel %vm1358_vm4, %v4692_v51, %v4694_v23  ;;  %v1329_v3 = vmul.bf16 %v6117_v50, %v8434_v58  ;;  %v8879_v60 = vsel %vm1529_vm2, %v4221_v7, %v4230_v19  ;;  %v4257_v16 = vor.u32 %v8840_v22, %v8780_v62  ;;  %v7234_v51 = vld [vmem:[%s9302_s7 + $0x3c] sm:$0xf] }
 0x1fd   : > { %v8885_v47 = vsel %vm1358_vm4, %v4694_v23, %v8852_v55  ;;  %6660 = vmatpush3.bf16.msra.mxu1 %v7146_v33  ;;  %5042 = vperm.xlu1 %7073, %v7234_v51   ;;  %v4549_v25 = vrot.slane %v4541_v27, %v7951_v13  ;;  %v8892_v37 = vsel %vm1529_vm2, %v4230_v19, %v4239_v45  ;;  %v9410_v62 = vld [vmem:[#allocation39_spill] sm:$0xff] }
 0x1fe   : > { %v4248_v1 = vor.u32 %v4247_v63, %v4244_v30  ;;  %v1368_v61 = vrot.slane %v1329_v3, 4  ;;  %6677 = vmatprep.subr.bf16.mxu1 %v7147_v46  ;;  %v3113_v22 = vmul.bf16 %v8894_v0, %v9410_v62  ;;  %v7148_v23 = vld [vmem:[#allocation8 + $0x148] sm:$0xff]   ;;  %v3114_v33 = vmul.bf16 %v8898_v53, %v9411_v5  ;;  %v8928_v3 = vld [vmem:[#allocation2 + $0x20] sm:$0xff] }
 0x1ff   : > { %v6222_v7 = vcombine.low %v4538_v35, %v4549_v25  ;;  %v2964_v52 = vrot.slane %v9412_v17, %v7951_v13  ;;  %v2975_v38 = vrot.slane %v9413_v31, %v7951_v13  ;;  %v1229_v14 = vrot.slane %v9414_v6, %v7951_v13  ;;  %v1232_v29 = vpop.permute.xlu1 %1231  ;;  %v9419_v5 = vld [vmem:[#allocation28_spill] sm:$0xff]  ;;  %v9420_v17 = vld [vmem:[#allocation31_spill] sm:$0xff] }
 0x200   : > { %v8903_v32 = vsel %vm1529_vm2, %v4239_v45, %v4248_v1  ;;  %v8906_v41 = vsel %vm1529_vm2, %v4248_v1, %v4257_v16  ;;  %6662 = vmatmul.mubr.bf16.vlgmr.msra.gmra.mrb[0].mxu1 %v3113_v22  ;;  %v1369_v18 = vsel %vm1358_vm4, %v8819_v8, %v1368_v61  ;;  %v2986_v57 = vrot.slane %v9415_v9, %v7951_v13  ;;  %v7150_v16 = vld [vmem:[#allocation8 + $0x158] sm:$0xff]   ;;  %v9417_v1 = vld [vmem:[#allocation26_spill] sm:$0xff] }
 0x201   : > { %v2997_v20 = vrot.slane %v9416_v54, %v7951_v13  ;;  %v4660_v42 = vmul.bf16 %v6222_v7, %v8483_v49  ;;  %6678 = vmatpush3.bf16.msra.mxu1 %v7147_v46  ;;  %6665 = vmatprep.mubr.bf16.mxu1 %v3114_v33  ;;  %v1240_v50 = vrot.slane %v1232_v29, %v7951_v13  ;;  %v9418_v22 = vld [vmem:[#allocation29_spill] sm:$0xff]  ;;  %v8939_v7 = vpop.permute.xlu0 %4573 }
 0x202   : > { %6541 = vmatprep.mubr.bf16.mxu0 %v1369_v18  ;;  %6679 = vmatprep.subr.bf16.mxu1 %v7148_v23  ;;  %v6172_v35 = vcombine.low %v2964_v52, %v2975_v38  ;;  %v4571_v30 = vrot.slane %v4563_v12, %v7951_v13  ;;  %v3008_v62 = vrot.slane %v9417_v1, %v7951_v13  ;;  %v7151_v38 = vld [vmem:[#allocation8 + $0x160] sm:$0xff]   ;;  %v9421_v12 = vld [vmem:[#allocation33_spill] sm:$0xff] }
 0x203   : > { %v4698_v44 = vrot.slane %v4660_v42, 4  ;;  %v6118_v8 = vcombine.low %v1229_v14, %v1240_v50  ;;  %v6173_v19 = vcombine.low %v2986_v57, %v2997_v20  ;;  %v3041_v33 = vrot.slane %v9419_v5, %v7951_v13  ;;  %v7152_v20 = vld [vmem:[#allocation8 + $0x168] sm:$0xff]  }
 0x204   : > { %v4552_v63 = vpop.permute.xlu1 %4551  ;;  %v3115_v27 = vmul.bf16 %v8928_v3, %v6172_v35  ;;  %v3030_v52 = vrot.slane %v9420_v17, %v7951_v13  ;;  %v9422_v35 = vld [vmem:[#allocation35_spill] sm:$0xff] }
 0x205   : > { %6680 = vmatpush3.bf16.msra.mxu1 %v7148_v23  ;;  %v8925_v45 = vsel %vm1358_vm4, %v8852_v55, %v4698_v44  ;;  %v1330_v46 = vmul.bf16 %v6118_v8, %v8483_v49  ;;  %v4560_v51 = vrot.slane %v4552_v63, %v7951_v13  ;;  %v3116_v25 = vmul.bf16 %v6173_v19, %v8434_v58  ;;  %v8951_v42 = vpop.permute.xlu0 %4595 }
 0x206   : > { %6681 = vmatprep.subr.bf16.mxu1 %v7149_v43  ;;  %v3019_v55 = vrot.slane %v9418_v22, %v7951_v13  ;;  %v6175_v9 = vcombine.low %v3030_v52, %v3041_v33  ;;  %v3063_v8 = vrot.slane %v9422_v35, %v7951_v13  ;;  %v7156_v33 = vld [vmem:[#allocation8 + $0x188] sm:$0xff]  }
 0x207   : > { %v8937_v23 = vrot.slane %v1330_v46, 4  ;;  %v6223_v31 = vcombine.low %v4560_v51, %v4571_v30 }
 0x208   : > { %6666 = vmatmul.mubr.bf16.gmra.mrb[4].mxu1 %v3115_v27  ;;  %v6174_v18 = vcombine.low %v3008_v62, %v3019_v55  ;;  %v3118_v50 = vmul.bf16 %v6175_v9, %v8523_v4 }
 0x209   : > { %6682 = vmatpush3.bf16.msra.mxu1 %v7149_v43  ;;  %6669 = vmatprep.mubr.bf16.mxu1 %v3116_v25  ;;  %v1371_v58 = vsel %vm1358_vm4, %v1368_v61, %v8937_v23  ;;  %v4661_v6 = vmul.bf16 %v6223_v31, %v8523_v4  ;;  %v762_v14 = vpop.permute.xlu1 %761  ;;  %v3052_v43 = vrot.slane %v9421_v12, %v7951_v13  ;;  %v4889_v46 = vpop.permute.xlu0 %4888  ;;  %v9423_v4 = vld [vmem:[#allocation19_spill] sm:$0xff]  ;;  %v7155_v25 = vld [vmem:[#allocation8 + $0x180] sm:$0xff]   ;;  %v8975_v12 = vld [vmem:[#allocation2 + $0x8] sm:$0xf0] }
 0x20a   : > { %6683 = vmatprep.subr.bf16.mxu1 %v7150_v16  ;;  %6542 = vmatmul.mubr.bf16.gmra.mrb[40].mxu0 %v1371_v58  ;;  %v3117_v54 = vmul.bf16 %v6174_v18, %v8483_v49  ;;  %v7153_v49 = vld [vmem:[#allocation8 + $0x170] sm:$0xff]   ;;  %v4897_v27 = vrot.slane %v4889_v46, %v7951_v13  ;;  %v770_v5 = vrot.slane %v762_v14, %v7951_v13 }
 0x20b   : > { %v8948_v57 = vrot.slane %v4661_v6, 4  ;;  %v6176_v30 = vcombine.low %v3052_v43, %v3063_v8 }
 0x20d   : > { %6684 = vmatpush3.bf16.msra.mxu1 %v7150_v16  ;;  %v774_v29 = vpop.permute.xlu1 %773  ;;  %v8956_v61 = vsel %vm1358_vm4, %v4698_v44, %v8948_v57  ;;  %v3119_v63 = vmul.bf16 %v6176_v30, %v9423_v4  ;;  %v7154_v44 = vld [vmem:[#allocation8 + $0x178] sm:$0xff]   ;;  %v4933_v30 = vpop.permute.xlu0 %4932 }
 0x20e   : > { %6685 = vmatprep.subr.bf16.mxu1 %v7151_v38  ;;  %v782_v17 = vrot.slane %v774_v29, %v7951_v13 }
 0x210   : > { %6670 = vmatmul.mubr.bf16.gmra.mrb[8].mxu1 %v3117_v54  ;;  %v7157_v54 = vld [vmem:[#allocation8 + $0x190] sm:$0xff]  }
 0x211   : > { %6686 = vmatpush3.bf16.msra.mxu1 %v7151_v38  ;;  %6673 = vmatprep.mubr.bf16.mxu1 %v3118_v50  ;;  %v798_v19 = vpop.permute.xlu1 %797  ;;  %v9424_v38 = vld [vmem:[#allocation36_spill] sm:$0xff] }
 0x212   : > { %6687 = vmatprep.subr.bf16.mxu1 %v7152_v20  ;;  %v806_v6 = vrot.slane %v798_v19, %v7951_v13 }
 0x215   : > { %6688 = vmatpush3.bf16.msra.mxu1 %v7152_v20  ;;  %v6104_v20 = vcombine.low %v770_v5, %v782_v17 }
 0x216   : > { %6689 = vmatprep.subr.bf16.mxu1 %v7153_v49  ;;  %v4878_v16 = vpop.permute.xlu1 %4877 }
 0x217   : > { %v4886_v51 = vrot.slane %v4878_v16, %v7951_v13  ;;  %v993_v46 = vshrl.u32 %v6104_v20, 16 }
 0x218   : > { %6674 = vmatmul.mubr.bf16.gmra.mrb[12].mxu1 %v3119_v63 }
 0x219   : > { %6690 = vmatpush3.bf16.msra.mxu1 %v7153_v49  ;;  %6693 = vmatprep.mubr.bf16.mxu1 %v8724_v15  ;;  %v6234_v1 = vcombine.low %v4886_v51, %v4897_v27  ;;  %v794_v15 = vrot.slane %v9424_v38, %v7951_v13  ;;  %v996_v27 = vshll.u32 %v6104_v20, 16 }
 0x21a   : > { %6691 = vmatprep.subr.bf16.mxu1 %v7154_v44  ;;  %v4900_v62 = vpop.permute.xlu1 %4899 }
 0x21b   : > { %v5093_v22 = vshrl.u32 %v6234_v1, 16  ;;  %v5096_v55 = vshll.u32 %v6234_v1, 16  ;;  %v4908_v58 = vrot.slane %v4900_v62, %v7951_v13  ;;  %v6105_v50 = vcombine.low %v794_v15, %v806_v6 }
 0x21c   : > { %v4941_v1 = vrot.slane %v4933_v30, %v7951_v13 }
 0x21d   : > { %6692 = vmatpush3.bf16.msra.mxu1 %v7154_v44  ;;  %v5095_v52 = vrot.slane %v5093_v22, 3  ;;  %v5098_v31 = vrot.slane %v5096_v55, 4  ;;  %v1001_v16 = vshrl.u32 %v6105_v50, 16  ;;  %v1004_v51 = vshll.u32 %v6105_v50, 16  ;;  %v7159_v22 = vld [vmem:[#allocation8 + $0x1a0] sm:$0xff]  }
 0x21e   : > { %6709 = vmatprep.subr.bf16.mxu1 %v7155_v25  ;;  %v4911_v18 = vpop.permute.xlu1 %4910 }
 0x21f   : > { %v4919_v9 = vrot.slane %v4911_v18, %v7951_v13  ;;  %v5099_v14 = vor.u32 %v5098_v31, %v5095_v52  ;;  %v1003_v38 = vrot.slane %v1001_v16, 4 }
 0x220   : > { %6694 = vmatmul.mubr.bf16.vlgmr.msra.gmra.mrb[0].mxu1 %v8731_v24  ;;  %v9425_v24 = vld [vmem:[#allocation20_spill] sm:$0xff] }
 0x221   : > { %6710 = vmatpush3.bf16.msra.mxu1 %v7155_v25  ;;  %6697 = vmatprep.mubr.bf16.mxu1 %v8743_v2  ;;  %v6235_v29 = vcombine.low %v4908_v58, %v4919_v9  ;;  %v818_v49 = vrot.slane %v9425_v24, %v7951_v13  ;;  %v5172_v19 = vmul.bf16 %v5099_v14, %v8975_v12  ;;  %v7158_v2 = vld [vmem:[#allocation8 + $0x198] sm:$0xff]   ;;  %v998_v58 = vrot.slane %v996_v27, 5  ;;  %v734_v27 = vld [vmem:[#allocation2] sm:$0xf8] }
 0x222   : > { %6711 = vmatprep.subr.bf16.mxu1 %v7156_v33 }
 0x223   : > { %v5101_v43 = vshrl.u32 %v6235_v29, 16  ;;  %v5104_v35 = vshll.u32 %v6235_v29, 16  ;;  %v822_v8 = vpop.permute.xlu1 %821  ;;  %v5198_v55 = vshrl.u32 %v5172_v19, 16  ;;  %v5201_v5 = vshll.u32 %v5172_v19, 16 }
 0x224   : > { %v830_v44 = vrot.slane %v822_v8, %v7951_v13 }
 0x225   : > { %6712 = vmatpush3.bf16.msra.mxu1 %v7156_v33  ;;  %v5103_v4 = vrot.slane %v5101_v43, 3  ;;  %v5106_v63 = vrot.slane %v5104_v35, 4  ;;  %v995_v33 = vrot.slane %v993_v46, 4  ;;  %v5200_v18 = vrot.slane %v5198_v55, 4 }
 0x226   : > { %6713 = vmatprep.subr.bf16.mxu1 %v7157_v54  ;;  %v6106_v52 = vcombine.low %v818_v49, %v830_v44  ;;  %v5203_v9 = vrot.slane %v5201_v5, 5 }
 0x227   : > { %v5107_v25 = vor.u32 %v5106_v63, %v5103_v4  ;;  %v999_v8 = vor.u32 %v998_v58, %v995_v33  ;;  %v7163_v4 = vld [vmem:[#allocation8 + $0x1b0] sm:$0xff]   ;;  %v7238_v58 = vld [vmem:[#allocation2 + $0x8] sm:$0xff] }
 0x228   : > { %6698 = vmatmul.mubr.bf16.gmra.mrb[4].mxu1 %v8751_v40  ;;  %v4922_v62 = vpop.permute.xlu1 %4921  ;;  %v1006_v40 = vrot.slane %v1004_v51, 5  ;;  %v1010_v29 = vshrl.u32 %v6106_v52, 16  ;;  %v1013_v50 = vshll.u32 %v6106_v52, 16  ;;  %v5204_v63 = vor.u32 %v5203_v9, %v5200_v18  ;;  %v7165_v52 = vld [vmem:[#allocation8 + $0x1b8] sm:$0xff]  }
 0x229   : > { %6714 = vmatpush3.bf16.msra.mxu1 %v7157_v54  ;;  %6701 = vmatprep.mubr.bf16.mxu1 %v8772_v56  ;;  %v5108_v17 = vsel %vm1529_vm2, %v5099_v14, %v5107_v25  ;;  %v4930_v31 = vrot.slane %v4922_v62, %v7951_v13  ;;  %v7161_v56 = vld [vmem:[#allocation8 + $0x1a8] sm:$0xff]   ;;  %v1072_v5 = vmul.bf16 %v999_v8, %v734_v27 }
 0x22a   : > { %6715 = vmatprep.subr.bf16.mxu1 %v7158_v2  ;;  %v5173_v15 = vmul.bf16 %v8894_v0, %v5108_v17  ;;  %v1007_v24 = vor.u32 %v1006_v40, %v1003_v38  ;;  %v1012_v16 = vrot.slane %v1010_v29, 4  ;;  %v1015_v51 = vrot.slane %v1013_v50, 5  ;;  %v9002_v40 = vld [vmem:[#allocation2 + $0x38] sm:$0xff] }
 0x22b   : > { %v6236_v6 = vcombine.low %v4930_v31, %v4941_v1 }
 0x22c   : > { %v5206_v54 = vshrl.u32 %v5173_v15, 16  ;;  %v5209_v20 = vshll.u32 %v5173_v15, 16  ;;  %v9000_v31 = vor.u32 %v1015_v51, %v1012_v16  ;;  %v9024_v51 = vld [vmem:[#allocation2 + $0x40] sm:$0xf] }
 0x22d   : > { %6716 = vmatpush3.bf16.msra.mxu1 %v7158_v2  ;;  %v5110_v43 = vshrl.u32 %v6236_v6, 16  ;;  %v5113_v14 = vshll.u32 %v6236_v6, 16  ;;  %v1243_v35 = vpop.permute.xlu1 %1242 }
 0x22e   : > { %6717 = vmatprep.subr.bf16.mxu1 %v7159_v22  ;;  %v5208_v49 = vrot.slane %v5206_v54, 4  ;;  %v5211_v19 = vrot.slane %v5209_v20, 5  ;;  %v1251_v2 = vrot.slane %v1243_v35, %v7951_v13  ;;  %v7167_v54 = vld [vmem:[#allocation8 + $0x1c0] sm:$0xff]   ;;  %v1531_v20 = vshrl.u32 %v1072_v5, 16 }
 0x22f   : > { %v5112_v30 = vrot.slane %v5110_v43, 3  ;;  %v5115_v46 = vrot.slane %v5113_v14, 4  ;;  %v1017_v43 = vsel %vm991_vm3, %v1007_v24, %v9000_v31  ;;  %v1534_v14 = vshll.u32 %v1072_v5, 16 }
 0x230   : > { %6702 = vmatmul.mubr.bf16.gmra.mrb[8].mxu1 %v8794_v28  ;;  %v5212_v44 = vor.u32 %v5211_v19, %v5208_v49  ;;  %v1008_v28 = vsel %vm991_vm3, %v999_v8, %v1007_v24 }
 0x231   : > { %6718 = vmatpush3.bf16.msra.mxu1 %v7159_v22  ;;  %6705 = vmatprep.mubr.bf16.mxu1 %v8802_v36  ;;  %v8990_v1 = vor.u32 %v5115_v46, %v5112_v30  ;;  %v1254_v62 = vpop.permute.xlu1 %1253  ;;  %v1073_v38 = vmul.bf16 %v7238_v58, %v1008_v28 }
 0x232   : > { %6719 = vmatprep.subr.bf16.mxu1 %v7161_v56  ;;  %v1262_v55 = vrot.slane %v1254_v62, %v7951_v13  ;;  %v8995_v22 = vsel %vm991_vm3, %v5204_v63, %v5212_v44  ;;  %v1536_v63 = vrot.slane %v1534_v14, 4 }
 0x233   : > { %v5117_v36 = vsel %vm1529_vm2, %v5107_v25, %v8990_v1  ;;  %v9008_v25 = vpop.permute.xlu0 %4965  ;;  %v1542_v35 = vshll.u32 %v1073_v38, 16 }
 0x234   : > { %v5174_v33 = vmul.bf16 %v8898_v53, %v5117_v36  ;;  %v6119_v17 = vcombine.low %v1251_v2, %v1262_v55  ;;  %v7169_v2 = vld [vmem:[#allocation8 + $0x1c8] sm:$0xff]  }
 0x235   : > { %6720 = vmatpush3.bf16.msra.mxu1 %v7161_v56 }
 0x236   : > { %6721 = vmatprep.subr.bf16.mxu1 %v7163_v4  ;;  %v1331_v15 = vmul.bf16 %v9002_v40, %v6119_v17  ;;  %v5215_v56 = vshrl.u32 %v5174_v33, 16  ;;  %v5218_v18 = vshll.u32 %v5174_v33, 16 }
 0x237   : > { %v9006_v6 = vpop.permute.xlu1 %4584  ;;  %v846_v46 = vpop.permute.xlu0 %845 }
 0x238   : > { %6706 = vmatmul.mubr.bf16.gmra.mrb[12].mxu1 %v8807_v26  ;;  %v1372_v9 = vrot.slane %v1331_v15, 4  ;;  %v5217_v29 = vrot.slane %v5215_v56, 4  ;;  %v5220_v50 = vrot.slane %v5218_v18, 5  ;;  %v1539_v26 = vshrl.u32 %v1073_v38, 16 }
 0x239   : > { %6722 = vmatpush3.bf16.msra.mxu1 %v7163_v4  ;;  %6725 = vmatprep.mubr.bf16.mxu1 %v8830_v21  ;;  %v1074_v21 = vmul.bf16 %v8894_v0, %v1017_v43  ;;  %v1533_v4 = vrot.slane %v1531_v20, 3  ;;  %v854_v0 = vrot.slane %v846_v46, %v7951_v13 }
 0x23a   : > { %6723 = vmatprep.subr.bf16.mxu1 %v7165_v52  ;;  %v1373_v8 = vsel %vm1358_vm4, %v8937_v23, %v1372_v9  ;;  %v9015_v49 = vor.u32 %v5220_v50, %v5217_v29  ;;  %v1541_v27 = vrot.slane %v1539_v26, 3  ;;  %v1544_v23 = vrot.slane %v1542_v35, 4  ;;  %v9426_v29 = vld [vmem:[#allocation21_spill] sm:$0xff]  ;;  %v7175_v26 = vld [vmem:[#allocation8 + $0x1e0] sm:$0xff]  }
 0x23b   : > { %6545 = vmatprep.mubr.bf16.mxu0 %v1373_v8  ;;  %v1548_v55 = vshrl.u32 %v1074_v21, 16  ;;  %v1551_v36 = vshll.u32 %v1074_v21, 16  ;;  %v1537_v33 = vor.u32 %v1536_v63, %v1533_v4  ;;  %v4439_v50 = vrot.slane %v9426_v29, %v7951_v13 }
 0x23c   : > { %v1265_v19 = vpop.permute.xlu1 %1264  ;;  %v9021_v24 = vsel %vm991_vm3, %v5212_v44, %v9015_v49  ;;  %v7171_v44 = vld [vmem:[#allocation8 + $0x1d0] sm:$0xff]   ;;  %v1545_v17 = vor.u32 %v1544_v23, %v1541_v27 }
 0x23d   : > { %6724 = vmatpush3.bf16.msra.mxu1 %v7165_v52  ;;  %v1273_v30 = vrot.slane %v1265_v19, %v7951_v13  ;;  %v1550_v38 = vrot.slane %v1548_v55, 3  ;;  %v1553_v15 = vrot.slane %v1551_v36, 4 }
 0x23e   : > { %6741 = vmatprep.subr.bf16.mxu1 %v7167_v54  ;;  %v1546_v20 = vsel %vm1529_vm2, %v1537_v33, %v1545_v17 }
 0x23f   : > { %v6120_v16 = vcombine.low %v1273_v30, %v1273_v30  ;;  %v1554_v35 = vor.u32 %v1553_v15, %v1550_v38  ;;  %v858_v30 = vpop.permute.xlu0 %857 }
 0x240   : > { %6726 = vmatmul.mubr.bf16.vlgmr.msra.gmra.mrb[0].mxu1 %v8835_v39  ;;  %v866_v27 = vrot.slane %v858_v30, %v7951_v13 }
 0x241   : > { %6742 = vmatpush3.bf16.msra.mxu1 %v7167_v54  ;;  %6729 = vmatprep.mubr.bf16.mxu1 %v8848_v10  ;;  %v1332_v62 = vmul.bf16 %v6120_v16, %v9024_v51  ;;  %v834_v28 = vpop.permute.xlu1 %833  ;;  %v7173_v10 = vld [vmem:[#allocation8 + $0x1d8] sm:$0xff]   ;;  %v1555_v4 = vsel %vm1529_vm2, %v1545_v17, %v1554_v35 }
 0x242   : > { %6743 = vmatprep.subr.bf16.mxu1 %v7169_v2  ;;  %v842_v5 = vrot.slane %v834_v28, %v7951_v13 }
 0x243   : > { %v1374_v52 = vrot.slane %v1332_v62, 4  ;;  %v894_v15 = vpop.permute.xlu0 %893 }
 0x244   : > { %v6107_v39 = vcombine.low %v842_v5, %v854_v0 }
 0x245   : > { %6744 = vmatpush3.bf16.msra.mxu1 %v7169_v2  ;;  %v1375_v58 = vsel %vm1358_vm4, %v1372_v9, %v1374_v52 }
 0x246   : > { %6745 = vmatprep.subr.bf16.mxu1 %v7171_v44  ;;  %v1019_v56 = vshrl.u32 %v6107_v39, 16  ;;  %v1022_v18 = vshll.u32 %v6107_v39, 16  ;;  %v4944_v54 = vpop.permute.xlu1 %4943  ;;  %6546 = vmatmul.mubr.bf16.gmra.mrb[44].mxu0 %v1375_v58 }
 0x247   : > { %6565 = vmatprep.mubr.bf16.mxu0 %v1546_v20  ;;  %v4952_v9 = vrot.slane %v4944_v54, %v7951_v13 }
 0x248   : > { %6730 = vmatmul.mubr.bf16.gmra.mrb[4].mxu1 %v8855_v59  ;;  %v1021_v43 = vrot.slane %v1019_v56, 4  ;;  %v1024_v14 = vrot.slane %v1022_v18, 5  ;;  %v6217_v59 = vcombine.low %v4439_v50, %v4439_v50  ;;  %v7178_v56 = vld [vmem:[#allocation8 + $0x1f8] sm:$0xff]  }
 0x249   : > { %6746 = vmatpush3.bf16.msra.mxu1 %v7171_v44  ;;  %6733 = vmatprep.mubr.bf16.mxu1 %v8879_v60  ;;  %v7176_v60 = vld [vmem:[#allocation8 + $0x1e8] sm:$0xff]  }
 0x24a   : > { %6747 = vmatprep.subr.bf16.mxu1 %v7173_v10  ;;  %v1025_v8 = vor.u32 %v1024_v14, %v1021_v43  ;;  %v4955_v19 = vpop.permute.xlu1 %4954 }
 0x24b   : > { %v4963_v21 = vrot.slane %v4955_v19, %v7951_v13  ;;  %v7179_v19 = vld [vmem:[#allocation8 + $0x200] sm:$0xff]  }
 0x24c   : > { %v1026_v46 = vsel %vm991_vm3, %v9000_v31, %v1025_v8  ;;  %v4655_v31 = vmul.bf16 %v6217_v59, %v8975_v12 }
 0x24d   : > { %6748 = vmatpush3.bf16.msra.mxu1 %v7173_v10  ;;  %v6237_v2 = vcombine.low %v4952_v9, %v4963_v21  ;;  %v1075_v63 = vmul.bf16 %v8898_v53, %v1026_v46  ;;  %v7177_v53 = vld [vmem:[#allocation8 + $0x1f0] sm:$0xff]   ;;  %v4974_v9 = vrot.slane %v9008_v25, %v7951_v13 }
 0x24e   : > { %6749 = vmatprep.subr.bf16.mxu1 %v7175_v26  ;;  %6566 = vmatmul.mubr.bf16.vlgmr.msra.gmra.mrb[32].mxu0 %v1555_v4  ;;  %v4689_v10 = vrot.slane %v4655_v31, 4  ;;  %v7180_v4 = vld [vmem:[#allocation8 + $0x208] sm:$0xff]  }
 0x24f   : > { %v5119_v23 = vshrl.u32 %v6237_v2, 16  ;;  %v5122_v16 = vshll.u32 %v6237_v2, 16  ;;  %v870_v0 = vpop.permute.xlu1 %869  ;;  %v1557_v62 = vshrl.u32 %v1075_v63, 16  ;;  %v1560_v28 = vshll.u32 %v1075_v63, 16 }
 0x250   : > { %6734 = vmatmul.mubr.bf16.gmra.mrb[8].mxu1 %v8892_v37  ;;  %v878_v44 = vrot.slane %v870_v0, %v7951_v13  ;;  %v4691_v29 = vsel %vm1358_vm4, %v4689_v10, %v8863_v48  ;;  %v4593_v0 = vrot.slane %v9006_v6, %v7951_v13  ;;  %v906_v6 = vpop.permute.xlu0 %905  ;;  %v7182_v10 = vld [vmem:[#allocation8 + $0x218] sm:$0xff]  }
 0x251   : > { %6750 = vmatpush3.bf16.msra.mxu1 %v7175_v26  ;;  %6737 = vmatprep.mubr.bf16.mxu1 %v8903_v32  ;;  %v5121_v55 = vrot.slane %v5119_v23, 3  ;;  %v5124_v36 = vrot.slane %v5122_v16, 4  ;;  %v1559_v5 = vrot.slane %v1557_v62, 3  ;;  %v1562_v33 = vrot.slane %v1560_v28, 4 }
 0x252   : > { %6751 = vmatprep.subr.bf16.mxu1 %v7176_v60  ;;  %v6108_v17 = vcombine.low %v866_v27, %v878_v44 }
 0x253   : > { %v9047_v52 = vor.u32 %v5124_v36, %v5121_v55  ;;  %v9049_v37 = vor.u32 %v1562_v33, %v1559_v5  ;;  %v7181_v36 = vld [vmem:[#allocation8 + $0x210] sm:$0xff]  }
 0x254   : > { %v1028_v39 = vshrl.u32 %v6108_v17, 16  ;;  %v1031_v58 = vshll.u32 %v6108_v17, 16  ;;  %v4977_v12 = vpop.permute.xlu1 %4976 }
 0x255   : > { %6752 = vmatpush3.bf16.msra.mxu1 %v7176_v60  ;;  %v5126_v32 = vsel %vm1529_vm2, %v8990_v1, %v9047_v52  ;;  %v1564_v38 = vsel %vm1529_vm2, %v1554_v35, %v9049_v37  ;;  %v902_v1 = vrot.slane %v894_v15, %v7951_v13  ;;  %v4985_v26 = vrot.slane %v4977_v12, %v7951_v13 }
 0x256   : > { %6753 = vmatprep.subr.bf16.mxu1 %v7177_v53  ;;  %v1030_v18 = vrot.slane %v1028_v39, 4  ;;  %v1033_v54 = vrot.slane %v1031_v58, 5  ;;  %6569 = vmatprep.mubr.bf16.mxu0 %v1564_v38  ;;  %v5175_v20 = vmul.bf16 %v8928_v3, %v5126_v32  ;;  %v4604_v58 = vrot.slane %v8951_v42, %v7951_v13  ;;  %v7240_v32 = vld [vmem:[#allocation2 + $0x28] sm:$0xff] }
 0x257   : > { %v6238_v63 = vcombine.low %v4974_v9, %v4985_v26  ;;  %v7183_v26 = vld [vmem:[#allocation8 + $0x220] sm:$0xff]  }
 0x258   : > { %6738 = vmatmul.mubr.bf16.gmra.mrb[12].mxu1 %v8906_v41  ;;  %v1034_v50 = vor.u32 %v1033_v54, %v1030_v18  ;;  %v5224_v43 = vshrl.u32 %v5175_v20, 16  ;;  %v5227_v14 = vshll.u32 %v5175_v20, 16  ;;  %v9090_v18 = vld [vmem:[#allocation2 + $0x40] sm:$0xff] }
 0x259   : > { %6754 = vmatpush3.bf16.msra.mxu1 %v7177_v53  ;;  %6757 = vmatprep.mubr.bf16.mxu1 %v4691_v29  ;;  %v882_v35 = vpop.permute.xlu1 %881  ;;  %v5128_v53 = vshrl.u32 %v6238_v63, 16  ;;  %v5131_v5 = vshll.u32 %v6238_v63, 16 }
 0x25a   : > { %6755 = vmatprep.subr.bf16.mxu1 %v7178_v56  ;;  %v1035_v41 = vsel %vm991_vm3, %v1025_v8, %v1034_v50  ;;  %v890_v21 = vrot.slane %v882_v35, %v7951_v13  ;;  %v5226_v48 = vrot.slane %v5224_v43, 4  ;;  %v5229_v30 = vrot.slane %v5227_v14, 5  ;;  %v5010_v43 = vpop.permute.xlu0 %5009 }
 0x25b   : > { %v1076_v59 = vmul.bf16 %v8928_v3, %v1035_v41  ;;  %v4582_v3 = vrot.slane %v8939_v7, %v7951_v13  ;;  %v5130_v15 = vrot.slane %v5128_v53, 3  ;;  %v6225_v14 = vcombine.low %v4604_v58, %v4604_v58  ;;  %v7243_v58 = vld [vmem:[#allocation2 + $0x30] sm:$0xff] }
 0x25c   : > { %v6109_v46 = vcombine.low %v890_v21, %v902_v1  ;;  %v9067_v2 = vor.u32 %v5229_v30, %v5226_v48 }
 0x25d   : > { %6756 = vmatpush3.bf16.msra.mxu1 %v7178_v56  ;;  %v1566_v25 = vshrl.u32 %v1076_v59, 16  ;;  %v1569_v60 = vshll.u32 %v1076_v59, 16  ;;  %v6224_v17 = vcombine.low %v4582_v3, %v4593_v0  ;;  %v5133_v56 = vrot.slane %v5131_v5, 4  ;;  %v7185_v5 = vld [vmem:[#allocation8 + $0x230] sm:$0xff]  }
 0x25e   : > { %6773 = vmatprep.subr.bf16.mxu1 %v7179_v19  ;;  %v1037_v27 = vshrl.u32 %v6109_v46, 16  ;;  %v1040_v23 = vshll.u32 %v6109_v46, 16  ;;  %v4988_v16 = vpop.permute.xlu1 %4987  ;;  %v9072_v8 = vsel %vm991_vm3, %v9015_v49, %v9067_v2  ;;  %v5018_v59 = vrot.slane %v5010_v43, %v7951_v13  ;;  %v942_v0 = vpop.permute.xlu0 %941 }
 0x25f   : > { %v1568_v62 = vrot.slane %v1566_v25, 3  ;;  %v1571_v28 = vrot.slane %v1569_v60, 4  ;;  %v4996_v55 = vrot.slane %v4988_v16, %v7951_v13  ;;  %v4662_v54 = vmul.bf16 %v9090_v18, %v6224_v17 }
 0x260   : > { %6758 = vmatmul.mubr.bf16.vlgmr.msra.gmra.mrb[0].mxu1 %v8872_v11  ;;  %v1039_v31 = vrot.slane %v1037_v27, 4  ;;  %v1042_v44 = vrot.slane %v1040_v23, 5  ;;  %v7184_v27 = vld [vmem:[#allocation8 + $0x228] sm:$0xff]   ;;  %v950_v53 = vrot.slane %v942_v0, %v7951_v13 }
 0x261   : > { %6774 = vmatpush3.bf16.msra.mxu1 %v7179_v19  ;;  %6761 = vmatprep.mubr.bf16.mxu1 %v8875_v34  ;;  %v1572_v49 = vor.u32 %v1571_v28, %v1568_v62  ;;  %v5134_v19 = vor.u32 %v5133_v56, %v5130_v15 }
 0x262   : > { %6775 = vmatprep.subr.bf16.mxu1 %v7180_v4  ;;  %v9081_v7 = vor.u32 %v1042_v44, %v1039_v31  ;;  %v4999_v33 = vpop.permute.xlu1 %4998 }
 0x263   : > { %v5007_v11 = vrot.slane %v4999_v33, %v7951_v13  ;;  %v1573_v39 = vsel %vm1529_vm2, %v9049_v37, %v1572_v49  ;;  %v914_v37 = vrot.slane %v906_v6, %v7951_v13  ;;  %v5135_v23 = vsel %vm1529_vm2, %v9047_v52, %v5134_v19 }
 0x264   : > { %v1044_v34 = vsel %vm991_vm3, %v1034_v50, %v9081_v7  ;;  %6570 = vmatmul.mubr.bf16.gmra.mrb[36].mxu0 %v1573_v39 }
 0x265   : > { %6776 = vmatpush3.bf16.msra.mxu1 %v7180_v4  ;;  %v6239_v12 = vcombine.low %v4996_v55, %v5007_v11  ;;  %v1077_v38 = vmul.bf16 %v7240_v32, %v1044_v34  ;;  %v7242_v4 = vld [vmem:[#allocation2 + $0x48] sm:$0xf] }
 0x266   : > { %6777 = vmatprep.subr.bf16.mxu1 %v7181_v36 }
 0x267   : > { %v1575_v20 = vshrl.u32 %v1077_v38, 16  ;;  %v1578_v29 = vshll.u32 %v1077_v38, 16  ;;  %v5137_v50 = vshrl.u32 %v6239_v12, 16  ;;  %v5140_v1 = vshll.u32 %v6239_v12, 16 }
 0x268   : > { %6762 = vmatmul.mubr.bf16.gmra.mrb[4].mxu1 %v8885_v47  ;;  %v918_v42 = vpop.permute.xlu1 %917  ;;  %v4702_v47 = vrot.slane %v4662_v54, 4 }
 0x269   : > { %6778 = vmatpush3.bf16.msra.mxu1 %v7181_v36  ;;  %6765 = vmatprep.mubr.bf16.mxu1 %v8925_v45  ;;  %v926_v9 = vrot.slane %v918_v42, %v7951_v13  ;;  %v1577_v35 = vrot.slane %v1575_v20, 3  ;;  %v1580_v41 = vrot.slane %v1578_v29, 4  ;;  %v5139_v48 = vrot.slane %v5137_v50, 3 }
 0x26a   : > { %6779 = vmatprep.subr.bf16.mxu1 %v7182_v10  ;;  %v5142_v30 = vrot.slane %v5140_v1, 4  ;;  %v4663_v45 = vmul.bf16 %v7242_v4, %v6225_v14  ;;  %v4703_v31 = vsel %vm1358_vm4, %v8948_v57, %v4702_v47 }
 0x26b   : > { %v6110_v21 = vcombine.low %v914_v37, %v926_v9  ;;  %v9098_v46 = vor.u32 %v1580_v41, %v1577_v35 }
 0x26c   : > { %v5143_v44 = vor.u32 %v5142_v30, %v5139_v48  ;;  %v4704_v36 = vrot.slane %v4663_v45, 4 }
 0x26d   : > { %6780 = vmatpush3.bf16.msra.mxu1 %v7182_v10  ;;  %v1046_v25 = vshrl.u32 %v6110_v21, 16  ;;  %v1049_v60 = vshll.u32 %v6110_v21, 16  ;;  %v5021_v63 = vpop.permute.xlu1 %5020  ;;  %v1582_v3 = vsel %vm1529_vm2, %v1572_v49, %v9098_v46  ;;  %v5176_v49 = vmul.bf16 %v7240_v32, %v5135_v23  ;;  %v7186_v32 = vld [vmem:[#allocation8 + $0x238] sm:$0xff]  }
 0x26e   : > { %6781 = vmatprep.subr.bf16.mxu1 %v7183_v26  ;;  %v5029_v16 = vrot.slane %v5021_v63, %v7951_v13  ;;  %6573 = vmatprep.mubr.bf16.mxu0 %v1582_v3  ;;  %v5144_v57 = vsel %vm1529_vm2, %v5134_v19, %v5143_v44  ;;  %v4705_v38 = vsel %vm1358_vm4, %v4702_v47, %v4704_v36 }
 0x26f   : > { %v1048_v62 = vrot.slane %v1046_v25, 4  ;;  %v1051_v28 = vrot.slane %v1049_v60, 5  ;;  %v5233_v15 = vshrl.u32 %v5176_v49, 16  ;;  %v5236_v20 = vshll.u32 %v5176_v49, 16  ;;  %v4875_v49 = vld [vmem:[#allocation2 + $0x48] sm:$0x1f] }
 0x270   : > { %6766 = vmatmul.mubr.bf16.gmra.mrb[8].mxu1 %v8956_v61  ;;  %v6240_v55 = vcombine.low %v5018_v59, %v5029_v16  ;;  %v5177_v1 = vmul.bf16 %v7243_v58, %v5144_v57 }
 0x271   : > { %6782 = vmatpush3.bf16.msra.mxu1 %v7183_v26  ;;  %6769 = vmatprep.mubr.bf16.mxu1 %v4703_v31  ;;  %v1052_v52 = vor.u32 %v1051_v28, %v1048_v62  ;;  %v5235_v26 = vrot.slane %v5233_v15, 4  ;;  %v5238_v47 = vrot.slane %v5236_v20, 5 }
 0x272   : > { %6783 = vmatprep.subr.bf16.mxu1 %v7184_v27  ;;  %v5146_v33 = vshrl.u32 %v6240_v55, 16  ;;  %v5149_v6 = vshll.u32 %v6240_v55, 16  ;;  %v930_v17 = vpop.permute.xlu1 %929  ;;  %v5242_v30 = vshrl.u32 %v5177_v1, 16  ;;  %v5245_v59 = vshll.u32 %v5177_v1, 16 }
 0x273   : > { %v1053_v61 = vsel %vm991_vm3, %v9081_v7, %v1052_v52  ;;  %v938_v11 = vrot.slane %v930_v17, %v7951_v13  ;;  %v5239_v23 = vor.u32 %v5238_v47, %v5235_v26  ;;  %v7192_v26 = vld [vmem:[#allocation9 + $0x14] ss:$8 sps:$4 sm:$0xff]  }
 0x274   : > { %v5148_v39 = vrot.slane %v5146_v33, 3  ;;  %v5151_v34 = vrot.slane %v5149_v6, 4  ;;  %v1078_v12 = vmul.bf16 %v7243_v58, %v1053_v61  ;;  %v5247_v0 = vrot.slane %v5245_v59, 5  ;;  %v7198_v47 = vld [vmem:[#allocation9 + $0x34] ss:$8 sps:$4 sm:$0xff]  }
 0x275   : > { %6784 = vmatpush3.bf16.msra.mxu1 %v7184_v27  ;;  %v6111_v10 = vcombine.low %v938_v11, %v950_v53  ;;  %v5240_v61 = vsel %vm991_vm3, %v9067_v2, %v5239_v23  ;;  %v9133_v2 = vld [vmem:[#allocation2] sm:$0xff] }
 0x276   : > { %6785 = vmatprep.subr.bf16.mxu1 %v7185_v5  ;;  %v5152_v56 = vor.u32 %v5151_v34, %v5148_v39  ;;  %v1584_v54 = vshrl.u32 %v1078_v12, 16  ;;  %v1587_v37 = vshll.u32 %v1078_v12, 16  ;;  %v7202_v59 = vld [vmem:[#allocation9 + $0x50] ss:$8 sps:$4 sm:$0xff]  }
 0x277   : > { %v1055_v7 = vshrl.u32 %v6111_v10, 16  ;;  %v1058_v29 = vshll.u32 %v6111_v10, 16  ;;  %v5032_v50 = vpop.permute.xlu1 %5031 }
 0x278   : > { %6770 = vmatmul.mubr.bf16.gmra.mrb[12].mxu1 %v4705_v38  ;;  %v1586_v42 = vrot.slane %v1584_v54, 3  ;;  %v1589_v43 = vrot.slane %v1587_v37, 4  ;;  %v5153_v35 = vsel %vm1529_vm2, %v5143_v44, %v5152_v56  ;;  %v5040_v19 = vrot.slane %v5032_v50, %v7951_v13 }
 0x279   : > { %6786 = vmatpush3.bf16.msra.mxu1 %v7185_v5  ;;  %6789 = vmatprep.mubr.bf16.mxu1 %v8995_v22  ;;  %v1057_v14 = vrot.slane %v1055_v7, 4  ;;  %v1060_v9 = vrot.slane %v1058_v29, 5  ;;  %v5178_v60 = vmul.bf16 %v9002_v40, %v5153_v35  ;;  %v7190_v35 = vld [vmem:[#allocation9 + $0x10] ss:$8 sps:$4 sm:$0xff]  }
 0x27a   : > { %6787 = vmatprep.subr.bf16.mxu1 %v7186_v32  ;;  %v1590_v41 = vor.u32 %v1589_v43, %v1586_v42 }
 0x27b   : > { %v1061_v21 = vor.u32 %v1060_v9, %v1057_v14  ;;  %v5251_v55 = vshrl.u32 %v5178_v60, 16  ;;  %v5254_v36 = vshll.u32 %v5178_v60, 16  ;;  %v7187_v14 = vld [vmem:[#allocation9] ss:$8 sps:$4 sm:$0xff]   ;;  %v7189_v9 = vld [vmem:[#allocation9 + $0x4] ss:$8 sps:$4 sm:$0xff]  }
 0x27c   : > { %v5043_v48 = vpop.permute.xlu1 %5042  ;;  %v1591_v22 = vsel %vm1529_vm2, %v9098_v46, %v1590_v41  ;;  %5601 = vmatprep.subr.bf16.mxu0 %v7189_v9  ;;  %v7208_v60 = vld [vmem:[#allocation9 + $0x70] ss:$8 sps:$4 sm:$0xff]  }
 0x27d   : > { %v5051_v4 = vrot.slane %v5043_v48, %v7951_v13  ;;  %6788 = vmatpush3.bf16.msra.mxu1 %v7186_v32  ;;  %v1062_v45 = vsel %vm991_vm3, %v1052_v52, %v1061_v21  ;;  %v1080_v25 = vmul.bf16 %v1061_v21, %v9024_v51  ;;  %6574 = vmatmul.mubr.bf16.gmra.mrb[40].mxu0 %v1591_v22  ;;  %v5244_v13 = vrot.slane %v5242_v30, 4  ;;  %v7196_v21 = vld [vmem:[#allocation9 + $0x30] ss:$8 sps:$4 sm:$0xff]   ;;  %v7201_v48 = vld [vmem:[#allocation9 + $0x44] ss:$8 sps:$4 sm:$0xff]  }
 0x27e   : > { %v1079_v27 = vmul.bf16 %v9002_v40, %v1062_v45  ;;  %v5253_v11 = vrot.slane %v5251_v55, 4  ;;  %5602 = vmatpush1.bf16.msra.mxu0 %v7187_v14  ;;  %v7199_v30 = vld [vmem:[#allocation9 + $0x40] ss:$8 sps:$4 sm:$0xff]   ;;  %v7207_v45 = vld [vmem:[#allocation9 + $0x64] ss:$8 sps:$4 sm:$0xff]  }
 0x27f   : > { %v6241_v63 = vcombine.low %v5040_v19, %v5051_v4  ;;  %v1602_v16 = vshrl.u32 %v1080_v25, 16  ;;  %v1605_v3 = vshll.u32 %v1080_v25, 16  ;;  %v5248_v33 = vor.u32 %v5247_v0, %v5244_v13  ;;  %5603 = vmatprep.subr.bf16.mxu0 %v7192_v26  ;;  %v7195_v19 = vld [vmem:[#allocation9 + $0x24] ss:$8 sps:$4 sm:$0xff]   ;;  %v7204_v4 = vld [vmem:[#allocation9 + $0x54] ss:$8 sps:$4 sm:$0xff]  }
 0x280   : > { %6790 = vmatmul.mubr.bf16.vlgmr.msra.gmra.mrb[0].mxu1 %v9021_v24  ;;  %v1593_v46 = vshrl.u32 %v1079_v27, 16  ;;  %v1596_v31 = vshll.u32 %v1079_v27, 16  ;;  %v7205_v22 = vld [vmem:[#allocation9 + $0x60] ss:$8 sps:$4 sm:$0xff]   ;;  %v7210_v25 = vld [vmem:[#allocation9 + $0x74] ss:$8 sps:$4 sm:$0xff]  }
 0x281   : > { %v5155_v62 = vshrl.u32 %v6241_v63, 16  ;;  %v5158_v28 = vshll.u32 %v6241_v63, 16  ;;  %6793 = vmatprep.mubr.bf16.mxu1 %v9072_v8  ;;  %v1604_v51 = vrot.slane %v1602_v16, 3  ;;  %v1607_v44 = vrot.slane %v1605_v3, 4 }
 0x282   : > { %v1595_v40 = vrot.slane %v1593_v46, 3  ;;  %v1598_v5 = vrot.slane %v1596_v31, 4  ;;  %v5256_v8 = vrot.slane %v5254_v36, 5  ;;  %v5249_v12 = vsel %vm991_vm3, %v5239_v23, %v5248_v33  ;;  %5604 = vmatpush1.bf16.msra.mxu0 %v7190_v35 }
 0x283   : > { %v5157_v52 = vrot.slane %v5155_v62, 3  ;;  %v5160_v53 = vrot.slane %v5158_v28, 4  ;;  %v1608_v24 = vor.u32 %v1607_v44, %v1604_v51  ;;  %5605 = vmatprep.subr.bf16.mxu0 %v7195_v19  ;;  %v9142_v44 = vld [vmem:[%s9300_s5] ss:$0 sm:$0xff] }
 0x284   : > { %v1599_v17 = vor.u32 %v1598_v5, %v1595_v40  ;;  %v5257_v15 = vor.u32 %v5256_v8, %v5253_v11 }
 0x285   : > { %v5161_v6 = vor.u32 %v5160_v53, %v5157_v52 }
 0x286   : > { %v1600_v34 = vsel %vm1529_vm2, %v1590_v41, %v1599_v17  ;;  %v1609_v58 = vsel %vm1529_vm2, %v1599_v17, %v1608_v24  ;;  %v5258_v29 = vsel %vm991_vm3, %v5248_v33, %v5257_v15  ;;  %v7193_v41 = vld [vmem:[#allocation9 + $0x20] ss:$8 sps:$4 sm:$0xff]  }
 0x287   : > { %v5162_v57 = vsel %vm1529_vm2, %v5152_v56, %v5161_v6  ;;  %v5180_v39 = vmul.bf16 %v5161_v6, %v4875_v49  ;;  %6577 = vmatprep.mubr.bf16.mxu0 %v1600_v34  ;;  %5606 = vmatpush1.bf16.msra.mxu0 %v7193_v41 }
 0x288   : > { %6794 = vmatmul.mubr.bf16.gmra.mrb[4].mxu1 %v5240_v61  ;;  %v5179_v10 = vmul.bf16 %v9090_v18, %v5162_v57  ;;  %6578 = vmatmul.mubr.bf16.gmra.mrb[44].mxu0 %v1609_v58 }
 0x289   : > { %6797 = vmatprep.mubr.bf16.mxu1 %v5249_v12  ;;  %5633 = vmatprep.mubr.bf16.mxu0 %v9133_v2  ;;  %v5269_v56 = vshrl.u32 %v5180_v39, 16  ;;  %v5272_v54 = vshll.u32 %v5180_v39, 16 }
 0x28a   : > { %v5260_v38 = vshrl.u32 %v5179_v10, 16  ;;  %v5263_v32 = vshll.u32 %v5179_v10, 16  ;;  %5607 = vmatprep.subr.bf16.mxu0 %v7198_v47 }
 0x28b   : > { %v5271_v50 = vrot.slane %v5269_v56, 4  ;;  %v5274_v1 = vrot.slane %v5272_v54, 5  ;;  %5608 = vmatpush1.bf16.msra.mxu0 %v7196_v21 }
 0x28c   : > { %v5262_v37 = vrot.slane %v5260_v38, 4  ;;  %v5265_v20 = vrot.slane %v5263_v32, 5  ;;  %5609 = vmatprep.subr.bf16.mxu0 %v7201_v48 }
 0x28d   : > { %v5275_v42 = vor.u32 %v5274_v1, %v5271_v50 }
 0x28e   : > { %v5266_v7 = vor.u32 %v5265_v20, %v5262_v37 }
 0x28f   : > { %5610 = vmatpush1.bf16.msra.mxu0 %v7199_v30 }
 0x290   : > { %6798 = vmatmul.mubr.bf16.gmra.mrb[8].mxu1 %v5258_v29  ;;  %v5267_v18 = vsel %vm991_vm3, %v5257_v15, %v5266_v7  ;;  %v5276_v43 = vsel %vm991_vm3, %v5266_v7, %v5275_v42  ;;  %5611 = vmatprep.subr.bf16.mxu0 %v7204_v4 }
 0x291   : > { %6801 = vmatprep.mubr.bf16.mxu1 %v5267_v18 }
 0x293   : > { %5612 = vmatpush1.bf16.msra.mxu0 %v7202_v59 }
 0x294   : > { %5613 = vmatprep.subr.bf16.mxu0 %v7207_v45 }
 0x297   : > { %5614 = vmatpush1.bf16.msra.mxu0 %v7205_v22 }
 0x298   : > { %6802 = vmatmul.mubr.bf16.gmra.mrb[12].mxu1 %v5276_v43  ;;  %5615 = vmatprep.subr.bf16.mxu0 %v7210_v25 }
 0x29b   : > { %5616 = vmatpush1.bf16.msra.mxu0 %v7208_v60 }
 0x321   : > { %v6567_v63 = vpop.f32.mrb[32].mxu0 }
 0x322   : > { %v1700_v27 = vpop.f32.mrb[33].mxu0 }
 0x323   : > { %v6568_v23 = vpop.f32.mrb[34].mxu0 }
 0x324   : > { %v1703_v16 = vpop.f32.mrb[35].mxu0 }
 0x337   : > { %v6571_v3 = vpop.f32.mrb[36].mxu0 }
 0x338   : > { %v1716_v13 = vpop.f32.mrb[37].mxu0 }
 0x339   : > { %v6572_v0 = vpop.f32.mrb[38].mxu0 }
 0x33a   : > { %v1719_v62 = vpop.f32.mrb[39].mxu0 }
 0x350   : > { %v6575_v28 = vpop.f32.mrb[40].mxu0 }
 0x351   : > { %v1732_v46 = vpop.f32.mrb[41].mxu0 }
 0x352   : > { %v6576_v31 = vpop.f32.mrb[42].mxu0 }
 0x353   : > { %v6791_v51 = vpop.f32.mrb[0].mxu1  ;;  %v1735_v36 = vpop.f32.mrb[43].mxu0 }
 0x354   : > { %v6805_v55 = vadd.f32 %v6791_v51, %v6567_v63  ;;  %v5367_v52 = vpop.f32.mrb[1].mxu1 }
 0x355   : > { %v6806_v53 = vadd.f32 %v5367_v52, %v1700_v27  ;;  %v6792_v40 = vpop.f32.mrb[2].mxu1 }
 0x356   : > { %v5455_v5 = vadd.f32 %v6805_v55, %v9142_v44  ;;  %v6807_v49 = vadd.f32 %v6792_v40, %v6568_v23  ;;  %v5370_v24 = vpop.f32.mrb[3].mxu1 }
 0x357   : > { %v5453_v33 = vadd.f32 %v6806_v53, %v9142_v44  ;;  %v6808_v6 = vadd.f32 %v5370_v24, %v1703_v16 }
 0x358   : > { %v5456_v17 = vadd.f32 %v6807_v49, %v9142_v44  ;;  %v5471_v11 = vmax.f32 %v5455_v5, 0.0 }
 0x359   : > { %v5454_v61 = vadd.f32 %v6808_v6, %v9142_v44  ;;  %v5469_v57 = vmax.f32 %v5453_v33, 0.0 }
 0x35a   : > { %v5472_v8 = vmax.f32 %v5456_v17, 0.0 }
 0x35b   : > { %v5470_v39 = vmax.f32 %v5454_v61, 0.0  ;;  %v6795_v34 = vpop.f32.mrb[4].mxu1  ;;  %v6579_v12 = vpop.f32.mrb[44].mxu0 }
 0x35c   : > { %v6809_v58 = vadd.f32 %v6795_v34, %v6571_v3  ;;  %v5383_v10 = vpop.f32.mrb[5].mxu1  ;;  %v5486_v38 = vpack.c.bf16 %v5472_v8, %v5471_v11  ;;  %v1748_v56 = vpop.f32.mrb[45].mxu0 }
 0x35d   : > { %v5485_v32 = vpack.c.bf16 %v5470_v39, %v5469_v57  ;;  %v6810_v15 = vadd.f32 %v5383_v10, %v1716_v13  ;;  %v6796_v54 = vpop.f32.mrb[6].mxu1  ;;  %v6580_v7 = vpop.f32.mrb[46].mxu0  ;;  %v5509_v39 = vld [vmem:[%s9301_s6] sm:$0x3] }
 0x35e   : > { %v5459_v37 = vadd.f32 %v6809_v58, %v9142_v44  ;;  %v6811_v20 = vadd.f32 %v6796_v54, %v6572_v0  ;;  %v5386_v29 = vpop.f32.mrb[7].mxu1  ;;  %v1751_v18 = vpop.f32.mrb[47].mxu0  ;;  %v5714_v58 = vld [vmem:[%s7706_s21] sm:$0xff] }
 0x35f   : > { %v5457_v50 = vadd.f32 %v6810_v15, %v9142_v44  ;;  %v6812_v1 = vadd.f32 %v5386_v29, %v1719_v62  ;;  %5634 = vmatmul.mubr.bf16.vlgmr.msra.gmra.mrb[48].mxu0 %v5485_v32  ;;  %v5730_v32 = vunpack.c.l.bf16 %v5714_v58 }
 0x360   : > { %v5460_v42 = vadd.f32 %v6811_v20, %v9142_v44  ;;  %5643 = vmatprep.mubr.bf16.mxu0 %v9133_v2  ;;  %v5475_v14 = vmax.f32 %v5459_v37, 0.0 }
 0x361   : > { %v5458_v43 = vadd.f32 %v6812_v1, %v9142_v44  ;;  %v5473_v26 = vmax.f32 %v5457_v50, 0.0 }
 0x362   : > { %v5476_v9 = vmax.f32 %v5460_v42, 0.0 }
 0x363   : > { %v5474_v35 = vmax.f32 %v5458_v43, 0.0  ;;  %v6799_v19 = vpop.f32.mrb[8].mxu1 }
 0x364   : > { %v6813_v41 = vadd.f32 %v6799_v19, %v6575_v28  ;;  %v5399_v47 = vpop.f32.mrb[9].mxu1  ;;  %v5488_v21 = vpack.c.bf16 %v5476_v9, %v5475_v14  ;;  %v5716_v14 = vld [vmem:[%s7706_s21 + $0x10] sm:$0xff] }
 0x365   : > { %v6814_v48 = vadd.f32 %v5399_v47, %v1732_v46  ;;  %v6800_v30 = vpop.f32.mrb[10].mxu1  ;;  %v5487_v59 = vpack.c.bf16 %v5474_v35, %v5473_v26 }
 0x366   : > { %v5463_v4 = vadd.f32 %v6813_v41, %v9142_v44  ;;  %v6815_v22 = vadd.f32 %v6800_v30, %v6576_v31  ;;  %v5402_v45 = vpop.f32.mrb[11].mxu1  ;;  %v5717_v41 = vld [vmem:[%s7706_s21 + $0x18] sm:$0xff] }
 0x367   : > { %v5461_v25 = vadd.f32 %v6814_v48, %v9142_v44  ;;  %v6816_v60 = vadd.f32 %v5402_v45, %v1735_v36  ;;  %5644 = vmatmul.mubr.bf16.gmra.mrb[52].mxu0 %v5486_v38  ;;  %v5715_v38 = vld [vmem:[%s7706_s21 + $0x8] sm:$0xff] }
 0x368   : > { %v5464_v63 = vadd.f32 %v6815_v22, %v9142_v44  ;;  %5653 = vmatprep.mubr.bf16.mxu0 %v9133_v2  ;;  %v5479_v23 = vmax.f32 %v5463_v4, 0.0  ;;  %v5732_v37 = vunpack.c.l.bf16 %v5715_v38  ;;  %v5733_v29 = vunpack.c.h.bf16 %v5715_v38 }
 0x369   : > { %v5462_v27 = vadd.f32 %v6816_v60, %v9142_v44  ;;  %v5477_v3 = vmax.f32 %v5461_v25, 0.0  ;;  %v5735_v4 = vunpack.c.h.bf16 %v5716_v14  ;;  %v5736_v25 = vunpack.c.l.bf16 %v5717_v41 }
 0x36a   : > { %v5480_v16 = vmax.f32 %v5464_v63, 0.0 }
 0x36b   : > { %v5478_v13 = vmax.f32 %v5462_v27, 0.0  ;;  %v6803_v0 = vpop.f32.mrb[12].mxu1 }
 0x36c   : > { %v6817_v62 = vadd.f32 %v6803_v0, %v6579_v12  ;;  %v5415_v28 = vpop.f32.mrb[13].mxu1  ;;  %v5490_v46 = vpack.c.bf16 %v5480_v16, %v5479_v23  ;;  %v5737_v23 = vunpack.c.h.bf16 %v5717_v41 }
 0x36d   : > { %v6818_v31 = vadd.f32 %v5415_v28, %v1748_v56  ;;  %v6804_v51 = vpop.f32.mrb[14].mxu1  ;;  %v5489_v55 = vpack.c.bf16 %v5478_v13, %v5477_v3  ;;  %v5731_v56 = vunpack.c.h.bf16 %v5714_v58  ;;  %v5718_v28 = vld [vmem:[%s7706_s21 + $0x20] sm:$0xff] }
 0x36e   : > { %v5467_v36 = vadd.f32 %v6817_v62, %v9142_v44  ;;  %v6819_v52 = vadd.f32 %v6804_v51, %v6580_v7  ;;  %v5418_v53 = vpop.f32.mrb[15].mxu1 }
 0x36f   : > { %v5465_v40 = vadd.f32 %v6818_v31, %v9142_v44  ;;  %v6820_v5 = vadd.f32 %v5418_v53, %v1751_v18  ;;  %5654 = vmatmul.mubr.bf16.gmra.mrb[56].mxu0 %v5487_v59  ;;  %v5738_v53 = vunpack.c.l.bf16 %v5718_v28 }
 0x370   : > { %v5468_v49 = vadd.f32 %v6819_v52, %v9142_v44  ;;  %5663 = vmatprep.mubr.bf16.mxu0 %v9133_v2  ;;  %v5483_v33 = vmax.f32 %v5467_v36, 0.0  ;;  %v5719_v36 = vld [vmem:[%s7706_s21 + $0x28] sm:$0xff] }
 0x371   : > { %v5466_v24 = vadd.f32 %v6820_v5, %v9142_v44  ;;  %v5481_v17 = vmax.f32 %v5465_v40, 0.0  ;;  %v9427_v44 = vld [vmem:[#allocation18_spill] sm:$0xff] }
 0x372   : > { %v5484_v6 = vmax.f32 %v5468_v49, 0.0  ;;  %v5513_v57 = vsub.s32 0, %v9427_v44  ;;  %v5517_v34 = vsub.s32 1, %v9427_v44  ;;  %v5741_v44 = vunpack.c.h.bf16 %v5719_v36 }
 0x373   : > { %v5482_v61 = vmax.f32 %v5466_v24, 0.0  ;;  %v5739_v24 = vunpack.c.h.bf16 %v5718_v28 }
 0x374   : > { %v5492_v11 = vpack.c.bf16 %v5484_v6, %v5483_v33  ;;  %v9173_v12 = vrot.slane %v5509_v39, %v5513_v57  ;;  %v9175_v10 = vrot.slane %v5509_v39, %v5517_v34 }
 0x375   : > { %v5491_v8 = vpack.c.bf16 %v5482_v61, %v5481_v17  ;;  %v5740_v17 = vunpack.c.l.bf16 %v5719_v36 }
 0x377   : > { %5664 = vmatmul.mubr.bf16.gmra.mrb[60].mxu0 %v5488_v21  ;;  %v5734_v21 = vunpack.c.l.bf16 %v5716_v14 }
 0x378   : > { %5673 = vmatprep.mubr.bf16.mxu0 %v9133_v2 }
 0x37f   : > { %5674 = vmatmul.mubr.bf16.gmra.mrb[64].mxu0 %v5489_v55 }
 0x380   : > { %5683 = vmatprep.mubr.bf16.mxu0 %v9133_v2 }
 0x387   : > { %5684 = vmatmul.mubr.bf16.gmra.mrb[68].mxu0 %v5490_v46 }
 0x388   : > { %5693 = vmatprep.mubr.bf16.mxu0 %v9133_v2 }
 0x38f   : > { %5694 = vmatmul.mubr.bf16.gmra.mrb[72].mxu0 %v5491_v8 }
 0x390   : > { %5703 = vmatprep.mubr.bf16.mxu0 %v9133_v2 }
 0x397   : > { %5704 = vmatmul.mubr.bf16.gmra.mrb[76].mxu0 %v5492_v11 }
 0x432   : > { %v5635_v15 = vpop.f32.mrb[48].mxu0 }
 0x433   : > { %v5636_v2 = vadd.f32 %v5635_v15, %v9173_v12  ;;  %v5637_v54 = vpop.f32.mrb[49].mxu0 }
 0x434   : > { %v5638_v20 = vadd.f32 %v5637_v54, %v9175_v10  ;;  %v5639_v7 = vpop.f32.mrb[50].mxu0 }
 0x435   : > { %v5762_v50 = vadd.f32 %v5730_v32, %v5636_v2  ;;  %v5640_v1 = vadd.f32 %v5639_v7, %v9173_v12  ;;  %v5641_v18 = vpop.f32.mrb[51].mxu0  ;;  %v5720_v32 = vld [vmem:[%s7706_s21 + $0x30] sm:$0xff] }
 0x436   : > { %v5763_v42 = vadd.f32 %v5731_v56, %v5638_v20  ;;  %v5642_v43 = vadd.f32 %v5641_v18, %v9175_v10  ;;  %v5742_v7 = vunpack.c.l.bf16 %v5720_v32  ;;  %v5743_v18 = vunpack.c.h.bf16 %v5720_v32 }
 0x437   : > { %v5794_v9 = vmax.f32 %v5762_v50, 0.0  ;;  %v5764_v26 = vadd.f32 %v5732_v37, %v5640_v1  ;;  %v5721_v37 = vld [vmem:[%s7706_s21 + $0x38] sm:$0xff] }
 0x438   : > { %v5795_v35 = vmax.f32 %v5763_v42, 0.0  ;;  %v5765_v19 = vadd.f32 %v5733_v29, %v5642_v43  ;;  %v5744_v14 = vunpack.c.l.bf16 %v5721_v37 }
 0x439   : > { %v5796_v47 = vmax.f32 %v5764_v26, 0.0 }
 0x43a   : > { %v6291_v48 = vpack.c.bf16 %v5795_v35, %v5794_v9  ;;  %v5797_v30 = vmax.f32 %v5765_v19, 0.0  ;;  %v5645_v59 = vpop.f32.mrb[52].mxu0  ;;  %v5745_v19 = vunpack.c.h.bf16 %v5721_v37 }
 0x43b   : > { %v5646_v22 = vadd.f32 %v5645_v59, %v9173_v12  ;;  %v5647_v45 = vpop.f32.mrb[53].mxu0  ;;  %v5722_v59 = vld [vmem:[%s7706_s21 + $0x40] sm:$0xff] }
 0x43c   : > { %5922 = vst [vmem:[%s9187_s14] sm:$0xff] %v6291_v48  ;;  %v6292_v60 = vpack.c.bf16 %v5797_v30, %v5796_v47  ;;  %v5648_v63 = vadd.f32 %v5647_v45, %v9175_v10  ;;  %v5649_v27 = vpop.f32.mrb[54].mxu0 }
 0x43d   : > { %v5766_v16 = vadd.f32 %v5734_v21, %v5646_v22  ;;  %v5650_v3 = vadd.f32 %v5649_v27, %v9173_v12  ;;  %v5651_v13 = vpop.f32.mrb[55].mxu0  ;;  %v5746_v27 = vunpack.c.l.bf16 %v5722_v59 }
 0x43e   : > { %5923 = vst [vmem:[%s9187_s14 + $0x8] sm:$0xff] %v6292_v60  ;;  %v5767_v0 = vadd.f32 %v5735_v4, %v5648_v63  ;;  %v5652_v62 = vadd.f32 %v5651_v13, %v9175_v10  ;;  %v5723_v60 = vld [vmem:[%s7706_s21 + $0x48] sm:$0xff]  ;;  %v5747_v13 = vunpack.c.h.bf16 %v5722_v59 }
 0x43f   : > { %v5798_v46 = vmax.f32 %v5766_v16, 0.0  ;;  %v5768_v31 = vadd.f32 %v5736_v25, %v5650_v3  ;;  %v5748_v28 = vunpack.c.l.bf16 %v5723_v60 }
 0x440   : > { %v5799_v51 = vmax.f32 %v5767_v0, 0.0  ;;  %v5769_v55 = vadd.f32 %v5737_v23, %v5652_v62 }
 0x441   : > { %v5800_v52 = vmax.f32 %v5768_v31, 0.0 }
 0x442   : > { %v6293_v40 = vpack.c.bf16 %v5799_v51, %v5798_v46  ;;  %v5801_v5 = vmax.f32 %v5769_v55, 0.0  ;;  %v5655_v49 = vpop.f32.mrb[56].mxu0  ;;  %v5749_v55 = vunpack.c.h.bf16 %v5723_v60 }
 0x443   : > { %v5656_v33 = vadd.f32 %v5655_v49, %v9173_v12  ;;  %v5657_v6 = vpop.f32.mrb[57].mxu0  ;;  %v5724_v49 = vld [vmem:[%s7706_s21 + $0x50] sm:$0xff] }
 0x444   : > { %5924 = vst [vmem:[%s9187_s14 + $0x10] sm:$0xff] %v6293_v40  ;;  %v6294_v61 = vpack.c.bf16 %v5801_v5, %v5800_v52  ;;  %v5658_v11 = vadd.f32 %v5657_v6, %v9175_v10  ;;  %v5659_v8 = vpop.f32.mrb[58].mxu0 }
 0x445   : > { %v5770_v57 = vadd.f32 %v5738_v53, %v5656_v33  ;;  %v5660_v39 = vadd.f32 %v5659_v8, %v9173_v12  ;;  %v5661_v34 = vpop.f32.mrb[59].mxu0  ;;  %v5750_v8 = vunpack.c.l.bf16 %v5724_v49 }
 0x446   : > { %5925 = vst [vmem:[%s9187_s14 + $0x18] sm:$0xff] %v6294_v61  ;;  %v5771_v58 = vadd.f32 %v5739_v24, %v5658_v11  ;;  %v5662_v38 = vadd.f32 %v5661_v34, %v9175_v10  ;;  %v5725_v61 = vld [vmem:[%s7706_s21 + $0x58] sm:$0xff]  ;;  %v5751_v34 = vunpack.c.h.bf16 %v5724_v49 }
 0x447   : > { %v5802_v15 = vmax.f32 %v5770_v57, 0.0  ;;  %v5772_v56 = vadd.f32 %v5740_v17, %v5660_v39  ;;  %v5752_v32 = vunpack.c.l.bf16 %v5725_v61 }
 0x448   : > { %v5803_v2 = vmax.f32 %v5771_v58, 0.0  ;;  %v5773_v54 = vadd.f32 %v5741_v44, %v5662_v38 }
 0x449   : > { %v5804_v20 = vmax.f32 %v5772_v56, 0.0 }
 0x44a   : > { %v6295_v29 = vpack.c.bf16 %v5803_v2, %v5802_v15  ;;  %v5805_v50 = vmax.f32 %v5773_v54, 0.0  ;;  %v5665_v1 = vpop.f32.mrb[60].mxu0  ;;  %v5753_v54 = vunpack.c.h.bf16 %v5725_v61 }
 0x44b   : > { %v5666_v42 = vadd.f32 %v5665_v1, %v9173_v12  ;;  %v5667_v43 = vpop.f32.mrb[61].mxu0  ;;  %v5726_v1 = vld [vmem:[%s7706_s21 + $0x60] sm:$0xff] }
 0x44c   : > { %5926 = vst [vmem:[%s9187_s14 + $0x20] sm:$0xff] %v6295_v29  ;;  %v6296_v9 = vpack.c.bf16 %v5805_v50, %v5804_v20  ;;  %v5668_v26 = vadd.f32 %v5667_v43, %v9175_v10  ;;  %v5669_v35 = vpop.f32.mrb[62].mxu0 }
 0x44d   : > { %v5774_v41 = vadd.f32 %v5742_v7, %v5666_v42  ;;  %v5670_v47 = vadd.f32 %v5669_v35, %v9173_v12  ;;  %v5671_v21 = vpop.f32.mrb[63].mxu0  ;;  %v5754_v35 = vunpack.c.l.bf16 %v5726_v1 }
 0x44e   : > { %5927 = vst [vmem:[%s9187_s14 + $0x28] sm:$0xff] %v6296_v9  ;;  %v5775_v48 = vadd.f32 %v5743_v18, %v5668_v26  ;;  %v5672_v30 = vadd.f32 %v5671_v21, %v9175_v10  ;;  %v5727_v9 = vld [vmem:[%s7706_s21 + $0x68] sm:$0xff]  ;;  %v5755_v21 = vunpack.c.h.bf16 %v5726_v1 }
 0x44f   : > { %v5806_v4 = vmax.f32 %v5774_v41, 0.0  ;;  %v5776_v22 = vadd.f32 %v5744_v14, %v5670_v47  ;;  %v5756_v59 = vunpack.c.l.bf16 %v5727_v9 }
 0x450   : > { %v5807_v45 = vmax.f32 %v5775_v48, 0.0  ;;  %v5777_v25 = vadd.f32 %v5745_v19, %v5672_v30 }
 0x451   : > { %v5808_v63 = vmax.f32 %v5776_v22, 0.0 }
 0x452   : > { %v6297_v23 = vpack.c.bf16 %v5807_v45, %v5806_v4  ;;  %v5809_v16 = vmax.f32 %v5777_v25, 0.0  ;;  %v5675_v3 = vpop.f32.mrb[64].mxu0  ;;  %v5757_v25 = vunpack.c.h.bf16 %v5727_v9 }
 0x453   : > { %v5676_v0 = vadd.f32 %v5675_v3, %v9173_v12  ;;  %v5677_v62 = vpop.f32.mrb[65].mxu0  ;;  %v5728_v3 = vld [vmem:[%s7706_s21 + $0x70] sm:$0xff] }
 0x454   : > { %5928 = vst [vmem:[%s9187_s14 + $0x30] sm:$0xff] %v6297_v23  ;;  %v6298_v46 = vpack.c.bf16 %v5809_v16, %v5808_v63  ;;  %v5678_v31 = vadd.f32 %v5677_v62, %v9175_v10  ;;  %v5679_v51 = vpop.f32.mrb[66].mxu0 }
 0x455   : > { %v5778_v36 = vadd.f32 %v5746_v27, %v5676_v0  ;;  %v5680_v52 = vadd.f32 %v5679_v51, %v9173_v12  ;;  %v5681_v53 = vpop.f32.mrb[67].mxu0  ;;  %v5758_v51 = vunpack.c.l.bf16 %v5728_v3 }
 0x456   : > { %5929 = vst [vmem:[%s9187_s14 + $0x38] sm:$0xff] %v6298_v46  ;;  %v5779_v40 = vadd.f32 %v5747_v13, %v5678_v31  ;;  %v5682_v5 = vadd.f32 %v5681_v53, %v9175_v10  ;;  %v5729_v46 = vld [vmem:[%s7706_s21 + $0x78] sm:$0xff]  ;;  %v5759_v53 = vunpack.c.h.bf16 %v5728_v3  ;;  %s5953_s21 = sshll.u32 %s9187_s14, 4  ;;  %s9249_s21 = int_to_ptr.vmem [resolvable:$true] %s5953_s21 }
 0x457   : > { %v5810_v24 = vmax.f32 %v5778_v36, 0.0  ;;  %v5780_v33 = vadd.f32 %v5748_v28, %v5680_v52  ;;  %v5760_v49 = vunpack.c.l.bf16 %v5729_v46  ;;  %s7359_s26 = scalar_lea.vmem %s9249_s21, 2048  ;;  %p7366_p12 = scmp.lt.s32.totalorder %s9249_s21, %s7364_s17 }
 0x458   : > { %v5811_v6 = vmax.f32 %v5779_v40, 0.0  ;;  %v5781_v17 = vadd.f32 %v5749_v55, %v5682_v5  ;;  %p7360_p10 = scmp.ne.s32.totalorder %s9249_s21, %s7359_s26  ;;  %p7367_p2 = scmp.lt.s32.totalorder %s7365_s19, %s7359_s26 }
 0x459   : > { %v5812_v11 = vmax.f32 %v5780_v33, 0.0 }
 0x45a   : > { %v6299_v44 = vpack.c.bf16 %v5811_v6, %v5810_v24  ;;  %v5813_v57 = vmax.f32 %v5781_v17, 0.0  ;;  %v5685_v39 = vpop.f32.mrb[68].mxu0  ;;  %v5761_v17 = vunpack.c.h.bf16 %v5729_v46  ;;  %p7361_p3 = pnand %p7360_p10, %p7649_p5  ;;  %p7368_p1 = por %p7367_p2, %p7366_p12 }
 0x45b   : > { %v5686_v58 = vadd.f32 %v5685_v39, %v9173_v12  ;;  %v5687_v38 = vpop.f32.mrb[69].mxu0 }
 0x45c   : > { %5930 = vst [vmem:[%s9187_s14 + $0x40] sm:$0xff] %v6299_v44  ;;  %v6300_v15 = vpack.c.bf16 %v5813_v57, %v5812_v11  ;;  %v5688_v56 = vadd.f32 %v5687_v38, %v9175_v10  ;;  %v5689_v2 = vpop.f32.mrb[70].mxu0  ;;  %p7362_p7 = pneg %p7361_p3 }
 0x45d   : > { %v5782_v37 = vadd.f32 %v5750_v8, %v5686_v58  ;;  %v5690_v20 = vadd.f32 %v5689_v2, %v9173_v12  ;;  %v5691_v7 = vpop.f32.mrb[71].mxu0 }
 0x45e   : > { %5931 = vst [vmem:[%s9187_s14 + $0x48] sm:$0xff] %v6300_v15  ;;  %v5783_v29 = vadd.f32 %v5751_v34, %v5688_v56  ;;  %v5692_v50 = vadd.f32 %v5691_v7, %v9175_v10  ;;  %p7369_p4 = pnand %p7368_p1, %p7362_p7 }
 0x45f   : > { %v5814_v18 = vmax.f32 %v5782_v37, 0.0  ;;  %v5784_v42 = vadd.f32 %v5752_v32, %v5690_v20 }
 0x460   : > { %v5815_v43 = vmax.f32 %v5783_v29, 0.0  ;;  %v5785_v14 = vadd.f32 %v5753_v54, %v5692_v50 }
 0x461   : > { %v5816_v26 = vmax.f32 %v5784_v42, 0.0 }
 0x462   : > { %v6301_v19 = vpack.c.bf16 %v5815_v43, %v5814_v18  ;;  %v5817_v41 = vmax.f32 %v5785_v14, 0.0  ;;  %v5695_v47 = vpop.f32.mrb[72].mxu0 }
 0x463   : > { %v5696_v48 = vadd.f32 %v5695_v47, %v9173_v12  ;;  %v5697_v30 = vpop.f32.mrb[73].mxu0 }
 0x464   : > { %5932 = vst [vmem:[%s9187_s14 + $0x50] sm:$0xff] %v6301_v19  ;;  %v6302_v4 = vpack.c.bf16 %v5817_v41, %v5816_v26  ;;  %v5698_v22 = vadd.f32 %v5697_v30, %v9175_v10  ;;  %v5699_v45 = vpop.f32.mrb[74].mxu0 }
 0x465   : > { %v5786_v60 = vadd.f32 %v5754_v35, %v5696_v48  ;;  %v5700_v63 = vadd.f32 %v5699_v45, %v9173_v12  ;;  %v5701_v27 = vpop.f32.mrb[75].mxu0 }
 0x466   : > { %5933 = vst [vmem:[%s9187_s14 + $0x58] sm:$0xff] %v6302_v4  ;;  %v5787_v23 = vadd.f32 %v5755_v21, %v5698_v22  ;;  %v5702_v16 = vadd.f32 %v5701_v27, %v9175_v10 }
 0x467   : > { %v5818_v13 = vmax.f32 %v5786_v60, 0.0  ;;  %v5788_v0 = vadd.f32 %v5756_v59, %v5700_v63 }
 0x468   : > { %v5819_v62 = vmax.f32 %v5787_v23, 0.0  ;;  %v5789_v28 = vadd.f32 %v5757_v25, %v5702_v16 }
 0x469   : > { %v5820_v31 = vmax.f32 %v5788_v0, 0.0 }
 0x46a   : > { %v6303_v55 = vpack.c.bf16 %v5819_v62, %v5818_v13  ;;  %v5821_v36 = vmax.f32 %v5789_v28, 0.0  ;;  %v5705_v52 = vpop.f32.mrb[76].mxu0 }
 0x46b   : > { %v5706_v40 = vadd.f32 %v5705_v52, %v9173_v12  ;;  %v5707_v5 = vpop.f32.mrb[77].mxu0 }
 0x46c   : > { %5934 = vst [vmem:[%s9187_s14 + $0x60] sm:$0xff] %v6303_v55  ;;  %v6304_v24 = vpack.c.bf16 %v5821_v36, %v5820_v31  ;;  %v5708_v33 = vadd.f32 %v5707_v5, %v9175_v10  ;;  %v5709_v6 = vpop.f32.mrb[78].mxu0 }
 0x46d   : > { %v5790_v61 = vadd.f32 %v5758_v51, %v5706_v40  ;;  %v5710_v11 = vadd.f32 %v5709_v6, %v9173_v12  ;;  %v5711_v8 = vpop.f32.mrb[79].mxu0 }
 0x46e   : > { %5935 = vst [vmem:[%s9187_s14 + $0x68] sm:$0xff] %v6304_v24  ;;  %v5791_v44 = vadd.f32 %v5759_v53, %v5708_v33  ;;  %v5712_v57 = vadd.f32 %v5711_v8, %v9175_v10 }
 0x46f   : > { %v5822_v39 = vmax.f32 %v5790_v61, 0.0  ;;  %v5792_v34 = vadd.f32 %v5760_v49, %v5710_v11 }
 0x470   : > { %v5823_v58 = vmax.f32 %v5791_v44, 0.0  ;;  %v5793_v38 = vadd.f32 %v5761_v17, %v5712_v57 }
 0x471   : > { %v5824_v32 = vmax.f32 %v5792_v34, 0.0 }
 0x472   : > { %v6305_v15 = vpack.c.bf16 %v5823_v58, %v5822_v39  ;;  %v5825_v56 = vmax.f32 %v5793_v38, 0.0 }
 0x474   : > { %5936 = vst [vmem:[%s9187_s14 + $0x70] sm:$0xff] %v6305_v15  ;;  %v6306_v12 = vpack.c.bf16 %v5825_v56, %v5824_v32 }
 0x476   : > { %5937 = vst [vmem:[%s9187_s14 + $0x78] sm:$0xff] %v6306_v12 }
 0x477   : > { %7372 = shalt.err (!%p7369_p4)
}
 0x478   : > { %s7373_s12 = scalar_lea.hbm %s9247_s18, 2048  ;;  %s7377_s20 = scalar_lea.hbm %s9303_s8, 4096 }
 0x479   : > { %p7374_p9 = scmp.ne.s32.totalorder %s9247_s18, %s7373_s12  ;;  %p7378_p8 = scmp.lt.u32.totalorder %s9247_s18, %s9303_s8 }
 0x47a   : > { %p7379_p13 = scmp.lt.u32.totalorder %s7377_s20, %s7373_s12  ;;  %p7381_p10 = scmp.lt.u32.totalorder %s7373_s12, %s9247_s18 }
 0x47b   : > { %p7375_p0 = pnand %p7374_p9, %p7649_p5 }
 0x47c   : > { %p7380_p6 = por %p7379_p13, %p7378_p8 }
 0x47d   : > { %p7376_p11 = pneg %p7375_p0 }
 0x47e   : > { %p7382_p3 = por %p7381_p10, %p7380_p6 }
 0x480   : > { %p7383_p7 = pnand %p7382_p3, %p7376_p11 }
 0x482   : > { %7386 = shalt.err (!%p7383_p7)
}
 0x483   : > { %s7454_s15 = smov 128   ;;  %s7455_s13 = smov 8  }
 0x484   : > { %6947 = dma.vmem_to_hbm [thread:$0]  (%p7649_p5), %s9249_s21, 2048, %s9247_s18, %s5939_s11, %s7454_s15, %s7454_s15, %s7455_s13  }
 0x485 PF: > { %s9428_s26 = sld [smem:[#allocation16_spill]]  ;;  %s9429_s9 = sld [smem:[#allocation17_spill]] }
 0x486   : > { %p9431_p2 = scmp.ge.s32.totalorder %s7433_s30, 2 }
 0x48b   : > { %s5968_s17 = sand.u32 1, %s9428_s26   ;;  %p9430_p12 = scmp.ne.s32.totalorder %s9429_s9, 0 }
 0x48c   : > { %s5969_s19 = scalar_lea.sflag [#allocation5], %s5968_s17 }
 0x48d   : > { %p6964_p1 = pnand %p9431_p2, %p9430_p12 }
 0x48f   : > { %7416 = dma.done.wait (!%p6964_p1), %s5969_s19, 2048  }
 0x490   : > { %7418 = vsyncadd (!%p6964_p1), %s5969_s19, 4294965248  ;;  %s9432_s12 = smov %s7635_s27  ;;  %p23_p4 = scmp.ge.s32.totalorder %s7635_s27, 4  }
 0x491   : > { %s9433_s27 = smov %s7425_s28  ;;  %s9434_s28 = smov %s7429_s29 }
 0x492   : > { %s9435_s29 = smov %s7645_s23  ;;  %s9436_s30 = smov %s9432_s12 }
 0x493   :  { %25 = sbr.rel (!%p23_p4) target bundleno = 7 (0x7), region = 109 }
 0x49a   :  { %5974 = vsyncpa [#allocation4], 1 }
 0x49b   :  { %5976 = vsyncpa [#allocation4 + $0x1], 1 }
 0x49c   :  { %5977 = vsyncpa [#allocation7], 1 }
 0x49d   :  { %5978 = vsyncpa [#allocation10], 1 }
 0x49e   :  { %5979 = vsyncpa [#allocation5], 1 }
 0x49f   :  { %5981 = vsyncpa [#allocation5 + $0x1], 1 }

</bundles_post_ra>
